<compile_context>
chip_gen: v7x
topology: tpu7x:2x2x1
jax: 0.10.0
libtpu: 0.0.40
codegen_flags: <defaults>
</compile_context>

<pallas_src>
import functools
import math

import jax
import jax.numpy as jnp
from jax.experimental import pallas as pl
from jax.experimental.pallas import tpu as pltpu


def _layernorm_f32(z, gamma, beta, eps=1e-5):
    """One-pass LayerNorm in fp32: var = E[z^2] - E[z]^2 (one reduce pair)."""
    zf = z.astype(jnp.float32)
    mu = jnp.mean(zf, axis=-1, keepdims=True)
    ms = jnp.mean(zf * zf, axis=-1, keepdims=True)
    var = ms - mu * mu
    inv = jax.lax.rsqrt(var + eps)
    return (zf - mu) * inv * gamma.astype(jnp.float32) + beta.astype(jnp.float32)


def encoder_block_kernel(
    xq_ref,                      # (1, TQ, D)  query-tile rows of x
    xf_ref,                      # (1, S,  D)  full sequence (for K/V)
    wq_ref, wk_ref, wv_ref,      # (D, D) each, no bias
    wo3_ref,                     # (H, hd, D)  out-proj split per head
    bo_ref,                      # (1, D)
    g1_ref, be1_ref,             # LayerNorm1 params (1, D)
    g2_ref, be2_ref,             # LayerNorm2 params (1, D)
    w1_ref, bf1_ref,             # (D, DFF), (1, DFF)
    w2_ref, bf2_ref,             # (DFF, D), (1, D)
    o_ref,                       # (1, TQ, D)
    *, n_heads: int, head_dim: int, approx_recip: bool,
):
    cdt = xq_ref.dtype           # MXU operand dtype (fp32 or bf16)
    f32 = jnp.float32
    H, hd = n_heads, head_dim

    xq = xq_ref[0]               # (TQ, D)
    xf = xf_ref[0]               # (S,  D)

    # ---- pre-norm + multi-head self-attention ----
    xn_q = _layernorm_f32(xq, g1_ref[...], be1_ref[...]).astype(cdt)   # (TQ, D)
    xn_f = _layernorm_f32(xf, g1_ref[...], be1_ref[...]).astype(cdt)   # (S,  D)

    # Full-width projections -> best MXU fill; fp32 accumulation.
    q = jnp.dot(xn_q, wq_ref[...], preferred_element_type=f32)         # (TQ, D)
    k = jnp.dot(xn_f, wk_ref[...], preferred_element_type=f32)         # (S,  D)
    v = jnp.dot(xn_f, wv_ref[...], preferred_element_type=f32)         # (S,  D)
    q = q * (1.0 / math.sqrt(hd))

    # Split heads into a leading batch axis (lane-aligned slices when hd%128==0),
    # then ONE batched contraction per stage instead of a per-head matmul loop.
    q3 = jnp.stack([q[:, h * hd:(h + 1) * hd] for h in range(H)], 0).astype(cdt)  # (H,TQ,hd)
    k3 = jnp.stack([k[:, h * hd:(h + 1) * hd] for h in range(H)], 0).astype(cdt)  # (H,S, hd)
    v3 = jnp.stack([v[:, h * hd:(h + 1) * hd] for h in range(H)], 0).astype(cdt)  # (H,S, hd)

    # Scores: contract trailing dims of both operands directly (no explicit k.T).
    s = jnp.einsum('hqc,hkc->hqk', q3, k3, preferred_element_type=f32)  # (H,TQ,S)

    # Softmax over keys (fp32); divide goes to the EUP via pl.reciprocal.
    m = jnp.max(s, axis=-1, keepdims=True)
    e = jnp.exp(s - m)
    denom = jnp.sum(e, axis=-1, keepdims=True)
    p = (e * pl.reciprocal(denom, approx=approx_recip)).astype(cdt)

    attn3 = jnp.einsum('hqk,hkc->hqc', p, v3, preferred_element_type=f32)          # (H,TQ,hd)

    # Output projection folded per head: concat(heads) @ Wo == sum_h head_h @ Wo[h]
    proj3 = jnp.einsum('hqc,hcd->hqd', attn3.astype(cdt), wo3_ref[...],
                       preferred_element_type=f32)                                 # (H,TQ,D)
    attn_out = jnp.sum(proj3, axis=0) + bo_ref[...].astype(f32)                    # (TQ, D)

    h1 = xq.astype(f32) + attn_out          # residual (dropout_rate = 0.0 -> identity)

    # ---- pre-norm + feed-forward (relu) ----
    hn = _layernorm_f32(h1, g2_ref[...], be2_ref[...]).astype(cdt)
    z = jnp.dot(hn, w1_ref[...], preferred_element_type=f32) + bf1_ref[...].astype(f32)
    z = jnp.maximum(z, 0.0).astype(cdt)     # keep (TQ, DFF) intermediate in compute dtype
    ff = jnp.dot(z, w2_ref[...], preferred_element_type=f32) + bf2_ref[...].astype(f32)

    o_ref[0] = (h1 + ff).astype(o_ref.dtype)


def _vmem_limit_bytes():
    try:
        cap = pltpu.get_tpu_info().vmem_capacity_bytes
    except Exception:
        cap = 64 * 1024 * 1024
    return int(min(96 * 1024 * 1024, 0.75 * cap))


def encoder_block(x, params, n_heads, *, tq=None, single_buffer_weights=True):
    B, S, D = x.shape
    assert D % n_heads == 0, "d_model must be divisible by n_heads"
    hd = D // n_heads
    DFF = params["w1"].shape[1]
    cdt = x.dtype                 # compute dtype follows x (pass bf16 x for bf16 MXU path)
    if tq is None:
        tq = min(S, 128)
    assert S % tq == 0 and tq % 8 == 0

    p = {k: jnp.asarray(v).astype(cdt) for k, v in params.items()}
    wo3 = p["wo"].reshape(n_heads, hd, D)     # rows [h*hd:(h+1)*hd] of Wo -> head h

    def _const_spec(shape):
        idx = lambda b, qi: (0,) * len(shape)
        if single_buffer_weights:
            # Grid-invariant operand: single-buffer to halve its VMEM footprint.
            return pl.BlockSpec(shape, idx, pipeline_mode=pl.Buffered(1))
        return pl.BlockSpec(shape, idx)

    kernel = functools.partial(
        encoder_block_kernel,
        n_heads=n_heads, head_dim=hd,
        approx_recip=bool(cdt != jnp.float32),
    )

    return pl.pallas_call(
        kernel,
        out_shape=jax.ShapeDtypeStruct((B, S, D), cdt),
        grid_spec=pltpu.PrefetchScalarGridSpec(
            num_scalar_prefetch=0,
            grid=(B, S // tq),
            in_specs=[
                pl.BlockSpec((1, tq, D), lambda b, qi: (b, qi, 0)),   # x (q tile)
                pl.BlockSpec((1, S, D), lambda b, qi: (b, 0, 0)),     # x (full seq, K/V)
                _const_spec((D, D)), _const_spec((D, D)), _const_spec((D, D)),  # wq wk wv
                _const_spec((n_heads, hd, D)), _const_spec((1, D)),             # wo3 bo
                _const_spec((1, D)), _const_spec((1, D)),                       # ln1 g,b
                _const_spec((1, D)), _const_spec((1, D)),                       # ln2 g,b
                _const_spec((D, DFF)), _const_spec((1, DFF)),                   # w1 b1
                _const_spec((DFF, D)), _const_spec((1, D)),                     # w2 b2
            ],
            out_specs=pl.BlockSpec((1, tq, D), lambda b, qi: (b, qi, 0)),
        ),
        compiler_params=pltpu.CompilerParams(
            dimension_semantics=("parallel", "parallel"),
            vmem_limit_bytes=_vmem_limit_bytes(),
        ),
    )(
        x, x,
        p["wq"], p["wk"], p["wv"],
        wo3, p["bo"],
        p["g1"], p["be1"],
        p["g2"], p["be2"],
        p["w1"], p["bf1"],
        p["w2"], p["bf2"],
    )


def encoder_block_ref(x, p, n_heads):
    """Pure-JAX fp32 reference for verification."""
    def ln(z, g, b):
        mu = jnp.mean(z, -1, keepdims=True)
        var = jnp.mean((z - mu) ** 2, -1, keepdims=True)
        return (z - mu) * jax.lax.rsqrt(var + 1e-5) * g + b

    B, S, D = x.shape
    hd = D // n_heads
    xn = ln(x, p["g1"], p["be1"])
    q = xn @ p["wq"]
    k = xn @ p["wk"]
    v = xn @ p["wv"]
    q = q.reshape(B, S, n_heads, hd).transpose(0, 2, 1, 3)
    k = k.reshape(B, S, n_heads, hd).transpose(0, 2, 1, 3)
    v = v.reshape(B, S, n_heads, hd).transpose(0, 2, 1, 3)
    scores = jnp.einsum("bhqd,bhkd->bhqk", q, k) / (hd ** 0.5)
    w = jax.nn.softmax(scores, axis=-1)
    attn = jnp.einsum("bhqk,bhkd->bhqd", w, v)
    attn = attn.transpose(0, 2, 1, 3).reshape(B, S, D)
    attn = attn @ p["wo"] + p["bo"]
    h1 = x + attn
    hn = ln(h1, p["g2"], p["be2"])
    ff = jnp.maximum(hn @ p["w1"] + p["bf1"], 0.0) @ p["w2"] + p["bf2"]
    return h1 + ff


if __name__ == "__main__":
    # Small but TPU-aligned shapes: head_dim = 128 (lane-aligned), TQ multiple of 8/16.
    B, S, D, H = 2, 64, 256, 2
    DFF = 4 * D
    TQ = 32

    key = jax.random.PRNGKey(0)
    ks = jax.random.split(key, 16)
    sc = 0.05
    params = {
        "wq": jax.random.normal(ks[0], (D, D), jnp.float32) * sc,
        "wk": jax.random.normal(ks[1], (D, D), jnp.float32) * sc,
        "wv": jax.random.normal(ks[2], (D, D), jnp.float32) * sc,
        "wo": jax.random.normal(ks[3], (D, D), jnp.float32) * sc,
        "bo": jax.random.normal(ks[4], (1, D), jnp.float32) * sc,
        "g1": 1.0 + 0.1 * jax.random.normal(ks[5], (1, D), jnp.float32),
        "be1": 0.1 * jax.random.normal(ks[6], (1, D), jnp.float32),
        "g2": 1.0 + 0.1 * jax.random.normal(ks[7], (1, D), jnp.float32),
        "be2": 0.1 * jax.random.normal(ks[8], (1, D), jnp.float32),
        "w1": jax.random.normal(ks[9], (D, DFF), jnp.float32) * sc,
        "bf1": jax.random.normal(ks[10], (1, DFF), jnp.float32) * sc,
        "w2": jax.random.normal(ks[11], (DFF, D), jnp.float32) * sc,
        "bf2": jax.random.normal(ks[12], (1, D), jnp.float32) * sc,
    }
    x = jax.random.normal(ks[13], (B, S, D), jnp.float32)

    ref = encoder_block_ref(x, params, n_heads=H)

    # fp32 run (strict check).  Falls back to default double-buffered weights if
    # the installed JAX rejects pl.Buffered(1) single-buffering.
    try:
        out = jax.block_until_ready(
            encoder_block(x, params, n_heads=H, tq=TQ, single_buffer_weights=True))
        sb = True
    except Exception:
        out = jax.block_until_ready(
            encoder_block(x, params, n_heads=H, tq=TQ, single_buffer_weights=False))
        sb = False

    assert out.shape == (B, S, D)
    assert jnp.allclose(out, ref, atol=5e-4, rtol=5e-4), "fp32 mismatch vs JAX reference"

    # bf16 compute path (bf16 MXU matmuls, fp32 accumulation / LN / softmax).
    out16 = jax.block_until_ready(
        encoder_block(x.astype(jnp.bfloat16), params, n_heads=H, tq=TQ,
                      single_buffer_weights=sb))
    assert out16.shape == (B, S, D) and out16.dtype == jnp.bfloat16
    assert jnp.allclose(out16.astype(jnp.float32), ref, atol=2e-1, rtol=2e-1), \
        "bf16 mismatch vs JAX reference"

    print("KERNEL_OK")
</pallas_src>

<mosaic_0001>
module attributes {stable_mosaic.version = 11 : i64} {
  func.func @encoder_block_kernel(%arg0: i32, %arg1: i32, %arg2: memref<1x32x256xf32, #tpu.memory_space<vmem>>, %arg3: memref<1x64x256xf32, #tpu.memory_space<vmem>>, %arg4: memref<256x256xf32, #tpu.memory_space<vmem>>, %arg5: memref<256x256xf32, #tpu.memory_space<vmem>>, %arg6: memref<256x256xf32, #tpu.memory_space<vmem>>, %arg7: memref<2x128x256xf32, #tpu.memory_space<vmem>>, %arg8: memref<1x256xf32, #tpu.memory_space<vmem>>, %arg9: memref<1x256xf32, #tpu.memory_space<vmem>>, %arg10: memref<1x256xf32, #tpu.memory_space<vmem>>, %arg11: memref<1x256xf32, #tpu.memory_space<vmem>>, %arg12: memref<1x256xf32, #tpu.memory_space<vmem>>, %arg13: memref<256x1024xf32, #tpu.memory_space<vmem>>, %arg14: memref<1x1024xf32, #tpu.memory_space<vmem>>, %arg15: memref<1024x256xf32, #tpu.memory_space<vmem>>, %arg16: memref<1x256xf32, #tpu.memory_space<vmem>>, %arg17: memref<1x32x256xf32, #tpu.memory_space<vmem>>) attributes {dimension_semantics = [#tpu.dimension_semantics<parallel>, #tpu.dimension_semantics<parallel>], iteration_bounds = array<i64: 2, 2>, scalar_prefetch = 0 : i64, scratch_operands = 0 : i64, tpu.core_type = #tpu.core_type<tc>, window_params = [{transform_indices = @transform_0, window_bounds = array<i64: 1, 32, 256>}, {transform_indices = @transform_1, window_bounds = array<i64: 1, 64, 256>}, {pipeline_mode = #tpu.pipeline_mode<synchronous>, transform_indices = @transform_2, window_bounds = array<i64: 256, 256>}, {pipeline_mode = #tpu.pipeline_mode<synchronous>, transform_indices = @transform_3, window_bounds = array<i64: 256, 256>}, {pipeline_mode = #tpu.pipeline_mode<synchronous>, transform_indices = @transform_4, window_bounds = array<i64: 256, 256>}, {pipeline_mode = #tpu.pipeline_mode<synchronous>, transform_indices = @transform_5, window_bounds = array<i64: 2, 128, 256>}, {pipeline_mode = #tpu.pipeline_mode<synchronous>, transform_indices = @transform_6, window_bounds = array<i64: 1, 256>}, {pipeline_mode = #tpu.pipeline_mode<synchronous>, transform_indices = @transform_7, window_bounds = array<i64: 1, 256>}, {pipeline_mode = #tpu.pipeline_mode<synchronous>, transform_indices = @transform_8, window_bounds = array<i64: 1, 256>}, {pipeline_mode = #tpu.pipeline_mode<synchronous>, transform_indices = @transform_9, window_bounds = array<i64: 1, 256>}, {pipeline_mode = #tpu.pipeline_mode<synchronous>, transform_indices = @transform_10, window_bounds = array<i64: 1, 256>}, {pipeline_mode = #tpu.pipeline_mode<synchronous>, transform_indices = @transform_11, window_bounds = array<i64: 256, 1024>}, {pipeline_mode = #tpu.pipeline_mode<synchronous>, transform_indices = @transform_12, window_bounds = array<i64: 1, 1024>}, {pipeline_mode = #tpu.pipeline_mode<synchronous>, transform_indices = @transform_13, window_bounds = array<i64: 1024, 256>}, {pipeline_mode = #tpu.pipeline_mode<synchronous>, transform_indices = @transform_14, window_bounds = array<i64: 1, 256>}, {transform_indices = @transform_15, window_bounds = array<i64: 1, 32, 256>}]} {
    %c0 = arith.constant 0 : index
    %c0_0 = arith.constant 0 : index
    %c0_1 = arith.constant 0 : index
    %0 = vector.load %arg2[%c0, %c0_0, %c0_1] : memref<1x32x256xf32, #tpu.memory_space<vmem>>, vector<1x32x256xf32>
    %1 = vector.shape_cast %0 : vector<1x32x256xf32> to vector<32x256xf32>
    %c0_2 = arith.constant 0 : index
    %c0_3 = arith.constant 0 : index
    %c0_4 = arith.constant 0 : index
    %2 = vector.load %arg3[%c0_2, %c0_3, %c0_4] : memref<1x64x256xf32, #tpu.memory_space<vmem>>, vector<1x64x256xf32>
    %3 = vector.shape_cast %2 : vector<1x64x256xf32> to vector<64x256xf32>
    %c0_5 = arith.constant 0 : index
    %c0_6 = arith.constant 0 : index
    %4 = vector.load %arg9[%c0_5, %c0_6] : memref<1x256xf32, #tpu.memory_space<vmem>>, vector<1x256xf32>
    %c0_7 = arith.constant 0 : index
    %c0_8 = arith.constant 0 : index
    %5 = vector.load %arg10[%c0_7, %c0_8] : memref<1x256xf32, #tpu.memory_space<vmem>>, vector<1x256xf32>
    %cst = arith.constant dense<0.000000e+00> : vector<32xf32>
    %6 = vector.multi_reduction <add>, %1, %cst [1] : vector<32x256xf32> to vector<32xf32>
    %7 = vector.shape_cast %6 : vector<32xf32> to vector<32x1xf32>
    %cst_9 = arith.constant 2.560000e+02 : f32
    %8 = vector.broadcast %cst_9 : f32 to vector<32x1xf32>
    %9 = arith.divf %7, %8 : vector<32x1xf32>
    %10 = arith.mulf %1, %1 : vector<32x256xf32>
    %cst_10 = arith.constant dense<0.000000e+00> : vector<32xf32>
    %11 = vector.multi_reduction <add>, %10, %cst_10 [1] : vector<32x256xf32> to vector<32xf32>
    %12 = vector.shape_cast %11 : vector<32xf32> to vector<32x1xf32>
    %cst_11 = arith.constant 2.560000e+02 : f32
    %13 = vector.broadcast %cst_11 : f32 to vector<32x1xf32>
    %14 = arith.divf %12, %13 : vector<32x1xf32>
    %15 = arith.mulf %9, %9 : vector<32x1xf32>
    %16 = arith.subf %14, %15 : vector<32x1xf32>
    %cst_12 = arith.constant 9.99999974E-6 : f32
    %17 = vector.broadcast %cst_12 : f32 to vector<32x1xf32>
    %18 = arith.addf %16, %17 : vector<32x1xf32>
    %19 = math.rsqrt %18 : vector<32x1xf32>
    %20 = vector.broadcast %9 : vector<32x1xf32> to vector<32x256xf32>
    %21 = arith.subf %1, %20 : vector<32x256xf32>
    %22 = vector.broadcast %19 : vector<32x1xf32> to vector<32x256xf32>
    %23 = arith.mulf %21, %22 : vector<32x256xf32>
    %24 = vector.broadcast %4 : vector<1x256xf32> to vector<32x256xf32>
    %25 = arith.mulf %23, %24 : vector<32x256xf32>
    %26 = vector.broadcast %5 : vector<1x256xf32> to vector<32x256xf32>
    %27 = arith.addf %25, %26 : vector<32x256xf32>
    %c0_13 = arith.constant 0 : index
    %c0_14 = arith.constant 0 : index
    %28 = vector.load %arg9[%c0_13, %c0_14] : memref<1x256xf32, #tpu.memory_space<vmem>>, vector<1x256xf32>
    %c0_15 = arith.constant 0 : index
    %c0_16 = arith.constant 0 : index
    %29 = vector.load %arg10[%c0_15, %c0_16] : memref<1x256xf32, #tpu.memory_space<vmem>>, vector<1x256xf32>
    %cst_17 = arith.constant dense<0.000000e+00> : vector<64xf32>
    %30 = vector.multi_reduction <add>, %3, %cst_17 [1] : vector<64x256xf32> to vector<64xf32>
    %31 = vector.shape_cast %30 : vector<64xf32> to vector<64x1xf32>
    %cst_18 = arith.constant 2.560000e+02 : f32
    %32 = vector.broadcast %cst_18 : f32 to vector<64x1xf32>
    %33 = arith.divf %31, %32 : vector<64x1xf32>
    %34 = arith.mulf %3, %3 : vector<64x256xf32>
    %cst_19 = arith.constant dense<0.000000e+00> : vector<64xf32>
    %35 = vector.multi_reduction <add>, %34, %cst_19 [1] : vector<64x256xf32> to vector<64xf32>
    %36 = vector.shape_cast %35 : vector<64xf32> to vector<64x1xf32>
    %cst_20 = arith.constant 2.560000e+02 : f32
    %37 = vector.broadcast %cst_20 : f32 to vector<64x1xf32>
    %38 = arith.divf %36, %37 : vector<64x1xf32>
    %39 = arith.mulf %33, %33 : vector<64x1xf32>
    %40 = arith.subf %38, %39 : vector<64x1xf32>
    %cst_21 = arith.constant 9.99999974E-6 : f32
    %41 = vector.broadcast %cst_21 : f32 to vector<64x1xf32>
    %42 = arith.addf %40, %41 : vector<64x1xf32>
    %43 = math.rsqrt %42 : vector<64x1xf32>
    %44 = vector.broadcast %33 : vector<64x1xf32> to vector<64x256xf32>
    %45 = arith.subf %3, %44 : vector<64x256xf32>
    %46 = vector.broadcast %43 : vector<64x1xf32> to vector<64x256xf32>
    %47 = arith.mulf %45, %46 : vector<64x256xf32>
    %48 = vector.broadcast %28 : vector<1x256xf32> to vector<64x256xf32>
    %49 = arith.mulf %47, %48 : vector<64x256xf32>
    %50 = vector.broadcast %29 : vector<1x256xf32> to vector<64x256xf32>
    %51 = arith.addf %49, %50 : vector<64x256xf32>
    %c0_22 = arith.constant 0 : index
    %c0_23 = arith.constant 0 : index
    %52 = vector.load %arg4[%c0_22, %c0_23] : memref<256x256xf32, #tpu.memory_space<vmem>>, vector<256x256xf32>
    %cst_24 = arith.constant dense<0.000000e+00> : vector<32x256xf32>
    %53 = tpu.matmul %27, %52, %cst_24 {dimension_numbers = #tpu.dot_dimension_numbers<[1], [0], [0], [1], [0, 0, 1, 1], [], []>} : vector<32x256xf32>, vector<256x256xf32>, vector<32x256xf32> -> vector<32x256xf32>
    %c0_25 = arith.constant 0 : index
    %c0_26 = arith.constant 0 : index
    %54 = vector.load %arg5[%c0_25, %c0_26] : memref<256x256xf32, #tpu.memory_space<vmem>>, vector<256x256xf32>
    %cst_27 = arith.constant dense<0.000000e+00> : vector<64x256xf32>
    %55 = tpu.matmul %51, %54, %cst_27 {dimension_numbers = #tpu.dot_dimension_numbers<[1], [0], [0], [1], [0, 0, 1, 1], [], []>} : vector<64x256xf32>, vector<256x256xf32>, vector<64x256xf32> -> vector<64x256xf32>
    %c0_28 = arith.constant 0 : index
    %c0_29 = arith.constant 0 : index
    %56 = vector.load %arg6[%c0_28, %c0_29] : memref<256x256xf32, #tpu.memory_space<vmem>>, vector<256x256xf32>
    %cst_30 = arith.constant dense<0.000000e+00> : vector<64x256xf32>
    %57 = tpu.matmul %51, %56, %cst_30 {dimension_numbers = #tpu.dot_dimension_numbers<[1], [0], [0], [1], [0, 0, 1, 1], [], []>} : vector<64x256xf32>, vector<256x256xf32>, vector<64x256xf32> -> vector<64x256xf32>
    %cst_31 = arith.constant 0.0883883461 : f32
    %58 = vector.broadcast %cst_31 : f32 to vector<32x256xf32>
    %59 = arith.mulf %53, %58 : vector<32x256xf32>
    %60 = vector.extract_strided_slice %59 {offsets = [0, 0], sizes = [32, 128], strides = [1, 1]} : vector<32x256xf32> to vector<32x128xf32>
    %61 = vector.extract_strided_slice %59 {offsets = [0, 128], sizes = [32, 128], strides = [1, 1]} : vector<32x256xf32> to vector<32x128xf32>
    %62 = vector.shape_cast %60 : vector<32x128xf32> to vector<1x32x128xf32>
    %63 = vector.shape_cast %61 : vector<32x128xf32> to vector<1x32x128xf32>
    %64 = tpu.concatenate %62, %63 in 0 : vector<1x32x128xf32>, vector<1x32x128xf32> -> vector<2x32x128xf32>
    %65 = vector.extract_strided_slice %55 {offsets = [0, 0], sizes = [64, 128], strides = [1, 1]} : vector<64x256xf32> to vector<64x128xf32>
    %66 = vector.extract_strided_slice %55 {offsets = [0, 128], sizes = [64, 128], strides = [1, 1]} : vector<64x256xf32> to vector<64x128xf32>
    %67 = vector.shape_cast %65 : vector<64x128xf32> to vector<1x64x128xf32>
    %68 = vector.shape_cast %66 : vector<64x128xf32> to vector<1x64x128xf32>
    %69 = tpu.concatenate %67, %68 in 0 : vector<1x64x128xf32>, vector<1x64x128xf32> -> vector<2x64x128xf32>
    %70 = vector.extract_strided_slice %57 {offsets = [0, 0], sizes = [64, 128], strides = [1, 1]} : vector<64x256xf32> to vector<64x128xf32>
    %71 = vector.extract_strided_slice %57 {offsets = [0, 128], sizes = [64, 128], strides = [1, 1]} : vector<64x256xf32> to vector<64x128xf32>
    %72 = vector.shape_cast %70 : vector<64x128xf32> to vector<1x64x128xf32>
    %73 = vector.shape_cast %71 : vector<64x128xf32> to vector<1x64x128xf32>
    %74 = tpu.concatenate %72, %73 in 0 : vector<1x64x128xf32>, vector<1x64x128xf32> -> vector<2x64x128xf32>
    "tpu.trace_start"() <{level = 10 : i32, message = "hqc,hkc->hqk"}> : () -> ()
    %cst_32 = arith.constant dense<0.000000e+00> : vector<2x32x64xf32>
    %75 = tpu.matmul %64, %69, %cst_32 {dimension_numbers = #tpu.dot_dimension_numbers<[2], [2], [1], [1], [0, 0, 0, 1, 1, 1], [0], [0]>} : vector<2x32x128xf32>, vector<2x64x128xf32>, vector<2x32x64xf32> -> vector<2x32x64xf32>
    "tpu.trace_stop"() : () -> ()
    %cst_33 = arith.constant dense<0xFF800000> : vector<2x32xf32>
    %76 = vector.multi_reduction <maximumf>, %75, %cst_33 [2] : vector<2x32x64xf32> to vector<2x32xf32>
    %77 = vector.shape_cast %76 : vector<2x32xf32> to vector<2x32x1xf32>
    %78 = vector.broadcast %77 : vector<2x32x1xf32> to vector<2x32x64xf32>
    %79 = arith.subf %75, %78 : vector<2x32x64xf32>
    %80 = math.exp %79 : vector<2x32x64xf32>
    %cst_34 = arith.constant dense<0.000000e+00> : vector<2x32xf32>
    %81 = vector.multi_reduction <add>, %80, %cst_34 [2] : vector<2x32x64xf32> to vector<2x32xf32>
    %82 = vector.shape_cast %81 : vector<2x32xf32> to vector<2x32x1xf32>
    %83 = tpu.reciprocal %82 : vector<2x32x1xf32> -> vector<2x32x1xf32>
    %84 = vector.broadcast %83 : vector<2x32x1xf32> to vector<2x32x64xf32>
    %85 = arith.mulf %80, %84 : vector<2x32x64xf32>
    "tpu.trace_start"() <{level = 10 : i32, message = "hqk,hkc->hqc"}> : () -> ()
    %cst_35 = arith.constant dense<0.000000e+00> : vector<2x32x128xf32>
    %86 = tpu.matmul %85, %74, %cst_35 {dimension_numbers = #tpu.dot_dimension_numbers<[2], [1], [1], [2], [0, 0, 0, 1, 1, 2], [0], [0]>} : vector<2x32x64xf32>, vector<2x64x128xf32>, vector<2x32x128xf32> -> vector<2x32x128xf32>
    "tpu.trace_stop"() : () -> ()
    %c0_36 = arith.constant 0 : index
    %c0_37 = arith.constant 0 : index
    %c0_38 = arith.constant 0 : index
    %87 = vector.load %arg7[%c0_36, %c0_37, %c0_38] : memref<2x128x256xf32, #tpu.memory_space<vmem>>, vector<2x128x256xf32>
    "tpu.trace_start"() <{level = 10 : i32, message = "hqc,hcd->hqd"}> : () -> ()
    %cst_39 = arith.constant dense<0.000000e+00> : vector<2x32x256xf32>
    %88 = tpu.matmul %86, %87, %cst_39 {dimension_numbers = #tpu.dot_dimension_numbers<[2], [1], [1], [2], [0, 0, 0, 1, 1, 2], [0], [0]>} : vector<2x32x128xf32>, vector<2x128x256xf32>, vector<2x32x256xf32> -> vector<2x32x256xf32>
    "tpu.trace_stop"() : () -> ()
    %cst_40 = arith.constant dense<0.000000e+00> : vector<32x256xf32>
    %89 = vector.multi_reduction <add>, %88, %cst_40 [0] : vector<2x32x256xf32> to vector<32x256xf32>
    %c0_41 = arith.constant 0 : index
    %c0_42 = arith.constant 0 : index
    %90 = vector.load %arg8[%c0_41, %c0_42] : memref<1x256xf32, #tpu.memory_space<vmem>>, vector<1x256xf32>
    %91 = vector.broadcast %90 : vector<1x256xf32> to vector<32x256xf32>
    %92 = arith.addf %89, %91 : vector<32x256xf32>
    %93 = arith.addf %1, %92 : vector<32x256xf32>
    %c0_43 = arith.constant 0 : index
    %c0_44 = arith.constant 0 : index
    %94 = vector.load %arg11[%c0_43, %c0_44] : memref<1x256xf32, #tpu.memory_space<vmem>>, vector<1x256xf32>
    %c0_45 = arith.constant 0 : index
    %c0_46 = arith.constant 0 : index
    %95 = vector.load %arg12[%c0_45, %c0_46] : memref<1x256xf32, #tpu.memory_space<vmem>>, vector<1x256xf32>
    %cst_47 = arith.constant dense<0.000000e+00> : vector<32xf32>
    %96 = vector.multi_reduction <add>, %93, %cst_47 [1] : vector<32x256xf32> to vector<32xf32>
    %97 = vector.shape_cast %96 : vector<32xf32> to vector<32x1xf32>
    %cst_48 = arith.constant 2.560000e+02 : f32
    %98 = vector.broadcast %cst_48 : f32 to vector<32x1xf32>
    %99 = arith.divf %97, %98 : vector<32x1xf32>
    %100 = arith.mulf %93, %93 : vector<32x256xf32>
    %cst_49 = arith.constant dense<0.000000e+00> : vector<32xf32>
    %101 = vector.multi_reduction <add>, %100, %cst_49 [1] : vector<32x256xf32> to vector<32xf32>
    %102 = vector.shape_cast %101 : vector<32xf32> to vector<32x1xf32>
    %cst_50 = arith.constant 2.560000e+02 : f32
    %103 = vector.broadcast %cst_50 : f32 to vector<32x1xf32>
    %104 = arith.divf %102, %103 : vector<32x1xf32>
    %105 = arith.mulf %99, %99 : vector<32x1xf32>
    %106 = arith.subf %104, %105 : vector<32x1xf32>
    %cst_51 = arith.constant 9.99999974E-6 : f32
    %107 = vector.broadcast %cst_51 : f32 to vector<32x1xf32>
    %108 = arith.addf %106, %107 : vector<32x1xf32>
    %109 = math.rsqrt %108 : vector<32x1xf32>
    %110 = vector.broadcast %99 : vector<32x1xf32> to vector<32x256xf32>
    %111 = arith.subf %93, %110 : vector<32x256xf32>
    %112 = vector.broadcast %109 : vector<32x1xf32> to vector<32x256xf32>
    %113 = arith.mulf %111, %112 : vector<32x256xf32>
    %114 = vector.broadcast %94 : vector<1x256xf32> to vector<32x256xf32>
    %115 = arith.mulf %113, %114 : vector<32x256xf32>
    %116 = vector.broadcast %95 : vector<1x256xf32> to vector<32x256xf32>
    %117 = arith.addf %115, %116 : vector<32x256xf32>
    %c0_52 = arith.constant 0 : index
    %c0_53 = arith.constant 0 : index
    %118 = vector.load %arg13[%c0_52, %c0_53] : memref<256x1024xf32, #tpu.memory_space<vmem>>, vector<256x1024xf32>
    %cst_54 = arith.constant dense<0.000000e+00> : vector<32x1024xf32>
    %119 = tpu.matmul %117, %118, %cst_54 {dimension_numbers = #tpu.dot_dimension_numbers<[1], [0], [0], [1], [0, 0, 1, 1], [], []>} : vector<32x256xf32>, vector<256x1024xf32>, vector<32x1024xf32> -> vector<32x1024xf32>
    %c0_55 = arith.constant 0 : index
    %c0_56 = arith.constant 0 : index
    %120 = vector.load %arg14[%c0_55, %c0_56] : memref<1x1024xf32, #tpu.memory_space<vmem>>, vector<1x1024xf32>
    %121 = vector.broadcast %120 : vector<1x1024xf32> to vector<32x1024xf32>
    %122 = arith.addf %119, %121 : vector<32x1024xf32>
    %cst_57 = arith.constant 0.000000e+00 : f32
    %123 = vector.broadcast %cst_57 : f32 to vector<32x1024xf32>
    %124 = arith.maximumf %122, %123 : vector<32x1024xf32>
    %c0_58 = arith.constant 0 : index
    %c0_59 = arith.constant 0 : index
    %125 = vector.load %arg15[%c0_58, %c0_59] : memref<1024x256xf32, #tpu.memory_space<vmem>>, vector<1024x256xf32>
    %cst_60 = arith.constant dense<0.000000e+00> : vector<32x256xf32>
    %126 = tpu.matmul %124, %125, %cst_60 {dimension_numbers = #tpu.dot_dimension_numbers<[1], [0], [0], [1], [0, 0, 1, 1], [], []>} : vector<32x1024xf32>, vector<1024x256xf32>, vector<32x256xf32> -> vector<32x256xf32>
    %c0_61 = arith.constant 0 : index
    %c0_62 = arith.constant 0 : index
    %127 = vector.load %arg16[%c0_61, %c0_62] : memref<1x256xf32, #tpu.memory_space<vmem>>, vector<1x256xf32>
    %128 = vector.broadcast %127 : vector<1x256xf32> to vector<32x256xf32>
    %129 = arith.addf %126, %128 : vector<32x256xf32>
    %130 = arith.addf %93, %129 : vector<32x256xf32>
    %c0_63 = arith.constant 0 : index
    %c0_64 = arith.constant 0 : index
    %c0_65 = arith.constant 0 : index
    %131 = vector.load %arg17[%c0_63, %c0_64, %c0_65] : memref<1x32x256xf32, #tpu.memory_space<vmem>>, vector<1x32x256xf32>
    %132 = vector.shape_cast %131 : vector<1x32x256xf32> to vector<32x256xf32>
    %133 = vector.shape_cast %130 : vector<32x256xf32> to vector<1x32x256xf32>
    tpu.vector_store %arg17[%c0_63, %c0_64, %c0_65], %133 {strides = array<i32>} : memref<1x32x256xf32, #tpu.memory_space<vmem>>, vector<1x32x256xf32>,
    return
  }
  func.func @transform_0(%arg0: i32, %arg1: i32) -> (i32, i32, i32) {
    %c0_i32 = arith.constant 0 : i32
    %c0_i32_0 = arith.constant 0 : i32
    return %arg0, %arg1, %c0_i32 : i32, i32, i32
  }
  func.func @transform_1(%arg0: i32, %arg1: i32) -> (i32, i32, i32) {
    %c0_i32 = arith.constant 0 : i32
    %c0_i32_0 = arith.constant 0 : i32
    %c0_i32_1 = arith.constant 0 : i32
    return %arg0, %c0_i32, %c0_i32_0 : i32, i32, i32
  }
  func.func @transform_2(%arg0: i32, %arg1: i32) -> (i32, i32) {
    %c0_i32 = arith.constant 0 : i32
    %c0_i32_0 = arith.constant 0 : i32
    %c0_i32_1 = arith.constant 0 : i32
    return %c0_i32, %c0_i32_0 : i32, i32
  }
  func.func @transform_3(%arg0: i32, %arg1: i32) -> (i32, i32) {
    %c0_i32 = arith.constant 0 : i32
    %c0_i32_0 = arith.constant 0 : i32
    %c0_i32_1 = arith.constant 0 : i32
    return %c0_i32, %c0_i32_0 : i32, i32
  }
  func.func @transform_4(%arg0: i32, %arg1: i32) -> (i32, i32) {
    %c0_i32 = arith.constant 0 : i32
    %c0_i32_0 = arith.constant 0 : i32
    %c0_i32_1 = arith.constant 0 : i32
    return %c0_i32, %c0_i32_0 : i32, i32
  }
  func.func @transform_5(%arg0: i32, %arg1: i32) -> (i32, i32, i32) {
    %c0_i32 = arith.constant 0 : i32
    %c0_i32_0 = arith.constant 0 : i32
    %c0_i32_1 = arith.constant 0 : i32
    %c0_i32_2 = arith.constant 0 : i32
    return %c0_i32, %c0_i32_0, %c0_i32_1 : i32, i32, i32
  }
  func.func @transform_6(%arg0: i32, %arg1: i32) -> (i32, i32) {
    %c0_i32 = arith.constant 0 : i32
    %c0_i32_0 = arith.constant 0 : i32
    %c0_i32_1 = arith.constant 0 : i32
    return %c0_i32, %c0_i32_0 : i32, i32
  }
  func.func @transform_7(%arg0: i32, %arg1: i32) -> (i32, i32) {
    %c0_i32 = arith.constant 0 : i32
    %c0_i32_0 = arith.constant 0 : i32
    %c0_i32_1 = arith.constant 0 : i32
    return %c0_i32, %c0_i32_0 : i32, i32
  }
  func.func @transform_8(%arg0: i32, %arg1: i32) -> (i32, i32) {
    %c0_i32 = arith.constant 0 : i32
    %c0_i32_0 = arith.constant 0 : i32
    %c0_i32_1 = arith.constant 0 : i32
    return %c0_i32, %c0_i32_0 : i32, i32
  }
  func.func @transform_9(%arg0: i32, %arg1: i32) -> (i32, i32) {
    %c0_i32 = arith.constant 0 : i32
    %c0_i32_0 = arith.constant 0 : i32
    %c0_i32_1 = arith.constant 0 : i32
    return %c0_i32, %c0_i32_0 : i32, i32
  }
  func.func @transform_10(%arg0: i32, %arg1: i32) -> (i32, i32) {
    %c0_i32 = arith.constant 0 : i32
    %c0_i32_0 = arith.constant 0 : i32
    %c0_i32_1 = arith.constant 0 : i32
    return %c0_i32, %c0_i32_0 : i32, i32
  }
  func.func @transform_11(%arg0: i32, %arg1: i32) -> (i32, i32) {
    %c0_i32 = arith.constant 0 : i32
    %c0_i32_0 = arith.constant 0 : i32
    %c0_i32_1 = arith.constant 0 : i32
    return %c0_i32, %c0_i32_0 : i32, i32
  }
  func.func @transform_12(%arg0: i32, %arg1: i32) -> (i32, i32) {
    %c0_i32 = arith.constant 0 : i32
    %c0_i32_0 = arith.constant 0 : i32
    %c0_i32_1 = arith.constant 0 : i32
    return %c0_i32, %c0_i32_0 : i32, i32
  }
  func.func @transform_13(%arg0: i32, %arg1: i32) -> (i32, i32) {
    %c0_i32 = arith.constant 0 : i32
    %c0_i32_0 = arith.constant 0 : i32
    %c0_i32_1 = arith.constant 0 : i32
    return %c0_i32, %c0_i32_0 : i32, i32
  }
  func.func @transform_14(%arg0: i32, %arg1: i32) -> (i32, i32) {
    %c0_i32 = arith.constant 0 : i32
    %c0_i32_0 = arith.constant 0 : i32
    %c0_i32_1 = arith.constant 0 : i32
    return %c0_i32, %c0_i32_0 : i32, i32
  }
  func.func @transform_15(%arg0: i32, %arg1: i32) -> (i32, i32, i32) {
    %c0_i32 = arith.constant 0 : i32
    %c0_i32_0 = arith.constant 0 : i32
    return %arg0, %arg1, %c0_i32 : i32, i32, i32
  }
}

module attributes {stable_mosaic.version = 11 : i64} {
  func.func @encoder_block_kernel(%arg0: i32, %arg1: i32, %arg2: memref<1x32x256xf32, #tpu.memory_space<vmem>>, %arg3: memref<1x64x256xf32, #tpu.memory_space<vmem>>, %arg4: memref<256x256xf32, #tpu.memory_space<vmem>>, %arg5: memref<256x256xf32, #tpu.memory_space<vmem>>, %arg6: memref<256x256xf32, #tpu.memory_space<vmem>>, %arg7: memref<2x128x256xf32, #tpu.memory_space<vmem>>, %arg8: memref<1x256xf32, #tpu.memory_space<vmem>>, %arg9: memref<1x256xf32, #tpu.memory_space<vmem>>, %arg10: memref<1x256xf32, #tpu.memory_space<vmem>>, %arg11: memref<1x256xf32, #tpu.memory_space<vmem>>, %arg12: memref<1x256xf32, #tpu.memory_space<vmem>>, %arg13: memref<256x1024xf32, #tpu.memory_space<vmem>>, %arg14: memref<1x1024xf32, #tpu.memory_space<vmem>>, %arg15: memref<1024x256xf32, #tpu.memory_space<vmem>>, %arg16: memref<1x256xf32, #tpu.memory_space<vmem>>, %arg17: memref<1x32x256xf32, #tpu.memory_space<vmem>>) attributes {dimension_semantics = [#tpu.dimension_semantics<parallel>, #tpu.dimension_semantics<parallel>], iteration_bounds = array<i64: 2, 2>, scalar_prefetch = 0 : i64, scratch_operands = 0 : i64, tpu.core_type = #tpu.core_type<tc>, window_params = [{transform_indices = @transform_0, window_bounds = array<i64: 1, 32, 256>}, {transform_indices = @transform_1, window_bounds = array<i64: 1, 64, 256>}, {pipeline_mode = #tpu.pipeline_mode<synchronous>, transform_indices = @transform_2, window_bounds = array<i64: 256, 256>}, {pipeline_mode = #tpu.pipeline_mode<synchronous>, transform_indices = @transform_3, window_bounds = array<i64: 256, 256>}, {pipeline_mode = #tpu.pipeline_mode<synchronous>, transform_indices = @transform_4, window_bounds = array<i64: 256, 256>}, {pipeline_mode = #tpu.pipeline_mode<synchronous>, transform_indices = @transform_5, window_bounds = array<i64: 2, 128, 256>}, {pipeline_mode = #tpu.pipeline_mode<synchronous>, transform_indices = @transform_6, window_bounds = array<i64: 1, 256>}, {pipeline_mode = #tpu.pipeline_mode<synchronous>, transform_indices = @transform_7, window_bounds = array<i64: 1, 256>}, {pipeline_mode = #tpu.pipeline_mode<synchronous>, transform_indices = @transform_8, window_bounds = array<i64: 1, 256>}, {pipeline_mode = #tpu.pipeline_mode<synchronous>, transform_indices = @transform_9, window_bounds = array<i64: 1, 256>}, {pipeline_mode = #tpu.pipeline_mode<synchronous>, transform_indices = @transform_10, window_bounds = array<i64: 1, 256>}, {pipeline_mode = #tpu.pipeline_mode<synchronous>, transform_indices = @transform_11, window_bounds = array<i64: 256, 1024>}, {pipeline_mode = #tpu.pipeline_mode<synchronous>, transform_indices = @transform_12, window_bounds = array<i64: 1, 1024>}, {pipeline_mode = #tpu.pipeline_mode<synchronous>, transform_indices = @transform_13, window_bounds = array<i64: 1024, 256>}, {pipeline_mode = #tpu.pipeline_mode<synchronous>, transform_indices = @transform_14, window_bounds = array<i64: 1, 256>}, {transform_indices = @transform_15, window_bounds = array<i64: 1, 32, 256>}]} {
    %c0 = arith.constant 0 : index
    %c0_0 = arith.constant 0 : index
    %c0_1 = arith.constant 0 : index
    %0 = vector.load %arg2[%c0, %c0_0, %c0_1] : memref<1x32x256xf32, #tpu.memory_space<vmem>>, vector<1x32x256xf32>
    %1 = vector.shape_cast %0 : vector<1x32x256xf32> to vector<32x256xf32>
    %c0_2 = arith.constant 0 : index
    %c0_3 = arith.constant 0 : index
    %c0_4 = arith.constant 0 : index
    %2 = vector.load %arg3[%c0_2, %c0_3, %c0_4] : memref<1x64x256xf32, #tpu.memory_space<vmem>>, vector<1x64x256xf32>
    %3 = vector.shape_cast %2 : vector<1x64x256xf32> to vector<64x256xf32>
    %c0_5 = arith.constant 0 : index
    %c0_6 = arith.constant 0 : index
    %4 = vector.load %arg9[%c0_5, %c0_6] : memref<1x256xf32, #tpu.memory_space<vmem>>, vector<1x256xf32>
    %c0_7 = arith.constant 0 : index
    %c0_8 = arith.constant 0 : index
    %5 = vector.load %arg10[%c0_7, %c0_8] : memref<1x256xf32, #tpu.memory_space<vmem>>, vector<1x256xf32>
    %cst = arith.constant dense<0.000000e+00> : vector<32xf32>
    %6 = vector.multi_reduction <add>, %1, %cst [1] : vector<32x256xf32> to vector<32xf32>
    %7 = vector.shape_cast %6 : vector<32xf32> to vector<32x1xf32>
    %cst_9 = arith.constant 2.560000e+02 : f32
    %8 = vector.broadcast %cst_9 : f32 to vector<32x1xf32>
    %9 = arith.divf %7, %8 : vector<32x1xf32>
    %10 = arith.mulf %1, %1 : vector<32x256xf32>
    %cst_10 = arith.constant dense<0.000000e+00> : vector<32xf32>
    %11 = vector.multi_reduction <add>, %10, %cst_10 [1] : vector<32x256xf32> to vector<32xf32>
    %12 = vector.shape_cast %11 : vector<32xf32> to vector<32x1xf32>
    %cst_11 = arith.constant 2.560000e+02 : f32
    %13 = vector.broadcast %cst_11 : f32 to vector<32x1xf32>
    %14 = arith.divf %12, %13 : vector<32x1xf32>
    %15 = arith.mulf %9, %9 : vector<32x1xf32>
    %16 = arith.subf %14, %15 : vector<32x1xf32>
    %cst_12 = arith.constant 9.99999974E-6 : f32
    %17 = vector.broadcast %cst_12 : f32 to vector<32x1xf32>
    %18 = arith.addf %16, %17 : vector<32x1xf32>
    %19 = math.rsqrt %18 : vector<32x1xf32>
    %20 = vector.broadcast %9 : vector<32x1xf32> to vector<32x256xf32>
    %21 = arith.subf %1, %20 : vector<32x256xf32>
    %22 = vector.broadcast %19 : vector<32x1xf32> to vector<32x256xf32>
    %23 = arith.mulf %21, %22 : vector<32x256xf32>
    %24 = vector.broadcast %4 : vector<1x256xf32> to vector<32x256xf32>
    %25 = arith.mulf %23, %24 : vector<32x256xf32>
    %26 = vector.broadcast %5 : vector<1x256xf32> to vector<32x256xf32>
    %27 = arith.addf %25, %26 : vector<32x256xf32>
    %c0_13 = arith.constant 0 : index
    %c0_14 = arith.constant 0 : index
    %28 = vector.load %arg9[%c0_13, %c0_14] : memref<1x256xf32, #tpu.memory_space<vmem>>, vector<1x256xf32>
    %c0_15 = arith.constant 0 : index
    %c0_16 = arith.constant 0 : index
    %29 = vector.load %arg10[%c0_15, %c0_16] : memref<1x256xf32, #tpu.memory_space<vmem>>, vector<1x256xf32>
    %cst_17 = arith.constant dense<0.000000e+00> : vector<64xf32>
    %30 = vector.multi_reduction <add>, %3, %cst_17 [1] : vector<64x256xf32> to vector<64xf32>
    %31 = vector.shape_cast %30 : vector<64xf32> to vector<64x1xf32>
    %cst_18 = arith.constant 2.560000e+02 : f32
    %32 = vector.broadcast %cst_18 : f32 to vector<64x1xf32>
    %33 = arith.divf %31, %32 : vector<64x1xf32>
    %34 = arith.mulf %3, %3 : vector<64x256xf32>
    %cst_19 = arith.constant dense<0.000000e+00> : vector<64xf32>
    %35 = vector.multi_reduction <add>, %34, %cst_19 [1] : vector<64x256xf32> to vector<64xf32>
    %36 = vector.shape_cast %35 : vector<64xf32> to vector<64x1xf32>
    %cst_20 = arith.constant 2.560000e+02 : f32
    %37 = vector.broadcast %cst_20 : f32 to vector<64x1xf32>
    %38 = arith.divf %36, %37 : vector<64x1xf32>
    %39 = arith.mulf %33, %33 : vector<64x1xf32>
    %40 = arith.subf %38, %39 : vector<64x1xf32>
    %cst_21 = arith.constant 9.99999974E-6 : f32
    %41 = vector.broadcast %cst_21 : f32 to vector<64x1xf32>
    %42 = arith.addf %40, %41 : vector<64x1xf32>
    %43 = math.rsqrt %42 : vector<64x1xf32>
    %44 = vector.broadcast %33 : vector<64x1xf32> to vector<64x256xf32>
    %45 = arith.subf %3, %44 : vector<64x256xf32>
    %46 = vector.broadcast %43 : vector<64x1xf32> to vector<64x256xf32>
    %47 = arith.mulf %45, %46 : vector<64x256xf32>
    %48 = vector.broadcast %28 : vector<1x256xf32> to vector<64x256xf32>
    %49 = arith.mulf %47, %48 : vector<64x256xf32>
    %50 = vector.broadcast %29 : vector<1x256xf32> to vector<64x256xf32>
    %51 = arith.addf %49, %50 : vector<64x256xf32>
    %c0_22 = arith.constant 0 : index
    %c0_23 = arith.constant 0 : index
    %52 = vector.load %arg4[%c0_22, %c0_23] : memref<256x256xf32, #tpu.memory_space<vmem>>, vector<256x256xf32>
    %cst_24 = arith.constant dense<0.000000e+00> : vector<32x256xf32>
    %53 = tpu.matmul %27, %52, %cst_24 {dimension_numbers = #tpu.dot_dimension_numbers<[1], [0], [0], [1], [0, 0, 1, 1], [], []>} : vector<32x256xf32>, vector<256x256xf32>, vector<32x256xf32> -> vector<32x256xf32>
    %c0_25 = arith.constant 0 : index
    %c0_26 = arith.constant 0 : index
    %54 = vector.load %arg5[%c0_25, %c0_26] : memref<256x256xf32, #tpu.memory_space<vmem>>, vector<256x256xf32>
    %cst_27 = arith.constant dense<0.000000e+00> : vector<64x256xf32>
    %55 = tpu.matmul %51, %54, %cst_27 {dimension_numbers = #tpu.dot_dimension_numbers<[1], [0], [0], [1], [0, 0, 1, 1], [], []>} : vector<64x256xf32>, vector<256x256xf32>, vector<64x256xf32> -> vector<64x256xf32>
    %c0_28 = arith.constant 0 : index
    %c0_29 = arith.constant 0 : index
    %56 = vector.load %arg6[%c0_28, %c0_29] : memref<256x256xf32, #tpu.memory_space<vmem>>, vector<256x256xf32>
    %cst_30 = arith.constant dense<0.000000e+00> : vector<64x256xf32>
    %57 = tpu.matmul %51, %56, %cst_30 {dimension_numbers = #tpu.dot_dimension_numbers<[1], [0], [0], [1], [0, 0, 1, 1], [], []>} : vector<64x256xf32>, vector<256x256xf32>, vector<64x256xf32> -> vector<64x256xf32>
    %cst_31 = arith.constant 0.0883883461 : f32
    %58 = vector.broadcast %cst_31 : f32 to vector<32x256xf32>
    %59 = arith.mulf %53, %58 : vector<32x256xf32>
    %60 = vector.extract_strided_slice %59 {offsets = [0, 0], sizes = [32, 128], strides = [1, 1]} : vector<32x256xf32> to vector<32x128xf32>
    %61 = vector.extract_strided_slice %59 {offsets = [0, 128], sizes = [32, 128], strides = [1, 1]} : vector<32x256xf32> to vector<32x128xf32>
    %62 = vector.shape_cast %60 : vector<32x128xf32> to vector<1x32x128xf32>
    %63 = vector.shape_cast %61 : vector<32x128xf32> to vector<1x32x128xf32>
    %64 = tpu.concatenate %62, %63 in 0 : vector<1x32x128xf32>, vector<1x32x128xf32> -> vector<2x32x128xf32>
    %65 = vector.extract_strided_slice %55 {offsets = [0, 0], sizes = [64, 128], strides = [1, 1]} : vector<64x256xf32> to vector<64x128xf32>
    %66 = vector.extract_strided_slice %55 {offsets = [0, 128], sizes = [64, 128], strides = [1, 1]} : vector<64x256xf32> to vector<64x128xf32>
    %67 = vector.shape_cast %65 : vector<64x128xf32> to vector<1x64x128xf32>
    %68 = vector.shape_cast %66 : vector<64x128xf32> to vector<1x64x128xf32>
    %69 = tpu.concatenate %67, %68 in 0 : vector<1x64x128xf32>, vector<1x64x128xf32> -> vector<2x64x128xf32>
    %70 = vector.extract_strided_slice %57 {offsets = [0, 0], sizes = [64, 128], strides = [1, 1]} : vector<64x256xf32> to vector<64x128xf32>
    %71 = vector.extract_strided_slice %57 {offsets = [0, 128], sizes = [64, 128], strides = [1, 1]} : vector<64x256xf32> to vector<64x128xf32>
    %72 = vector.shape_cast %70 : vector<64x128xf32> to vector<1x64x128xf32>
    %73 = vector.shape_cast %71 : vector<64x128xf32> to vector<1x64x128xf32>
    %74 = tpu.concatenate %72, %73 in 0 : vector<1x64x128xf32>, vector<1x64x128xf32> -> vector<2x64x128xf32>
    "tpu.trace_start"() <{level = 10 : i32, message = "hqc,hkc->hqk"}> : () -> ()
    %cst_32 = arith.constant dense<0.000000e+00> : vector<2x32x64xf32>
    %75 = tpu.matmul %64, %69, %cst_32 {dimension_numbers = #tpu.dot_dimension_numbers<[2], [2], [1], [1], [0, 0, 0, 1, 1, 1], [0], [0]>} : vector<2x32x128xf32>, vector<2x64x128xf32>, vector<2x32x64xf32> -> vector<2x32x64xf32>
    "tpu.trace_stop"() : () -> ()
    %cst_33 = arith.constant dense<0xFF800000> : vector<2x32xf32>
    %76 = vector.multi_reduction <maximumf>, %75, %cst_33 [2] : vector<2x32x64xf32> to vector<2x32xf32>
    %77 = vector.shape_cast %76 : vector<2x32xf32> to vector<2x32x1xf32>
    %78 = vector.broadcast %77 : vector<2x32x1xf32> to vector<2x32x64xf32>
    %79 = arith.subf %75, %78 : vector<2x32x64xf32>
    %80 = math.exp %79 : vector<2x32x64xf32>
    %cst_34 = arith.constant dense<0.000000e+00> : vector<2x32xf32>
    %81 = vector.multi_reduction <add>, %80, %cst_34 [2] : vector<2x32x64xf32> to vector<2x32xf32>
    %82 = vector.shape_cast %81 : vector<2x32xf32> to vector<2x32x1xf32>
    %83 = tpu.reciprocal %82 : vector<2x32x1xf32> -> vector<2x32x1xf32>
    %84 = vector.broadcast %83 : vector<2x32x1xf32> to vector<2x32x64xf32>
    %85 = arith.mulf %80, %84 : vector<2x32x64xf32>
    "tpu.trace_start"() <{level = 10 : i32, message = "hqk,hkc->hqc"}> : () -> ()
    %cst_35 = arith.constant dense<0.000000e+00> : vector<2x32x128xf32>
    %86 = tpu.matmul %85, %74, %cst_35 {dimension_numbers = #tpu.dot_dimension_numbers<[2], [1], [1], [2], [0, 0, 0, 1, 1, 2], [0], [0]>} : vector<2x32x64xf32>, vector<2x64x128xf32>, vector<2x32x128xf32> -> vector<2x32x128xf32>
    "tpu.trace_stop"() : () -> ()
    %c0_36 = arith.constant 0 : index
    %c0_37 = arith.constant 0 : index
    %c0_38 = arith.constant 0 : index
    %87 = vector.load %arg7[%c0_36, %c0_37, %c0_38] : memref<2x128x256xf32, #tpu.memory_space<vmem>>, vector<2x128x256xf32>
    "tpu.trace_start"() <{level = 10 : i32, message = "hqc,hcd->hqd"}> : () -> ()
    %cst_39 = arith.constant dense<0.000000e+00> : vector<2x32x256xf32>
    %88 = tpu.matmul %86, %87, %cst_39 {dimension_numbers = #tpu.dot_dimension_numbers<[2], [1], [1], [2], [0, 0, 0, 1, 1, 2], [0], [0]>} : vector<2x32x128xf32>, vector<2x128x256xf32>, vector<2x32x256xf32> -> vector<2x32x256xf32>
    "tpu.trace_stop"() : () -> ()
    %cst_40 = arith.constant dense<0.000000e+00> : vector<32x256xf32>
    %89 = vector.multi_reduction <add>, %88, %cst_40 [0] : vector<2x32x256xf32> to vector<32x256xf32>
    %c0_41 = arith.constant 0 : index
    %c0_42 = arith.constant 0 : index
    %90 = vector.load %arg8[%c0_41, %c0_42] : memref<1x256xf32, #tpu.memory_space<vmem>>, vector<1x256xf32>
    %91 = vector.broadcast %90 : vector<1x256xf32> to vector<32x256xf32>
    %92 = arith.addf %89, %91 : vector<32x256xf32>
    %93 = arith.addf %1, %92 : vector<32x256xf32>
    %c0_43 = arith.constant 0 : index
    %c0_44 = arith.constant 0 : index
    %94 = vector.load %arg11[%c0_43, %c0_44] : memref<1x256xf32, #tpu.memory_space<vmem>>, vector<1x256xf32>
    %c0_45 = arith.constant 0 : index
    %c0_46 = arith.constant 0 : index
    %95 = vector.load %arg12[%c0_45, %c0_46] : memref<1x256xf32, #tpu.memory_space<vmem>>, vector<1x256xf32>
    %cst_47 = arith.constant dense<0.000000e+00> : vector<32xf32>
    %96 = vector.multi_reduction <add>, %93, %cst_47 [1] : vector<32x256xf32> to vector<32xf32>
    %97 = vector.shape_cast %96 : vector<32xf32> to vector<32x1xf32>
    %cst_48 = arith.constant 2.560000e+02 : f32
    %98 = vector.broadcast %cst_48 : f32 to vector<32x1xf32>
    %99 = arith.divf %97, %98 : vector<32x1xf32>
    %100 = arith.mulf %93, %93 : vector<32x256xf32>
    %cst_49 = arith.constant dense<0.000000e+00> : vector<32xf32>
    %101 = vector.multi_reduction <add>, %100, %cst_49 [1] : vector<32x256xf32> to vector<32xf32>
    %102 = vector.shape_cast %101 : vector<32xf32> to vector<32x1xf32>
    %cst_50 = arith.constant 2.560000e+02 : f32
    %103 = vector.broadcast %cst_50 : f32 to vector<32x1xf32>
    %104 = arith.divf %102, %103 : vector<32x1xf32>
    %105 = arith.mulf %99, %99 : vector<32x1xf32>
    %106 = arith.subf %104, %105 : vector<32x1xf32>
    %cst_51 = arith.constant 9.99999974E-6 : f32
    %107 = vector.broadcast %cst_51 : f32 to vector<32x1xf32>
    %108 = arith.addf %106, %107 : vector<32x1xf32>
    %109 = math.rsqrt %108 : vector<32x1xf32>
    %110 = vector.broadcast %99 : vector<32x1xf32> to vector<32x256xf32>
    %111 = arith.subf %93, %110 : vector<32x256xf32>
    %112 = vector.broadcast %109 : vector<32x1xf32> to vector<32x256xf32>
    %113 = arith.mulf %111, %112 : vector<32x256xf32>
    %114 = vector.broadcast %94 : vector<1x256xf32> to vector<32x256xf32>
    %115 = arith.mulf %113, %114 : vector<32x256xf32>
    %116 = vector.broadcast %95 : vector<1x256xf32> to vector<32x256xf32>
    %117 = arith.addf %115, %116 : vector<32x256xf32>
    %c0_52 = arith.constant 0 : index
    %c0_53 = arith.constant 0 : index
    %118 = vector.load %arg13[%c0_52, %c0_53] : memref<256x1024xf32, #tpu.memory_space<vmem>>, vector<256x1024xf32>
    %cst_54 = arith.constant dense<0.000000e+00> : vector<32x1024xf32>
    %119 = tpu.matmul %117, %118, %cst_54 {dimension_numbers = #tpu.dot_dimension_numbers<[1], [0], [0], [1], [0, 0, 1, 1], [], []>} : vector<32x256xf32>, vector<256x1024xf32>, vector<32x1024xf32> -> vector<32x1024xf32>
    %c0_55 = arith.constant 0 : index
    %c0_56 = arith.constant 0 : index
    %120 = vector.load %arg14[%c0_55, %c0_56] : memref<1x1024xf32, #tpu.memory_space<vmem>>, vector<1x1024xf32>
    %121 = vector.broadcast %120 : vector<1x1024xf32> to vector<32x1024xf32>
    %122 = arith.addf %119, %121 : vector<32x1024xf32>
    %cst_57 = arith.constant 0.000000e+00 : f32
    %123 = vector.broadcast %cst_57 : f32 to vector<32x1024xf32>
    %124 = arith.maximumf %122, %123 : vector<32x1024xf32>
    %c0_58 = arith.constant 0 : index
    %c0_59 = arith.constant 0 : index
    %125 = vector.load %arg15[%c0_58, %c0_59] : memref<1024x256xf32, #tpu.memory_space<vmem>>, vector<1024x256xf32>
    %cst_60 = arith.constant dense<0.000000e+00> : vector<32x256xf32>
    %126 = tpu.matmul %124, %125, %cst_60 {dimension_numbers = #tpu.dot_dimension_numbers<[1], [0], [0], [1], [0, 0, 1, 1], [], []>} : vector<32x1024xf32>, vector<1024x256xf32>, vector<32x256xf32> -> vector<32x256xf32>
    %c0_61 = arith.constant 0 : index
    %c0_62 = arith.constant 0 : index
    %127 = vector.load %arg16[%c0_61, %c0_62] : memref<1x256xf32, #tpu.memory_space<vmem>>, vector<1x256xf32>
    %128 = vector.broadcast %127 : vector<1x256xf32> to vector<32x256xf32>
    %129 = arith.addf %126, %128 : vector<32x256xf32>
    %130 = arith.addf %93, %129 : vector<32x256xf32>
    %c0_63 = arith.constant 0 : index
    %c0_64 = arith.constant 0 : index
    %c0_65 = arith.constant 0 : index
    %131 = vector.load %arg17[%c0_63, %c0_64, %c0_65] : memref<1x32x256xf32, #tpu.memory_space<vmem>>, vector<1x32x256xf32>
    %132 = vector.shape_cast %131 : vector<1x32x256xf32> to vector<32x256xf32>
    %133 = vector.shape_cast %130 : vector<32x256xf32> to vector<1x32x256xf32>
    tpu.vector_store %arg17[%c0_63, %c0_64, %c0_65], %133 {strides = array<i32>} : memref<1x32x256xf32, #tpu.memory_space<vmem>>, vector<1x32x256xf32>,
    return
  }
  func.func @transform_0(%arg0: i32, %arg1: i32) -> (i32, i32, i32) {
    %c0_i32 = arith.constant 0 : i32
    %c0_i32_0 = arith.constant 0 : i32
    return %arg0, %arg1, %c0_i32 : i32, i32, i32
  }
  func.func @transform_1(%arg0: i32, %arg1: i32) -> (i32, i32, i32) {
    %c0_i32 = arith.constant 0 : i32
    %c0_i32_0 = arith.constant 0 : i32
    %c0_i32_1 = arith.constant 0 : i32
    return %arg0, %c0_i32, %c0_i32_0 : i32, i32, i32
  }
  func.func @transform_2(%arg0: i32, %arg1: i32) -> (i32, i32) {
    %c0_i32 = arith.constant 0 : i32
    %c0_i32_0 = arith.constant 0 : i32
    %c0_i32_1 = arith.constant 0 : i32
    return %c0_i32, %c0_i32_0 : i32, i32
  }
  func.func @transform_3(%arg0: i32, %arg1: i32) -> (i32, i32) {
    %c0_i32 = arith.constant 0 : i32
    %c0_i32_0 = arith.constant 0 : i32
    %c0_i32_1 = arith.constant 0 : i32
    return %c0_i32, %c0_i32_0 : i32, i32
  }
  func.func @transform_4(%arg0: i32, %arg1: i32) -> (i32, i32) {
    %c0_i32 = arith.constant 0 : i32
    %c0_i32_0 = arith.constant 0 : i32
    %c0_i32_1 = arith.constant 0 : i32
    return %c0_i32, %c0_i32_0 : i32, i32
  }
  func.func @transform_5(%arg0: i32, %arg1: i32) -> (i32, i32, i32) {
    %c0_i32 = arith.constant 0 : i32
    %c0_i32_0 = arith.constant 0 : i32
    %c0_i32_1 = arith.constant 0 : i32
    %c0_i32_2 = arith.constant 0 : i32
    return %c0_i32, %c0_i32_0, %c0_i32_1 : i32, i32, i32
  }
  func.func @transform_6(%arg0: i32, %arg1: i32) -> (i32, i32) {
    %c0_i32 = arith.constant 0 : i32
    %c0_i32_0 = arith.constant 0 : i32
    %c0_i32_1 = arith.constant 0 : i32
    return %c0_i32, %c0_i32_0 : i32, i32
  }
  func.func @transform_7(%arg0: i32, %arg1: i32) -> (i32, i32) {
    %c0_i32 = arith.constant 0 : i32
    %c0_i32_0 = arith.constant 0 : i32
    %c0_i32_1 = arith.constant 0 : i32
    return %c0_i32, %c0_i32_0 : i32, i32
  }
  func.func @transform_8(%arg0: i32, %arg1: i32) -> (i32, i32) {
    %c0_i32 = arith.constant 0 : i32
    %c0_i32_0 = arith.constant 0 : i32
    %c0_i32_1 = arith.constant 0 : i32
    return %c0_i32, %c0_i32_0 : i32, i32
  }
  func.func @transform_9(%arg0: i32, %arg1: i32) -> (i32, i32) {
    %c0_i32 = arith.constant 0 : i32
    %c0_i32_0 = arith.constant 0 : i32
    %c0_i32_1 = arith.constant 0 : i32
    return %c0_i32, %c0_i32_0 : i32, i32
  }
  func.func @transform_10(%arg0: i32, %arg1: i32) -> (i32, i32) {
    %c0_i32 = arith.constant 0 : i32
    %c0_i32_0 = arith.constant 0 : i32
    %c0_i32_1 = arith.constant 0 : i32
    return %c0_i32, %c0_i32_0 : i32, i32
  }
  func.func @transform_11(%arg0: i32, %arg1: i32) -> (i32, i32) {
    %c0_i32 = arith.constant 0 : i32
    %c0_i32_0 = arith.constant 0 : i32
    %c0_i32_1 = arith.constant 0 : i32
    return %c0_i32, %c0_i32_0 : i32, i32
  }
  func.func @transform_12(%arg0: i32, %arg1: i32) -> (i32, i32) {
    %c0_i32 = arith.constant 0 : i32
    %c0_i32_0 = arith.constant 0 : i32
    %c0_i32_1 = arith.constant 0 : i32
    return %c0_i32, %c0_i32_0 : i32, i32
  }
  func.func @transform_13(%arg0: i32, %arg1: i32) -> (i32, i32) {
    %c0_i32 = arith.constant 0 : i32
    %c0_i32_0 = arith.constant 0 : i32
    %c0_i32_1 = arith.constant 0 : i32
    return %c0_i32, %c0_i32_0 : i32, i32
  }
  func.func @transform_14(%arg0: i32, %arg1: i32) -> (i32, i32) {
    %c0_i32 = arith.constant 0 : i32
    %c0_i32_0 = arith.constant 0 : i32
    %c0_i32_1 = arith.constant 0 : i32
    return %c0_i32, %c0_i32_0 : i32, i32
  }
  func.func @transform_15(%arg0: i32, %arg1: i32) -> (i32, i32, i32) {
    %c0_i32 = arith.constant 0 : i32
    %c0_i32_0 = arith.constant 0 : i32
    return %arg0, %arg1, %c0_i32 : i32, i32, i32
  }
}

</mosaic_0001>

<bundles_post_ra>
// kernel: tpu_custom_call.1
= control target key start
LH: loop header
LB: loop body
LE: loop exit
PB: predicated region body
PF: predicated region fallthrough
CT: control target
= control target key end

     0   :  { %s6909_s0 = inlined_call_operand.hbm [shape: f32[2,64,256], index: 0, kind: input, shape index: {}]   ;;  %s6910_s1 = inlined_call_operand.hbm [shape: f32[2,64,256], index: 1, kind: input, shape index: {}]   ;;  %s6911_s2 = inlined_call_operand.hbm [shape: f32[256,256], index: 2, kind: input, shape index: {}]   ;;  %s6912_s3 = inlined_call_operand.hbm [shape: f32[256,256], index: 3, kind: input, shape index: {}]   ;;  %s6913_s4 = inlined_call_operand.hbm [shape: f32[256,256], index: 4, kind: input, shape index: {}]   ;;  %s6914_s5 = inlined_call_operand.hbm [shape: f32[2,128,256], index: 5, kind: input, shape index: {}]   ;;  %s6915_s6 = inlined_call_operand.vmem [shape: f32[1,256], index: 6, kind: input, shape index: {}]   ;;  %s6916_s7 = inlined_call_operand.vmem [shape: f32[1,256], index: 7, kind: input, shape index: {}]   ;;  %s6917_s8 = inlined_call_operand.vmem [shape: f32[1,256], index: 8, kind: input, shape index: {}]   ;;  %s6918_s9 = inlined_call_operand.vmem [shape: f32[1,256], index: 9, kind: input, shape index: {}]   ;;  %s6919_s10 = inlined_call_operand.vmem [shape: f32[1,256], index: 10, kind: input, shape index: {}]   ;;  %s6920_s11 = inlined_call_operand.hbm [shape: f32[256,1024], index: 11, kind: input, shape index: {}]   ;;  %s6921_s12 = inlined_call_operand.vmem [shape: f32[1,1024], index: 12, kind: input, shape index: {}]   ;;  %s6922_s13 = inlined_call_operand.hbm [shape: f32[1024,256], index: 13, kind: input, shape index: {}]   ;;  %s6923_s14 = inlined_call_operand.vmem [shape: f32[1,256], index: 14, kind: input, shape index: {}]   ;;  %s6924_s15 = inlined_call_operand.hbm [shape: f32[2,64,256], index: 15, kind: output, shape index: {}]  }
   0x1   :  { %6939 = sst [smem:[#allocation29_spill]] %s6909_s0 }
   0x2   :  { %6940 = sst [smem:[#allocation30_spill]] %s6910_s1 }
   0x3   :  { %6941 = sst [smem:[#allocation31_spill]] %s6911_s2 }
   0x4   :  { %6942 = sst [smem:[#allocation32_spill]] %s6912_s3 }
   0x5   :  { %6943 = sst [smem:[#allocation33_spill]] %s6913_s4 }
   0x6   :  { %6944 = sst [smem:[#allocation34_spill]] %s6914_s5 }
   0x7   :  { %6945 = sst [smem:[#allocation35_spill]] %s6915_s6 }
   0x8   :  { %6946 = sst [smem:[#allocation36_spill]] %s6916_s7 }
   0x9   :  { %6947 = sst [smem:[#allocation37_spill]] %s6917_s8 }
   0xa   :  { %6948 = sst [smem:[#allocation38_spill]] %s6918_s9 }
   0xb   :  { %6949 = sst [smem:[#allocation39_spill]] %s6919_s10 }
   0xc   :  { %6950 = sst [smem:[#allocation40_spill]] %s6920_s11 }
   0xd   :  { %6951 = sst [smem:[#allocation41_spill]] %s6921_s12 }
   0xe   :  { %6952 = sst [smem:[#allocation42_spill]] %s6922_s13 }
   0xf   :  { %6953 = sst [smem:[#allocation43_spill]] %s6923_s14 }
  0x10   :  { %6954 = sst [smem:[#allocation44_spill]] %s6924_s15 }
  0x11   :  { %20 = vsyncpa [#allocation3], 0 }
  0x12   :  { %22 = vsyncpa [#allocation3 + $0x1], 0 }
  0x13   :  { %23 = vsyncpa [#allocation6], 0 }
  0x14   :  { %25 = vsyncpa [#allocation6 + $0x1], 0 }
  0x15   :  { %26 = vsyncpa [#allocation9], 0 }
  0x16   :  { %27 = vsyncpa [#allocation12], 0 }
  0x17   :  { %28 = vsyncpa [#allocation15], 0 }
  0x18   :  { %29 = vsyncpa [#allocation4], 0 }
  0x19   :  { %31 = vsyncpa [#allocation4 + $0x1], 0  ;;  %s5614_s18 = smov 0   ;;  %s5616_s19 = smov 0  }
  0x1a   :  { %s5618_s20 = smov 0   ;;  %s5620_s21 = smov 0  }
  0x1b   :  { %s5622_s22 = smov 0   ;;  %s5624_s23 = smov 0  }
  0x1c   :  { %s5626_s24 = smov 0   ;;  %s5628_s25 = smov 0  }
  0x1d   :  { %s5630_s26 = smov 0   ;;  %s5632_s27 = smov 0  }
  0x1e   :  { %s5634_s28 = smov 0  }
  0x1f LB: > { %6955 = sst [smem:[#allocation24_spill]] %s5476_s18  ;;  %s5670_s29 = sadd.s32 4294967295, %s5516_s28   ;;  %s5516_s28 = sphi %s5634_s28, %s37_s28   ;;  %s5512_s27 = sphi %s5632_s27, %s7025_s27   ;;  %s5508_s26 = sphi %s5630_s26, %s7024_s26   ;;  %s5504_s25 = sphi %s5628_s25, %s7023_s25   ;;  %s5500_s24 = sphi %s5626_s24, %s7022_s24   ;;  %s5496_s23 = sphi %s5624_s23, %s7021_s23   ;;  %s5492_s22 = sphi %s5622_s22, %s7020_s22   ;;  %s5488_s21 = sphi %s5620_s21, %s7019_s21   ;;  %s5484_s20 = sphi %s5618_s20, %s7018_s20   ;;  %s5480_s19 = sphi %s5616_s19, %s7017_s19   ;;  %s5476_s18 = sphi %s5614_s18, %s7016_s18  }
  0x20   : > { %6956 = sst [smem:[#allocation25_spill]] %s5480_s19  ;;  %p3847_p0 = scmp.ge.s32.totalorder %s5516_s28, 1 }
  0x21   : > { %6957 = sst [smem:[#allocation26_spill]] %s5500_s24  ;;  %p6929_p1 = scmp.eq.s32.totalorder %s5670_s29, 0 }
  0x22   : > { %6958 = sst [smem:[#allocation27_spill]] %s5504_s25  ;;  %p409_p2 = scmp.lt.s32.totalorder %s5516_s28, 5 }
  0x23   : > { %s5518_s16 = smov [#allocation7]   ;;  %s5519_s25 = smov [#allocation8]  }
  0x24   : > { %p5675_p3 = pnand %p3847_p0, %p409_p2  ;;  %s421_s17 = sshll.u32 %s5518_s16, 4  ;;  %s5679_s17 = int_to_ptr.vmem [resolvable:$true] %s421_s17 }
  0x25   : > { %s434_s24 = sshll.u32 %s5519_s25, 4  ;;  %s5520_s14 = smov [#allocation11]   ;;  %s5689_s24 = int_to_ptr.vmem [resolvable:$true] %s434_s24 }
  0x26   : > { %s6959_s30 = scalar_select %p5675_p3, 1, 0 }
  0x27   : > { %p4929_p4 = pneg %p5675_p3  ;;  %s5691_s12 = sshll.u32 %s5520_s14, 4  ;;  %s461_s12 = int_to_ptr.vmem [resolvable:$true] %s5691_s12 }
  0x28   : > { %6960 = sst [smem:[#allocation28_spill]] %s6959_s30  ;;  %s6962_s2 = sld [smem:[#allocation31_spill]] }
  0x29   : > { %p5685_p5 = pnand %p4929_p4, %p6929_p1 }
  0x2b   : > { %p5701_p7 = pneg %p5685_p5 }
  0x2e   : > { %s5146_s16 = scalar_lea.hbm %s6962_s2, 8192 }
  0x2f   : > { %p5147_p6 = scmp.ne.s32.totalorder %s6962_s2, %s5146_s16  ;;  %p5153_p10 = scmp.lt.u32.totalorder %s5146_s16, %s6962_s2 }
  0x31   : > { %p5149_p8 = pnand %p5701_p7, %p5147_p6 }
  0x33   : > { %p5150_p9 = pneg %p5149_p8 }
  0x35   : > { %p5155_p11 = pnand %p5153_p10, %p5150_p9 }
  0x37   : > { %5158 = shalt.err (!%p5155_p11)
}
  0x38   : > { %s5159_s6 = scalar_lea.vmem %s5679_s17, 8192  ;;  %p5167_p2 = scmp.lt.s32.totalorder %s5679_s17, %s5679_s17 }
  0x39   : > { %p5160_p12 = scmp.ne.s32.totalorder %s5679_s17, %s5159_s6  ;;  %p5168_p4 = scmp.lt.s32.totalorder %s5159_s6, %s5159_s6 }
  0x3b   : > { %p5162_p13 = pnand %p5160_p12, %p5701_p7  ;;  %p5169_p6 = por %p5168_p4, %p5167_p2 }
  0x3d   : > { %p5163_p0 = pneg %p5162_p13 }
  0x3f   : > { %p5170_p8 = pnand %p5169_p6, %p5163_p0 }
  0x41   : > { %5173 = shalt.err (!%p5170_p8)
}
  0x42   : > { %s6931_s8 = smov 256   ;;  %s6933_s9 = smov 16  }
  0x43   : > { %4932 = dma.hbm_to_vmem [thread:$0]  (!%p5685_p5), %s6962_s2, 8192, %s5679_s17, [#allocation6], %s6931_s8, %s6931_s8, %s6933_s9  }
  0x44   : > { %s6964_s3 = sld [smem:[#allocation32_spill]] }
  0x4a   : > { %s5174_s6 = scalar_lea.hbm %s6964_s3, 8192 }
  0x4b   : > { %p5175_p9 = scmp.ne.s32.totalorder %s6964_s3, %s5174_s6  ;;  %p5181_p12 = scmp.lt.u32.totalorder %s5174_s6, %s6964_s3 }
  0x4d   : > { %p5177_p10 = pnand %p5175_p9, %p5701_p7 }
  0x4f   : > { %p5178_p11 = pneg %p5177_p10 }
  0x51   : > { %p5183_p13 = pnand %p5181_p12, %p5178_p11 }
  0x53   : > { %5186 = shalt.err (!%p5183_p13)
}
  0x54   : > { %s5187_s17 = scalar_lea.vmem %s5689_s24, 8192  ;;  %p5195_p6 = scmp.lt.s32.totalorder %s5689_s24, %s5689_s24 }
  0x55   : > { %p5188_p0 = scmp.ne.s32.totalorder %s5689_s24, %s5187_s17  ;;  %p5196_p8 = scmp.lt.s32.totalorder %s5187_s17, %s5187_s17 }
  0x57   : > { %p5190_p2 = pnand %p5188_p0, %p5701_p7  ;;  %p5197_p9 = por %p5196_p8, %p5195_p6 }
  0x59   : > { %p5191_p4 = pneg %p5190_p2 }
  0x5b   : > { %p5198_p10 = pnand %p5197_p9, %p5191_p4 }
  0x5d   : > { %5201 = shalt.err (!%p5198_p10)
}
  0x5e   : > { %4935 = dma.hbm_to_vmem [thread:$0]  (!%p5685_p5), %s6964_s3, 8192, %s5689_s24, [#allocation9], %s6931_s8, %s6931_s8, %s6933_s9  }
  0x5f   : > { %s6965_s5 = sld [smem:[#allocation34_spill]] }
  0x65   : > { %s5202_s10 = scalar_lea.hbm %s6965_s5, 8192 }
  0x66   : > { %p5203_p11 = scmp.ne.s32.totalorder %s6965_s5, %s5202_s10  ;;  %p5209_p0 = scmp.lt.u32.totalorder %s5202_s10, %s6965_s5 }
  0x68   : > { %p5205_p12 = pnand %p5203_p11, %p5701_p7 }
  0x6a   : > { %p5206_p13 = pneg %p5205_p12 }
  0x6c   : > { %p5211_p2 = pnand %p5209_p0, %p5206_p13 }
  0x6e   : > { %5214 = shalt.err (!%p5211_p2)
}
  0x6f   : > { %s5215_s17 = scalar_lea.vmem %s461_s12, 8192  ;;  %p5223_p9 = scmp.lt.s32.totalorder %s461_s12, %s461_s12 }
  0x70   : > { %p5216_p4 = scmp.ne.s32.totalorder %s461_s12, %s5215_s17  ;;  %p5224_p10 = scmp.lt.s32.totalorder %s5215_s17, %s5215_s17 }
  0x72   : > { %p5218_p6 = pnand %p5216_p4, %p5701_p7  ;;  %p5225_p1 = por %p5224_p10, %p5223_p9 }
  0x74   : > { %p5219_p8 = pneg %p5218_p6 }
  0x76   : > { %p5226_p3 = pnand %p5225_p1, %p5219_p8 }
  0x78   : > { %5229 = shalt.err (!%p5226_p3)
}
  0x79   : > { %4941 = dma.hbm_to_vmem [thread:$0]  (!%p5685_p5), %s6965_s5, 8192, %s461_s12, [#allocation12], %s6931_s8, %s6931_s8, %s6933_s9  }
  0x7a   : > { %s5523_s18 = smov [#allocation10]   ;;  %s5524_s30 = smov [#allocation13]  }
  0x7b   : > { %s447_s19 = sshll.u32 %s5523_s18, 4  ;;  %s488_s10 = sshll.u32 %s5524_s30, 4  ;;  %s448_s19 = int_to_ptr.vmem [resolvable:$true] %s447_s19  ;;  %s489_s10 = int_to_ptr.vmem [resolvable:$true] %s488_s10 }
  0x7c   : > { %s6966_s4 = sld [smem:[#allocation33_spill]] }
  0x82   : > { %s5230_s14 = scalar_lea.hbm %s6966_s4, 8192 }
  0x83   : > { %p5231_p1 = scmp.ne.s32.totalorder %s6966_s4, %s5230_s14  ;;  %p5237_p12 = scmp.lt.u32.totalorder %s5230_s14, %s6966_s4 }
  0x85   : > { %p5233_p3 = pnand %p5231_p1, %p5701_p7 }
  0x87   : > { %p5234_p11 = pneg %p5233_p3 }
  0x89   : > { %p5239_p13 = pnand %p5237_p12, %p5234_p11 }
  0x8b   : > { %5242 = shalt.err (!%p5239_p13)
}
  0x8c   : > { %s5243_s12 = scalar_lea.vmem %s448_s19, 8192  ;;  %p5251_p6 = scmp.lt.s32.totalorder %s448_s19, %s448_s19 }
  0x8d   : > { %p5244_p0 = scmp.ne.s32.totalorder %s448_s19, %s5243_s12  ;;  %p5252_p8 = scmp.lt.s32.totalorder %s5243_s12, %s5243_s12 }
  0x8f   : > { %p5246_p2 = pnand %p5244_p0, %p5701_p7  ;;  %p5253_p9 = por %p5252_p8, %p5251_p6 }
  0x91   : > { %p5247_p4 = pneg %p5246_p2 }
  0x93   : > { %p5254_p10 = pnand %p5253_p9, %p5247_p4 }
  0x95   : > { %5257 = shalt.err (!%p5254_p10)
}
  0x96   : > { %4938 = dma.hbm_to_vmem [thread:$0]  (!%p5685_p5), %s6966_s4, 8192, %s448_s19, [#allocation9], %s6931_s8, %s6931_s8, %s6933_s9  }
  0x97   : > { %s6967_s11 = sld [smem:[#allocation40_spill]] }
  0x9d   : > { %s5258_s16 = scalar_lea.hbm %s6967_s11, 32768 }
  0x9e   : > { %p5259_p1 = scmp.ne.s32.totalorder %s6967_s11, %s5258_s16  ;;  %p5265_p12 = scmp.lt.u32.totalorder %s5258_s16, %s6967_s11 }
  0xa0   : > { %p5261_p3 = pnand %p5259_p1, %p5701_p7 }
  0xa2   : > { %p5262_p11 = pneg %p5261_p3 }
  0xa4   : > { %p5267_p13 = pnand %p5265_p12, %p5262_p11 }
  0xa6   : > { %5270 = shalt.err (!%p5267_p13)
}
  0xa7   : > { %s5271_s24 = scalar_lea.vmem %s489_s10, 32768  ;;  %p5279_p6 = scmp.lt.s32.totalorder %s489_s10, %s489_s10 }
  0xa8   : > { %p5272_p0 = scmp.ne.s32.totalorder %s489_s10, %s5271_s24  ;;  %p5280_p8 = scmp.lt.s32.totalorder %s5271_s24, %s5271_s24 }
  0xaa   : > { %p5274_p2 = pnand %p5272_p0, %p5701_p7  ;;  %p5281_p9 = por %p5280_p8, %p5279_p6 }
  0xac   : > { %p5275_p4 = pneg %p5274_p2 }
  0xae   : > { %p5282_p10 = pnand %p5281_p9, %p5275_p4 }
  0xb0   : > { %5285 = shalt.err (!%p5282_p10)
}
  0xb1   : > { %s5525_s19 = smov 1024   ;;  %s5526_s12 = smov 64  }
  0xb2   : > { %4944 = dma.hbm_to_vmem [thread:$0]  (!%p5685_p5), %s6967_s11, 32768, %s489_s10, [#allocation12], %s5525_s19, %s5525_s19, %s5526_s12  }
  0xb3   : > { %s5527_s18 = smov [#allocation14]   ;;  %s6968_s13 = sld [smem:[#allocation42_spill]] }
  0xb4   : > { %s504_s30 = sshll.u32 %s5527_s18, 4  ;;  %s505_s30 = int_to_ptr.vmem [resolvable:$true] %s504_s30 }
  0xb9   : > { %s5286_s14 = scalar_lea.hbm %s6968_s13, 32768 }
  0xba   : > { %p5287_p1 = scmp.ne.s32.totalorder %s6968_s13, %s5286_s14  ;;  %p5293_p12 = scmp.lt.u32.totalorder %s5286_s14, %s6968_s13 }
  0xbc   : > { %p5289_p3 = pnand %p5287_p1, %p5701_p7 }
  0xbe   : > { %p5290_p11 = pneg %p5289_p3 }
  0xc0   : > { %p5295_p13 = pnand %p5293_p12, %p5290_p11 }
  0xc2   : > { %5298 = shalt.err (!%p5295_p13)
}
  0xc3   : > { %s5299_s10 = scalar_lea.vmem %s505_s30, 32768  ;;  %p5307_p6 = scmp.lt.s32.totalorder %s505_s30, %s505_s30 }
  0xc4   : > { %p5300_p0 = scmp.ne.s32.totalorder %s505_s30, %s5299_s10  ;;  %p5308_p8 = scmp.lt.s32.totalorder %s5299_s10, %s5299_s10 }
  0xc6   : > { %p5302_p2 = pnand %p5300_p0, %p5701_p7  ;;  %p5309_p9 = por %p5308_p8, %p5307_p6 }
  0xc8   : > { %p5303_p4 = pneg %p5302_p2 }
  0xca   : > { %p5310_p10 = pnand %p5309_p9, %p5303_p4 }
  0xcc   : > { %5313 = shalt.err (!%p5310_p10)
}
  0xcd   : > { %s6969_s19 = smov 256   ;;  %s3846_s7 = sadd.s32 4294967294, %s5516_s28  }
  0xce   : > { %4947 = dma.hbm_to_vmem [thread:$0]  (!%p5685_p5), %s6968_s13, 32768, %s505_s30, [#allocation15], %s6969_s19, %s6969_s19, %s6933_s9  }
  0xcf   : > { %s46_s15 = sadd.s32 1, %s5508_s26  ;;  %s49_s2 = sadd.s32 1, %s5512_s27 }
  0xd0   : > { %p47_p7 = scmp.ge.s32.totalorder %s46_s15, 2  ;;  %s58_s1 = sadd.s32 1, %s5496_s23 }
  0xd1   : > { %p65_p1 = scmp.ne.s32.totalorder %s5496_s23, %s5492_s22  ;;  %p6936_p3 = scmp.eq.s32.totalorder %s5516_s28, 0 }
  0xd2   : > { %s7027_s15 = smov (%p47_p7, %s46_s15), 0  ;;  %s7029_s2 = smov (!%p47_p7, %s49_s2), %s5512_s27 }
  0xd3   : > { %s54_s18 = ssub.s32 %s5508_s26, %s7027_s15  ;;  %p51_p11 = scmp.ge.s32.totalorder %s7029_s2, 2 }
  0xd4   : > { %p71_p12 = scmp.ne.s32.totalorder %s5492_s22, %s5488_s21  ;;  %p5849_p5 = por %p6936_p3, %p65_p1 }
  0xd5   : > { %p396_p13 = scmp.eq.s32.totalorder %s5670_s29, 3  ;;  %s7031_s2 = smov (%p51_p11, %s7029_s2), 0 }
  0xd6   : > { %p6971_p0 = scmp.eq.s32.totalorder %s5670_s29, 0  ;;  %s5868_s14 = ssub.s32 %s5512_s27, %s7031_s2 }
  0xd7   : > { %p5862_p4 = por %p396_p13, %p65_p1  ;;  %p402_p6 = scmp.eq.s32.totalorder %s3846_s7, 3 }
  0xd8   : > { %p5858_p2 = por %p6971_p0, %p71_p12  ;;  %s55_s6 = sor.u32 %s54_s18, %s5868_s14 }
  0xd9   : > { %s6973_s25 = scalar_select %p5862_p4, 1, 0 }
  0xda   : > { %p56_p9 = scmp.eq.s32.totalorder %s55_s6, 0  ;;  %p5872_p10 = por %p402_p6, %p71_p12 }
  0xdb   : > { %p6935_p7 = scmp.lt.s32.totalorder %s5516_s28, 4  ;;  %s521_s24 = sand.u32 1, %s5496_s23  }
  0xdc   : > { %s6974_s17 = scalar_select %p5872_p10, 1, 0 }
  0xdd   : > { %s5879_s10 = scalar_select %p56_p9, %s5496_s23, %s58_s1  }
  0xde   : > { %s3855_s8 = sshll.u32 %s521_s24, 6  ;;  %s3888_s12 = sshll.u32 %s5508_s26, 3 }
  0xdf   : > { %s3858_s9 = sshll.u32 %s5512_s27, 4  ;;  %s525_s3 = scalar_lea.vmem [#allocation2], %s3855_s8 }
  0xe0   : > { %s535_s4 = sshll.u32 %s525_s3, 4  ;;  %s532_s5 = sadd.s32 %s3888_s12, %s3858_s9  ;;  %s5883_s4 = int_to_ptr.vmem [resolvable:$true] %s535_s4 }
  0xe1   : > { %s3859_s7 = sshll.u32 %s532_s5, 7  ;;  %p5889_p1 = pnand %p6935_p7, %p5849_p5 }
  0xe2   : > { %s6976_s0 = sld [smem:[#allocation29_spill]]  ;;  %s5898_s3 = scalar_lea.sflag [#allocation3], %s521_s24 }
  0xe3   : > { %p5316_p12 = pneg %p5889_p1 }
  0xe8   : > { %s5896_s1 = scalar_lea.hbm %s6976_s0, %s3859_s7  ;;  %s5319_s30 = scalar_lea.hbm %s6976_s0, 4096 }
  0xe9   : > { %s5314_s5 = scalar_lea.hbm %s5896_s1, 1024  ;;  %p5320_p0 = scmp.lt.u32.totalorder %s5896_s1, %s6976_s0 }
  0xea   : > { %p5315_p11 = scmp.ne.s32.totalorder %s5896_s1, %s5314_s5  ;;  %p5321_p6 = scmp.lt.u32.totalorder %s5319_s30, %s5314_s5 }
  0xeb   : > { %p5323_p7 = scmp.lt.u32.totalorder %s5314_s5, %s5896_s1 }
  0xec   : > { %p5317_p5 = pnand %p5316_p12, %p5315_p11  ;;  %p5322_p9 = por %p5321_p6, %p5320_p0 }
  0xee   : > { %p5318_p13 = pneg %p5317_p5  ;;  %p5324_p3 = por %p5323_p7, %p5322_p9 }
  0xf0   : > { %p5325_p8 = pnand %p5324_p3, %p5318_p13 }
  0xf2   : > { %5328 = shalt.err (!%p5325_p8)
}
  0xf3   : > { %s5329_s24 = scalar_lea.vmem %s5883_s4, 1024  ;;  %s5528_s7 = smov [#allocation2]  }
  0xf4   : > { %p5330_p11 = scmp.ne.s32.totalorder %s5883_s4, %s5329_s24  ;;  %s5334_s6 = sshll.u32 %s5528_s7, 4  ;;  %s5335_s6 = int_to_ptr.vmem [resolvable:$false] %s5334_s6 }
  0xf5   : > { %s5336_s9 = scalar_lea.vmem %s5335_s6, 2048  ;;  %p5337_p4 = scmp.lt.s32.totalorder %s5883_s4, %s5335_s6 }
  0xf6   : > { %p5332_p5 = pnand %p5330_p11, %p5316_p12  ;;  %p5338_p0 = scmp.lt.s32.totalorder %s5336_s9, %s5329_s24 }
  0xf8   : > { %p5333_p10 = pneg %p5332_p5  ;;  %p5339_p6 = por %p5338_p0, %p5337_p4 }
  0xfa   : > { %p5340_p7 = pnand %p5339_p6, %p5333_p10 }
  0xfc   : > { %5343 = shalt.err (!%p5340_p7)
}
  0xfd   : > { %s6977_s5 = smov 16   ;;  %s6978_s11 = sld [smem:[#allocation25_spill]] }
  0xfe   : > { %s6979_s30 = sld [smem:[#allocation24_spill]]  ;;  %s84_s18 = sadd.s32 1, %s5484_s20 }
  0xff   : > { %4951 = dma.hbm_to_vmem [thread:$0]  (!%p5889_p1), %s5896_s1, 1024, %s5883_s4, %s5898_s3, %s6969_s19, %s6969_s19, %s6977_s5  }
 0x100   : > { %p6980_p4 = scmp.eq.s32.totalorder %s5868_s14, 0  ;;  %p6981_p8 = scmp.eq.s32.totalorder %s5516_s28, 0 }
 0x101   : > { %s545_s12 = sand.u32 1, %s5516_s28   ;;  %s547_s24 = sand.u32 1, %s5484_s20  }
 0x102   : > { %s5935_s8 = scalar_select %p6980_p4, %s5484_s20, %s84_s18  }
 0x103   : > { %p91_p3 = scmp.ne.s32.totalorder %s5484_s20, %s6978_s11  ;;  %p6982_p13 = scmp.eq.s32.totalorder %s5670_s29, 0 }
 0x104   : > { %p97_p12 = scmp.ne.s32.totalorder %s6978_s11, %s6979_s30  ;;  %s3860_s6 = sshll.u32 %s547_s24, 7 }
 0x105   : > { %p93_p10 = por %p91_p3, %p6981_p8  ;;  %s3889_s9 = sshll.u32 %s5512_s27, 11 }
 0x106   : > { %p5945_p9 = por %p97_p12, %p6982_p13  ;;  %s6984_s4 = sld [smem:[#allocation30_spill]] }
 0x107   : > { %s549_s14 = scalar_lea.vmem [#allocation5], %s3860_s6  ;;  %p6985_p1 = scmp.lt.s32.totalorder %s5516_s28, 4 }
 0x108   : > { %s6983_s7 = scalar_select %p5945_p9, 1, 0 }
 0x109   : > { %s556_s3 = sshll.u32 %s549_s14, 4  ;;  %p5957_p11 = pnand %p6985_p1, %p93_p10  ;;  %s5961_s3 = int_to_ptr.vmem [resolvable:$true] %s556_s3 }
 0x10a   : > { %s5963_s30 = scalar_lea.sflag [#allocation6], %s545_s12 }
 0x10b   : > { %p5346_p0 = pneg %p5957_p11 }
 0x10c   : > { %s5953_s1 = scalar_lea.hbm %s6984_s4, %s3889_s9  ;;  %s5349_s24 = scalar_lea.hbm %s6984_s4, 4096 }
 0x10d   : > { %s5344_s0 = scalar_lea.hbm %s5953_s1, 2048  ;;  %p5350_p3 = scmp.lt.u32.totalorder %s5953_s1, %s6984_s4 }
 0x10e   : > { %p5345_p5 = scmp.ne.s32.totalorder %s5953_s1, %s5344_s0  ;;  %p5351_p4 = scmp.lt.u32.totalorder %s5349_s24, %s5344_s0 }
 0x10f   : > { %p5353_p10 = scmp.lt.u32.totalorder %s5344_s0, %s5953_s1 }
 0x110   : > { %p5347_p6 = pnand %p5346_p0, %p5345_p5  ;;  %p5352_p8 = por %p5351_p4, %p5350_p3 }
 0x112   : > { %p5348_p7 = pneg %p5347_p6  ;;  %p5354_p12 = por %p5353_p10, %p5352_p8 }
 0x114   : > { %p5355_p13 = pnand %p5354_p12, %p5348_p7 }
 0x116   : > { %5358 = shalt.err (!%p5355_p13)
}
 0x117   : > { %s5359_s12 = scalar_lea.vmem %s5961_s3, 2048  ;;  %s5529_s14 = smov [#allocation5]  }
 0x118   : > { %p5360_p1 = scmp.ne.s32.totalorder %s5961_s3, %s5359_s12  ;;  %s5364_s13 = sshll.u32 %s5529_s14, 4  ;;  %s5365_s13 = int_to_ptr.vmem [resolvable:$false] %s5364_s13 }
 0x119   : > { %s5366_s18 = scalar_lea.vmem %s5365_s13, 4096  ;;  %p5367_p9 = scmp.lt.s32.totalorder %s5961_s3, %s5365_s13 }
 0x11a   : > { %p5362_p5 = pnand %p5360_p1, %p5346_p0  ;;  %p5368_p3 = scmp.lt.s32.totalorder %s5366_s18, %s5359_s12 }
 0x11c   : > { %p5363_p6 = pneg %p5362_p5  ;;  %p5369_p4 = por %p5368_p3, %p5367_p9 }
 0x11e   : > { %p5370_p8 = pnand %p5369_p4, %p5363_p6 }
 0x120   : > { %5373 = shalt.err (!%p5370_p8)
}
 0x121   : > { %4954 = dma.hbm_to_vmem [thread:$0]  (!%p5957_p11), %s5953_s1, 2048, %s5961_s3, %s5963_s30, %s6969_s19, %s6969_s19, %s6977_s5  }
 0x122   : > { %s6987_s0 = sld [smem:[#allocation28_spill]] }
 0x128   : > { %p6988_p0 = scmp.ne.s32.totalorder %s6987_s0, 0 }
 0x129   : > { %s5997_s24 = sand.u32 (!%p6988_p0), 1, %s5492_s22  }
 0x12a   : > { %568 = sbr.rel (%p6988_p0) target bundleno = 2567 (0xa07), region = 80  ;;  %s3864_s6 = sshll.u32 (!%p6988_p0), %s5997_s24, 6 }
 0x12b   : > { %s571_s9 = scalar_lea.sflag (!%p6988_p0), [#allocation3], %s5997_s24  ;;  %s6003_s11 = scalar_lea.vmem (!%p6988_p0), [#allocation2], %s3864_s6 }
 0x131   : > { %5447 = dma.done.wait (%p5858_p2), %s571_s9, 1024  }
 0x132   : > { %5449 = vsyncadd (%p5858_p2), %s571_s9, 4294966272  ;;  %s6989_s19 = sld [smem:[#allocation25_spill]]  ;;  %s579_s5 = sand.u32 1, %s5670_s29  }
 0x133   : > { %s580_s30 = scalar_lea.sflag [#allocation6], %s579_s5  ;;  %p6990_p9 = scmp.ne.s32.totalorder %s6983_s7, 0 }
 0x138   : > { %s581_s1 = sand.u32 1, %s6989_s19  }
 0x139   : > { %s3865_s3 = sshll.u32 %s581_s1, 7 }
 0x13a   : > { %s6011_s12 = scalar_lea.vmem [#allocation5], %s3865_s3 }
 0x13b   : > { %5451 = dma.done.wait (%p6990_p9), %s580_s30, 2048  }
 0x13c   : > { %5453 = vsyncadd (%p6990_p9), %s580_s30, 4294965248  ;;  %p6991_p11 = scmp.eq.s32.totalorder %s5670_s29, 0 }
 0x13e   : > { %5455 = dma.done.wait (%p6991_p11), [#allocation6], 8192   ;;  %p6992_p7 = pmov %p6991_p11 }
 0x140   : > { %5457 = vsyncadd (%p6992_p7), [#allocation6], 4294959104  ;;  %p6993_p2 = pmov %p6992_p7 }
 0x142   : > { %5459 = dma.done.wait (%p6993_p2), [#allocation9], 16384   ;;  %p6994_p10 = pmov %p6993_p2 }
 0x143   : > { %p6995_p12 = pmov %p6993_p2 }
 0x144   : > { %5461 = vsyncadd (%p6994_p10), [#allocation9], 4294950912 }
 0x145   : > { %5463 = dma.done.wait (%p6995_p12), [#allocation12], 40960   ;;  %p6996_p13 = pmov %p6993_p2 }
 0x146   : > { %p6997_p1 = pmov %p6993_p2 }
 0x147   : > { %5465 = vsyncadd (%p6996_p13), [#allocation12], 4294926336 }
 0x148   : > { %5467 = dma.done.wait (%p6997_p1), [#allocation15], 32768   ;;  %p6998_p5 = pmov %p6997_p1 }
 0x149   : > { %v6034_v0 = vld [vmem:[%s6011_s12 + $0x10] sm:$0xff]  ;;  %v6037_v1 = vld [vmem:[%s6011_s12 + $0x18] sm:$0xff]  ;;  %v6040_v2 = vld [vmem:[%s6011_s12] sm:$0xff]  ;;  %s6999_s7 = sld [smem:[#allocation36_spill]]  ;;  %s7000_s18 = sld [smem:[#allocation37_spill]]  ;;  %vm1659_vm0 = vcmask 523264  }
 0x14a   : > { %5469 = vsyncadd (%p6998_p5), [#allocation15], 4294934528  ;;  %v801_v3 = vadd.f32 %v6037_v1, %v6034_v0  ;;  %v6045_v4 = vld [vmem:[%s6011_s12 + $0x8] sm:$0xff]  ;;  %v832_v5 = vmul.f32 %v6034_v0, %v6034_v0  ;;  %v833_v6 = vmul.f32 %v6037_v1, %v6037_v1  ;;  %v830_v7 = vmul.f32 %v6040_v2, %v6040_v2  ;;  %v6054_v8 = vld [vmem:[%s6011_s12 + $0x20] sm:$0xff]  ;;  %s7006_s19 = sld [smem:[#allocation35_spill]]  ;;  %s7007_s1 = sld [smem:[#allocation38_spill]] }
 0x14b   : > { %v6057_v9 = vld [vmem:[%s6011_s12 + $0x28] sm:$0xff]  ;;  %v798_v10 = vadd.f32 %v6045_v4, %v6040_v2  ;;  %v831_v11 = vmul.f32 %v6045_v4, %v6045_v4  ;;  %v834_v13 = vmul.f32 %v6054_v8, %v6054_v8  ;;  %v6068_v16 = vld [vmem:[%s6011_s12 + $0x30] sm:$0xff]  ;;  %v6071_v17 = vld [vmem:[%s6011_s12 + $0x38] sm:$0xff]  ;;  %s7011_s0 = sld [smem:[#allocation26_spill]]  ;;  %s7012_s9 = sld [smem:[#allocation27_spill]] }
 0x14c   : > { %802 = vadd.xlane.f32.xlu1 %v801_v3  ;;  %v849_v12 = vadd.f32 %v833_v6, %v832_v5  ;;  %v835_v14 = vmul.f32 %v6057_v9, %v6057_v9  ;;  %v836_v19 = vmul.f32 %v6068_v16, %v6068_v16  ;;  %v837_v20 = vmul.f32 %v6071_v17, %v6071_v17  ;;  %v6080_v22 = vld [vmem:[%s6011_s12 + $0x40] sm:$0xff]  ;;  %v6083_v23 = vld [vmem:[%s6011_s12 + $0x48] sm:$0xff]  ;;  %v1130_v25 = vld [vmem:[#allocation8 + $0x18] sm:$0xff]  ;;  %s7013_s29 = sld [smem:[#allocation44_spill]]  ;;  %p7014_p3 = scmp.ne.s32.totalorder %s6973_s25, 0 }
 0x14d   : > { %799 = vadd.xlane.f32.xlu0 %v798_v10  ;;  %v846_v15 = vadd.f32 %v831_v11, %v830_v7  ;;  %v804_v21 = vadd.f32 %v6057_v9, %v6054_v8  ;;  %v1128_v24 = vld [vmem:[#allocation8 + $0x8] sm:$0xff]  ;;  %v1127_v26 = vld [vmem:[#allocation8] sm:$0xff]  ;;  %v1129_v27 = vld [vmem:[#allocation8 + $0x10] sm:$0xff]  ;;  %v838_v31 = vmul.f32 %v6080_v22, %v6080_v22  ;;  %v839_v32 = vmul.f32 %v6083_v23, %v6083_v23  ;;  %s5531_s13 = smov [#allocation16]  }
 0x14e   : > { %v852_v18 = vadd.f32 %v835_v14, %v834_v13  ;;  %v1132_v28 = vld [vmem:[#allocation8 + $0x28] sm:$0xff]  ;;  %v1134_v29 = vld [vmem:[#allocation8 + $0x38] sm:$0xff]  ;;  %v855_v30 = vadd.f32 %v837_v20, %v836_v19  ;;  %v6090_v33 = vld [vmem:[%s6011_s12 + $0x50] sm:$0xff]  ;;  %v807_v34 = vadd.f32 %v6071_v17, %v6068_v16  ;;  %v4091_v36 = vpack.c.bf16 %v1130_v25, %v1128_v24 }
 0x14f   : > { %v6095_v35 = vld [vmem:[%s6011_s12 + $0x58] sm:$0xff]  ;;  %v4093_v37 = vpack.c.bf16 %v1129_v27, %v1127_v26  ;;  %v1131_v38 = vld [vmem:[#allocation8 + $0x20] sm:$0xff]  ;;  %v1133_v39 = vld [vmem:[#allocation8 + $0x30] sm:$0xff]  ;;  %v4095_v40 = vpack.c.bf16 %v1134_v29, %v1132_v28  ;;  %v840_v43 = vmul.f32 %v6090_v33, %v6090_v33  ;;  %v858_v44 = vadd.f32 %v839_v32, %v838_v31 }
 0x150   : > { %850 = vadd.xlane.f32.xlu1 %v849_v12  ;;  %v1136_v41 = vld [vmem:[#allocation8 + $0x48] sm:$0xff]  ;;  %v1138_v42 = vld [vmem:[#allocation8 + $0x58] sm:$0xff]  ;;  %4092 = vmatprep.subr.bf16.mxu1 %v4091_v36  ;;  %v841_v45 = vmul.f32 %v6095_v35, %v6095_v35  ;;  %v6102_v46 = vld [vmem:[%s6011_s12 + $0x60] sm:$0xff]  ;;  %v4097_v47 = vpack.c.bf16 %v1133_v39, %v1131_v38  ;;  %v810_v48 = vadd.f32 %v6083_v23, %v6080_v22 }
 0x151   : > { %847 = vadd.xlane.f32.xlu0 %v846_v15  ;;  %4094 = vmatpush1.bf16.msra.mxu1 %v4093_v37  ;;  %v6107_v49 = vld [vmem:[%s6011_s12 + $0x68] sm:$0xff]  ;;  %v4099_v50 = vpack.c.bf16 %v1138_v42, %v1136_v41  ;;  %v1135_v51 = vld [vmem:[#allocation8 + $0x40] sm:$0xff]  ;;  %v1137_v52 = vld [vmem:[#allocation8 + $0x50] sm:$0xff]  ;;  %v842_v55 = vmul.f32 %v6102_v46, %v6102_v46  ;;  %v813_v5 = vadd.f32 %v6095_v35, %v6090_v33  ;;  %s3884_s5 = sshll.u32 %s7012_s9, 4 }
 0x152   : > { %4096 = vmatprep.subr.bf16.mxu1 %v4095_v40  ;;  %v1140_v53 = vld [vmem:[#allocation8 + $0x68] sm:$0xff]  ;;  %v1142_v54 = vld [vmem:[#allocation8 + $0x78] sm:$0xff]  ;;  %v6112_v56 = vld [vmem:[%s6011_s12 + $0x70] sm:$0xff]  ;;  %v861_v59 = vadd.f32 %v841_v45, %v840_v43  ;;  %v843_v60 = vmul.f32 %v6107_v49, %v6107_v49  ;;  %v4101_v61 = vpack.c.bf16 %v1137_v52, %v1135_v51  ;;  %v816_v31 = vadd.f32 %v6107_v49, %v6102_v46 }
 0x153   : > { %v6115_v57 = vld [vmem:[%s6011_s12 + $0x78] sm:$0xff]  ;;  %v975_v58 = vld [vmem:[#allocation7 + $0x8] sm:$0xff]  ;;  %v974_v63 = vld [vmem:[#allocation7] sm:$0xff]  ;;  %v4103_v6 = vpack.c.bf16 %v1142_v54, %v1140_v53  ;;  %v844_v19 = vmul.f32 %v6112_v56, %v6112_v56  ;;  %s7008_s12 = sld [smem:[#allocation39_spill]] }
 0x154   : > { %853 = vadd.xlane.f32.xlu1 %v852_v18  ;;  %v977_v62 = vld [vmem:[#allocation7 + $0x18] sm:$0xff]  ;;  %v976_v3 = vld [vmem:[#allocation7 + $0x10] sm:$0xff]  ;;  %v1139_v7 = vld [vmem:[#allocation8 + $0x60] sm:$0xff]  ;;  %v864_v25 = vadd.f32 %v843_v60, %v842_v55  ;;  %v845_v26 = vmul.f32 %v6115_v57, %v6115_v57  ;;  %v819_v53 = vadd.f32 %v6115_v57, %v6112_v56 }
 0x155   : > { %805 = vadd.xlane.f32.xlu0 %v804_v21  ;;  %4098 = vmatpush1.bf16.msra.mxu1 %v4097_v47  ;;  %v1141_v10 = vld [vmem:[#allocation8 + $0x70] sm:$0xff]  ;;  %v1144_v11 = vld [vmem:[#allocation8 + $0x88] sm:$0xff]  ;;  %v4027_v12 = vpack.c.bf16 %v977_v62, %v975_v58  ;;  %v1146_v13 = vld [vmem:[#allocation8 + $0x98] sm:$0xff]  ;;  %v4029_v14 = vpack.c.bf16 %v976_v3, %v974_v63 }
 0x156   : > { %4100 = vmatprep.subr.bf16.mxu1 %v4099_v50  ;;  %v979_v15 = vld [vmem:[#allocation7 + $0x28] sm:$0xff]  ;;  %v981_v18 = vld [vmem:[#allocation7 + $0x38] sm:$0xff]  ;;  %v978_v21 = vld [vmem:[#allocation7 + $0x20] sm:$0xff]  ;;  %v4105_v29 = vpack.c.bf16 %v1141_v10, %v1139_v7  ;;  %v4107_v32 = vpack.c.bf16 %v1146_v13, %v1144_v11  ;;  %v867_v45 = vadd.f32 %v845_v26, %v844_v19 }
 0x157   : > { %4028 = vmatprep.subr.bf16.mxu0 %v4027_v12  ;;  %v4031_v20 = vpack.c.bf16 %v981_v18, %v979_v15  ;;  %v980_v24 = vld [vmem:[#allocation7 + $0x30] sm:$0xff]  ;;  %v6126_v27 = vld [vmem:[%s6003_s11] sm:$0xff]  ;;  %v6129_v28 = vld [vmem:[%s6003_s11 + $0x8] sm:$0xff] }
 0x158   : > { %856 = vadd.xlane.f32.xlu1 %v855_v30  ;;  %v1143_v30 = vld [vmem:[#allocation8 + $0x80] sm:$0xff]  ;;  %v983_v36 = vld [vmem:[#allocation7 + $0x48] sm:$0xff]  ;;  %v985_v37 = vld [vmem:[#allocation7 + $0x58] sm:$0xff]  ;;  %4030 = vmatpush1.bf16.msra.mxu0 %v4029_v14  ;;  %v4033_v40 = vpack.c.bf16 %v980_v24, %v978_v21  ;;  %v704_v41 = vmul.f32 %v6126_v27, %v6126_v27  ;;  %v705_v47 = vmul.f32 %v6129_v28, %v6129_v28 }
 0x159   : > { %808 = vadd.xlane.f32.xlu0 %v807_v34  ;;  %4102 = vmatpush1.bf16.msra.mxu1 %v4101_v61  ;;  %v1145_v34 = vld [vmem:[#allocation8 + $0x90] sm:$0xff]  ;;  %v1148_v38 = vld [vmem:[#allocation8 + $0xa8] sm:$0xff]  ;;  %v1150_v39 = vld [vmem:[#allocation8 + $0xb8] sm:$0xff]  ;;  %v4035_v42 = vpack.c.bf16 %v985_v37, %v983_v36  ;;  %v687_v15 = vadd.f32 %v6129_v28, %v6126_v27 }
 0x15a   : > { %4104 = vmatprep.subr.bf16.mxu1 %v4103_v6  ;;  %4032 = vmatprep.subr.bf16.mxu0 %v4031_v20  ;;  %v982_v43 = vld [vmem:[#allocation7 + $0x40] sm:$0xff]  ;;  %v4109_v50 = vpack.c.bf16 %v1145_v34, %v1143_v30  ;;  %v987_v51 = vld [vmem:[#allocation7 + $0x68] sm:$0xff]  ;;  %v989_v52 = vld [vmem:[#allocation7 + $0x78] sm:$0xff]  ;;  %v4111_v55 = vpack.c.bf16 %v1150_v39, %v1148_v38  ;;  %v712_v7 = vadd.f32 %v705_v47, %v704_v41 }
 0x15b   : > { %v6143_v54 = vld [vmem:[%s6003_s11 + $0x18] sm:$0xff]  ;;  %v1147_v58 = vld [vmem:[#allocation8 + $0xa0] sm:$0xff]  ;;  %v1152_v60 = vld [vmem:[#allocation8 + $0xc8] sm:$0xff]  ;;  %v4039_v3 = vpack.c.bf16 %v989_v52, %v987_v51 }
 0x15c   : > { %859 = vadd.xlane.f32.xlu1 %v858_v44  ;;  %v984_v44 = vld [vmem:[#allocation7 + $0x50] sm:$0xff]  ;;  %v1154_v61 = vld [vmem:[#allocation8 + $0xd8] sm:$0xff]  ;;  %4034 = vmatpush1.bf16.msra.mxu0 %v4033_v40  ;;  %v707_v10 = vmul.f32 %v6143_v54, %v6143_v54  ;;  %v6150_v11 = vld [vmem:[%s6003_s11 + $0x20] sm:$0xff] }
 0x15d   : > { %811 = vadd.xlane.f32.xlu0 %v810_v48  ;;  %v6138_v48 = vld [vmem:[%s6003_s11 + $0x10] sm:$0xff]  ;;  %4106 = vmatpush1.bf16.msra.mxu1 %v4105_v29  ;;  %v4037_v62 = vpack.c.bf16 %v984_v44, %v982_v43  ;;  %v991_v13 = vld [vmem:[#allocation7 + $0x88] sm:$0xff]  ;;  %v993_v14 = vld [vmem:[#allocation7 + $0x98] sm:$0xff]  ;;  %v4115_v19 = vpack.c.bf16 %v1154_v61, %v1152_v60  ;;  %v708_v29 = vmul.f32 %v6150_v11, %v6150_v11 }
 0x15e   : > { %4108 = vmatprep.subr.bf16.mxu1 %v4107_v32  ;;  %v706_v63 = vmul.f32 %v6138_v48, %v6138_v48  ;;  %4036 = vmatprep.subr.bf16.mxu0 %v4035_v42  ;;  %v988_v6 = vld [vmem:[#allocation7 + $0x70] sm:$0xff]  ;;  %v6155_v18 = vld [vmem:[%s6003_s11 + $0x28] sm:$0xff]  ;;  %v1151_v20 = vld [vmem:[#allocation8 + $0xc0] sm:$0xff]  ;;  %v4043_v30 = vpack.c.bf16 %v993_v14, %v991_v13  ;;  %v690_v41 = vadd.f32 %v6143_v54, %v6138_v48 }
 0x15f   : > { %v1153_v21 = vld [vmem:[#allocation8 + $0xd0] sm:$0xff]  ;;  %v1156_v24 = vld [vmem:[#allocation8 + $0xe8] sm:$0xff]  ;;  %v709_v36 = vmul.f32 %v6155_v18, %v6155_v18  ;;  %v997_v40 = vld [vmem:[#allocation7 + $0xb8] sm:$0xff] }
 0x160   : > { %862 = vadd.xlane.f32.xlu1 %v861_v59  ;;  %v1149_v59 = vld [vmem:[#allocation8 + $0xb0] sm:$0xff]  ;;  %4038 = vmatpush1.bf16.msra.mxu0 %v4037_v62  ;;  %v715_v34 = vadd.f32 %v707_v10, %v706_v63  ;;  %v4117_v38 = vpack.c.bf16 %v1153_v21, %v1151_v20  ;;  %v995_v39 = vld [vmem:[#allocation7 + $0xa8] sm:$0xff]  ;;  %v6167_v42 = vld [vmem:[%s6003_s11 + $0x38] sm:$0xff] }
 0x161   : > { %814 = vadd.xlane.f32.xlu0 %v813_v5  ;;  %v986_v5 = vld [vmem:[#allocation7 + $0x60] sm:$0xff]  ;;  %4110 = vmatpush1.bf16.msra.mxu1 %v4109_v50  ;;  %v4113_v12 = vpack.c.bf16 %v1149_v59, %v1147_v58  ;;  %v992_v32 = vld [vmem:[#allocation7 + $0x90] sm:$0xff]  ;;  %v1160_v47 = vld [vmem:[#allocation8 + $0x108] sm:$0xff]  ;;  %v718_v59 = vadd.f32 %v709_v36, %v708_v29  ;;  %v711_v60 = vmul.f32 %v6167_v42, %v6167_v42 }
 0x162   : > { %4112 = vmatprep.subr.bf16.mxu1 %v4111_v55  ;;  %v4041_v26 = vpack.c.bf16 %v988_v6, %v986_v5  ;;  %4040 = vmatprep.subr.bf16.mxu0 %v4039_v3  ;;  %v6162_v37 = vld [vmem:[%s6003_s11 + $0x30] sm:$0xff]  ;;  %v1155_v44 = vld [vmem:[#allocation8 + $0xe0] sm:$0xff]  ;;  %v1162_v50 = vld [vmem:[#allocation8 + $0x118] sm:$0xff]  ;;  %v693_v3 = vadd.f32 %v6155_v18, %v6150_v11 }
 0x163   : > { %v710_v52 = vmul.f32 %v6162_v37, %v6162_v37  ;;  %v994_v55 = vld [vmem:[#allocation7 + $0xa0] sm:$0xff]  ;;  %v996_v58 = vld [vmem:[#allocation7 + $0xb0] sm:$0xff]  ;;  %v999_v62 = vld [vmem:[#allocation7 + $0xc8] sm:$0xff]  ;;  %v4123_v5 = vpack.c.bf16 %v1162_v50, %v1160_v47 }
 0x164   : > { %865 = vadd.xlane.f32.xlu1 %v864_v25  ;;  %v1158_v25 = vld [vmem:[#allocation8 + $0xf8] sm:$0xff]  ;;  %4042 = vmatpush1.bf16.msra.mxu0 %v4041_v26  ;;  %v1159_v6 = vld [vmem:[#allocation8 + $0x100] sm:$0xff]  ;;  %v1164_v10 = vld [vmem:[#allocation8 + $0x128] sm:$0xff]  ;;  %v4049_v13 = vpack.c.bf16 %v996_v58, %v994_v55  ;;  %v696_v26 = vadd.f32 %v6167_v42, %v6162_v37 }
 0x165   : > { %817 = vadd.xlane.f32.xlu0 %v816_v31  ;;  %v990_v31 = vld [vmem:[#allocation7 + $0x80] sm:$0xff]  ;;  %4114 = vmatpush1.bf16.msra.mxu1 %v4113_v12  ;;  %v4119_v43 = vpack.c.bf16 %v1158_v25, %v1156_v24  ;;  %v1001_v63 = vld [vmem:[#allocation7 + $0xd8] sm:$0xff]  ;;  %v721_v20 = vadd.f32 %v711_v60, %v710_v52  ;;  %v1003_v24 = vld [vmem:[#allocation7 + $0xe8] sm:$0xff] }
 0x166   : > { %4116 = vmatprep.subr.bf16.mxu1 %v4115_v19  ;;  %v4045_v51 = vpack.c.bf16 %v992_v32, %v990_v31  ;;  %4044 = vmatprep.subr.bf16.mxu0 %v4043_v30  ;;  %v1166_v12 = vld [vmem:[#allocation8 + $0x138] sm:$0xff]  ;;  %v4051_v14 = vpack.c.bf16 %v1001_v63, %v999_v62  ;;  %v1000_v19 = vld [vmem:[#allocation7 + $0xd0] sm:$0xff]  ;;  %v1163_v30 = vld [vmem:[#allocation8 + $0x120] sm:$0xff] }
 0x167   : > { %v1005_v25 = vld [vmem:[#allocation7 + $0xf8] sm:$0xff]  ;;  %v4127_v29 = vpack.c.bf16 %v1166_v12, %v1164_v10  ;;  %v1165_v31 = vld [vmem:[#allocation8 + $0x130] sm:$0xff]  ;;  %v1168_v32 = vld [vmem:[#allocation8 + $0x148] sm:$0xff] }
 0x168   : > { %868 = vadd.xlane.f32.xlu1 %v867_v45  ;;  %v1157_v45 = vld [vmem:[#allocation8 + $0xf0] sm:$0xff]  ;;  %4046 = vmatpush1.bf16.msra.mxu0 %v4045_v51  ;;  %v1167_v47 = vld [vmem:[#allocation8 + $0x140] sm:$0xff]  ;;  %v1172_v51 = vld [vmem:[#allocation8 + $0x168] sm:$0xff] }
 0x169   : > { %820 = vadd.xlane.f32.xlu0 %v819_v53  ;;  %v4047_v53 = vpack.c.bf16 %v997_v40, %v995_v39  ;;  %4118 = vmatpush1.bf16.msra.mxu1 %v4117_v38  ;;  %v4121_v61 = vpack.c.bf16 %v1157_v45, %v1155_v44  ;;  %v4055_v38 = vpack.c.bf16 %v1005_v25, %v1003_v24  ;;  %v1002_v39 = vld [vmem:[#allocation7 + $0xe0] sm:$0xff]  ;;  %v1004_v40 = vld [vmem:[#allocation7 + $0xf0] sm:$0xff]  ;;  %v1009_v44 = vld [vmem:[#allocation7 + $0x118] sm:$0xff] }
 0x16a   : > { %4120 = vmatprep.subr.bf16.mxu1 %v4119_v43  ;;  %v1007_v43 = vld [vmem:[#allocation7 + $0x108] sm:$0xff]  ;;  %v1169_v50 = vld [vmem:[#allocation8 + $0x150] sm:$0xff]  ;;  %v1174_v52 = vld [vmem:[#allocation8 + $0x178] sm:$0xff] }
 0x16b   : > { %4048 = vmatprep.subr.bf16.mxu0 %v4047_v53  ;;  %v4057_v53 = vpack.c.bf16 %v1004_v40, %v1002_v39  ;;  %v4059_v55 = vpack.c.bf16 %v1009_v44, %v1007_v43  ;;  %v1006_v58 = vld [vmem:[#allocation7 + $0x100] sm:$0xff]  ;;  %v4133_v60 = vpack.c.bf16 %v1169_v50, %v1167_v47  ;;  %v1013_v62 = vld [vmem:[#allocation7 + $0x138] sm:$0xff]  ;;  %v4135_v63 = vpack.c.bf16 %v1174_v52, %v1172_v51  ;;  %v1177_v25 = vld [vmem:[#allocation8 + $0x190] sm:$0xff] }
 0x16c   : > { %713 = vadd.xlane.f32.xlu1 %v712_v7  ;;  %v1161_v7 = vld [vmem:[#allocation8 + $0x110] sm:$0xff]  ;;  %4050 = vmatpush1.bf16.msra.mxu0 %v4049_v13  ;;  %v1010_v13 = vld [vmem:[#allocation7 + $0x120] sm:$0xff]  ;;  %v1021_v39 = vld [vmem:[#allocation7 + $0x178] sm:$0xff] }
 0x16d   : > { %688 = vadd.xlane.f32.xlu0 %v687_v15  ;;  %v998_v15 = vld [vmem:[#allocation7 + $0xc0] sm:$0xff]  ;;  %4122 = vmatpush1.bf16.msra.mxu1 %v4121_v61  ;;  %v4125_v21 = vpack.c.bf16 %v1161_v7, %v1159_v6  ;;  %v1011_v61 = vld [vmem:[#allocation7 + $0x128] sm:$0xff]  ;;  %v1178_v7 = vld [vmem:[#allocation8 + $0x198] sm:$0xff] }
 0x16e   : > { %4124 = vmatprep.subr.bf16.mxu1 %v4123_v5  ;;  %v4053_v36 = vpack.c.bf16 %v1000_v19, %v998_v15  ;;  %4052 = vmatprep.subr.bf16.mxu0 %v4051_v14  ;;  %v1173_v5 = vld [vmem:[#allocation8 + $0x170] sm:$0xff]  ;;  %v1176_v6 = vld [vmem:[#allocation8 + $0x188] sm:$0xff]  ;;  %v4063_v12 = vpack.c.bf16 %v1013_v62, %v1011_v61  ;;  %v1175_v24 = vld [vmem:[#allocation8 + $0x180] sm:$0xff] }
 0x16f   : > { %v1012_v14 = vld [vmem:[#allocation7 + $0x130] sm:$0xff]  ;;  %v1015_v19 = vld [vmem:[#allocation7 + $0x148] sm:$0xff]  ;;  %v1018_v51 = vld [vmem:[#allocation7 + $0x160] sm:$0xff] }
 0x170   : > { %716 = vadd.xlane.f32.xlu1 %v715_v34  ;;  %v1170_v34 = vld [vmem:[#allocation8 + $0x158] sm:$0xff]  ;;  %4054 = vmatpush1.bf16.msra.mxu0 %v4053_v36  ;;  %v4141_v36 = vpack.c.bf16 %v1177_v25, %v1175_v24  ;;  %v1181_v43 = vld [vmem:[#allocation8 + $0x1b0] sm:$0xff]  ;;  %v1184_v44 = vld [vmem:[#allocation8 + $0x1c8] sm:$0xff] }
 0x171   : > { %691 = vadd.xlane.f32.xlu0 %v690_v41  ;;  %4126 = vmatpush1.bf16.msra.mxu1 %v4125_v21  ;;  %v4129_v41 = vpack.c.bf16 %v1165_v31, %v1163_v30  ;;  %v4131_v45 = vpack.c.bf16 %v1170_v34, %v1168_v32  ;;  %v4139_v21 = vpack.c.bf16 %v1178_v7, %v1176_v6  ;;  %v1014_v32 = vld [vmem:[#allocation7 + $0x140] sm:$0xff]  ;;  %v1016_v34 = vld [vmem:[#allocation7 + $0x150] sm:$0xff]  ;;  %v1188_v62 = vld [vmem:[#allocation8 + $0x1e8] sm:$0xff] }
 0x172   : > { %4128 = vmatprep.subr.bf16.mxu1 %v4127_v29  ;;  %4056 = vmatprep.subr.bf16.mxu0 %v4055_v38  ;;  %v1182_v29 = vld [vmem:[#allocation8 + $0x1b8] sm:$0xff]  ;;  %v4065_v30 = vpack.c.bf16 %v1012_v14, %v1010_v13  ;;  %v1019_v38 = vld [vmem:[#allocation7 + $0x168] sm:$0xff]  ;;  %v4069_v47 = vpack.c.bf16 %v1016_v34, %v1014_v32  ;;  %v1020_v52 = vld [vmem:[#allocation7 + $0x170] sm:$0xff] }
 0x173   : > { %v4071_v50 = vpack.c.bf16 %v1021_v39, %v1019_v38  ;;  %v1185_v61 = vld [vmem:[#allocation8 + $0x1d0] sm:$0xff]  ;;  %v1022_v6 = vld [vmem:[#allocation7 + $0x180] sm:$0xff]  ;;  %v1029_v13 = vld [vmem:[#allocation7 + $0x1b8] sm:$0xff] }
 0x174   : > { %719 = vadd.xlane.f32.xlu1 %v718_v59  ;;  %v1008_v59 = vld [vmem:[#allocation7 + $0x110] sm:$0xff]  ;;  %4058 = vmatpush1.bf16.msra.mxu0 %v4057_v53  ;;  %v1033_v32 = vld [vmem:[#allocation7 + $0x1d8] sm:$0xff]  ;;  %v1030_v39 = vld [vmem:[#allocation7 + $0x1c0] sm:$0xff] }
 0x175   : > { %694 = vadd.xlane.f32.xlu0 %v693_v3  ;;  %4130 = vmatpush1.bf16.msra.mxu1 %v4129_v41  ;;  %v1171_v3 = vld [vmem:[#allocation8 + $0x160] sm:$0xff]  ;;  %v4061_v10 = vpack.c.bf16 %v1008_v59, %v1006_v58  ;;  %v1025_v58 = vld [vmem:[#allocation7 + $0x198] sm:$0xff]  ;;  %v1024_v7 = vld [vmem:[#allocation7 + $0x190] sm:$0xff] }
 0x176   : > { %4132 = vmatprep.subr.bf16.mxu1 %v4131_v45  ;;  %4060 = vmatprep.subr.bf16.mxu0 %v4059_v55  ;;  %v4137_v15 = vpack.c.bf16 %v1173_v5, %v1171_v3  ;;  %v1179_v41 = vld [vmem:[#allocation8 + $0x1a0] sm:$0xff]  ;;  %v1186_v45 = vld [vmem:[#allocation8 + $0x1d8] sm:$0xff]  ;;  %v1023_v55 = vld [vmem:[#allocation7 + $0x188] sm:$0xff]  ;;  %v4073_v3 = vpack.c.bf16 %v1020_v52, %v1018_v51  ;;  %v4077_v24 = vpack.c.bf16 %v1024_v7, %v1022_v6  ;;  %v761_v6 = vlaneseq }
 0x177   : > { %v4145_v53 = vpack.c.bf16 %v1181_v43, %v1179_v41  ;;  %v4147_v59 = vpack.c.bf16 %v1186_v45, %v1184_v44  ;;  %v4075_v5 = vpack.c.bf16 %v1025_v58, %v1023_v55  ;;  %v1035_v41 = vld [vmem:[#allocation7 + $0x1e8] sm:$0xff]  ;;  %v1037_v43 = vld [vmem:[#allocation7 + $0x1f8] sm:$0xff] }
 0x178   : > { %722 = vadd.xlane.f32.xlu1 %v721_v20  ;;  %v1017_v20 = vld [vmem:[#allocation7 + $0x158] sm:$0xff]  ;;  %4062 = vmatpush1.bf16.msra.mxu0 %v4061_v10  ;;  %v4087_v45 = vpack.c.bf16 %v1037_v43, %v1035_v41  ;;  %v6207_v43 = vld [vmem:[#allocation10] sm:$0xff] }
 0x179   : > { %697 = vadd.xlane.f32.xlu0 %v696_v26  ;;  %4134 = vmatpush1.bf16.msra.mxu1 %v4133_v60  ;;  %v1180_v26 = vld [vmem:[#allocation8 + $0x1a8] sm:$0xff]  ;;  %v4067_v31 = vpack.c.bf16 %v1017_v20, %v1015_v19  ;;  %v1183_v60 = vld [vmem:[#allocation8 + $0x1c0] sm:$0xff]  ;;  %v1189_v19 = vld [vmem:[#allocation8 + $0x1f0] sm:$0xff] }
 0x17a   : > { %4136 = vmatprep.subr.bf16.mxu1 %v4135_v63  ;;  %4064 = vmatprep.subr.bf16.mxu0 %v4063_v12  ;;  %v4143_v40 = vpack.c.bf16 %v1182_v29, %v1180_v26  ;;  %v1190_v63 = vld [vmem:[#allocation8 + $0x1f8] sm:$0xff]  ;;  %v4149_v10 = vpack.c.bf16 %v1185_v61, %v1183_v60  ;;  %v1027_v12 = vld [vmem:[#allocation7 + $0x1a8] sm:$0xff]  ;;  %v1026_v26 = vld [vmem:[#allocation7 + $0x1a0] sm:$0xff] }
 0x17b   : > { %v4151_v14 = vpack.c.bf16 %v1190_v63, %v1188_v62  ;;  %v1305_v20 = vld [vmem:[#allocation10 + $0x8] sm:$0xff]  ;;  %v4079_v25 = vpack.c.bf16 %v1029_v13, %v1027_v12  ;;  %v1028_v29 = vld [vmem:[#allocation7 + $0x1b0] sm:$0xff] }
 0x17c   : > { %4066 = vmatpush1.bf16.msra.mxu0 %v4065_v30 }
 0x17d   : > { %4138 = vmatpush1.bf16.msra.mxu1 %v4137_v15  ;;  %4068 = vmatprep.subr.bf16.mxu0 %v4067_v31  ;;  %v1187_v15 = vld [vmem:[#allocation8 + $0x1e0] sm:$0xff]  ;;  %v1031_v31 = vld [vmem:[#allocation7 + $0x1c8] sm:$0xff] }
 0x17e   : > { %4140 = vmatprep.subr.bf16.mxu1 %v4139_v21  ;;  %v1307_v21 = vld [vmem:[#allocation10 + $0x18] sm:$0xff]  ;;  %v4153_v30 = vpack.c.bf16 %v1189_v19, %v1187_v15  ;;  %v4083_v38 = vpack.c.bf16 %v1033_v32, %v1031_v31 }
 0x17f   : > { %v4155_v34 = vpack.c.bf16 %v1307_v21, %v1305_v20  ;;  %v6187_v20 = vshrl.u32 %v761_v6, 7  ;;  %v6233_v6 = vld [vmem:[#allocation10 + $0x38] sm:$0xff] }
 0x180   : > { %4070 = vmatpush1.bf16.msra.mxu0 %v4069_v47  ;;  %v1034_v47 = vld [vmem:[#allocation7 + $0x1e0] sm:$0xff] }
 0x181   : > { %4142 = vmatpush1.bf16.msra.mxu1 %v4141_v36  ;;  %4072 = vmatprep.subr.bf16.mxu0 %v4071_v50  ;;  %v4081_v36 = vpack.c.bf16 %v1028_v29, %v1026_v26  ;;  %v1036_v50 = vld [vmem:[#allocation7 + $0x1f0] sm:$0xff]  ;;  %v6194_v31 = vsub.s32 0, %v6187_v20  ;;  %v6197_v32 = vsub.s32 1, %v6187_v20 }
 0x182   : > { %4144 = vmatprep.subr.bf16.mxu1 %v4143_v40  ;;  %v1032_v40 = vld [vmem:[#allocation7 + $0x1d0] sm:$0xff]  ;;  %v4089_v51 = vpack.c.bf16 %v1036_v50, %v1034_v47 }
 0x183   : > { %v4085_v44 = vpack.c.bf16 %v1032_v40, %v1030_v39  ;;  %v685_v39 = vld [vmem:[%s6999_s7] sm:$0x3]  ;;  %s7009_s7 = sld [smem:[#allocation41_spill]] }
 0x184   : > { %4074 = vmatpush1.bf16.msra.mxu0 %v4073_v3  ;;  %v686_v40 = vld [vmem:[%s7000_s18] sm:$0x3]  ;;  %s7010_s18 = sld [smem:[#allocation43_spill]] }
 0x185   : > { %4146 = vmatpush1.bf16.msra.mxu1 %v4145_v53  ;;  %4076 = vmatprep.subr.bf16.mxu0 %v4075_v5 }
 0x186   : > { %4148 = vmatprep.subr.bf16.mxu1 %v4147_v59 }
 0x188   : > { %4078 = vmatpush1.bf16.msra.mxu0 %v4077_v24 }
 0x189   : > { %4150 = vmatpush1.bf16.msra.mxu1 %v4149_v10  ;;  %4080 = vmatprep.subr.bf16.mxu0 %v4079_v25 }
 0x18a   : > { %4152 = vmatprep.subr.bf16.mxu1 %v4151_v14 }
 0x18c   : > { %4082 = vmatpush1.bf16.msra.mxu0 %v4081_v36 }
 0x18d   : > { %4154 = vmatpush1.bf16.msra.mxu1 %v4153_v30  ;;  %4084 = vmatprep.subr.bf16.mxu0 %v4083_v38 }
 0x18e   : > { %4156 = vmatprep.subr.bf16.mxu1 %v4155_v34 }
 0x190   : > { %4086 = vmatpush1.bf16.msra.mxu0 %v4085_v44  ;;  %v6209_v44 = vld [vmem:[#allocation10 + $0x10] sm:$0xff] }
 0x191   : > { %4088 = vmatprep.subr.bf16.mxu0 %v4087_v45 }
 0x194   : > { %4090 = vmatpush1.bf16.msra.mxu0 %v4089_v51  ;;  %v6214_v51 = vrot.slane %v685_v39, %v6194_v31 }
 0x1d9   : > { %v803_v52 = vpop.xlane.xlu1 %802 }
 0x1da   : > { %v6177_v53 = vmul.f32 0.00390625, %v803_v52  ;;  %v800_v55 = vpop.xlane.xlu0 %799  ;;  %v6217_v52 = vrot.slane %v685_v39, %v6197_v32 }
 0x1db   : > { %v6179_v58 = vmul.f32 0.00390625, %v800_v55  ;;  %v6220_v55 = vrot.slane %v686_v40, %v6194_v31 }
 0x1dc   : > { %v879_v59 = vmul.f32 %v6177_v53, %v6177_v53 }
 0x1dd   : > { %v851_v60 = vpop.xlane.xlu1 %850  ;;  %v878_v63 = vmul.f32 %v6179_v58, %v6179_v58 }
 0x1de   : > { %v871_v61 = vmul.f32 0.00390625, %v851_v60  ;;  %v848_v62 = vpop.xlane.xlu0 %847  ;;  %v6225_v60 = vld [vmem:[#allocation10 + $0x28] sm:$0xff] }
 0x1df   : > { %v870_v3 = vmul.f32 0.00390625, %v848_v62 }
 0x1e0   : > { %v887_v5 = vsub.f32 %v871_v61, %v879_v59  ;;  %v6223_v59 = vrot.slane %v686_v40, %v6197_v32  ;;  %v913_v61 = vsub.f32 %v6037_v1, %v6177_v53  ;;  %v910_v1 = vsub.f32 %v6040_v2, %v6179_v58 }
 0x1e1   : > { %v886_v7 = vsub.f32 %v870_v3, %v878_v63  ;;  %v854_v10 = vpop.xlane.xlu1 %853 }
 0x1e2   : > { %v895_v12 = vadd.f32 1e-05, %v887_v5  ;;  %v806_v13 = vpop.xlane.xlu0 %805  ;;  %v872_v19 = vmul.f32 0.00390625, %v854_v10  ;;  %v4157_v5 = vpack.c.bf16 %v6209_v44, %v6207_v43  ;;  %v6237_v10 = vld [vmem:[#allocation10 + $0x30] sm:$0xff] }
 0x1e3   : > { %v894_v14 = vadd.f32 1e-05, %v886_v7  ;;  %v6185_v15 = vmul.f32 0.00390625, %v806_v13  ;;  %v6235_v7 = vld [vmem:[#allocation10 + $0x20] sm:$0xff]  ;;  %v912_v13 = vsub.f32 %v6034_v0, %v6177_v53  ;;  %v6253_v0 = vld [vmem:[#allocation10 + $0x50] sm:$0xff] }
 0x1e4   : > { %5074 = vrsqrt.f32 %v895_v12  ;;  %v6323_v43 = vld [vmem:[#allocation10 + $0x90] sm:$0xff] }
 0x1e5   : > { %5076 = vrsqrt.f32 %v894_v14  ;;  %v880_v21 = vmul.f32 %v6185_v15, %v6185_v15  ;;  %v857_v24 = vpop.xlane.xlu1 %856  ;;  %v911_v14 = vsub.f32 %v6045_v4, %v6179_v58  ;;  %v4159_v4 = vpack.c.bf16 %v6233_v6, %v6225_v60  ;;  %v6268_v6 = vld [vmem:[#allocation10 + $0x68] sm:$0xff] }
 0x1e6   : > { %v809_v25 = vpop.xlane.xlu0 %808  ;;  %v873_v30 = vmul.f32 0.00390625, %v857_v24  ;;  %v6245_v24 = vld [vmem:[#allocation10 + $0x48] sm:$0xff] }
 0x1e7   : > { %v888_v26 = vsub.f32 %v872_v19, %v880_v21  ;;  %v6191_v29 = vmul.f32 0.00390625, %v809_v25  ;;  %v6247_v25 = vld [vmem:[#allocation10 + $0x58] sm:$0xff]  ;;  %v6302_v58 = vld [vmem:[#allocation10 + $0x88] sm:$0xff] }
 0x1e9   : > { %v896_v34 = vadd.f32 1e-05, %v888_v26  ;;  %v881_v36 = vmul.f32 %v6191_v29, %v6191_v29  ;;  %v860_v38 = vpop.xlane.xlu1 %859 }
 0x1ea   : > { %v812_v41 = vpop.xlane.xlu0 %811  ;;  %v874_v50 = vmul.f32 0.00390625, %v860_v38  ;;  %v6251_v38 = vld [vmem:[#allocation10 + $0x40] sm:$0xff] }
 0x1eb   : > { %5078 = vrsqrt.f32 %v896_v34  ;;  %v889_v45 = vsub.f32 %v873_v30, %v881_v36  ;;  %v6211_v47 = vmul.f32 0.00390625, %v812_v41 }
 0x1ed   : > { %v897_v62 = vadd.f32 1e-05, %v889_v45  ;;  %v882_v63 = vmul.f32 %v6211_v47, %v6211_v47  ;;  %v863_v3 = vpop.xlane.xlu1 %862 }
 0x1ee   : > { %v5075_v12 = vpop.eup %5074  ;;  %v815_v19 = vpop.xlane.xlu0 %814  ;;  %v875_v21 = vmul.f32 0.00390625, %v863_v3 }
 0x1ef   : > { %v5077_v26 = vpop.eup %5076  ;;  %5080 = vrsqrt.f32 %v897_v62  ;;  %v890_v30 = vsub.f32 %v874_v50, %v882_v63  ;;  %v6249_v34 = vmul.f32 0.00390625, %v815_v19  ;;  %v929_v36 = vmul.f32 %v5075_v12, %v913_v61  ;;  %v6274_v19 = vld [vmem:[#allocation10 + $0x60] sm:$0xff] }
 0x1f0   : > { %v927_v2 = vmul.f32 %v5077_v26, %v911_v14  ;;  %v926_v53 = vmul.f32 %v5077_v26, %v910_v1  ;;  %v928_v45 = vmul.f32 %v5075_v12, %v912_v13  ;;  %v6270_v1 = vld [vmem:[#allocation10 + $0x78] sm:$0xff]  ;;  %v6276_v26 = vld [vmem:[#allocation10 + $0x70] sm:$0xff] }
 0x1f1   : > { %v898_v39 = vadd.f32 1e-05, %v890_v30  ;;  %v883_v40 = vmul.f32 %v6249_v34, %v6249_v34  ;;  %v866_v41 = vpop.xlane.xlu1 %865  ;;  %v945_v3 = vmul.f32 %v929_v36, %v6217_v52  ;;  %v914_v30 = vsub.f32 %v6054_v8, %v6185_v15  ;;  %v6304_v8 = vld [vmem:[#allocation10 + $0x98] sm:$0xff] }
 0x1f2   : > { %v818_v61 = vpop.xlane.xlu0 %817  ;;  %v943_v62 = vmul.f32 %v927_v2, %v6217_v52  ;;  %v942_v63 = vmul.f32 %v926_v53, %v6214_v51  ;;  %v876_v13 = vmul.f32 0.00390625, %v866_v41  ;;  %v915_v36 = vsub.f32 %v6057_v9, %v6185_v15 }
 0x1f3   : > { %5082 = vrsqrt.f32 %v898_v39  ;;  %v891_v14 = vsub.f32 %v875_v21, %v883_v40  ;;  %v6272_v12 = vmul.f32 0.00390625, %v818_v61  ;;  %v944_v61 = vmul.f32 %v928_v45, %v6214_v51 }
 0x1f4   : > { %v6283_v2 = vadd.f32 %v943_v62, %v6223_v59  ;;  %v6286_v53 = vadd.f32 %v942_v63, %v6220_v55  ;;  %v6295_v15 = vadd.f32 %v945_v3, %v6223_v59  ;;  %v916_v3 = vsub.f32 %v6068_v16, %v6191_v29 }
 0x1f5   : > { %v5079_v21 = vpop.eup %5078  ;;  %v899_v39 = vadd.f32 1e-05, %v891_v14  ;;  %v884_v40 = vmul.f32 %v6272_v12, %v6272_v12  ;;  %v869_v41 = vpop.xlane.xlu1 %868  ;;  %v7001_v14 = vpack.c.bf16 %v6237_v10, %v6235_v7 }
 0x1f6   : > { %1255 = vmatprep.mubr.f32.mxu1 %v6283_v2  ;;  %v821_v9 = vpop.xlane.xlu0 %820  ;;  %v931_v62 = vmul.f32 %v5079_v21, %v915_v36  ;;  %v930_v63 = vmul.f32 %v5079_v21, %v914_v30  ;;  %v877_v45 = vmul.f32 0.00390625, %v869_v41  ;;  %v917_v30 = vsub.f32 %v6071_v17, %v6191_v29  ;;  %v6321_v29 = vld [vmem:[#allocation10 + $0x80] sm:$0xff] }
 0x1f7   : > { %5084 = vrsqrt.f32 %v899_v39  ;;  %v892_v60 = vsub.f32 %v876_v13, %v884_v40  ;;  %v6299_v50 = vmul.f32 0.00390625, %v821_v9  ;;  %1256 = vmatmul.mubr.f32.vlgmr.msra.gmra.mrb[0].mxu1 %v6286_v53  ;;  %v6318_v40 = vadd.f32 %v944_v61, %v6220_v55 }
 0x1f8   : > { %4158 = vmatpush1.bf16.msra.mxu1 %v4157_v5  ;;  %1261 = vmatprep.mubr.f32.mxu1 %v6295_v15  ;;  %v947_v13 = vmul.f32 %v931_v62, %v6217_v52  ;;  %v946_v17 = vmul.f32 %v930_v63, %v6214_v51  ;;  %v4171_v9 = vpack.c.bf16 %v6304_v8, %v6302_v58 }
 0x1f9   : > { %v5081_v36 = vpop.eup %5080  ;;  %v900_v21 = vadd.f32 1e-05, %v892_v60  ;;  %v885_v39 = vmul.f32 %v6299_v50, %v6299_v50  ;;  %4160 = vmatprep.subr.bf16.mxu1 %v4159_v4  ;;  %v714_v16 = vpop.xlane.xlu1 %713  ;;  %v919_v63 = vsub.f32 %v6083_v23, %v6211_v47  ;;  %v7002_v23 = vpack.c.bf16 %v6247_v25, %v6245_v24 }
 0x1fa   : > { %v689_v44 = vpop.xlane.xlu0 %688  ;;  %v6326_v5 = vadd.f32 %v947_v13, %v6223_v59  ;;  %v724_v41 = vmul.f32 0.00390625, %v714_v16  ;;  %v933_v60 = vmul.f32 %v5081_v36, %v917_v30  ;;  %v932_v62 = vmul.f32 %v5081_v36, %v916_v3  ;;  %v6354_v36 = vld [vmem:[#allocation10 + $0xb8] sm:$0xff] }
 0x1fb   : > { %5086 = vrsqrt.f32 %v900_v21  ;;  %v893_v4 = vsub.f32 %v877_v45, %v885_v39  ;;  %v6330_v61 = vmul.f32 0.00390625, %v689_v44  ;;  %1262 = vmatmul.mubr.f32.gmra.mrb[2].mxu1 %v6318_v40  ;;  %v4173_v13 = vpack.c.bf16 %v6323_v43, %v6321_v29 }
 0x1fc   : > { %4162 = vmatpush1.bf16.msra.mxu1 %v7001_v14  ;;  %1267 = vmatprep.mubr.f32.mxu1 %v6326_v5  ;;  %v949_v30 = vmul.f32 %v933_v60, %v6217_v52  ;;  %v918_v21 = vsub.f32 %v6080_v22, %v6211_v47  ;;  %v6350_v7 = vadd.f32 %v946_v17, %v6220_v55  ;;  %v6352_v14 = vld [vmem:[#allocation10 + $0xa8] sm:$0xff] }
 0x1fd   : > { %v5083_v45 = vpop.eup %5082  ;;  %v901_v39 = vadd.f32 1e-05, %v893_v4  ;;  %v728_v3 = vmul.f32 %v6330_v61, %v6330_v61  ;;  %4164 = vmatprep.subr.bf16.mxu1 %v7002_v23  ;;  %v717_v10 = vpop.xlane.xlu1 %716  ;;  %v948_v47 = vmul.f32 %v932_v62, %v6214_v51  ;;  %v921_v17 = vsub.f32 %v6095_v35, %v6249_v34 }
 0x1fe   : > { %v692_v16 = vpop.xlane.xlu0 %691  ;;  %v6357_v44 = vadd.f32 %v949_v30, %v6223_v59  ;;  %v725_v22 = vmul.f32 0.00390625, %v717_v10  ;;  %v935_v60 = vmul.f32 %v5083_v45, %v919_v63  ;;  %v934_v25 = vmul.f32 %v5083_v45, %v918_v21  ;;  %v1324_v21 = vld [vmem:[#allocation10 + $0xa0] sm:$0xff] }
 0x1ff   : > { %5088 = vrsqrt.f32 %v901_v39  ;;  %v732_v4 = vsub.f32 %v724_v41, %v728_v3  ;;  %v6360_v24 = vmul.f32 0.00390625, %v692_v16  ;;  %1268 = vmatmul.mubr.f32.gmra.mrb[4].mxu1 %v6350_v7  ;;  %v7003_v23 = vpack.c.bf16 %v6253_v0, %v6251_v38  ;;  %v1326_v3 = vld [vmem:[#allocation10 + $0xb0] sm:$0xff] }
 0x200   : > { %1273 = vmatprep.mubr.f32.mxu1 %v6357_v44  ;;  %v951_v30 = vmul.f32 %v935_v60, %v6217_v52  ;;  %v4175_v62 = vpack.c.bf16 %v6354_v36, %v6352_v14  ;;  %v920_v63 = vsub.f32 %v6090_v33, %v6249_v34  ;;  %v7004_v35 = vpack.c.bf16 %v6270_v1, %v6268_v6 }
 0x201   : > { %4166 = vmatpush1.bf16.msra.mxu1 %v7003_v23  ;;  %v5085_v41 = vpop.eup %5084  ;;  %v736_v39 = vadd.f32 1e-05, %v732_v4  ;;  %v729_v45 = vmul.f32 %v6360_v24, %v6360_v24  ;;  %v6380_v38 = vadd.f32 %v948_v47, %v6220_v55  ;;  %v720_v0 = vpop.xlane.xlu1 %719  ;;  %v950_v33 = vmul.f32 %v934_v25, %v6214_v51 }
 0x202   : > { %4168 = vmatprep.subr.bf16.mxu1 %v7004_v35  ;;  %v695_v10 = vpop.xlane.xlu0 %694  ;;  %v6383_v14 = vadd.f32 %v951_v30, %v6223_v59  ;;  %v726_v36 = vmul.f32 0.00390625, %v720_v0  ;;  %v937_v34 = vmul.f32 %v5085_v41, %v921_v17  ;;  %v936_v6 = vmul.f32 %v5085_v41, %v920_v63 }
 0x203   : > { %5090 = vrsqrt.f32 %v736_v39  ;;  %v733_v16 = vsub.f32 %v725_v22, %v729_v45  ;;  %v6386_v60 = vmul.f32 0.00390625, %v695_v10  ;;  %1274 = vmatmul.mubr.f32.gmra.mrb[6].mxu1 %v6380_v38  ;;  %v923_v1 = vsub.f32 %v6107_v49, %v6272_v12  ;;  %v1331_v45 = vld [vmem:[#allocation10 + $0xd8] sm:$0xff]  ;;  %v1330_v10 = vld [vmem:[#allocation10 + $0xd0] sm:$0xff] }
 0x204   : > { %v7005_v47 = vpack.c.bf16 %v6276_v26, %v6274_v19  ;;  %1279 = vmatprep.mubr.f32.mxu1 %v6383_v14  ;;  %v953_v4 = vmul.f32 %v937_v34, %v6217_v52  ;;  %v4177_v25 = vpack.c.bf16 %v1326_v3, %v1324_v21  ;;  %v922_v22 = vsub.f32 %v6102_v46, %v6272_v12  ;;  %v1329_v12 = vld [vmem:[#allocation10 + $0xc8] sm:$0xff]  ;;  %v1328_v3 = vld [vmem:[#allocation10 + $0xc0] sm:$0xff] }
 0x205   : > { %v5087_v17 = vpop.eup %5086  ;;  %v737_v23 = vadd.f32 1e-05, %v733_v16  ;;  %v730_v30 = vmul.f32 %v6386_v60, %v6386_v60  ;;  %v6404_v49 = vadd.f32 %v950_v33, %v6220_v55  ;;  %v723_v19 = vpop.xlane.xlu1 %722  ;;  %v952_v39 = vmul.f32 %v936_v6, %v6214_v51  ;;  %v1335_v16 = vld [vmem:[#allocation10 + $0xf8] sm:$0xff] }
 0x206   : > { %4170 = vmatpush1.bf16.msra.mxu1 %v7005_v47  ;;  %v698_v26 = vpop.xlane.xlu0 %697  ;;  %v6407_v41 = vadd.f32 %v953_v4, %v6223_v59  ;;  %v727_v63 = vmul.f32 0.00390625, %v723_v19  ;;  %v939_v46 = vmul.f32 %v5087_v17, %v923_v1  ;;  %v938_v58 = vmul.f32 %v5087_v17, %v922_v22  ;;  %v1332_v22 = vld [vmem:[#allocation10 + $0xe0] sm:$0xff] }
 0x207   : > { %4172 = vmatprep.subr.bf16.mxu1 %v4171_v9  ;;  %5092 = vrsqrt.f32 %v737_v23  ;;  %v734_v35 = vsub.f32 %v726_v36, %v730_v30  ;;  %v6410_v0 = vmul.f32 0.00390625, %v698_v26  ;;  %1280 = vmatmul.mubr.f32.gmra.mrb[8].mxu1 %v6404_v49  ;;  %v924_v8 = vsub.f32 %v6112_v56, %v6299_v50  ;;  %v1334_v23 = vld [vmem:[#allocation10 + $0xf0] sm:$0xff] }
 0x208   : > { %v925_v9 = vsub.f32 %v6115_v57, %v6299_v50  ;;  %1285 = vmatprep.mubr.f32.mxu1 %v6407_v41  ;;  %v955_v21 = vmul.f32 %v939_v46, %v6217_v52  ;;  %v6425_v56 = vadd.f32 %v952_v39, %v6220_v55  ;;  %v4179_v57 = vpack.c.bf16 %v1331_v45, %v1329_v12  ;;  %v1339_v46 = vld [vmem:[#allocation10 + $0x118] sm:$0xff] }
 0x209   : > { %v5089_v36 = vpop.eup %5088  ;;  %v738_v33 = vadd.f32 1e-05, %v734_v35  ;;  %v731_v34 = vmul.f32 %v6410_v0, %v6410_v0  ;;  %v954_v29 = vmul.f32 %v938_v58, %v6214_v51  ;;  %v4181_v47 = vpack.c.bf16 %v1330_v10, %v1328_v3 }
 0x20a   : > { %4174 = vmatpush1.bf16.msra.mxu1 %v4173_v13  ;;  %v6428_v50 = vadd.f32 %v955_v21, %v6223_v59  ;;  %v941_v43 = vmul.f32 %v5089_v36, %v925_v9  ;;  %v1333_v13 = vld [vmem:[#allocation10 + $0xe8] sm:$0xff]  ;;  %v940_v6 = vmul.f32 %v5089_v36, %v924_v8  ;;  %v745_v4 = vsub.f32 %v6129_v28, %v6330_v61 }
 0x20b   : > { %4176 = vmatprep.subr.bf16.mxu1 %v4175_v62  ;;  %5094 = vrsqrt.f32 %v738_v33  ;;  %v735_v1 = vsub.f32 %v727_v63, %v731_v34  ;;  %1286 = vmatmul.mubr.f32.gmra.mrb[10].mxu1 %v6425_v56  ;;  %v744_v62 = vsub.f32 %v6126_v27, %v6330_v61  ;;  %v6439_v26 = vadd.f32 %v954_v29, %v6220_v55  ;;  %v1341_v29 = vld [vmem:[#allocation10 + $0x128] sm:$0xff] }
 0x20c   : > { %1291 = vmatprep.mubr.f32.mxu1 %v6428_v50  ;;  %v957_v17 = vmul.f32 %v941_v43, %v6217_v52  ;;  %v4183_v63 = vpack.c.bf16 %v1335_v16, %v1333_v13  ;;  %v956_v39 = vmul.f32 %v940_v6, %v6214_v51  ;;  %v746_v12 = vsub.f32 %v6138_v48, %v6360_v24  ;;  %v1343_v43 = vld [vmem:[#allocation10 + $0x138] sm:$0xff] }
 0x20d   : > { %v5091_v30 = vpop.eup %5090  ;;  %v739_v19 = vadd.f32 1e-05, %v735_v1  ;;  %v4185_v45 = vpack.c.bf16 %v1334_v23, %v1332_v22  ;;  %v747_v35 = vsub.f32 %v6143_v54, %v6360_v24  ;;  %v748_v21 = vsub.f32 %v6150_v11, %v6386_v60  ;;  %v1336_v54 = vld [vmem:[#allocation10 + $0x100] sm:$0xff]  ;;  %v1338_v24 = vld [vmem:[#allocation10 + $0x110] sm:$0xff] }
 0x20e   : > { %4178 = vmatpush1.bf16.msra.mxu1 %v4177_v25  ;;  %v6443_v27 = vadd.f32 %v957_v17, %v6223_v59  ;;  %v753_v28 = vmul.f32 %v5091_v30, %v745_v4  ;;  %v752_v61 = vmul.f32 %v5091_v30, %v744_v62  ;;  %v1337_v25 = vld [vmem:[#allocation10 + $0x108] sm:$0xff]  ;;  %v749_v48 = vsub.f32 %v6155_v18, %v6386_v60  ;;  %v1342_v62 = vld [vmem:[#allocation10 + $0x130] sm:$0xff] }
 0x20f   : > { %4180 = vmatprep.subr.bf16.mxu1 %v4179_v57  ;;  %5096 = vrsqrt.f32 %v739_v19  ;;  %1292 = vmatmul.mubr.f32.gmra.mrb[12].mxu1 %v6439_v26  ;;  %v6458_v3 = vadd.f32 %v956_v39, %v6220_v55  ;;  %v4187_v10 = vpack.c.bf16 %v1339_v46, %v1337_v25  ;;  %v4189_v11 = vpack.c.bf16 %v1338_v24, %v1336_v54  ;;  %v1345_v30 = vld [vmem:[#allocation10 + $0x148] sm:$0xff]  ;;  %v1347_v19 = vld [vmem:[#allocation10 + $0x158] sm:$0xff]  ;;  %v1344_v39 = vld [vmem:[#allocation10 + $0x140] sm:$0xff] }
 0x210   : > { %1297 = vmatprep.mubr.f32.mxu1 %v6443_v27  ;;  %v772_v58 = vmul.f32 %v6217_v52, %v753_v28  ;;  %v771_v8 = vmul.f32 %v6214_v51, %v752_v61  ;;  %v750_v16 = vsub.f32 %v6162_v37, %v6410_v0  ;;  %v751_v6 = vsub.f32 %v6167_v42, %v6410_v0  ;;  %v1346_v28 = vld [vmem:[#allocation10 + $0x150] sm:$0xff] }
 0x211   : > { %v5093_v9 = vpop.eup %5092  ;;  %v4191_v1 = vpack.c.bf16 %v1343_v43, %v1341_v29  ;;  %v1354_v29 = vld [vmem:[#allocation10 + $0x190] sm:$0xff]  ;;  %v1359_v43 = vld [vmem:[#allocation10 + $0x1b8] sm:$0xff] }
 0x212   : > { %4182 = vmatpush1.bf16.msra.mxu1 %v4181_v47  ;;  %v791_v36 = vadd.f32 %v6223_v59, %v772_v58  ;;  %v790_v33 = vadd.f32 %v6220_v55, %v771_v8  ;;  %v755_v34 = vmul.f32 %v5093_v9, %v747_v35  ;;  %v754_v57 = vmul.f32 %v5093_v9, %v746_v12  ;;  %v1340_v47 = vld [vmem:[#allocation10 + $0x120] sm:$0xff]  ;;  %v1351_v35 = vld [vmem:[#allocation10 + $0x178] sm:$0xff] }
 0x213   : > { %4184 = vmatprep.subr.bf16.mxu1 %v4183_v63  ;;  %1298 = vmatmul.mubr.f32.gmra.mrb[14].mxu1 %v6458_v3  ;;  %v4193_v37 = vpack.c.bf16 %v1342_v62, %v1340_v47  ;;  %v4195_v63 = vpack.c.bf16 %v1347_v19, %v1345_v30  ;;  %v4197_v58 = vpack.c.bf16 %v1346_v28, %v1344_v39  ;;  %v1362_v47 = vld [vmem:[#allocation10 + $0x1d0] sm:$0xff]  ;;  %v1365_v62 = vld [vmem:[#allocation10 + $0x1e8] sm:$0xff] }
 0x214   : > { %1102 = vmatprep.mubr.f32.mxu0 %v791_v36  ;;  %v774_v18 = vmul.f32 %v6217_v52, %v755_v34  ;;  %v773_v60 = vmul.f32 %v6214_v51, %v754_v57  ;;  %1432 = vmatprep.mubr.f32.mxu1 %v6283_v2  ;;  %v1353_v36 = vld [vmem:[#allocation10 + $0x188] sm:$0xff]  ;;  %v1366_v30 = vld [vmem:[#allocation10 + $0x1f0] sm:$0xff] }
 0x215   : > { %v5095_v13 = vpop.eup %5094  ;;  %1103 = vmatmul.mubr.f32.vlgmr.msra.gmra.mrb[0].mxu0 %v790_v33  ;;  %v1355_v33 = vld [vmem:[#allocation10 + $0x198] sm:$0xff] }
 0x216   : > { %4186 = vmatpush1.bf16.msra.mxu1 %v4185_v45  ;;  %v793_v4 = vadd.f32 %v6223_v59, %v774_v18  ;;  %v792_v17 = vadd.f32 %v6220_v55, %v773_v60  ;;  %v757_v22 = vmul.f32 %v5095_v13, %v749_v48  ;;  %v756_v23 = vmul.f32 %v5095_v13, %v748_v21  ;;  %v1349_v45 = vld [vmem:[#allocation10 + $0x168] sm:$0xff]  ;;  %v1348_v48 = vld [vmem:[#allocation10 + $0x160] sm:$0xff] }
 0x217   : > { %4188 = vmatprep.subr.bf16.mxu1 %v4187_v10  ;;  %v4199_v21 = vpack.c.bf16 %v1351_v35, %v1349_v45  ;;  %v1350_v10 = vld [vmem:[#allocation10 + $0x170] sm:$0xff]  ;;  %v4203_v57 = vpack.c.bf16 %v1355_v33, %v1353_v36  ;;  %v1356_v60 = vld [vmem:[#allocation10 + $0x1a0] sm:$0xff]  ;;  %v1361_v13 = vld [vmem:[#allocation10 + $0x1c8] sm:$0xff] }
 0x218   : > { %1108 = vmatprep.mubr.f32.mxu0 %v793_v4  ;;  %v776_v42 = vmul.f32 %v6217_v52, %v757_v22  ;;  %v775_v2 = vmul.f32 %v6214_v51, %v756_v23  ;;  %v4201_v34 = vpack.c.bf16 %v1350_v10, %v1348_v48  ;;  %v1367_v4 = vld [vmem:[#allocation10 + $0x1f8] sm:$0xff]  ;;  %v1364_v23 = vld [vmem:[#allocation10 + $0x1e0] sm:$0xff] }
 0x219   : > { %v5097_v0 = vpop.eup %5096  ;;  %1109 = vmatmul.mubr.f32.gmra.mrb[2].mxu0 %v792_v17  ;;  %v4215_v22 = vpack.c.bf16 %v1367_v4, %v1365_v62  ;;  %v4217_v19 = vpack.c.bf16 %v1366_v30, %v1364_v23 }
 0x21a   : > { %4190 = vmatpush1.bf16.msra.mxu1 %v4189_v11  ;;  %v795_v61 = vadd.f32 %v6223_v59, %v776_v42  ;;  %v794_v25 = vadd.f32 %v6220_v55, %v775_v2  ;;  %v759_v46 = vmul.f32 %v5097_v0, %v751_v6  ;;  %v758_v12 = vmul.f32 %v5097_v0, %v750_v16 }
 0x21b   : > { %4192 = vmatprep.subr.bf16.mxu1 %v4191_v1  ;;  %v1360_v1 = vld [vmem:[#allocation10 + $0x1c0] sm:$0xff] }
 0x21c   : > { %1114 = vmatprep.mubr.f32.mxu0 %v795_v61  ;;  %v778_v8 = vmul.f32 %v6217_v52, %v759_v46  ;;  %v777_v9 = vmul.f32 %v6214_v51, %v758_v12  ;;  %v1352_v52 = vld [vmem:[#allocation10 + $0x180] sm:$0xff]  ;;  %v1357_v51 = vld [vmem:[#allocation10 + $0x1a8] sm:$0xff]  ;;  %v4213_v17 = vpack.c.bf16 %v1362_v47, %v1360_v1 }
 0x21d   : > { %1115 = vmatmul.mubr.f32.gmra.mrb[4].mxu0 %v794_v25  ;;  %v4205_v11 = vpack.c.bf16 %v1354_v29, %v1352_v52  ;;  %v4207_v18 = vpack.c.bf16 %v1359_v43, %v1357_v51 }
 0x21e   : > { %4194 = vmatpush1.bf16.msra.mxu1 %v4193_v37  ;;  %v797_v54 = vadd.f32 %v6223_v59, %v778_v8  ;;  %v796_v24 = vadd.f32 %v6220_v55, %v777_v9  ;;  %v1358_v59 = vld [vmem:[#allocation10 + $0x1b0] sm:$0xff]  ;;  %v1363_v55 = vld [vmem:[#allocation10 + $0x1d8] sm:$0xff] }
 0x21f   : > { %4196 = vmatprep.subr.bf16.mxu1 %v4195_v63  ;;  %v4209_v16 = vpack.c.bf16 %v1358_v59, %v1356_v60  ;;  %v4211_v6 = vpack.c.bf16 %v1363_v55, %v1361_v13 }
 0x220   : > { %1120 = vmatprep.mubr.f32.mxu0 %v797_v54 }
 0x221   : > { %1121 = vmatmul.mubr.f32.gmra.mrb[6].mxu0 %v796_v24 }
 0x222   : > { %4198 = vmatpush1.bf16.msra.mxu1 %v4197_v58 }
 0x223   : > { %4200 = vmatprep.subr.bf16.mxu1 %v4199_v21 }
 0x226   : > { %4202 = vmatpush1.bf16.msra.mxu1 %v4201_v34 }
 0x227   : > { %4204 = vmatprep.subr.bf16.mxu1 %v4203_v57 }
 0x22a   : > { %4206 = vmatpush1.bf16.msra.mxu1 %v4205_v11 }
 0x22b   : > { %4208 = vmatprep.subr.bf16.mxu1 %v4207_v18 }
 0x22e   : > { %4210 = vmatpush1.bf16.msra.mxu1 %v4209_v16 }
 0x22f   : > { %4212 = vmatprep.subr.bf16.mxu1 %v4211_v6 }
 0x232   : > { %4214 = vmatpush1.bf16.msra.mxu1 %v4213_v17 }
 0x233   : > { %4216 = vmatprep.subr.bf16.mxu1 %v4215_v22 }
 0x236   : > { %4218 = vmatpush1.bf16.msra.mxu1 %v4217_v19 }
 0x239   : > { %1433 = vmatmul.mubr.f32.vlgmr.msra.gmra.mrb[16].mxu1 %v6286_v53 }
 0x23a   : > { %1438 = vmatprep.mubr.f32.mxu1 %v6295_v15 }
 0x23d   : > { %1439 = vmatmul.mubr.f32.gmra.mrb[18].mxu1 %v6318_v40 }
 0x23e   : > { %1444 = vmatprep.mubr.f32.mxu1 %v6326_v5 }
 0x241   : > { %1445 = vmatmul.mubr.f32.gmra.mrb[20].mxu1 %v6350_v7 }
 0x242   : > { %1450 = vmatprep.mubr.f32.mxu1 %v6357_v44 }
 0x245   : > { %1451 = vmatmul.mubr.f32.gmra.mrb[22].mxu1 %v6380_v38 }
 0x246   : > { %1456 = vmatprep.mubr.f32.mxu1 %v6383_v14 }
 0x249   : > { %1457 = vmatmul.mubr.f32.gmra.mrb[24].mxu1 %v6404_v49 }
 0x24a   : > { %1462 = vmatprep.mubr.f32.mxu1 %v6407_v41 }
 0x24d   : > { %1463 = vmatmul.mubr.f32.gmra.mrb[26].mxu1 %v6425_v56 }
 0x24e   : > { %1468 = vmatprep.mubr.f32.mxu1 %v6428_v50 }
 0x251   : > { %1469 = vmatmul.mubr.f32.gmra.mrb[28].mxu1 %v6439_v26 }
 0x252   : > { %1474 = vmatprep.mubr.f32.mxu1 %v6443_v27 }
 0x255   : > { %1475 = vmatmul.mubr.f32.gmra.mrb[30].mxu1 %v6458_v3 }
 0x2ca   : > { %v1257_v53 = vpop.f32.mrb[0].mxu1 }
 0x2cb   : > { %v1259_v15 = vpop.f32.mrb[1].mxu1 }
 0x2ce   : > { %v1263_v40 = vpop.f32.mrb[2].mxu1 }
 0x2cf   : > { %v4219_v5 = vpack.c.bf16 %v1263_v40, %v1257_v53  ;;  %v1265_v7 = vpop.f32.mrb[3].mxu1 }
 0x2d0   : > { %v4235_v44 = vpack.c.bf16 %v1265_v7, %v1259_v15 }
 0x2d1   : > { %4220 = vmatprep.subr.bf16.mxu1 %v4219_v5 }
 0x2d2   : > { %v1269_v38 = vpop.f32.mrb[4].mxu1  ;;  %4222 = vmatpush3.bf16.xpose.msra.mxu1 %v4219_v5 }
 0x2d3   : > { %v1271_v14 = vpop.f32.mrb[5].mxu1 }
 0x2d6   : > { %v1275_v49 = vpop.f32.mrb[6].mxu1 }
 0x2d7   : > { %v4223_v41 = vpack.c.bf16 %v1275_v49, %v1269_v38  ;;  %v1277_v56 = vpop.f32.mrb[7].mxu1 }
 0x2d8   : > { %v4239_v50 = vpack.c.bf16 %v1277_v56, %v1271_v14 }
 0x2d9   : > { %4224 = vmatprep.subr.bf16.mxu1 %v4223_v41 }
 0x2da   : > { %v1281_v26 = vpop.f32.mrb[8].mxu1  ;;  %4226 = vmatpush3.bf16.xpose.msra.mxu1 %v4223_v41 }
 0x2db   : > { %v1283_v27 = vpop.f32.mrb[9].mxu1 }
 0x2de   : > { %v1287_v37 = vpop.f32.mrb[10].mxu1 }
 0x2df   : > { %v4227_v3 = vpack.c.bf16 %v1287_v37, %v1281_v26  ;;  %v1289_v42 = vpop.f32.mrb[11].mxu1 }
 0x2e0   : > { %v4243_v2 = vpack.c.bf16 %v1289_v42, %v1283_v27 }
 0x2e1   : > { %4228 = vmatprep.subr.bf16.mxu1 %v4227_v3 }
 0x2e2   : > { %v1293_v0 = vpop.f32.mrb[12].mxu1  ;;  %4230 = vmatpush3.bf16.xpose.msra.mxu1 %v4227_v3 }
 0x2e3   : > { %v1295_v63 = vpop.f32.mrb[13].mxu1 }
 0x2e6   : > { %v1299_v39 = vpop.f32.mrb[14].mxu1 }
 0x2e7   : > { %v4231_v28 = vpack.c.bf16 %v1299_v39, %v1293_v0  ;;  %v1301_v61 = vpop.f32.mrb[15].mxu1 }
 0x2e8   : > { %v4247_v25 = vpack.c.bf16 %v1301_v61, %v1295_v63  ;;  %v1104_v46 = vpop.f32.mrb[0].mxu0 }
 0x2e9   : > { %v1481_v12 = vmul.f32 0.088388346, %v1104_v46  ;;  %v1106_v45 = vpop.f32.mrb[1].mxu0  ;;  %4232 = vmatprep.subr.bf16.mxu1 %v4231_v28 }
 0x2ea   : > { %4234 = vmatpush3.bf16.xpose.msra.mxu1 %v4231_v28  ;;  %v1482_v36 = vmul.f32 0.088388346, %v1106_v45 }
 0x2eb   : > { %3955 = vmatprep.mubr.f32.mxu1 %v1481_v12  ;;  %4236 = vmatprep.subr.bf16.mxu1 %v4235_v44 }
 0x2ec   : > { %v1110_v35 = vpop.f32.mrb[2].mxu0 }
 0x2ed   : > { %v1112_v58 = vpop.f32.mrb[3].mxu0  ;;  %v1483_v8 = vmul.f32 0.088388346, %v1110_v35 }
 0x2ee   : > { %v1484_v52 = vmul.f32 0.088388346, %v1112_v58 }
 0x2f0   : > { %v1116_v9 = vpop.f32.mrb[4].mxu0 }
 0x2f1   : > { %v1485_v21 = vmul.f32 0.088388346, %v1116_v9  ;;  %3956 = vmatmul.mubr.f32.vlgmr.msra.gmra.mrb[32].mxu1 %v1483_v8  ;;  %v1118_v48 = vpop.f32.mrb[5].mxu0 }
 0x2f2   : > { %4238 = vmatpush3.bf16.xpose.msra.mxu1 %v4235_v44  ;;  %v1486_v43 = vmul.f32 0.088388346, %v1118_v48 }
 0x2f3   : > { %4240 = vmatprep.subr.bf16.mxu1 %v4239_v50  ;;  %3958 = vmatprep.mubr.f32.mxu1 %v1485_v21 }
 0x2f4   : > { %v1122_v10 = vpop.f32.mrb[6].mxu0 }
 0x2f5   : > { %v1487_v54 = vmul.f32 0.088388346, %v1122_v10  ;;  %v1124_v24 = vpop.f32.mrb[7].mxu0 }
 0x2f6   : > { %v1488_v60 = vmul.f32 0.088388346, %v1124_v24 }
 0x2f7   : > { %3959 = vmatmul.mubr.f32.gmra.mrb[34].mxu1 %v1487_v54 }
 0x2f8   : > { %3977 = vmatprep.mubr.f32.mxu1 %v1482_v36 }
 0x2fa   : > { %4242 = vmatpush3.bf16.xpose.msra.mxu1 %v4239_v50 }
 0x2fb   : > { %4244 = vmatprep.subr.bf16.mxu1 %v4243_v2 }
 0x302   : > { %4246 = vmatpush3.bf16.xpose.msra.mxu1 %v4243_v2 }
 0x303   : > { %4248 = vmatprep.subr.bf16.mxu1 %v4247_v25 }
 0x30a   : > { %4250 = vmatpush3.bf16.xpose.msra.mxu1 %v4247_v25 }
 0x30c   : > { %v1434_v33 = vpop.f32.mrb[16].mxu1 }
 0x30d   : > { %v1436_v34 = vpop.f32.mrb[17].mxu1 }
 0x310   : > { %v1440_v57 = vpop.f32.mrb[18].mxu1 }
 0x311   : > { %v4251_v29 = vpack.c.bf16 %v1440_v57, %v1434_v33  ;;  %v1442_v51 = vpop.f32.mrb[19].mxu1  ;;  %3978 = vmatmul.mubr.f32.vlgmr.msra.gmra.mrb[36].mxu1 %v1484_v52 }
 0x312   : > { %v6495_v11 = vpack.c.bf16 %v1442_v51, %v1436_v34  ;;  %3980 = vmatprep.mubr.f32.mxu1 %v1486_v43 }
 0x313   : > { %4252 = vmatprep.subr.bf16.mxu1 %v4251_v29 }
 0x314   : > { %v1446_v18 = vpop.f32.mrb[20].mxu1  ;;  %4254 = vmatpush3.bf16.msra.mxu1 %v4251_v29 }
 0x315   : > { %v1448_v59 = vpop.f32.mrb[21].mxu1  ;;  %3981 = vmatmul.mubr.f32.gmra.mrb[38].mxu1 %v1488_v60 }
 0x318   : > { %v1452_v13 = vpop.f32.mrb[22].mxu1 }
 0x319   : > { %v4255_v55 = vpack.c.bf16 %v1452_v13, %v1446_v18  ;;  %v1454_v16 = vpop.f32.mrb[23].mxu1 }
 0x31a   : > { %v6497_v6 = vpack.c.bf16 %v1454_v16, %v1448_v59 }
 0x31b   : > { %4256 = vmatprep.subr.bf16.mxu1 %v4255_v55 }
 0x31c   : > { %v1458_v1 = vpop.f32.mrb[24].mxu1  ;;  %4258 = vmatpush3.bf16.msra.mxu1 %v4255_v55 }
 0x31d   : > { %v1460_v47 = vpop.f32.mrb[25].mxu1 }
 0x320   : > { %v1464_v62 = vpop.f32.mrb[26].mxu1 }
 0x321   : > { %v4259_v4 = vpack.c.bf16 %v1464_v62, %v1458_v1  ;;  %v1466_v17 = vpop.f32.mrb[27].mxu1 }
 0x322   : > { %v6499_v22 = vpack.c.bf16 %v1466_v17, %v1460_v47 }
 0x323   : > { %4260 = vmatprep.subr.bf16.mxu1 %v4259_v4 }
 0x324   : > { %v1470_v23 = vpop.f32.mrb[28].mxu1  ;;  %4262 = vmatpush3.bf16.msra.mxu1 %v4259_v4 }
 0x325   : > { %v1472_v30 = vpop.f32.mrb[29].mxu1 }
 0x328   : > { %v1476_v19 = vpop.f32.mrb[30].mxu1 }
 0x329   : > { %v4263_v53 = vpack.c.bf16 %v1476_v19, %v1470_v23  ;;  %v1478_v15 = vpop.f32.mrb[31].mxu1 }
 0x32a   : > { %v6501_v40 = vpack.c.bf16 %v1478_v15, %v1472_v30 }
 0x32b   : > { %4264 = vmatprep.subr.bf16.mxu1 %v4263_v53 }
 0x32c   : > { %4266 = vmatpush3.bf16.msra.mxu1 %v4263_v53 }
 0x32d   : > { %4268 = vmatprep.subr.bf16.mxu1 %v6495_v11 }
 0x3c4   : > { %v3957_v5 = vpop.f32.mrb[32].mxu1 }
 0x3c5   : > { %v1555_v7 = vpop.f32.mrb[33].mxu1  ;;  %v1663_v44 = vsel %vm1659_vm0, %v3957_v5, -inf }
 0x3c6   : > { %1664 = vmax.xlane.f32.xlu1 %v1663_v44  ;;  %v1660_v38 = vsel %vm1659_vm0, %v1555_v7, -inf }
 0x3c7   : > { %1661 = vmax.xlane.f32.xlu0 %v1660_v38 }
 0x3ca   : > { %v3960_v14 = vpop.f32.mrb[34].mxu1 }
 0x3cb   : > { %v1565_v49 = vpop.f32.mrb[35].mxu1  ;;  %v1669_v41 = vsel %vm1659_vm0, %v3960_v14, -inf }
 0x3cc   : > { %1670 = vmax.xlane.f32.xlu1 %v1669_v41  ;;  %v1666_v56 = vsel %vm1659_vm0, %v1565_v49, -inf }
 0x3cd   : > { %1667 = vmax.xlane.f32.xlu0 %v1666_v56 }
 0x3e4   : > { %v3979_v50 = vpop.f32.mrb[36].mxu1 }
 0x3e5   : > { %v1640_v26 = vpop.f32.mrb[37].mxu1  ;;  %v1675_v27 = vsel %vm1659_vm0, %v3979_v50, -inf }
 0x3e6   : > { %1676 = vmax.xlane.f32.xlu1 %v1675_v27  ;;  %v1672_v37 = vsel %vm1659_vm0, %v1640_v26, -inf }
 0x3e7   : > { %1673 = vmax.xlane.f32.xlu0 %v1672_v37  ;;  %v1943_v37 = vld [vmem:[#allocation11 + $0x8] sm:$0xff] }
 0x3e8   : > { %v3982_v3 = vpop.f32.mrb[38].mxu1 }
 0x3e9   : > { %v1650_v42 = vpop.f32.mrb[39].mxu1  ;;  %v1681_v2 = vsel %vm1659_vm0, %v3982_v3, -inf }
 0x3ea   : > { %1682 = vmax.xlane.f32.xlu1 %v1681_v2  ;;  %v1678_v0 = vsel %vm1659_vm0, %v1650_v42, -inf }
 0x3eb   : > { %1679 = vmax.xlane.f32.xlu0 %v1678_v0 }
 0x453   : > { %v1665_v63 = vpop.xlane.xlu1 %1664 }
 0x454   : > { %v1685_v39 = vsub.f32 %v3957_v5, %v1665_v63  ;;  %v1662_v28 = vpop.xlane.xlu0 %1661  ;;  %v1942_v63 = vld [vmem:[#allocation11] sm:$0xff] }
 0x455   : > { %v1684_v61 = vsub.f32 %v1555_v7, %v1662_v28 }
 0x456   : > { %v1694_v25 = vmul.f32 1.442695, %v1685_v39  ;;  %v1944_v39 = vld [vmem:[#allocation11 + $0x10] sm:$0xff] }
 0x457   : > { %v1692_v46 = vmul.f32 1.442695, %v1684_v61  ;;  %v1947_v61 = vld [vmem:[#allocation11 + $0x28] sm:$0xff] }
 0x458   : > { %5098 = vpow2.f32 %v1694_v25  ;;  %v1949_v25 = vld [vmem:[#allocation11 + $0x38] sm:$0xff] }
 0x459   : > { %5100 = vpow2.f32 %v1692_v46  ;;  %v1671_v12 = vpop.xlane.xlu1 %1670 }
 0x45a   : > { %v1687_v45 = vsub.f32 %v3960_v14, %v1671_v12  ;;  %v1668_v35 = vpop.xlane.xlu0 %1667  ;;  %v4285_v12 = vpack.c.bf16 %v1944_v39, %v1942_v63 }
 0x45b   : > { %v1686_v58 = vsub.f32 %v1565_v49, %v1668_v35  ;;  %v4287_v35 = vpack.c.bf16 %v1949_v25, %v1947_v61  ;;  %v1978_v61 = vld [vmem:[#allocation11 + $0x120] sm:$0xff]  ;;  %v1980_v25 = vld [vmem:[#allocation11 + $0x130] sm:$0xff] }
 0x45c   : > { %v1698_v8 = vmul.f32 1.442695, %v1687_v45 }
 0x45d   : > { %v1696_v9 = vmul.f32 1.442695, %v1686_v58  ;;  %v1948_v58 = vld [vmem:[#allocation11 + $0x30] sm:$0xff] }
 0x45e   : > { %5102 = vpow2.f32 %v1698_v8 }
 0x45f   : > { %5104 = vpow2.f32 %v1696_v9  ;;  %v1951_v9 = vld [vmem:[#allocation11 + $0x48] sm:$0xff] }
 0x462   : > { %v5099_v21 = vpop.eup %5098 }
 0x463   : > { %v5101_v48 = vpop.eup %5100  ;;  %v1711_v10 = vsel %vm1659_vm0, %v5099_v21, 0.0 }
 0x464   : > { %1712 = vadd.xlane.f32.xlu1 %v1711_v10  ;;  %v1708_v54 = vsel %vm1659_vm0, %v5101_v48, 0.0 }
 0x465   : > { %1709 = vadd.xlane.f32.xlu0 %v1708_v54 }
 0x468   : > { %v5103_v24 = vpop.eup %5102 }
 0x469   : > { %v5105_v36 = vpop.eup %5104  ;;  %v1717_v33 = vsel %vm1659_vm0, %v5103_v24, 0.0 }
 0x46a   : > { %1718 = vadd.xlane.f32.xlu1 %v1717_v33  ;;  %v1714_v34 = vsel %vm1659_vm0, %v5105_v36, 0.0  ;;  %v1950_v33 = vld [vmem:[#allocation11 + $0x40] sm:$0xff] }
 0x46b   : > { %1715 = vadd.xlane.f32.xlu0 %v1714_v34  ;;  %v1952_v34 = vld [vmem:[#allocation11 + $0x50] sm:$0xff] }
 0x473   : > { %v1677_v57 = vpop.xlane.xlu1 %1676 }
 0x474   : > { %v1689_v52 = vsub.f32 %v3979_v50, %v1677_v57  ;;  %v1674_v29 = vpop.xlane.xlu0 %1673  ;;  %v1955_v57 = vld [vmem:[#allocation11 + $0x68] sm:$0xff] }
 0x475   : > { %v1688_v51 = vsub.f32 %v1640_v26, %v1674_v29  ;;  %v4293_v29 = vpack.c.bf16 %v1952_v34, %v1950_v33  ;;  %v1991_v33 = vld [vmem:[#allocation11 + $0x188] sm:$0xff]  ;;  %v1993_v34 = vld [vmem:[#allocation11 + $0x198] sm:$0xff] }
 0x476   : > { %v1702_v43 = vmul.f32 1.442695, %v1689_v52  ;;  %v1957_v52 = vld [vmem:[#allocation11 + $0x78] sm:$0xff] }
 0x477   : > { %v1700_v18 = vmul.f32 1.442695, %v1688_v51  ;;  %v1683_v60 = vpop.xlane.xlu1 %1682  ;;  %v4295_v51 = vpack.c.bf16 %v1957_v52, %v1955_v57  ;;  %v4331_v52 = vpack.c.bf16 %v1993_v34, %v1991_v33  ;;  %v2366_v33 = vld [vmem:[#allocation13 + $0x110] sm:$0xff] }
 0x478   : > { %5106 = vpow2.f32 %v1702_v43  ;;  %v1691_v59 = vsub.f32 %v3982_v3, %v1683_v60  ;;  %v1680_v13 = vpop.xlane.xlu0 %1679  ;;  %v1945_v3 = vld [vmem:[#allocation11 + $0x18] sm:$0xff]  ;;  %v1954_v43 = vld [vmem:[#allocation11 + $0x60] sm:$0xff]  ;;  %v1959_v60 = vld [vmem:[#allocation11 + $0x88] sm:$0xff] }
 0x479   : > { %5108 = vpow2.f32 %v1700_v18  ;;  %v1690_v55 = vsub.f32 %v1650_v42, %v1680_v13  ;;  %v1956_v18 = vld [vmem:[#allocation11 + $0x70] sm:$0xff] }
 0x47a   : > { %v1706_v16 = vmul.f32 1.442695, %v1691_v59  ;;  %v1961_v59 = vld [vmem:[#allocation11 + $0x98] sm:$0xff]  ;;  %v4297_v13 = vpack.c.bf16 %v1956_v18, %v1954_v43  ;;  %v1995_v43 = vld [vmem:[#allocation11 + $0x1a8] sm:$0xff]  ;;  %v2374_v34 = vld [vmem:[#allocation13 + $0x150] sm:$0xff] }
 0x47b   : > { %v1704_v1 = vmul.f32 1.442695, %v1690_v55  ;;  %v4299_v55 = vpack.c.bf16 %v1961_v59, %v1959_v60  ;;  %v1997_v18 = vld [vmem:[#allocation11 + $0x1b8] sm:$0xff] }
 0x47c   : > { %5110 = vpow2.f32 %v1706_v16  ;;  %v1958_v16 = vld [vmem:[#allocation11 + $0x80] sm:$0xff]  ;;  %v4335_v59 = vpack.c.bf16 %v1997_v18, %v1995_v43  ;;  %v4421_v43 = vpack.c.bf16 %v2374_v34, %v2366_v33  ;;  %v2454_v33 = vld [vmem:[#allocation13 + $0x3d0] sm:$0xff]  ;;  %v2461_v34 = vld [vmem:[#allocation13 + $0x408] sm:$0xff] }
 0x47d   : > { %5112 = vpow2.f32 %v1704_v1  ;;  %v1960_v1 = vld [vmem:[#allocation11 + $0x90] sm:$0xff] }
 0x482   : > { %v5107_v47 = vpop.eup %5106 }
 0x483   : > { %v5109_v62 = vpop.eup %5108  ;;  %v1723_v4 = vsel %vm1659_vm0, %v5107_v47, 0.0 }
 0x484   : > { %1724 = vadd.xlane.f32.xlu1 %v1723_v4  ;;  %v1720_v17 = vsel %vm1659_vm0, %v5109_v62, 0.0  ;;  %v4301_v4 = vpack.c.bf16 %v1960_v1, %v1958_v16  ;;  %v1999_v16 = vld [vmem:[#allocation11 + $0x1c8] sm:$0xff]  ;;  %v2001_v1 = vld [vmem:[#allocation11 + $0x1d8] sm:$0xff] }
 0x485   : > { %1721 = vadd.xlane.f32.xlu0 %v1720_v17 }
 0x486   : > { %v6518_v23 = vpop.eup %5110 }
 0x487   : > { %v5113_v30 = vpop.eup %5112  ;;  %v1729_v19 = vsel %vm1659_vm0, %v6518_v23, 0.0 }
 0x488   : > { %1730 = vadd.xlane.f32.xlu1 %v1729_v19  ;;  %v1726_v53 = vsel %vm1659_vm0, %v5113_v30, 0.0  ;;  %v1967_v19 = vld [vmem:[#allocation11 + $0xc8] sm:$0xff] }
 0x489   : > { %1727 = vadd.xlane.f32.xlu0 %v1726_v53  ;;  %v1969_v53 = vld [vmem:[#allocation11 + $0xd8] sm:$0xff] }
 0x4f1   : > { %v1713_v15 = vpop.xlane.xlu1 %1712 }
 0x4f2   : > { %5114 = vrcp.f32 %v1713_v15  ;;  %v1710_v5 = vpop.xlane.xlu0 %1709 }
 0x4f3   : > { %5116 = vrcp.f32 %v1710_v5  ;;  %v4307_v5 = vpack.c.bf16 %v1969_v53, %v1967_v19 }
 0x4f7   : > { %v1719_v7 = vpop.xlane.xlu1 %1718 }
 0x4f8   : > { %5118 = vrcp.f32 %v1719_v7  ;;  %v1716_v44 = vpop.xlane.xlu0 %1715  ;;  %v1966_v7 = vld [vmem:[#allocation11 + $0xc0] sm:$0xff] }
 0x4f9   : > { %5120 = vrcp.f32 %v1716_v44  ;;  %v1968_v44 = vld [vmem:[#allocation11 + $0xd0] sm:$0xff] }
 0x4fc   : > { %v5115_v38 = vpop.eup %5114 }
 0x4fd   : > { %v5117_v14 = vpop.eup %5116  ;;  %v1741_v41 = vmul.f32 %v5115_v38, %v5099_v21  ;;  %v1953_v21 = vld [vmem:[#allocation11 + $0x58] sm:$0xff]  ;;  %v1971_v38 = vld [vmem:[#allocation11 + $0xe8] sm:$0xff] }
 0x4fe   : > { %v1740_v49 = vmul.f32 %v5117_v14, %v5101_v48  ;;  %v1973_v14 = vld [vmem:[#allocation11 + $0xf8] sm:$0xff] }
 0x500   : > { %3999 = vmatprep.mubr.msk.f32.mxu1 %vm1659_vm0, %v1740_v49  ;;  %v4309_v49 = vpack.c.bf16 %v1968_v44, %v1966_v7 }
 0x501   : > { %4000 = vmatmul.mubr.msk.f32.vlgmr.msra.gmra.mrb[40].mxu1 %vm1659_vm0, %v1741_v41  ;;  %v4311_v41 = vpack.c.bf16 %v1973_v14, %v1971_v38 }
 0x502   : > { %v5119_v56 = vpop.eup %5118  ;;  %4270 = vmatpush3.bf16.msra.mxu1 %v6495_v11  ;;  %v4283_v11 = vpack.c.bf16 %v1945_v3, %v1943_v37  ;;  %v1977_v37 = vld [vmem:[#allocation11 + $0x118] sm:$0xff]  ;;  %v5530_v3 = vmov 0.0  }
 0x503   : > { %v5121_v50 = vpop.eup %5120  ;;  %4272 = vmatprep.subr.bf16.mxu1 %v6497_v6  ;;  %v1743_v27 = vmul.f32 %v5119_v56, %v5103_v24  ;;  %v1970_v56 = vld [vmem:[#allocation11 + $0xe0] sm:$0xff] }
 0x504   : > { %v1742_v26 = vmul.f32 %v5121_v50, %v5105_v36  ;;  %v4291_v36 = vpack.c.bf16 %v1953_v21, %v1951_v9  ;;  %v1972_v50 = vld [vmem:[#allocation11 + $0xf0] sm:$0xff]  ;;  %v1989_v9 = vld [vmem:[#allocation11 + $0x178] sm:$0xff] }
 0x506   : > { %4274 = vmatpush3.bf16.msra.mxu1 %v6497_v6  ;;  %4002 = vmatprep.mubr.msk.f32.mxu1 %vm1659_vm0, %v1742_v26  ;;  %v4313_v26 = vpack.c.bf16 %v1972_v50, %v1970_v56  ;;  %v2341_v56 = vld [vmem:[#allocation13 + $0x48] sm:$0xff]  ;;  %v2335_v50 = vld [vmem:[#allocation13 + $0x18] sm:$0xff] }
 0x507   : > { %4276 = vmatprep.subr.bf16.mxu1 %v6499_v22  ;;  %4003 = vmatmul.mubr.msk.f32.gmra.mrb[42].mxu1 %vm1659_vm0, %v1743_v27  ;;  %v1975_v27 = vld [vmem:[#allocation11 + $0x108] sm:$0xff] }
 0x50a   : > { %4278 = vmatpush3.bf16.msra.mxu1 %v6499_v22 }
 0x50b   : > { %4280 = vmatprep.subr.bf16.mxu1 %v6501_v40 }
 0x50e   : > { %4282 = vmatpush3.bf16.msra.mxu1 %v6501_v40  ;;  %v1946_v40 = vld [vmem:[#allocation11 + $0x20] sm:$0xff] }
 0x50f   : > { %4284 = vmatprep.subr.bf16.mxu1 %v4283_v11  ;;  %v4289_v54 = vpack.c.bf16 %v1948_v58, %v1946_v40  ;;  %v4315_v11 = vpack.c.bf16 %v1977_v37, %v1975_v27  ;;  %v1982_v40 = vld [vmem:[#allocation11 + $0x140] sm:$0xff]  ;;  %v1984_v58 = vld [vmem:[#allocation11 + $0x150] sm:$0xff]  ;;  %v2343_v27 = vld [vmem:[#allocation13 + $0x58] sm:$0xff] }
 0x510   : > { %v2332_v37 = vld [vmem:[#allocation13] sm:$0xff] }
 0x511   : > { %v1725_v42 = vpop.xlane.xlu1 %1724 }
 0x512   : > { %5122 = vrcp.f32 %v1725_v42  ;;  %v1722_v2 = vpop.xlane.xlu0 %1721  ;;  %v1974_v42 = vld [vmem:[#allocation11 + $0x100] sm:$0xff] }
 0x513   : > { %5124 = vrcp.f32 %v1722_v2  ;;  %v1976_v2 = vld [vmem:[#allocation11 + $0x110] sm:$0xff] }
 0x514   : > { %v4317_v63 = vpack.c.bf16 %v1976_v2, %v1974_v42  ;;  %v4411_v42 = vpack.c.bf16 %v2343_v27, %v2335_v50  ;;  %v2412_v27 = vld [vmem:[#allocation13 + $0x280] sm:$0xff] }
 0x515   : > { %v1731_v6 = vpop.xlane.xlu1 %1730 }
 0x516   : > { %5126 = vrcp.f32 %v1731_v6  ;;  %v1728_v0 = vpop.xlane.xlu0 %1727  ;;  %v1979_v6 = vld [vmem:[#allocation11 + $0x128] sm:$0xff] }
 0x517   : > { %5128 = vrcp.f32 %v1728_v0  ;;  %v1981_v0 = vld [vmem:[#allocation11 + $0x138] sm:$0xff] }
 0x51c   : > { %v5123_v28 = vpop.eup %5122 }
 0x51d   : > { %v5125_v22 = vpop.eup %5124  ;;  %v1745_v45 = vmul.f32 %v5123_v28, %v5107_v47  ;;  %v1963_v47 = vld [vmem:[#allocation11 + $0xa8] sm:$0xff]  ;;  %v4319_v28 = vpack.c.bf16 %v1981_v0, %v1979_v6  ;;  %v2334_v6 = vld [vmem:[#allocation13 + $0x10] sm:$0xff] }
 0x51e   : > { %v1744_v46 = vmul.f32 %v5125_v22, %v5109_v62  ;;  %v1965_v62 = vld [vmem:[#allocation11 + $0xb8] sm:$0xff]  ;;  %v2342_v0 = vld [vmem:[#allocation13 + $0x50] sm:$0xff] }
 0x51f   : > { %v4303_v17 = vpack.c.bf16 %v1965_v62, %v1963_v47  ;;  %v4339_v62 = vpack.c.bf16 %v2001_v1, %v1999_v16  ;;  %v2382_v16 = vld [vmem:[#allocation13 + $0x190] sm:$0xff] }
 0x520   : > { %v5127_v8 = vpop.eup %5126  ;;  %4021 = vmatprep.mubr.msk.f32.mxu1 %vm1659_vm0, %v1744_v46  ;;  %v1983_v46 = vld [vmem:[#allocation11 + $0x148] sm:$0xff]  ;;  %v2390_v1 = vld [vmem:[#allocation13 + $0x1d0] sm:$0xff] }
 0x521   : > { %v5129_v48 = vpop.eup %5128  ;;  %4022 = vmatmul.mubr.msk.f32.vlgmr.msra.gmra.mrb[44].mxu1 %vm1659_vm0, %v1745_v45  ;;  %v1747_v24 = vmul.f32 %v5127_v8, %v6518_v23  ;;  %v1962_v23 = vld [vmem:[#allocation11 + $0xa0] sm:$0xff]  ;;  %v4321_v45 = vpack.c.bf16 %v1980_v25, %v1978_v61  ;;  %v1987_v8 = vld [vmem:[#allocation11 + $0x168] sm:$0xff]  ;;  %v2351_v61 = vld [vmem:[#allocation13 + $0x98] sm:$0xff] }
 0x522   : > { %v1746_v10 = vmul.f32 %v5129_v48, %v5113_v30  ;;  %4286 = vmatpush1.bf16.msra.mxu1 %v4285_v12  ;;  %v1964_v30 = vld [vmem:[#allocation11 + $0xb0] sm:$0xff]  ;;  %v1985_v12 = vld [vmem:[#allocation11 + $0x158] sm:$0xff] }
 0x523   : > { %4288 = vmatprep.subr.bf16.mxu1 %v4287_v35  ;;  %v4305_v15 = vpack.c.bf16 %v1964_v30, %v1962_v23  ;;  %v4323_v35 = vpack.c.bf16 %v1985_v12, %v1983_v46  ;;  %v2003_v23 = vld [vmem:[#allocation11 + $0x1e8] sm:$0xff]  ;;  %v2005_v30 = vld [vmem:[#allocation11 + $0x1f8] sm:$0xff]  ;;  %v2348_v46 = vld [vmem:[#allocation13 + $0x80] sm:$0xff] }
 0x524   : > { %4024 = vmatprep.mubr.msk.f32.mxu1 %vm1659_vm0, %v1746_v10  ;;  %v4325_v10 = vpack.c.bf16 %v1984_v58, %v1982_v40  ;;  %v4343_v53 = vpack.c.bf16 %v2005_v30, %v2003_v23  ;;  %v2359_v25 = vld [vmem:[#allocation13 + $0xd8] sm:$0xff]  ;;  %v2356_v12 = vld [vmem:[#allocation13 + $0xc0] sm:$0xff]  ;;  %v2358_v40 = vld [vmem:[#allocation13 + $0xd0] sm:$0xff]  ;;  %v4425_v30 = vpack.c.bf16 %v2390_v1, %v2382_v16 }
 0x525   : > { %4025 = vmatmul.mubr.msk.f32.gmra.mrb[46].mxu1 %vm1659_vm0, %v1747_v24  ;;  %v1986_v24 = vld [vmem:[#allocation11 + $0x160] sm:$0xff]  ;;  %v2365_v58 = vld [vmem:[#allocation13 + $0x108] sm:$0xff]  ;;  %v2470_v16 = vld [vmem:[#allocation13 + $0x450] sm:$0xff] }
 0x526   : > { %4290 = vmatpush1.bf16.msra.mxu1 %v4289_v54  ;;  %2070 = vmatprep.mubr.f32.mxu1 %v5530_v3  ;;  %v4327_v54 = vpack.c.bf16 %v1989_v9, %v1987_v8  ;;  %v2373_v8 = vld [vmem:[#allocation13 + $0x148] sm:$0xff] }
 0x527   : > { %4292 = vmatprep.subr.bf16.mxu1 %v4291_v36  ;;  %v1988_v36 = vld [vmem:[#allocation11 + $0x170] sm:$0xff]  ;;  %v2477_v1 = vld [vmem:[#allocation13 + $0x488] sm:$0xff] }
 0x528   : > { %v4329_v57 = vpack.c.bf16 %v1988_v36, %v1986_v24  ;;  %v2372_v36 = vld [vmem:[#allocation13 + $0x140] sm:$0xff] }
 0x52a   : > { %4294 = vmatpush1.bf16.msra.mxu1 %v4293_v29  ;;  %v1990_v29 = vld [vmem:[#allocation11 + $0x180] sm:$0xff] }
 0x52b   : > { %4296 = vmatprep.subr.bf16.mxu1 %v4295_v51  ;;  %v1992_v51 = vld [vmem:[#allocation11 + $0x190] sm:$0xff] }
 0x52c   : > { %v4333_v60 = vpack.c.bf16 %v1992_v51, %v1990_v29  ;;  %v2389_v29 = vld [vmem:[#allocation13 + $0x1c8] sm:$0xff]  ;;  %v2383_v51 = vld [vmem:[#allocation13 + $0x198] sm:$0xff] }
 0x52e   : > { %4298 = vmatpush1.bf16.msra.mxu1 %v4297_v13  ;;  %v1994_v13 = vld [vmem:[#allocation11 + $0x1a0] sm:$0xff] }
 0x52f   : > { %4300 = vmatprep.subr.bf16.mxu1 %v4299_v55  ;;  %v1996_v55 = vld [vmem:[#allocation11 + $0x1b0] sm:$0xff] }
 0x530   : > { %v4337_v47 = vpack.c.bf16 %v1996_v55, %v1994_v13  ;;  %v2388_v13 = vld [vmem:[#allocation13 + $0x1c0] sm:$0xff] }
 0x532   : > { %4302 = vmatpush1.bf16.msra.mxu1 %v4301_v4  ;;  %v1998_v4 = vld [vmem:[#allocation11 + $0x1c0] sm:$0xff] }
 0x533   : > { %4304 = vmatprep.subr.bf16.mxu1 %v4303_v17  ;;  %v2000_v17 = vld [vmem:[#allocation11 + $0x1d0] sm:$0xff] }
 0x534   : > { %v4341_v19 = vpack.c.bf16 %v2000_v17, %v1998_v4  ;;  %v2399_v4 = vld [vmem:[#allocation13 + $0x218] sm:$0xff] }
 0x535   : > { %v2407_v17 = vld [vmem:[#allocation13 + $0x258] sm:$0xff] }
 0x536   : > { %4306 = vmatpush1.bf16.msra.mxu1 %v4305_v15  ;;  %v2002_v15 = vld [vmem:[#allocation11 + $0x1e0] sm:$0xff] }
 0x537   : > { %4308 = vmatprep.subr.bf16.mxu1 %v4307_v5  ;;  %v2004_v5 = vld [vmem:[#allocation11 + $0x1f0] sm:$0xff] }
 0x538   : > { %v4345_v7 = vpack.c.bf16 %v2004_v5, %v2002_v15  ;;  %v2404_v15 = vld [vmem:[#allocation13 + $0x240] sm:$0xff]  ;;  %v2398_v5 = vld [vmem:[#allocation13 + $0x210] sm:$0xff] }
 0x53a   : > { %4310 = vmatpush1.bf16.msra.mxu1 %v4309_v49 }
 0x53b   : > { %4312 = vmatprep.subr.bf16.mxu1 %v4311_v41  ;;  %v2333_v41 = vld [vmem:[#allocation13 + $0x8] sm:$0xff] }
 0x53e   : > { %4314 = vmatpush1.bf16.msra.mxu1 %v4313_v26  ;;  %v4347_v26 = vpack.c.bf16 %v2341_v56, %v2333_v41  ;;  %v2423_v41 = vld [vmem:[#allocation13 + $0x2d8] sm:$0xff] }
 0x53f   : > { %4316 = vmatprep.subr.bf16.mxu1 %v4315_v11  ;;  %v2340_v11 = vld [vmem:[#allocation13 + $0x40] sm:$0xff] }
 0x540   : > { %v4349_v2 = vpack.c.bf16 %v2340_v11, %v2332_v37  ;;  %4348 = vmatprep.subr.bf16.mxu0 %v4347_v26  ;;  %v2420_v37 = vld [vmem:[#allocation13 + $0x2c0] sm:$0xff]  ;;  %v2414_v11 = vld [vmem:[#allocation13 + $0x290] sm:$0xff] }
 0x542   : > { %4350 = vmatpush1.bf16.msra.mxu0 %v4349_v2  ;;  %v2422_v2 = vld [vmem:[#allocation13 + $0x2d0] sm:$0xff] }
 0x5d4   : > { %v4001_v39 = vpop.f32.mrb[40].mxu1 }
 0x5d5   : > { %v1826_v22 = vpop.f32.mrb[41].mxu1 }
 0x5d6   : > { %2071 = vmatmul.mubr.f32.vlgmr.msra.gmra.mrb[48].mxu1 %v1826_v22  ;;  %v4415_v22 = vpack.c.bf16 %v2359_v25, %v2351_v61  ;;  %v4433_v61 = vpack.c.bf16 %v2422_v2, %v2414_v11 }
 0x5d7   : > { %4318 = vmatpush1.bf16.msra.mxu1 %v4317_v63  ;;  %2076 = vmatprep.mubr.f32.mxu1 %v5530_v3  ;;  %v2349_v63 = vld [vmem:[#allocation13 + $0x88] sm:$0xff] }
 0x5d8   : > { %4320 = vmatprep.subr.bf16.mxu1 %v4319_v28  ;;  %v2357_v28 = vld [vmem:[#allocation13 + $0xc8] sm:$0xff] }
 0x5da   : > { %v4004_v21 = vpop.f32.mrb[42].mxu1  ;;  %2077 = vmatmul.mubr.f32.gmra.mrb[50].mxu1 %v4001_v39  ;;  %v4413_v39 = vpack.c.bf16 %v2342_v0, %v2334_v6  ;;  %v2429_v6 = vld [vmem:[#allocation13 + $0x308] sm:$0xff] }
 0x5db   : > { %v1836_v48 = vpop.f32.mrb[43].mxu1  ;;  %4322 = vmatpush1.bf16.msra.mxu1 %v4321_v45  ;;  %2082 = vmatprep.mubr.f32.mxu1 %v5530_v3  ;;  %v2350_v45 = vld [vmem:[#allocation13 + $0x90] sm:$0xff]  ;;  %v2437_v0 = vld [vmem:[#allocation13 + $0x348] sm:$0xff] }
 0x5dc   : > { %4324 = vmatprep.subr.bf16.mxu1 %v4323_v35  ;;  %v4353_v35 = vpack.c.bf16 %v2356_v12, %v2348_v46  ;;  %v4417_v9 = vpack.c.bf16 %v2358_v40, %v2350_v45  ;;  %v4371_v25 = vpack.c.bf16 %v2437_v0, %v2429_v6  ;;  %v2430_v46 = vld [vmem:[#allocation13 + $0x310] sm:$0xff]  ;;  %v2453_v40 = vld [vmem:[#allocation13 + $0x3c8] sm:$0xff] }
 0x5dd   : > { %v2438_v45 = vld [vmem:[#allocation13 + $0x350] sm:$0xff] }
 0x5de   : > { %2083 = vmatmul.mubr.f32.gmra.mrb[52].mxu1 %v1836_v48  ;;  %v2367_v48 = vld [vmem:[#allocation13 + $0x118] sm:$0xff] }
 0x5df   : > { %4326 = vmatpush1.bf16.msra.mxu1 %v4325_v10  ;;  %2088 = vmatprep.mubr.f32.mxu1 %v5530_v3  ;;  %v2375_v10 = vld [vmem:[#allocation13 + $0x158] sm:$0xff] }
 0x5e0   : > { %4328 = vmatprep.subr.bf16.mxu1 %v4327_v54  ;;  %v2364_v54 = vld [vmem:[#allocation13 + $0x100] sm:$0xff]  ;;  %v4419_v24 = vpack.c.bf16 %v2375_v10, %v2367_v48 }
 0x5e1   : > { %v2444_v10 = vld [vmem:[#allocation13 + $0x380] sm:$0xff] }
 0x5e2   : > { %2089 = vmatmul.mubr.f32.gmra.mrb[54].mxu1 %v4004_v21  ;;  %v4355_v21 = vpack.c.bf16 %v2373_v8, %v2365_v58  ;;  %v2447_v58 = vld [vmem:[#allocation13 + $0x398] sm:$0xff] }
 0x5e3   : > { %4330 = vmatpush1.bf16.msra.mxu1 %v4329_v57  ;;  %2159 = vmatprep.mubr.f32.mxu1 %v5530_v3  ;;  %v4357_v57 = vpack.c.bf16 %v2372_v36, %v2364_v54  ;;  %v2455_v8 = vld [vmem:[#allocation13 + $0x3d8] sm:$0xff]  ;;  %v2452_v54 = vld [vmem:[#allocation13 + $0x3c0] sm:$0xff] }
 0x5e4   : > { %4332 = vmatprep.subr.bf16.mxu1 %v4331_v52  ;;  %v2381_v52 = vld [vmem:[#allocation13 + $0x188] sm:$0xff]  ;;  %v4439_v36 = vpack.c.bf16 %v2455_v8, %v2447_v58 }
 0x5e5   : > { %v4359_v18 = vpack.c.bf16 %v2389_v29, %v2381_v52  ;;  %v2463_v52 = vld [vmem:[#allocation13 + $0x418] sm:$0xff] }
 0x5e6   : > { %v2471_v29 = vld [vmem:[#allocation13 + $0x458] sm:$0xff] }
 0x5e7   : > { %4334 = vmatpush1.bf16.msra.mxu1 %v4333_v60  ;;  %v2391_v60 = vld [vmem:[#allocation13 + $0x1d8] sm:$0xff] }
 0x5e8   : > { %4336 = vmatprep.subr.bf16.mxu1 %v4335_v59  ;;  %v2380_v59 = vld [vmem:[#allocation13 + $0x180] sm:$0xff]  ;;  %v4423_v55 = vpack.c.bf16 %v2391_v60, %v2383_v51  ;;  %v4377_v51 = vpack.c.bf16 %v2452_v54, %v2444_v10 }
 0x5e9   : > { %v4361_v23 = vpack.c.bf16 %v2388_v13, %v2380_v59  ;;  %v2460_v60 = vld [vmem:[#allocation13 + $0x400] sm:$0xff]  ;;  %v2462_v13 = vld [vmem:[#allocation13 + $0x410] sm:$0xff] }
 0x5ea   : > { %v2468_v59 = vld [vmem:[#allocation13 + $0x440] sm:$0xff] }
 0x5eb   : > { %4338 = vmatpush1.bf16.msra.mxu1 %v4337_v47  ;;  %v2397_v47 = vld [vmem:[#allocation13 + $0x208] sm:$0xff]  ;;  %v5142_v10 = vld [vmem:[%s6003_s11 + $0x20] sm:$0xff] }
 0x5ec   : > { %4340 = vmatprep.subr.bf16.mxu1 %v4339_v62  ;;  %v2405_v62 = vld [vmem:[#allocation13 + $0x248] sm:$0xff] }
 0x5ef   : > { %4342 = vmatpush1.bf16.msra.mxu1 %v4341_v19  ;;  %v4363_v19 = vpack.c.bf16 %v2405_v62, %v2397_v47  ;;  %v2485_v47 = vld [vmem:[#allocation13 + $0x4c8] sm:$0xff]  ;;  %v2479_v62 = vld [vmem:[#allocation13 + $0x498] sm:$0xff] }
 0x5f0   : > { %4344 = vmatprep.subr.bf16.mxu1 %v4343_v53  ;;  %v2396_v53 = vld [vmem:[#allocation13 + $0x200] sm:$0xff] }
 0x5f1   : > { %v4365_v56 = vpack.c.bf16 %v2404_v15, %v2396_v53  ;;  %v2484_v53 = vld [vmem:[#allocation13 + $0x4c0] sm:$0xff] }
 0x5f3   : > { %4346 = vmatpush1.bf16.msra.mxu1 %v4345_v7  ;;  %v4427_v7 = vpack.c.bf16 %v2407_v17, %v2399_v4  ;;  %v2487_v4 = vld [vmem:[#allocation13 + $0x4d8] sm:$0xff]  ;;  %v4381_v17 = vpack.c.bf16 %v2468_v59, %v2460_v60  ;;  %v5144_v60 = vld [vmem:[%s6003_s11 + $0x30] sm:$0xff] }
 0x5f4   : > { %v4023_v44 = vpop.f32.mrb[44].mxu1  ;;  %4412 = vmatprep.subr.bf16.mxu1 %v4411_v42  ;;  %v4447_v15 = vpack.c.bf16 %v2487_v4, %v2479_v62 }
 0x5f5   : > { %v1923_v38 = vpop.f32.mrb[45].mxu1 }
 0x5f6   : > { %2160 = vmatmul.mubr.f32.vlgmr.msra.gmra.mrb[48].mxu1 %v1923_v38  ;;  %v2413_v38 = vld [vmem:[#allocation13 + $0x288] sm:$0xff] }
 0x5f7   : > { %2165 = vmatprep.mubr.f32.mxu1 %v5530_v3  ;;  %4414 = vmatpush1.bf16.msra.mxu1 %v4413_v39  ;;  %v2439_v39 = vld [vmem:[#allocation13 + $0x358] sm:$0xff] }
 0x5f8   : > { %v4026_v14 = vpop.f32.mrb[46].mxu1  ;;  %4416 = vmatprep.subr.bf16.mxu1 %v4415_v22  ;;  %v2436_v22 = vld [vmem:[#allocation13 + $0x340] sm:$0xff] }
 0x5f9   : > { %v1933_v49 = vpop.f32.mrb[47].mxu1 }
 0x5fa   : > { %2166 = vmatmul.mubr.f32.gmra.mrb[50].mxu1 %v4023_v44  ;;  %v2406_v44 = vld [vmem:[#allocation13 + $0x250] sm:$0xff] }
 0x5fb   : > { %2171 = vmatprep.mubr.f32.mxu1 %v5530_v3  ;;  %4418 = vmatpush1.bf16.msra.mxu1 %v4417_v9  ;;  %v4429_v50 = vpack.c.bf16 %v2406_v44, %v2398_v5  ;;  %v2478_v5 = vld [vmem:[#allocation13 + $0x490] sm:$0xff] }
 0x5fc   : > { %4420 = vmatprep.subr.bf16.mxu1 %v4419_v24  ;;  %v2446_v24 = vld [vmem:[#allocation13 + $0x390] sm:$0xff] }
 0x5fe   : > { %2172 = vmatmul.mubr.f32.gmra.mrb[52].mxu1 %v1933_v49  ;;  %v2415_v49 = vld [vmem:[#allocation13 + $0x298] sm:$0xff] }
 0x5ff   : > { %2177 = vmatprep.mubr.f32.mxu1 %v5530_v3  ;;  %v4351_v3 = vpack.c.bf16 %v2357_v28, %v2349_v63  ;;  %4422 = vmatpush1.bf16.msra.mxu1 %v4421_v43  ;;  %v4431_v42 = vpack.c.bf16 %v2423_v41, %v2415_v49  ;;  %v2431_v63 = vld [vmem:[#allocation13 + $0x318] sm:$0xff]  ;;  %v4369_v28 = vpack.c.bf16 %v2420_v37, %v2412_v27  ;;  %v5138_v37 = vld [vmem:[%s6003_s11] sm:$0xff] }
 0x600   : > { %4424 = vmatprep.subr.bf16.mxu1 %v4423_v55  ;;  %v4435_v12 = vpack.c.bf16 %v2439_v39, %v2431_v63  ;;  %v4441_v43 = vpack.c.bf16 %v2454_v33, %v2446_v24  ;;  %v4443_v55 = vpack.c.bf16 %v2471_v29, %v2463_v52  ;;  %v5143_v24 = vld [vmem:[%s6003_s11 + $0x28] sm:$0xff] }
 0x601   : > { %4352 = vmatprep.subr.bf16.mxu0 %v4351_v3  ;;  %v2428_v3 = vld [vmem:[#allocation13 + $0x300] sm:$0xff] }
 0x602   : > { %2178 = vmatmul.mubr.f32.gmra.mrb[54].mxu1 %v4026_v14  ;;  %4354 = vmatpush1.bf16.msra.mxu0 %v4353_v35  ;;  %v2421_v14 = vld [vmem:[#allocation13 + $0x2c8] sm:$0xff]  ;;  %v4373_v9 = vpack.c.bf16 %v2436_v22, %v2428_v3  ;;  %v5140_v3 = vld [vmem:[%s6003_s11 + $0x10] sm:$0xff] }
 0x603   : > { %4356 = vmatprep.subr.bf16.mxu0 %v4355_v21  ;;  %4426 = vmatpush1.bf16.msra.mxu1 %v4425_v30  ;;  %v4367_v26 = vpack.c.bf16 %v2421_v14, %v2413_v38  ;;  %v2445_v35 = vld [vmem:[#allocation13 + $0x388] sm:$0xff]  ;;  %v4437_v21 = vpack.c.bf16 %v2438_v45, %v2430_v46  ;;  %v4383_v30 = vpack.c.bf16 %v2485_v47, %v2477_v1  ;;  %v2192_v14 = vld [vmem:[%s7006_s19] sm:$0x3]  ;;  %v5141_v46 = vld [vmem:[%s6003_s11 + $0x18] sm:$0xff]  ;;  %s6822_s19 = scalar_lea.vmem [#allocation16], %s3864_s6 }
 0x604   : > { %4428 = vmatprep.subr.bf16.mxu1 %v4427_v7  ;;  %v4375_v48 = vpack.c.bf16 %v2453_v40, %v2445_v35  ;;  %v2486_v7 = vld [vmem:[#allocation13 + $0x4d0] sm:$0xff]  ;;  %v2197_v49 = vrot.slane %v2192_v14, %v6194_v31  ;;  %v2201_v41 = vrot.slane %v2192_v14, %v6197_v32 }
 0x605   : > { %v4449_v38 = vpack.c.bf16 %v2486_v7, %v2478_v5  ;;  %v2500_v5 = vld [vmem:[#allocation13 + $0x540] sm:$0xff]  ;;  %v2502_v14 = vld [vmem:[#allocation13 + $0x550] sm:$0xff] }
 0x606   : > { %4358 = vmatpush1.bf16.msra.mxu0 %v4357_v57  ;;  %v2469_v57 = vld [vmem:[#allocation13 + $0x448] sm:$0xff] }
 0x607   : > { %4360 = vmatprep.subr.bf16.mxu0 %v4359_v18  ;;  %4430 = vmatpush1.bf16.msra.mxu1 %v4429_v50  ;;  %v4379_v18 = vpack.c.bf16 %v2469_v57, %v2461_v34 }
 0x608   : > { %4432 = vmatprep.subr.bf16.mxu1 %v4431_v42  ;;  %v5139_v42 = vld [vmem:[%s6003_s11 + $0x8] sm:$0xff] }
 0x60a   : > { %4362 = vmatpush1.bf16.msra.mxu0 %v4361_v23  ;;  %v4445_v23 = vpack.c.bf16 %v2470_v16, %v2462_v13  ;;  %v5145_v13 = vld [vmem:[%s6003_s11 + $0x38] sm:$0xff]  ;;  %s3890_s11 = sshll.u32 %s7011_s0, 3 }
 0x60b   : > { %4364 = vmatprep.subr.bf16.mxu0 %v4363_v19  ;;  %4434 = vmatpush1.bf16.msra.mxu1 %v4433_v61  ;;  %v2476_v19 = vld [vmem:[#allocation13 + $0x480] sm:$0xff]  ;;  %s3672_s6 = sadd.s32 %s3890_s11, %s3884_s5 }
 0x60c   : > { %4436 = vmatprep.subr.bf16.mxu1 %v4435_v12  ;;  %v4385_v44 = vpack.c.bf16 %v2484_v53, %v2476_v19  ;;  %v2503_v53 = vld [vmem:[#allocation13 + $0x558] sm:$0xff]  ;;  %s3885_s3 = sshll.u32 %s3672_s6, 7 }
 0x60d   : > { %s6843_s16 = scalar_lea.hbm %s7013_s29, %s3885_s3 }
 0x60e   : > { %4366 = vmatpush1.bf16.msra.mxu0 %v4365_v56 }
 0x60f   : > { %4368 = vmatprep.subr.bf16.mxu0 %v4367_v26  ;;  %4438 = vmatpush1.bf16.msra.mxu1 %v4437_v21 }
 0x610   : > { %4440 = vmatprep.subr.bf16.mxu1 %v4439_v36 }
 0x612   : > { %4370 = vmatpush1.bf16.msra.mxu0 %v4369_v28 }
 0x613   : > { %4372 = vmatprep.subr.bf16.mxu0 %v4371_v25  ;;  %4442 = vmatpush1.bf16.msra.mxu1 %v4441_v43 }
 0x614   : > { %4444 = vmatprep.subr.bf16.mxu1 %v4443_v55 }
 0x616   : > { %4374 = vmatpush1.bf16.msra.mxu0 %v4373_v9 }
 0x617   : > { %4376 = vmatprep.subr.bf16.mxu0 %v4375_v48  ;;  %4446 = vmatpush1.bf16.msra.mxu1 %v4445_v23  ;;  %v2501_v23 = vld [vmem:[#allocation13 + $0x548] sm:$0xff] }
 0x618   : > { %4448 = vmatprep.subr.bf16.mxu1 %v4447_v15  ;;  %v2492_v15 = vld [vmem:[#allocation13 + $0x500] sm:$0xff] }
 0x61a   : > { %4378 = vmatpush1.bf16.msra.mxu0 %v4377_v51 }
 0x61b   : > { %4380 = vmatprep.subr.bf16.mxu0 %v4379_v18  ;;  %4450 = vmatpush1.bf16.msra.mxu1 %v4449_v38  ;;  %v2494_v38 = vld [vmem:[#allocation13 + $0x510] sm:$0xff] }
 0x61e   : > { %4382 = vmatpush1.bf16.msra.mxu0 %v4381_v17  ;;  %v2493_v17 = vld [vmem:[#allocation13 + $0x508] sm:$0xff] }
 0x61f   : > { %4384 = vmatprep.subr.bf16.mxu0 %v4383_v30  ;;  %v2495_v30 = vld [vmem:[#allocation13 + $0x518] sm:$0xff]  ;;  %v4387_v19 = vpack.c.bf16 %v2501_v23, %v2493_v17  ;;  %v2556_v17 = vld [vmem:[#allocation13 + $0x700] sm:$0xff] }
 0x620   : > { %v4451_v7 = vpack.c.bf16 %v2503_v53, %v2495_v30  ;;  %v2564_v23 = vld [vmem:[#allocation13 + $0x740] sm:$0xff]  ;;  %v2558_v53 = vld [vmem:[#allocation13 + $0x710] sm:$0xff] }
 0x622   : > { %4386 = vmatpush1.bf16.msra.mxu0 %v4385_v44  ;;  %v4389_v44 = vpack.c.bf16 %v2500_v5, %v2492_v15  ;;  %4452 = vmatprep.subr.bf16.mxu1 %v4451_v7  ;;  %v2566_v15 = vld [vmem:[#allocation13 + $0x750] sm:$0xff]  ;;  %v2573_v7 = vld [vmem:[#allocation13 + $0x788] sm:$0xff] }
 0x623   : > { %4388 = vmatprep.subr.bf16.mxu0 %v4387_v19  ;;  %v4405_v19 = vpack.c.bf16 %v2564_v23, %v2556_v17  ;;  %v4469_v5 = vpack.c.bf16 %v2566_v15, %v2558_v53 }
 0x626   : > { %4390 = vmatpush1.bf16.msra.mxu0 %v4389_v44  ;;  %v2581_v44 = vld [vmem:[#allocation13 + $0x7c8] sm:$0xff] }
 0x6c9   : > { %v2161_v56 = vpop.f32.mrb[48].mxu1 }
 0x6ca   : > { %v2204_v50 = vadd.f32 %v2197_v49, %v2161_v56  ;;  %v2163_v26 = vpop.f32.mrb[49].mxu1  ;;  %v2517_v56 = vld [vmem:[#allocation13 + $0x5c8] sm:$0xff] }
 0x6cb   : > { %v2205_v27 = vadd.f32 %v2201_v41, %v2163_v26 }
 0x6cc   : > { %v6553_v11 = vadd.f32 %v5138_v37, %v2204_v50  ;;  %v2511_v50 = vld [vmem:[#allocation13 + $0x598] sm:$0xff]  ;;  %v2508_v37 = vld [vmem:[#allocation13 + $0x580] sm:$0xff] }
 0x6cd   : > { %v6556_v2 = vadd.f32 %v5139_v42, %v2205_v27  ;;  %v2167_v6 = vpop.f32.mrb[50].mxu1  ;;  %v2519_v27 = vld [vmem:[#allocation13 + $0x5d8] sm:$0xff]  ;;  %v2516_v42 = vld [vmem:[#allocation13 + $0x5c0] sm:$0xff] }
 0x6ce   : > { %v2206_v0 = vadd.f32 %v2197_v49, %v2167_v6  ;;  %v2169_v63 = vpop.f32.mrb[51].mxu1  ;;  %v2238_v39 = vmul.f32 %v6553_v11, %v6553_v11  ;;  %v4455_v6 = vpack.c.bf16 %v2519_v27, %v2511_v50  ;;  %v2574_v27 = vld [vmem:[#allocation13 + $0x790] sm:$0xff] }
 0x6cf   : > { %v2207_v28 = vadd.f32 %v2201_v41, %v2169_v63  ;;  %v2222_v61 = vadd.f32 %v6556_v2, %v6553_v11  ;;  %v2239_v25 = vmul.f32 %v6556_v2, %v6556_v2  ;;  %v2510_v63 = vld [vmem:[#allocation13 + $0x590] sm:$0xff] }
 0x6d0   : > { %v6565_v22 = vadd.f32 %v5140_v3, %v2206_v0  ;;  %v4393_v0 = vpack.c.bf16 %v2516_v42, %v2508_v37  ;;  %v2527_v3 = vld [vmem:[#allocation13 + $0x618] sm:$0xff]  ;;  %v2582_v37 = vld [vmem:[#allocation13 + $0x7d0] sm:$0xff] }
 0x6d1   : > { %v6568_v12 = vadd.f32 %v5141_v46, %v2207_v28  ;;  %2223 = vadd.xlane.f32.xlu0 %v2222_v61  ;;  %v2173_v45 = vpop.f32.mrb[52].mxu1  ;;  %v2246_v35 = vadd.f32 %v2239_v25, %v2238_v39  ;;  %v2518_v39 = vld [vmem:[#allocation13 + $0x5d0] sm:$0xff]  ;;  %v2525_v61 = vld [vmem:[#allocation13 + $0x608] sm:$0xff]  ;;  %v4473_v42 = vpack.c.bf16 %v2582_v37, %v2574_v27 }
 0x6d2   : > { %v2208_v40 = vadd.f32 %v2197_v49, %v2173_v45  ;;  %v2175_v58 = vpop.f32.mrb[53].mxu1  ;;  %v2240_v8 = vmul.f32 %v6565_v22, %v6565_v22  ;;  %v4457_v28 = vpack.c.bf16 %v2518_v39, %v2510_v63  ;;  %v2533_v25 = vld [vmem:[#allocation13 + $0x648] sm:$0xff]  ;;  %v2535_v45 = vld [vmem:[#allocation13 + $0x658] sm:$0xff] }
 0x6d3   : > { %v2209_v9 = vadd.f32 %v2201_v41, %v2175_v58  ;;  %2247 = vadd.xlane.f32.xlu1 %v2246_v35  ;;  %v2225_v21 = vadd.f32 %v6568_v12, %v6565_v22  ;;  %v2241_v48 = vmul.f32 %v6568_v12, %v6568_v12  ;;  %v4395_v46 = vpack.c.bf16 %v2533_v25, %v2525_v61  ;;  %v2524_v35 = vld [vmem:[#allocation13 + $0x600] sm:$0xff]  ;;  %v2339_v63 = vld [vmem:[#allocation13 + $0x38] sm:$0xff] }
 0x6d4   : > { %v6577_v54 = vadd.f32 %v5142_v10, %v2208_v40  ;;  %v2532_v40 = vld [vmem:[#allocation13 + $0x640] sm:$0xff]  ;;  %v4459_v58 = vpack.c.bf16 %v2535_v45, %v2527_v3  ;;  %v2541_v10 = vld [vmem:[#allocation13 + $0x688] sm:$0xff] }
 0x6d5   : > { %v6580_v36 = vadd.f32 %v5143_v24, %v2209_v9  ;;  %2226 = vadd.xlane.f32.xlu0 %v2225_v21  ;;  %v2179_v33 = vpop.f32.mrb[54].mxu1  ;;  %v2249_v34 = vadd.f32 %v2241_v48, %v2240_v8  ;;  %v4397_v8 = vpack.c.bf16 %v2532_v40, %v2524_v35  ;;  %v2526_v9 = vld [vmem:[#allocation13 + $0x610] sm:$0xff]  ;;  %v2549_v24 = vld [vmem:[#allocation13 + $0x6c8] sm:$0xff] }
 0x6d6   : > { %v2210_v57 = vadd.f32 %v2197_v49, %v2179_v33  ;;  %v2181_v52 = vpop.f32.mrb[55].mxu1  ;;  %v2242_v29 = vmul.f32 %v6577_v54, %v6577_v54  ;;  %v4453_v49 = vpack.c.bf16 %v2502_v14, %v2494_v38  ;;  %v2534_v21 = vld [vmem:[#allocation13 + $0x650] sm:$0xff]  ;;  %v2543_v33 = vld [vmem:[#allocation13 + $0x698] sm:$0xff]  ;;  %v4407_v14 = vpack.c.bf16 %v2581_v44, %v2573_v7 }
 0x6d7   : > { %v2211_v51 = vadd.f32 %v2201_v41, %v2181_v52  ;;  %2250 = vadd.xlane.f32.xlu1 %v2249_v34  ;;  %v2228_v43 = vadd.f32 %v6580_v36, %v6577_v54  ;;  %v2243_v18 = vmul.f32 %v6580_v36, %v6580_v36  ;;  %v2509_v41 = vld [vmem:[#allocation13 + $0x588] sm:$0xff]  ;;  %v4461_v48 = vpack.c.bf16 %v2534_v21, %v2526_v9  ;;  %v2540_v52 = vld [vmem:[#allocation13 + $0x680] sm:$0xff]  ;;  %v2575_v38 = vld [vmem:[#allocation13 + $0x798] sm:$0xff] }
 0x6d8   : > { %v6589_v59 = vadd.f32 %v5144_v60, %v2210_v57  ;;  %4454 = vmatpush1.bf16.msra.mxu1 %v4453_v49  ;;  %v4391_v26 = vpack.c.bf16 %v2517_v56, %v2509_v41  ;;  %v4399_v34 = vpack.c.bf16 %v2549_v24, %v2541_v10  ;;  %v2551_v57 = vld [vmem:[#allocation13 + $0x6d8] sm:$0xff]  ;;  %v2550_v60 = vld [vmem:[#allocation13 + $0x6d0] sm:$0xff]  ;;  %v2572_v41 = vld [vmem:[#allocation13 + $0x780] sm:$0xff] }
 0x6d9   : > { %v6592_v55 = vadd.f32 %v5145_v13, %v2211_v51  ;;  %2229 = vadd.xlane.f32.xlu0 %v2228_v43  ;;  %v2252_v16 = vadd.f32 %v2243_v18, %v2242_v29  ;;  %4456 = vmatprep.subr.bf16.mxu1 %v4455_v6  ;;  %v2548_v29 = vld [vmem:[#allocation13 + $0x6c0] sm:$0xff]  ;;  %v4463_v51 = vpack.c.bf16 %v2551_v57, %v2543_v33  ;;  %v2542_v18 = vld [vmem:[#allocation13 + $0x690] sm:$0xff]  ;;  %v2583_v49 = vld [vmem:[#allocation13 + $0x7d8] sm:$0xff] }
 0x6da   : > { %v2244_v1 = vmul.f32 %v6589_v59, %v6589_v59  ;;  %4392 = vmatprep.subr.bf16.mxu0 %v4391_v26  ;;  %v4401_v43 = vpack.c.bf16 %v2548_v29, %v2540_v52  ;;  %v4465_v13 = vpack.c.bf16 %v2550_v60, %v2542_v18  ;;  %v2580_v56 = vld [vmem:[#allocation13 + $0x7c0] sm:$0xff]  ;;  %v4471_v50 = vpack.c.bf16 %v2583_v49, %v2575_v38  ;;  %v2337_v6 = vld [vmem:[#allocation13 + $0x28] sm:$0xff] }
 0x6db   : > { %2253 = vadd.xlane.f32.xlu1 %v2252_v16  ;;  %v2231_v47 = vadd.f32 %v6592_v55, %v6589_v59  ;;  %v2245_v62 = vmul.f32 %v6592_v55, %v6592_v55  ;;  %4394 = vmatpush1.bf16.msra.mxu0 %v4393_v0  ;;  %v2557_v16 = vld [vmem:[#allocation13 + $0x708] sm:$0xff]  ;;  %v4409_v26 = vpack.c.bf16 %v2580_v56, %v2572_v41  ;;  %v2336_v49 = vld [vmem:[#allocation13 + $0x20] sm:$0xff]  ;;  %v2338_v56 = vld [vmem:[#allocation13 + $0x30] sm:$0xff] }
 0x6dc   : > { %4458 = vmatpush1.bf16.msra.mxu1 %v4457_v28  ;;  %4396 = vmatprep.subr.bf16.mxu0 %v4395_v46  ;;  %v2345_v0 = vld [vmem:[#allocation13 + $0x68] sm:$0xff]  ;;  %v2347_v28 = vld [vmem:[#allocation13 + $0x78] sm:$0xff]  ;;  %v2344_v41 = vld [vmem:[#allocation13 + $0x60] sm:$0xff] }
 0x6dd   : > { %2232 = vadd.xlane.f32.xlu0 %v2231_v47  ;;  %v2255_v4 = vadd.f32 %v2245_v62, %v2244_v1  ;;  %4460 = vmatprep.subr.bf16.mxu1 %v4459_v58  ;;  %v2565_v1 = vld [vmem:[#allocation13 + $0x748] sm:$0xff]  ;;  %v2559_v47 = vld [vmem:[#allocation13 + $0x718] sm:$0xff]  ;;  %v4475_v39 = vpack.c.bf16 %v2345_v0, %v2337_v6  ;;  %v4539_v61 = vpack.c.bf16 %v2347_v28, %v2339_v63 }
 0x6de   : > { %v4403_v62 = vpack.c.bf16 %v2565_v1, %v2557_v16  ;;  %v2220_v16 = vld [vmem:[%s7007_s1] sm:$0x3]  ;;  %v2355_v6 = vld [vmem:[#allocation13 + $0xb8] sm:$0xff]  ;;  %s3675_s1 = sshll.u32 %s6822_s19, 4  ;;  %s6836_s1 = int_to_ptr.vmem [resolvable:$true] %s3675_s1 }
 0x6df   : > { %2256 = vadd.xlane.f32.xlu1 %v2255_v4  ;;  %4398 = vmatpush1.bf16.msra.mxu0 %v4397_v8  ;;  %v2567_v4 = vld [vmem:[#allocation13 + $0x758] sm:$0xff]  ;;  %v6615_v17 = vrot.slane %v2220_v16, %v6194_v31  ;;  %v6620_v53 = vrot.slane %v2220_v16, %v6197_v32  ;;  %s5374_s14 = scalar_lea.vmem %s6836_s1, 1024 }
 0x6e0   : > { %4462 = vmatpush1.bf16.msra.mxu1 %v4461_v48  ;;  %4400 = vmatprep.subr.bf16.mxu0 %v4399_v34  ;;  %v4467_v30 = vpack.c.bf16 %v2567_v4, %v2559_v47  ;;  %v2221_v4 = vld [vmem:[%s7008_s12] sm:$0x3]  ;;  %v2363_v0 = vld [vmem:[#allocation13 + $0xf8] sm:$0xff]  ;;  %p5375_p6 = scmp.ne.s32.totalorder %s6836_s1, %s5374_s14 }
 0x6e1   : > { %4464 = vmatprep.subr.bf16.mxu1 %v4463_v51 }
 0x6e2   : > { %p5376_p4 = pnand %p5375_p6, %p7014_p3 }
 0x6e3   : > { %4402 = vmatpush1.bf16.msra.mxu0 %v4401_v43 }
 0x6e4   : > { %4466 = vmatpush1.bf16.msra.mxu1 %v4465_v13  ;;  %4404 = vmatprep.subr.bf16.mxu0 %v4403_v62  ;;  %p5377_p8 = pneg %p5376_p4 }
 0x6e5   : > { %4468 = vmatprep.subr.bf16.mxu1 %v4467_v30 }
 0x6e7   : > { %4406 = vmatpush1.bf16.msra.mxu0 %v4405_v19 }
 0x6e8   : > { %4470 = vmatpush1.bf16.msra.mxu1 %v4469_v5  ;;  %4408 = vmatprep.subr.bf16.mxu0 %v4407_v14  ;;  %v6623_v5 = vrot.slane %v2221_v4, %v6194_v31  ;;  %v6626_v14 = vrot.slane %v2221_v4, %v6197_v32  ;;  %v2368_v4 = vld [vmem:[#allocation13 + $0x120] sm:$0xff] }
 0x6e9   : > { %4472 = vmatprep.subr.bf16.mxu1 %v4471_v50  ;;  %v2346_v50 = vld [vmem:[#allocation13 + $0x70] sm:$0xff] }
 0x6eb   : > { %4410 = vmatpush1.bf16.msra.mxu0 %v4409_v26  ;;  %v2353_v26 = vld [vmem:[#allocation13 + $0xa8] sm:$0xff] }
 0x6ec   : > { %4474 = vmatpush1.bf16.msra.mxu1 %v4473_v42  ;;  %4476 = vmatprep.subr.bf16.mxu0 %v4475_v39  ;;  %v2361_v42 = vld [vmem:[#allocation13 + $0xe8] sm:$0xff] }
 0x6ed   : > { %4540 = vmatprep.subr.bf16.mxu1 %v4539_v61 }
 0x75e   : > { %v2224_v25 = vpop.xlane.xlu0 %2223 }
 0x75f   : > { %v2234_v3 = vmul.f32 0.00390625, %v2224_v25 }
 0x760   : > { %v2248_v46 = vpop.xlane.xlu1 %2247 }
 0x761   : > { %v2258_v45 = vmul.f32 0.00390625, %v2248_v46  ;;  %v2262_v35 = vmul.f32 %v2234_v3, %v2234_v3  ;;  %v2278_v23 = vsub.f32 %v6553_v11, %v2234_v3  ;;  %v2279_v30 = vsub.f32 %v6556_v2, %v2234_v3 }
 0x762   : > { %v2227_v40 = vpop.xlane.xlu0 %2226  ;;  %v4477_v3 = vpack.c.bf16 %v2344_v41, %v2336_v49  ;;  %v4541_v46 = vpack.c.bf16 %v2346_v50, %v2338_v56  ;;  %v2393_v50 = vld [vmem:[#allocation13 + $0x1e8] sm:$0xff] }
 0x763   : > { %v2266_v58 = vsub.f32 %v2258_v45, %v2262_v35  ;;  %v2235_v8 = vmul.f32 0.00390625, %v2227_v40  ;;  %v4479_v35 = vpack.c.bf16 %v2361_v42, %v2353_v26  ;;  %v4543_v40 = vpack.c.bf16 %v2363_v0, %v2355_v6  ;;  %v2387_v26 = vld [vmem:[#allocation13 + $0x1b8] sm:$0xff] }
 0x764   : > { %v2251_v9 = vpop.xlane.xlu1 %2250 }
 0x765   : > { %v2270_v21 = vadd.f32 1e-05, %v2266_v58  ;;  %v2259_v48 = vmul.f32 0.00390625, %v2251_v9  ;;  %v2263_v10 = vmul.f32 %v2235_v8, %v2235_v8  ;;  %v2280_v63 = vsub.f32 %v6565_v22, %v2235_v8  ;;  %v2352_v9 = vld [vmem:[#allocation13 + $0xa0] sm:$0xff] }
 0x766   : > { %v2230_v24 = vpop.xlane.xlu0 %2229  ;;  %v2281_v39 = vsub.f32 %v6568_v12, %v2235_v8 }
 0x767   : > { %5130 = vrsqrt.f32 %v2270_v21  ;;  %v6600_v33 = vmul.f32 0.00390625, %v2230_v24  ;;  %v2267_v34 = vsub.f32 %v2259_v48, %v2263_v10  ;;  %v2360_v21 = vld [vmem:[#allocation13 + $0xe0] sm:$0xff]  ;;  %v2354_v10 = vld [vmem:[#allocation13 + $0xb0] sm:$0xff] }
 0x768   : > { %v2254_v57 = vpop.xlane.xlu1 %2253  ;;  %v2362_v24 = vld [vmem:[#allocation13 + $0xf0] sm:$0xff] }
 0x769   : > { %v2260_v52 = vmul.f32 0.00390625, %v2254_v57  ;;  %v2264_v29 = vmul.f32 %v6600_v33, %v6600_v33  ;;  %v2271_v51 = vadd.f32 1e-05, %v2267_v34  ;;  %v2282_v48 = vsub.f32 %v6577_v54, %v6600_v33 }
 0x76a   : > { %v2233_v43 = vpop.xlane.xlu0 %2232  ;;  %v2283_v8 = vsub.f32 %v6580_v36, %v6600_v33  ;;  %v4481_v33 = vpack.c.bf16 %v2360_v21, %v2352_v9  ;;  %v2401_v21 = vld [vmem:[#allocation13 + $0x228] sm:$0xff] }
 0x76b   : > { %v2268_v18 = vsub.f32 %v2260_v52, %v2264_v29  ;;  %v6604_v60 = vmul.f32 0.00390625, %v2233_v43  ;;  %5132 = vrsqrt.f32 %v2271_v51  ;;  %v2369_v29 = vld [vmem:[#allocation13 + $0x128] sm:$0xff] }
 0x76c   : > { %v2257_v13 = vpop.xlane.xlu1 %2256  ;;  %v2377_v51 = vld [vmem:[#allocation13 + $0x168] sm:$0xff] }
 0x76d   : > { %v2272_v1 = vadd.f32 1e-05, %v2268_v18  ;;  %v2261_v47 = vmul.f32 0.00390625, %v2257_v13  ;;  %v2265_v62 = vmul.f32 %v6604_v60, %v6604_v60  ;;  %v2371_v18 = vld [vmem:[#allocation13 + $0x138] sm:$0xff]  ;;  %v2284_v49 = vsub.f32 %v6589_v59, %v6604_v60 }
 0x76e   : > { %v2379_v13 = vld [vmem:[#allocation13 + $0x178] sm:$0xff]  ;;  %v2285_v41 = vsub.f32 %v6592_v55, %v6604_v60 }
 0x76f   : > { %5134 = vrsqrt.f32 %v2272_v1  ;;  %v2269_v19 = vsub.f32 %v2261_v47, %v2265_v62  ;;  %v4545_v62 = vpack.c.bf16 %v2362_v24, %v2354_v10  ;;  %v4547_v56 = vpack.c.bf16 %v2379_v13, %v2371_v18  ;;  %v2403_v10 = vld [vmem:[#allocation13 + $0x238] sm:$0xff]  ;;  %v2425_v13 = vld [vmem:[#allocation13 + $0x2e8] sm:$0xff] }
 0x770   : > { %v2411_v24 = vld [vmem:[#allocation13 + $0x278] sm:$0xff] }
 0x771   : > { %v5131_v15 = vpop.eup %5130  ;;  %v2273_v44 = vadd.f32 1e-05, %v2269_v19  ;;  %v4483_v19 = vpack.c.bf16 %v2377_v51, %v2369_v29  ;;  %v2402_v29 = vld [vmem:[#allocation13 + $0x230] sm:$0xff]  ;;  %v4555_v18 = vpack.c.bf16 %v2411_v24, %v2403_v10  ;;  %v2473_v10 = vld [vmem:[#allocation13 + $0x468] sm:$0xff]  ;;  %v2467_v24 = vld [vmem:[#allocation13 + $0x438] sm:$0xff] }
 0x772   : > { %v2286_v7 = vmul.f32 %v5131_v15, %v2278_v23  ;;  %v2287_v38 = vmul.f32 %v5131_v15, %v2279_v30  ;;  %v2376_v23 = vld [vmem:[#allocation13 + $0x160] sm:$0xff]  ;;  %v2410_v51 = vld [vmem:[#allocation13 + $0x270] sm:$0xff] }
 0x773   : > { %5136 = vrsqrt.f32 %v2273_v44  ;;  %v2378_v44 = vld [vmem:[#allocation13 + $0x170] sm:$0xff]  ;;  %v4485_v60 = vpack.c.bf16 %v2376_v23, %v2368_v4  ;;  %v2416_v4 = vld [vmem:[#allocation13 + $0x2a0] sm:$0xff] }
 0x774   : > { %v2306_v27 = vmul.f32 %v6620_v53, %v2287_v38  ;;  %v2305_v37 = vmul.f32 %v6615_v17, %v2286_v7  ;;  %v2370_v7 = vld [vmem:[#allocation13 + $0x130] sm:$0xff]  ;;  %v2385_v38 = vld [vmem:[#allocation13 + $0x1a8] sm:$0xff]  ;;  %v2424_v23 = vld [vmem:[#allocation13 + $0x2e0] sm:$0xff] }
 0x775   : > { %v5133_v28 = vpop.eup %5132  ;;  %v4549_v0 = vpack.c.bf16 %v2378_v44, %v2370_v7  ;;  %v2426_v7 = vld [vmem:[#allocation13 + $0x2f0] sm:$0xff]  ;;  %v2433_v44 = vld [vmem:[#allocation13 + $0x328] sm:$0xff] }
 0x776   : > { %v6633_v61 = vadd.f32 %v6626_v14, %v2306_v27  ;;  %v6636_v25 = vadd.f32 %v6623_v5, %v2305_v37  ;;  %v2289_v45 = vmul.f32 %v5133_v28, %v2281_v39  ;;  %v2288_v58 = vmul.f32 %v5133_v28, %v2280_v63  ;;  %v2395_v27 = vld [vmem:[#allocation13 + $0x1f8] sm:$0xff]  ;;  %v2384_v28 = vld [vmem:[#allocation13 + $0x1a0] sm:$0xff] }
 0x778   : > { %2694 = vmatprep.mubr.f32.mxu0 %v6633_v61  ;;  %2783 = vmatprep.mubr.f32.mxu1 %v6633_v61  ;;  %v2308_v57 = vmul.f32 %v6620_v53, %v2289_v45  ;;  %v2307_v52 = vmul.f32 %v6615_v17, %v2288_v58  ;;  %v4551_v45 = vpack.c.bf16 %v2395_v27, %v2387_v26  ;;  %v2432_v26 = vld [vmem:[#allocation13 + $0x320] sm:$0xff] }
 0x779   : > { %v5135_v34 = vpop.eup %5134  ;;  %2695 = vmatmul.mubr.f32.vlgmr.msra.gmra.mrb[8].mxu0 %v6636_v25  ;;  %2784 = vmatmul.mubr.f32.vlgmr.msra.gmra.mrb[56].mxu1 %v6636_v25  ;;  %v2440_v27 = vld [vmem:[#allocation13 + $0x360] sm:$0xff] }
 0x77a   : > { %4478 = vmatpush1.bf16.msra.mxu0 %v4477_v3  ;;  %4542 = vmatpush1.bf16.msra.mxu1 %v4541_v46  ;;  %v2291_v43 = vmul.f32 %v5135_v34, %v2283_v8  ;;  %v2290_v16 = vmul.f32 %v5135_v34, %v2282_v48  ;;  %v6649_v1 = vadd.f32 %v6626_v14, %v2308_v57  ;;  %v2392_v3 = vld [vmem:[#allocation13 + $0x1e0] sm:$0xff]  ;;  %v2409_v8 = vld [vmem:[#allocation13 + $0x268] sm:$0xff] }
 0x77b   : > { %4480 = vmatprep.subr.bf16.mxu0 %v4479_v35  ;;  %4544 = vmatprep.subr.bf16.mxu1 %v4543_v40  ;;  %v6652_v47 = vadd.f32 %v6623_v5, %v2307_v52  ;;  %v4487_v46 = vpack.c.bf16 %v2393_v50, %v2385_v38  ;;  %v2386_v35 = vld [vmem:[#allocation13 + $0x1b0] sm:$0xff]  ;;  %v4489_v48 = vpack.c.bf16 %v2392_v3, %v2384_v28  ;;  %v2400_v52 = vld [vmem:[#allocation13 + $0x220] sm:$0xff]  ;;  %v2441_v38 = vld [vmem:[#allocation13 + $0x368] sm:$0xff] }
 0x77c   : > { %v2310_v30 = vmul.f32 %v6620_v53, %v2291_v43  ;;  %v2309_v15 = vmul.f32 %v6615_v17, %v2290_v16  ;;  %2700 = vmatprep.mubr.f32.mxu0 %v6649_v1  ;;  %2789 = vmatprep.mubr.f32.mxu1 %v6649_v1  ;;  %v2394_v40 = vld [vmem:[#allocation13 + $0x1f0] sm:$0xff]  ;;  %v4491_v43 = vpack.c.bf16 %v2409_v8, %v2401_v21  ;;  %v2427_v16 = vld [vmem:[#allocation13 + $0x2f8] sm:$0xff]  ;;  %v2465_v8 = vld [vmem:[#allocation13 + $0x428] sm:$0xff] }
 0x77d   : > { %v5137_v37 = vpop.eup %5136  ;;  %2701 = vmatmul.mubr.f32.gmra.mrb[10].mxu0 %v6652_v47  ;;  %2790 = vmatmul.mubr.f32.gmra.mrb[58].mxu1 %v6652_v47  ;;  %v2451_v28 = vld [vmem:[#allocation13 + $0x3b8] sm:$0xff]  ;;  %v2450_v21 = vld [vmem:[#allocation13 + $0x3b0] sm:$0xff] }
 0x77e   : > { %v6665_v42 = vadd.f32 %v6626_v14, %v2310_v30  ;;  %v6668_v6 = vadd.f32 %v6623_v5, %v2309_v15  ;;  %4482 = vmatpush1.bf16.msra.mxu0 %v4481_v33  ;;  %4546 = vmatpush1.bf16.msra.mxu1 %v4545_v62  ;;  %v2293_v63 = vmul.f32 %v5137_v37, %v2285_v41  ;;  %v2417_v33 = vld [vmem:[#allocation13 + $0x2a8] sm:$0xff]  ;;  %v2418_v15 = vld [vmem:[#allocation13 + $0x2b0] sm:$0xff]  ;;  %v2443_v41 = vld [vmem:[#allocation13 + $0x378] sm:$0xff] }
 0x77f   : > { %v2292_v39 = vmul.f32 %v5137_v37, %v2284_v49  ;;  %4484 = vmatprep.subr.bf16.mxu0 %v4483_v19  ;;  %4548 = vmatprep.subr.bf16.mxu1 %v4547_v56  ;;  %v4557_v62 = vpack.c.bf16 %v2410_v51, %v2402_v29  ;;  %v4495_v30 = vpack.c.bf16 %v2425_v13, %v2417_v33  ;;  %v2435_v49 = vld [vmem:[#allocation13 + $0x338] sm:$0xff]  ;;  %v2464_v29 = vld [vmem:[#allocation13 + $0x420] sm:$0xff]  ;;  %v2474_v13 = vld [vmem:[#allocation13 + $0x470] sm:$0xff] }
 0x780   : > { %2706 = vmatprep.mubr.f32.mxu0 %v6665_v42  ;;  %2795 = vmatprep.mubr.f32.mxu1 %v6665_v42  ;;  %v2312_v58 = vmul.f32 %v6620_v53, %v2293_v63  ;;  %v4553_v53 = vpack.c.bf16 %v2394_v40, %v2386_v35  ;;  %v4497_v56 = vpack.c.bf16 %v2424_v23, %v2416_v4  ;;  %v2449_v63 = vld [vmem:[#allocation13 + $0x3a8] sm:$0xff]  ;;  %v2459_v3 = vld [vmem:[#allocation13 + $0x3f8] sm:$0xff]  ;;  %v2448_v35 = vld [vmem:[#allocation13 + $0x3a0] sm:$0xff] }
 0x781   : > { %v2311_v9 = vmul.f32 %v6615_v17, %v2292_v39  ;;  %2707 = vmatmul.mubr.f32.gmra.mrb[12].mxu0 %v6668_v6  ;;  %2796 = vmatmul.mubr.f32.gmra.mrb[60].mxu1 %v6668_v6  ;;  %v2408_v17 = vld [vmem:[#allocation13 + $0x260] sm:$0xff]  ;;  %v4561_v50 = vpack.c.bf16 %v2426_v7, %v2418_v15  ;;  %v4499_v37 = vpack.c.bf16 %v2441_v38, %v2433_v44  ;;  %v2457_v39 = vld [vmem:[#allocation13 + $0x3e8] sm:$0xff]  ;;  %v2482_v44 = vld [vmem:[#allocation13 + $0x4b0] sm:$0xff] }
 0x782   : > { %4486 = vmatpush1.bf16.msra.mxu0 %v4485_v60  ;;  %4550 = vmatpush1.bf16.msra.mxu1 %v4549_v0  ;;  %v6677_v34 = vadd.f32 %v6626_v14, %v2312_v58  ;;  %v2419_v14 = vld [vmem:[#allocation13 + $0x2b8] sm:$0xff]  ;;  %v2434_v60 = vld [vmem:[#allocation13 + $0x330] sm:$0xff]  ;;  %v2456_v40 = vld [vmem:[#allocation13 + $0x3e0] sm:$0xff]  ;;  %v4503_v58 = vpack.c.bf16 %v2457_v39, %v2449_v63  ;;  %v4507_v33 = vpack.c.bf16 %v2473_v10, %v2465_v8 }
 0x783   : > { %v6680_v57 = vadd.f32 %v6623_v5, %v2311_v9  ;;  %4488 = vmatprep.subr.bf16.mxu0 %v4487_v46  ;;  %4552 = vmatprep.subr.bf16.mxu1 %v4551_v45  ;;  %v4493_v5 = vpack.c.bf16 %v2408_v17, %v2400_v52  ;;  %v4559_v19 = vpack.c.bf16 %v2427_v16, %v2419_v14  ;;  %v2442_v0 = vld [vmem:[#allocation13 + $0x370] sm:$0xff]  ;;  %v2472_v51 = vld [vmem:[#allocation13 + $0x460] sm:$0xff]  ;;  %v2481_v14 = vld [vmem:[#allocation13 + $0x4a8] sm:$0xff] }
 0x784   : > { %2712 = vmatprep.mubr.f32.mxu0 %v6677_v34  ;;  %2801 = vmatprep.mubr.f32.mxu1 %v6677_v34  ;;  %v4501_v46 = vpack.c.bf16 %v2440_v27, %v2432_v26  ;;  %v4565_v45 = vpack.c.bf16 %v2442_v0, %v2434_v60  ;;  %v4567_v9 = vpack.c.bf16 %v2459_v3, %v2451_v28  ;;  %v2489_v16 = vld [vmem:[#allocation13 + $0x4e8] sm:$0xff]  ;;  %v2490_v38 = vld [vmem:[#allocation13 + $0x4f0] sm:$0xff] }
 0x785   : > { %2713 = vmatmul.mubr.f32.gmra.mrb[14].mxu0 %v6680_v57  ;;  %2802 = vmatmul.mubr.f32.gmra.mrb[62].mxu1 %v6680_v57  ;;  %v4505_v52 = vpack.c.bf16 %v2456_v40, %v2448_v35  ;;  %v4509_v4 = vpack.c.bf16 %v2472_v51, %v2464_v29  ;;  %v4511_v15 = vpack.c.bf16 %v2489_v16, %v2481_v14  ;;  %v2498_v63 = vld [vmem:[#allocation13 + $0x530] sm:$0xff]  ;;  %v2513_v28 = vld [vmem:[#allocation13 + $0x5a8] sm:$0xff] }
 0x786   : > { %4490 = vmatpush1.bf16.msra.mxu0 %v4489_v48  ;;  %4554 = vmatpush1.bf16.msra.mxu1 %v4553_v53  ;;  %v2458_v48 = vld [vmem:[#allocation13 + $0x3f0] sm:$0xff]  ;;  %v2475_v53 = vld [vmem:[#allocation13 + $0x478] sm:$0xff]  ;;  %v4577_v27 = vpack.c.bf16 %v2490_v38, %v2482_v44  ;;  %v2521_v3 = vld [vmem:[#allocation13 + $0x5e8] sm:$0xff] }
 0x787   : > { %2872 = vmatprep.mubr.f32.mxu0 %v6633_v61  ;;  %2961 = vmatprep.mubr.f32.mxu1 %v6633_v61  ;;  %v4563_v61 = vpack.c.bf16 %v2443_v41, %v2435_v49  ;;  %v4569_v17 = vpack.c.bf16 %v2458_v48, %v2450_v21  ;;  %v2497_v49 = vld [vmem:[#allocation13 + $0x528] sm:$0xff]  ;;  %v2506_v39 = vld [vmem:[#allocation13 + $0x570] sm:$0xff]  ;;  %v4519_v21 = vpack.c.bf16 %v2521_v3, %v2513_v28 }
 0x788   : > { %4492 = vmatprep.subr.bf16.mxu0 %v4491_v43  ;;  %4556 = vmatprep.subr.bf16.mxu1 %v4555_v18  ;;  %v4571_v43 = vpack.c.bf16 %v2475_v53, %v2467_v24  ;;  %v2466_v18 = vld [vmem:[#allocation13 + $0x430] sm:$0xff]  ;;  %v2505_v41 = vld [vmem:[#allocation13 + $0x568] sm:$0xff]  ;;  %v4581_v40 = vpack.c.bf16 %v2506_v39, %v2498_v63 }
 0x789   : > { %v4573_v23 = vpack.c.bf16 %v2474_v13, %v2466_v18  ;;  %v4515_v60 = vpack.c.bf16 %v2505_v41, %v2497_v49  ;;  %v2514_v8 = vld [vmem:[#allocation13 + $0x5b0] sm:$0xff]  ;;  %v2529_v24 = vld [vmem:[#allocation13 + $0x628] sm:$0xff] }
 0x78a   : > { %4494 = vmatpush1.bf16.msra.mxu0 %v4493_v5  ;;  %4558 = vmatpush1.bf16.msra.mxu1 %v4557_v62  ;;  %v2483_v5 = vld [vmem:[#allocation13 + $0x4b8] sm:$0xff]  ;;  %v2522_v10 = vld [vmem:[#allocation13 + $0x5f0] sm:$0xff]  ;;  %v2537_v53 = vld [vmem:[#allocation13 + $0x668] sm:$0xff] }
 0x78b   : > { %4496 = vmatprep.subr.bf16.mxu0 %v4495_v30  ;;  %4560 = vmatprep.subr.bf16.mxu1 %v4559_v19  ;;  %v2491_v62 = vld [vmem:[#allocation13 + $0x4f8] sm:$0xff]  ;;  %v2480_v30 = vld [vmem:[#allocation13 + $0x4a0] sm:$0xff]  ;;  %v4585_v51 = vpack.c.bf16 %v2522_v10, %v2514_v8  ;;  %v4523_v18 = vpack.c.bf16 %v2537_v53, %v2529_v24  ;;  %v2530_v14 = vld [vmem:[#allocation13 + $0x630] sm:$0xff] }
 0x78c   : > { %v2488_v19 = vld [vmem:[#allocation13 + $0x4e0] sm:$0xff]  ;;  %v4575_v7 = vpack.c.bf16 %v2491_v62, %v2483_v5  ;;  %v2538_v16 = vld [vmem:[#allocation13 + $0x670] sm:$0xff]  ;;  %v2545_v5 = vld [vmem:[#allocation13 + $0x6a8] sm:$0xff] }
 0x78d   : > { %v4513_v26 = vpack.c.bf16 %v2488_v19, %v2480_v30  ;;  %v2553_v62 = vld [vmem:[#allocation13 + $0x6e8] sm:$0xff]  ;;  %v4589_v19 = vpack.c.bf16 %v2538_v16, %v2530_v14  ;;  %v2546_v49 = vld [vmem:[#allocation13 + $0x6b0] sm:$0xff]  ;;  %v2584_v10 = vld [vmem:[#allocation13 + $0x7e0] sm:$0xff] }
 0x78e   : > { %4498 = vmatpush1.bf16.msra.mxu0 %v4497_v56  ;;  %4562 = vmatpush1.bf16.msra.mxu1 %v4561_v50  ;;  %v2499_v56 = vld [vmem:[#allocation13 + $0x538] sm:$0xff]  ;;  %v4527_v44 = vpack.c.bf16 %v2553_v62, %v2545_v5  ;;  %v2554_v41 = vld [vmem:[#allocation13 + $0x6f0] sm:$0xff]  ;;  %v3022_v62 = vld [vmem:[#allocation14 + $0x20] sm:$0xff] }
 0x78f   : > { %4500 = vmatprep.subr.bf16.mxu0 %v4499_v37  ;;  %4564 = vmatprep.subr.bf16.mxu1 %v4563_v61  ;;  %v2507_v50 = vld [vmem:[#allocation13 + $0x578] sm:$0xff]  ;;  %v2496_v37 = vld [vmem:[#allocation13 + $0x520] sm:$0xff]  ;;  %v2562_v28 = vld [vmem:[#allocation13 + $0x730] sm:$0xff] }
 0x790   : > { %v2504_v61 = vld [vmem:[#allocation13 + $0x560] sm:$0xff]  ;;  %v4579_v0 = vpack.c.bf16 %v2507_v50, %v2499_v56  ;;  %v2561_v56 = vld [vmem:[#allocation13 + $0x728] sm:$0xff]  ;;  %v2570_v3 = vld [vmem:[#allocation13 + $0x770] sm:$0xff] }
 0x791   : > { %v4517_v35 = vpack.c.bf16 %v2504_v61, %v2496_v37  ;;  %v2569_v50 = vld [vmem:[#allocation13 + $0x768] sm:$0xff]  ;;  %v4593_v61 = vpack.c.bf16 %v2554_v41, %v2546_v49  ;;  %v2578_v24 = vld [vmem:[#allocation13 + $0x7b0] sm:$0xff]  ;;  %v3025_v14 = vld [vmem:[#allocation14 + $0x38] sm:$0xff] }
 0x792   : > { %4502 = vmatpush1.bf16.msra.mxu0 %v4501_v46  ;;  %4566 = vmatpush1.bf16.msra.mxu1 %v4565_v45  ;;  %v2515_v46 = vld [vmem:[#allocation13 + $0x5b8] sm:$0xff]  ;;  %v4531_v63 = vpack.c.bf16 %v2569_v50, %v2561_v56  ;;  %v2586_v53 = vld [vmem:[#allocation13 + $0x7f0] sm:$0xff]  ;;  %v3030_v41 = vld [vmem:[#allocation14 + $0x60] sm:$0xff] }
 0x793   : > { %4504 = vmatprep.subr.bf16.mxu0 %v4503_v58  ;;  %4568 = vmatprep.subr.bf16.mxu1 %v4567_v9  ;;  %v2523_v45 = vld [vmem:[#allocation13 + $0x5f8] sm:$0xff]  ;;  %v2512_v58 = vld [vmem:[#allocation13 + $0x5a0] sm:$0xff]  ;;  %v3032_v56 = vld [vmem:[#allocation14 + $0x70] sm:$0xff] }
 0x794   : > { %v2520_v9 = vld [vmem:[#allocation13 + $0x5e0] sm:$0xff]  ;;  %v4583_v48 = vpack.c.bf16 %v2523_v45, %v2515_v46  ;;  %v2577_v46 = vld [vmem:[#allocation13 + $0x7a8] sm:$0xff]  ;;  %v3033_v49 = vld [vmem:[#allocation14 + $0x78] sm:$0xff] }
 0x795   : > { %v4521_v29 = vpack.c.bf16 %v2520_v9, %v2512_v58  ;;  %v2585_v45 = vld [vmem:[#allocation13 + $0x7e8] sm:$0xff]  ;;  %v4597_v9 = vpack.c.bf16 %v2570_v3, %v2562_v28 }
 0x796   : > { %4506 = vmatpush1.bf16.msra.mxu0 %v4505_v52  ;;  %4570 = vmatpush1.bf16.msra.mxu1 %v4569_v17  ;;  %v2531_v52 = vld [vmem:[#allocation13 + $0x638] sm:$0xff]  ;;  %v3035_v50 = vld [vmem:[#allocation14 + $0x88] sm:$0xff] }
 0x797   : > { %4508 = vmatprep.subr.bf16.mxu0 %v4507_v33  ;;  %4572 = vmatprep.subr.bf16.mxu1 %v4571_v43  ;;  %v2539_v17 = vld [vmem:[#allocation13 + $0x678] sm:$0xff]  ;;  %v2528_v33 = vld [vmem:[#allocation13 + $0x620] sm:$0xff]  ;;  %v3043_v28 = vld [vmem:[#allocation14 + $0xc8] sm:$0xff] }
 0x798   : > { %v2536_v43 = vld [vmem:[#allocation13 + $0x660] sm:$0xff]  ;;  %v4587_v13 = vpack.c.bf16 %v2539_v17, %v2531_v52  ;;  %v3019_v52 = vld [vmem:[#allocation14 + $0x8] sm:$0xff]  ;;  %v3021_v17 = vld [vmem:[#allocation14 + $0x18] sm:$0xff] }
 0x799   : > { %v4525_v30 = vpack.c.bf16 %v2536_v43, %v2528_v33  ;;  %v4603_v33 = vpack.c.bf16 %v3021_v17, %v3019_v52  ;;  %v3018_v43 = vld [vmem:[#allocation14] sm:$0xff]  ;;  %v3052_v17 = vld [vmem:[#allocation14 + $0x110] sm:$0xff] }
 0x79a   : > { %4510 = vmatpush1.bf16.msra.mxu0 %v4509_v4  ;;  %4574 = vmatpush1.bf16.msra.mxu1 %v4573_v23  ;;  %v2547_v4 = vld [vmem:[#allocation13 + $0x6b8] sm:$0xff]  ;;  %v3050_v52 = vld [vmem:[#allocation14 + $0x100] sm:$0xff] }
 0x79b   : > { %4512 = vmatprep.subr.bf16.mxu0 %v4511_v15  ;;  %4576 = vmatprep.subr.bf16.mxu1 %v4575_v7  ;;  %v2555_v23 = vld [vmem:[#allocation13 + $0x6f8] sm:$0xff]  ;;  %v2544_v15 = vld [vmem:[#allocation13 + $0x6a0] sm:$0xff] }
 0x79c   : > { %v2552_v7 = vld [vmem:[#allocation13 + $0x6e0] sm:$0xff]  ;;  %v4591_v38 = vpack.c.bf16 %v2555_v23, %v2547_v4  ;;  %v3024_v4 = vld [vmem:[#allocation14 + $0x30] sm:$0xff]  ;;  %v3027_v23 = vld [vmem:[#allocation14 + $0x48] sm:$0xff] }
 0x79d   : > { %v4529_v37 = vpack.c.bf16 %v2552_v7, %v2544_v15  ;;  %v3026_v7 = vld [vmem:[#allocation14 + $0x40] sm:$0xff] }
 0x79e   : > { %4514 = vmatpush1.bf16.msra.mxu0 %v4513_v26  ;;  %4578 = vmatpush1.bf16.msra.mxu1 %v4577_v27  ;;  %v2563_v26 = vld [vmem:[#allocation13 + $0x738] sm:$0xff] }
 0x79f   : > { %4516 = vmatprep.subr.bf16.mxu0 %v4515_v60  ;;  %4580 = vmatprep.subr.bf16.mxu1 %v4579_v0  ;;  %v2571_v27 = vld [vmem:[#allocation13 + $0x778] sm:$0xff]  ;;  %v2560_v60 = vld [vmem:[#allocation13 + $0x720] sm:$0xff] }
 0x7a0   : > { %v2568_v0 = vld [vmem:[#allocation13 + $0x760] sm:$0xff]  ;;  %v4595_v39 = vpack.c.bf16 %v2571_v27, %v2563_v26  ;;  %v3037_v26 = vld [vmem:[#allocation14 + $0x98] sm:$0xff] }
 0x7a1   : > { %v4533_v58 = vpack.c.bf16 %v2568_v0, %v2560_v60  ;;  %v3034_v27 = vld [vmem:[#allocation14 + $0x80] sm:$0xff]  ;;  %v3041_v60 = vld [vmem:[#allocation14 + $0xb8] sm:$0xff] }
 0x7a2   : > { %4518 = vmatpush1.bf16.msra.mxu0 %v4517_v35  ;;  %4582 = vmatpush1.bf16.msra.mxu1 %v4581_v40  ;;  %v2579_v35 = vld [vmem:[#allocation13 + $0x7b8] sm:$0xff] }
 0x7a3   : > { %4520 = vmatprep.subr.bf16.mxu0 %v4519_v21  ;;  %4584 = vmatprep.subr.bf16.mxu1 %v4583_v48  ;;  %v2587_v40 = vld [vmem:[#allocation13 + $0x7f8] sm:$0xff]  ;;  %v2576_v21 = vld [vmem:[#allocation13 + $0x7a0] sm:$0xff]  ;;  %v4535_v48 = vpack.c.bf16 %v2585_v45, %v2577_v46 }
 0x7a4   : > { %v4599_v8 = vpack.c.bf16 %v2587_v40, %v2579_v35  ;;  %v3042_v45 = vld [vmem:[#allocation14 + $0xc0] sm:$0xff]  ;;  %v3044_v35 = vld [vmem:[#allocation14 + $0xd0] sm:$0xff]  ;;  %v3047_v40 = vld [vmem:[#allocation14 + $0xe8] sm:$0xff] }
 0x7a6   : > { %4522 = vmatpush1.bf16.msra.mxu0 %v4521_v29  ;;  %4586 = vmatpush1.bf16.msra.mxu1 %v4585_v51  ;;  %v4537_v29 = vpack.c.bf16 %v2584_v10, %v2576_v21  ;;  %v4601_v51 = vpack.c.bf16 %v2586_v53, %v2578_v24  ;;  %v3046_v21 = vld [vmem:[#allocation14 + $0xe0] sm:$0xff]  ;;  %v3053_v10 = vld [vmem:[#allocation14 + $0x118] sm:$0xff] }
 0x7a7   : > { %4524 = vmatprep.subr.bf16.mxu0 %v4523_v18  ;;  %4588 = vmatprep.subr.bf16.mxu1 %v4587_v13  ;;  %v3020_v18 = vld [vmem:[#allocation14 + $0x10] sm:$0xff]  ;;  %v3023_v13 = vld [vmem:[#allocation14 + $0x28] sm:$0xff] }
 0x7a8   : > { %v4605_v16 = vpack.c.bf16 %v3020_v18, %v3018_v43  ;;  %v4607_v5 = vpack.c.bf16 %v3025_v14, %v3023_v13  ;;  %v3054_v18 = vld [vmem:[#allocation14 + $0x120] sm:$0xff]  ;;  %v3056_v13 = vld [vmem:[#allocation14 + $0x130] sm:$0xff]  ;;  %v3059_v14 = vld [vmem:[#allocation14 + $0x148] sm:$0xff] }
 0x7aa   : > { %4526 = vmatpush1.bf16.msra.mxu0 %v4525_v30  ;;  %4590 = vmatpush1.bf16.msra.mxu1 %v4589_v19  ;;  %v3029_v30 = vld [vmem:[#allocation14 + $0x58] sm:$0xff]  ;;  %v4609_v19 = vpack.c.bf16 %v3024_v4, %v3022_v62  ;;  %v3058_v4 = vld [vmem:[#allocation14 + $0x140] sm:$0xff] }
 0x7ab   : > { %4528 = vmatprep.subr.bf16.mxu0 %v4527_v44  ;;  %4592 = vmatprep.subr.bf16.mxu1 %v4591_v38  ;;  %v4611_v15 = vpack.c.bf16 %v3029_v30, %v3027_v23  ;;  %v3028_v44 = vld [vmem:[#allocation14 + $0x50] sm:$0xff]  ;;  %v3031_v38 = vld [vmem:[#allocation14 + $0x68] sm:$0xff] }
 0x7ac   : > { %v3060_v23 = vld [vmem:[#allocation14 + $0x150] sm:$0xff]  ;;  %v3063_v30 = vld [vmem:[#allocation14 + $0x168] sm:$0xff] }
 0x7ae   : > { %4530 = vmatpush1.bf16.msra.mxu0 %v4529_v37  ;;  %4594 = vmatpush1.bf16.msra.mxu1 %v4593_v61  ;;  %v3036_v37 = vld [vmem:[#allocation14 + $0x90] sm:$0xff]  ;;  %v3039_v61 = vld [vmem:[#allocation14 + $0xa8] sm:$0xff] }
 0x7af   : > { %4532 = vmatprep.subr.bf16.mxu0 %v4531_v63  ;;  %4596 = vmatprep.subr.bf16.mxu1 %v4595_v39  ;;  %v4623_v0 = vpack.c.bf16 %v3041_v60, %v3039_v61  ;;  %v3038_v63 = vld [vmem:[#allocation14 + $0xa0] sm:$0xff]  ;;  %v3040_v39 = vld [vmem:[#allocation14 + $0xb0] sm:$0xff]  ;;  %v3075_v60 = vld [vmem:[#allocation14 + $0x1c8] sm:$0xff] }
 0x7b0   : > { %v4625_v3 = vpack.c.bf16 %v3040_v39, %v3038_v63  ;;  %v3072_v61 = vld [vmem:[#allocation14 + $0x1b0] sm:$0xff]  ;;  %v3074_v39 = vld [vmem:[#allocation14 + $0x1c0] sm:$0xff] }
 0x7b2   : > { %4534 = vmatpush1.bf16.msra.mxu0 %v4533_v58  ;;  %4598 = vmatpush1.bf16.msra.mxu1 %v4597_v9  ;;  %v3049_v58 = vld [vmem:[#allocation14 + $0xf8] sm:$0xff] }
 0x7b3   : > { %4536 = vmatprep.subr.bf16.mxu0 %v4535_v48  ;;  %4600 = vmatprep.subr.bf16.mxu1 %v4599_v8  ;;  %v4631_v9 = vpack.c.bf16 %v3049_v58, %v3047_v40  ;;  %v3048_v48 = vld [vmem:[#allocation14 + $0xf0] sm:$0xff]  ;;  %v3051_v8 = vld [vmem:[#allocation14 + $0x108] sm:$0xff] }
 0x7b4   : > { %v4633_v24 = vpack.c.bf16 %v3048_v48, %v3046_v21  ;;  %v4635_v53 = vpack.c.bf16 %v3053_v10, %v3051_v8  ;;  %v3080_v40 = vld [vmem:[#allocation14 + $0x1f0] sm:$0xff]  ;;  %v3083_v58 = vld [vmem:[#allocation14 + $0x208] sm:$0xff]  ;;  %v6705_v48 = vld [vmem:[%s7009_s7] sm:$0xff]  ;;  %s3659_s7 = scalar_lea.sflag [#allocation4], %s5997_s24 }
 0x7b5   : > { %v2593_v8 = vrot.slane %v6705_v48, %v6194_v31  ;;  %v2597_v10 = vrot.slane %v6705_v48, %v6197_v32 }
 0x7b6   : > { %4538 = vmatpush1.bf16.msra.mxu0 %v4537_v29  ;;  %4602 = vmatpush1.bf16.msra.mxu1 %v4601_v51  ;;  %v3055_v29 = vld [vmem:[#allocation14 + $0x128] sm:$0xff]  ;;  %v3057_v51 = vld [vmem:[#allocation14 + $0x138] sm:$0xff] }
 0x7b7   : > { %4604 = vmatprep.subr.bf16.mxu0 %v4603_v33  ;;  %v4637_v33 = vpack.c.bf16 %v3052_v17, %v3050_v52  ;;  %v4639_v43 = vpack.c.bf16 %v3057_v51, %v3055_v29  ;;  %v3082_v51 = vld [vmem:[#allocation14 + $0x200] sm:$0xff] }
 0x7b9   : > { %2873 = vmatmul.mubr.f32.vlgmr.msra.gmra.mrb[16].mxu0 %v6636_v25  ;;  %2962 = vmatmul.mubr.f32.vlgmr.msra.gmra.mrb[64].mxu1 %v6636_v25  ;;  %v4613_v25 = vpack.c.bf16 %v3028_v44, %v3026_v7  ;;  %v3062_v44 = vld [vmem:[#allocation14 + $0x160] sm:$0xff] }
 0x7ba   : > { %2878 = vmatprep.mubr.f32.mxu0 %v6649_v1  ;;  %2967 = vmatprep.mubr.f32.mxu1 %v6649_v1  ;;  %v4615_v1 = vpack.c.bf16 %v3033_v49, %v3031_v38  ;;  %v3064_v38 = vld [vmem:[#allocation14 + $0x170] sm:$0xff]  ;;  %v3067_v49 = vld [vmem:[#allocation14 + $0x188] sm:$0xff] }
 0x7bb   : > { %4606 = vmatpush1.bf16.msra.mxu0 %v4605_v16  ;;  %v3061_v16 = vld [vmem:[#allocation14 + $0x158] sm:$0xff] }
 0x7bc   : > { %4608 = vmatprep.subr.bf16.mxu0 %v4607_v5  ;;  %v4641_v5 = vpack.c.bf16 %v3056_v13, %v3054_v18  ;;  %v4643_v62 = vpack.c.bf16 %v3061_v16, %v3059_v14  ;;  %v3087_v18 = vld [vmem:[#allocation14 + $0x228] sm:$0xff]  ;;  %v3089_v13 = vld [vmem:[#allocation14 + $0x238] sm:$0xff] }
 0x7bd   : > { %2879 = vmatmul.mubr.f32.gmra.mrb[18].mxu0 %v6652_v47  ;;  %2968 = vmatmul.mubr.f32.gmra.mrb[66].mxu1 %v6652_v47  ;;  %v4617_v47 = vpack.c.bf16 %v3032_v56, %v3030_v41  ;;  %v3066_v56 = vld [vmem:[#allocation14 + $0x180] sm:$0xff] }
 0x7be   : > { %2884 = vmatprep.mubr.f32.mxu0 %v6665_v42  ;;  %2973 = vmatprep.mubr.f32.mxu1 %v6665_v42  ;;  %v4619_v42 = vpack.c.bf16 %v3037_v26, %v3035_v50  ;;  %v3068_v50 = vld [vmem:[#allocation14 + $0x190] sm:$0xff]  ;;  %v3071_v26 = vld [vmem:[#allocation14 + $0x1a8] sm:$0xff] }
 0x7bf   : > { %4610 = vmatpush1.bf16.msra.mxu0 %v4609_v19  ;;  %v3065_v19 = vld [vmem:[#allocation14 + $0x178] sm:$0xff] }
 0x7c0   : > { %4612 = vmatprep.subr.bf16.mxu0 %v4611_v15  ;;  %v4645_v15 = vpack.c.bf16 %v3060_v23, %v3058_v4  ;;  %v4647_v7 = vpack.c.bf16 %v3065_v19, %v3063_v30  ;;  %v4671_v23 = vpack.c.bf16 %v3089_v13, %v3087_v18 }
 0x7c1   : > { %2885 = vmatmul.mubr.f32.gmra.mrb[20].mxu0 %v6668_v6  ;;  %2974 = vmatmul.mubr.f32.gmra.mrb[68].mxu1 %v6668_v6  ;;  %v4621_v6 = vpack.c.bf16 %v3036_v37, %v3034_v27  ;;  %v3070_v37 = vld [vmem:[#allocation14 + $0x1a0] sm:$0xff] }
 0x7c2   : > { %2890 = vmatprep.mubr.f32.mxu0 %v6677_v34  ;;  %2979 = vmatprep.mubr.f32.mxu1 %v6677_v34  ;;  %v3045_v34 = vld [vmem:[#allocation14 + $0xd8] sm:$0xff] }
 0x7c3   : > { %4614 = vmatpush1.bf16.msra.mxu0 %v4613_v25  ;;  %v4627_v46 = vpack.c.bf16 %v3045_v34, %v3043_v28  ;;  %v3069_v25 = vld [vmem:[#allocation14 + $0x198] sm:$0xff]  ;;  %v3076_v28 = vld [vmem:[#allocation14 + $0x1d0] sm:$0xff]  ;;  %v3079_v34 = vld [vmem:[#allocation14 + $0x1e8] sm:$0xff] }
 0x7c4   : > { %4616 = vmatprep.subr.bf16.mxu0 %v4615_v1  ;;  %v4649_v1 = vpack.c.bf16 %v3064_v38, %v3062_v44  ;;  %v4651_v41 = vpack.c.bf16 %v3069_v25, %v3067_v49  ;;  %v3088_v44 = vld [vmem:[#allocation14 + $0x230] sm:$0xff]  ;;  %v2604_v38 = vsub.s32 3, %v6187_v20  ;;  %v3091_v25 = vld [vmem:[#allocation14 + $0x248] sm:$0xff] }
 0x7c5   : > { %2891 = vmatmul.mubr.f32.gmra.mrb[22].mxu0 %v6680_v57  ;;  %2980 = vmatmul.mubr.f32.gmra.mrb[70].mxu1 %v6680_v57  ;;  %v4629_v57 = vpack.c.bf16 %v3044_v35, %v3042_v45  ;;  %v3078_v35 = vld [vmem:[#allocation14 + $0x1e0] sm:$0xff] }
 0x7c7   : > { %4618 = vmatpush1.bf16.msra.mxu0 %v4617_v47  ;;  %v3073_v47 = vld [vmem:[#allocation14 + $0x1b8] sm:$0xff] }
 0x7c8   : > { %4620 = vmatprep.subr.bf16.mxu0 %v4619_v42  ;;  %v4653_v42 = vpack.c.bf16 %v3068_v50, %v3066_v56  ;;  %v4655_v27 = vpack.c.bf16 %v3073_v47, %v3071_v26 }
 0x7cb   : > { %4622 = vmatpush1.bf16.msra.mxu0 %v4621_v6  ;;  %v3077_v6 = vld [vmem:[#allocation14 + $0x1d8] sm:$0xff] }
 0x7cc   : > { %4624 = vmatprep.subr.bf16.mxu0 %v4623_v0  ;;  %v4657_v0 = vpack.c.bf16 %v3072_v61, %v3070_v37  ;;  %v4659_v63 = vpack.c.bf16 %v3077_v6, %v3075_v60  ;;  %v3090_v60 = vld [vmem:[#allocation14 + $0x240] sm:$0xff]  ;;  %v3092_v6 = vld [vmem:[#allocation14 + $0x250] sm:$0xff] }
 0x7cf   : > { %4626 = vmatpush1.bf16.msra.mxu0 %v4625_v3  ;;  %v3081_v3 = vld [vmem:[#allocation14 + $0x1f8] sm:$0xff] }
 0x7d0   : > { %4628 = vmatprep.subr.bf16.mxu0 %v4627_v46  ;;  %v4661_v46 = vpack.c.bf16 %v3076_v28, %v3074_v39  ;;  %v4663_v45 = vpack.c.bf16 %v3081_v3, %v3079_v34  ;;  %v3095_v39 = vld [vmem:[#allocation14 + $0x268] sm:$0xff]  ;;  %v3097_v28 = vld [vmem:[#allocation14 + $0x278] sm:$0xff] }
 0x7d3   : > { %4630 = vmatpush1.bf16.msra.mxu0 %v4629_v57  ;;  %v3085_v57 = vld [vmem:[#allocation14 + $0x218] sm:$0xff] }
 0x7d4   : > { %4632 = vmatprep.subr.bf16.mxu0 %v4631_v9  ;;  %v4665_v9 = vpack.c.bf16 %v3080_v40, %v3078_v35  ;;  %v4667_v21 = vpack.c.bf16 %v3085_v57, %v3083_v58 }
 0x7d7   : > { %4634 = vmatpush1.bf16.msra.mxu0 %v4633_v24 }
 0x7d8   : > { %4636 = vmatprep.subr.bf16.mxu0 %v4635_v53 }
 0x7db   : > { %4638 = vmatpush1.bf16.msra.mxu0 %v4637_v33  ;;  %v3084_v33 = vld [vmem:[#allocation14 + $0x210] sm:$0xff] }
 0x7dc   : > { %4640 = vmatprep.subr.bf16.mxu0 %v4639_v43  ;;  %v4669_v16 = vpack.c.bf16 %v3084_v33, %v3082_v51  ;;  %v3099_v51 = vld [vmem:[#allocation14 + $0x288] sm:$0xff]  ;;  %v3101_v33 = vld [vmem:[#allocation14 + $0x298] sm:$0xff] }
 0x7df   : > { %4642 = vmatpush1.bf16.msra.mxu0 %v4641_v5 }
 0x7e0   : > { %4644 = vmatprep.subr.bf16.mxu0 %v4643_v62 }
 0x7e3   : > { %4646 = vmatpush1.bf16.msra.mxu0 %v4645_v15 }
 0x7e4   : > { %4648 = vmatprep.subr.bf16.mxu0 %v4647_v7  ;;  %v3086_v7 = vld [vmem:[#allocation14 + $0x220] sm:$0xff] }
 0x7e5   : > { %v4673_v26 = vpack.c.bf16 %v3088_v44, %v3086_v7  ;;  %v3107_v7 = vld [vmem:[#allocation14 + $0x2c8] sm:$0xff]  ;;  %v3109_v44 = vld [vmem:[#allocation14 + $0x2d8] sm:$0xff] }
 0x7e7   : > { %4650 = vmatpush1.bf16.msra.mxu0 %v4649_v1  ;;  %v3093_v1 = vld [vmem:[#allocation14 + $0x258] sm:$0xff] }
 0x7e8   : > { %4652 = vmatprep.subr.bf16.mxu0 %v4651_v41  ;;  %v4675_v61 = vpack.c.bf16 %v3093_v1, %v3091_v25  ;;  %v3106_v25 = vld [vmem:[#allocation14 + $0x2c0] sm:$0xff]  ;;  %v3108_v1 = vld [vmem:[#allocation14 + $0x2d0] sm:$0xff] }
 0x7eb   : > { %4654 = vmatpush1.bf16.msra.mxu0 %v4653_v42 }
 0x7ec   : > { %4656 = vmatprep.subr.bf16.mxu0 %v4655_v27 }
 0x7ef   : > { %4658 = vmatpush1.bf16.msra.mxu0 %v4657_v0  ;;  %v6723_v0 = vrot.slane %v6705_v48, %v2604_v38 }
 0x7f0   : > { %4660 = vmatprep.subr.bf16.mxu0 %v4659_v63 }
 0x7f3   : > { %4662 = vmatpush1.bf16.msra.mxu0 %v4661_v46 }
 0x7f4   : > { %4664 = vmatprep.subr.bf16.mxu0 %v4663_v45  ;;  %v4677_v45 = vpack.c.bf16 %v3092_v6, %v3090_v60  ;;  %v3117_v60 = vld [vmem:[#allocation14 + $0x318] sm:$0xff] }
 0x7f7   : > { %4666 = vmatpush1.bf16.msra.mxu0 %v4665_v9  ;;  %v4679_v9 = vpack.c.bf16 %v3097_v28, %v3095_v39  ;;  %v3114_v39 = vld [vmem:[#allocation14 + $0x300] sm:$0xff]  ;;  %v3116_v28 = vld [vmem:[#allocation14 + $0x310] sm:$0xff] }
 0x7f8   : > { %4668 = vmatprep.subr.bf16.mxu0 %v4667_v21  ;;  %v3094_v21 = vld [vmem:[#allocation14 + $0x260] sm:$0xff] }
 0x84c   : > { %v2696_v24 = vpop.f32.mrb[8].mxu0  ;;  %v6711_v53 = vpop.f32.mrb[56].mxu1 }
 0x84d   : > { %v2697_v52 = vadd.f32 %v2696_v24, %v2593_v8  ;;  %v2698_v17 = vpop.f32.mrb[9].mxu0  ;;  %v2787_v29 = vpop.f32.mrb[57].mxu1  ;;  %v3096_v24 = vld [vmem:[#allocation14 + $0x270] sm:$0xff] }
 0x84e   : > { %v2699_v43 = vadd.f32 %v2698_v17, %v2597_v10  ;;  %v4681_v18 = vpack.c.bf16 %v3096_v24, %v3094_v21  ;;  %v3125_v21 = vld [vmem:[#allocation14 + $0x358] sm:$0xff] }
 0x84f   : > { %v2986_v5 = vmax.f32 %v2697_v52, 0.0  ;;  %v2788_v52 = vadd.f32 %v2787_v29, %v6723_v0 }
 0x850   : > { %v2987_v14 = vmax.f32 %v2699_v43, 0.0  ;;  %v2702_v62 = vpop.f32.mrb[10].mxu0  ;;  %v6713_v4 = vpop.f32.mrb[58].mxu1 }
 0x851   : > { %v2703_v30 = vadd.f32 %v2702_v62, %v2593_v8  ;;  %v2704_v19 = vpop.f32.mrb[11].mxu0  ;;  %v6715_v15 = vpop.f32.mrb[59].mxu1  ;;  %v3103_v62 = vld [vmem:[#allocation14 + $0x2a8] sm:$0xff] }
 0x852   : > { %3350 = vmatprep.mubr.f32.mxu0 %v2987_v14  ;;  %v2705_v49 = vadd.f32 %v2704_v19, %v2597_v10  ;;  %v3098_v14 = vld [vmem:[#allocation14 + $0x280] sm:$0xff]  ;;  %v3104_v19 = vld [vmem:[#allocation14 + $0x2b0] sm:$0xff] }
 0x853   : > { %3351 = vmatmul.mubr.f32.vlgmr.msra.gmra.mrb[24].mxu0 %v2986_v5  ;;  %v2994_v47 = vmax.f32 %v2703_v30, 0.0  ;;  %v2989_v5 = vmax.f32 %v2788_v52, 0.0  ;;  %v3102_v30 = vld [vmem:[#allocation14 + $0x2a0] sm:$0xff] }
 0x854   : > { %4670 = vmatpush1.bf16.msra.mxu0 %v4669_v16  ;;  %v2995_v41 = vmax.f32 %v2705_v49, 0.0  ;;  %v2708_v56 = vpop.f32.mrb[12].mxu0  ;;  %v6718_v50 = vpop.f32.mrb[60].mxu1  ;;  %v3100_v16 = vld [vmem:[#allocation14 + $0x290] sm:$0xff]  ;;  %v4689_v38 = vpack.c.bf16 %v3104_v19, %v3102_v30  ;;  %v4691_v49 = vpack.c.bf16 %v3109_v44, %v3107_v7  ;;  %v3135_v30 = vld [vmem:[#allocation14 + $0x3a8] sm:$0xff]  ;;  %v3137_v19 = vld [vmem:[#allocation14 + $0x3b8] sm:$0xff] }
 0x855   : > { %4672 = vmatprep.subr.bf16.mxu0 %v4671_v23  ;;  %v2709_v42 = vadd.f32 %v2708_v56, %v2593_v8  ;;  %v2710_v27 = vpop.f32.mrb[13].mxu0  ;;  %v6720_v37 = vpop.f32.mrb[61].mxu1  ;;  %v3105_v23 = vld [vmem:[#allocation14 + $0x2b8] sm:$0xff]  ;;  %v4719_v44 = vpack.c.bf16 %v3137_v19, %v3135_v30  ;;  %v2612_v30 = vsub.s32 5, %v6187_v20  ;;  %v3155_v19 = vld [vmem:[#allocation14 + $0x448] sm:$0xff] }
 0x856   : > { %v2711_v63 = vadd.f32 %v2710_v27, %v2597_v10  ;;  %3356 = vmatprep.mubr.f32.mxu0 %v2995_v41  ;;  %v4687_v29 = vpack.c.bf16 %v3105_v23, %v3103_v62  ;;  %v3111_v41 = vld [vmem:[#allocation14 + $0x2e8] sm:$0xff]  ;;  %v3113_v56 = vld [vmem:[#allocation14 + $0x2f8] sm:$0xff]  ;;  %v3112_v27 = vld [vmem:[#allocation14 + $0x2f0] sm:$0xff] }
 0x857   : > { %3357 = vmatmul.mubr.f32.gmra.mrb[26].mxu0 %v2994_v47  ;;  %v3002_v35 = vmax.f32 %v2709_v42, 0.0  ;;  %v4695_v47 = vpack.c.bf16 %v3113_v56, %v3111_v41  ;;  %v3110_v42 = vld [vmem:[#allocation14 + $0x2e0] sm:$0xff]  ;;  %v2600_v56 = vsub.s32 2, %v6187_v20 }
 0x858   : > { %v3003_v34 = vmax.f32 %v2711_v63, 0.0  ;;  %4674 = vmatpush1.bf16.msra.mxu0 %v4673_v26  ;;  %v2714_v3 = vpop.f32.mrb[14].mxu0  ;;  %v6725_v46 = vpop.f32.mrb[62].mxu1  ;;  %v4693_v26 = vpack.c.bf16 %v3108_v1, %v3106_v25  ;;  %v4697_v6 = vpack.c.bf16 %v3112_v27, %v3110_v42  ;;  %v3139_v25 = vld [vmem:[#allocation14 + $0x3c8] sm:$0xff]  ;;  %v3141_v1 = vld [vmem:[#allocation14 + $0x3d8] sm:$0xff]  ;;  %v3140_v42 = vld [vmem:[#allocation14 + $0x3d0] sm:$0xff] }
 0x859   : > { %v2715_v40 = vadd.f32 %v2714_v3, %v2593_v8  ;;  %v2716_v58 = vpop.f32.mrb[15].mxu0  ;;  %v6727_v57 = vpop.f32.mrb[63].mxu1  ;;  %4676 = vmatprep.subr.bf16.mxu0 %v4675_v61  ;;  %v4683_v8 = vpack.c.bf16 %v3101_v33, %v3099_v51  ;;  %v3115_v61 = vld [vmem:[#allocation14 + $0x308] sm:$0xff]  ;;  %v3121_v3 = vld [vmem:[#allocation14 + $0x338] sm:$0xff]  ;;  %v3124_v51 = vld [vmem:[#allocation14 + $0x350] sm:$0xff] }
 0x85a   : > { %v2717_v17 = vadd.f32 %v2716_v58, %v2597_v10  ;;  %3362 = vmatprep.mubr.f32.mxu0 %v3003_v34  ;;  %v4685_v10 = vpack.c.bf16 %v3100_v16, %v3098_v14  ;;  %v4699_v63 = vpack.c.bf16 %v3117_v60, %v3115_v61  ;;  %v3119_v34 = vld [vmem:[#allocation14 + $0x328] sm:$0xff]  ;;  %v3120_v58 = vld [vmem:[#allocation14 + $0x330] sm:$0xff]  ;;  %v3145_v61 = vld [vmem:[#allocation14 + $0x3f8] sm:$0xff] }
 0x85b   : > { %3363 = vmatmul.mubr.f32.gmra.mrb[28].mxu0 %v3002_v35  ;;  %v3010_v13 = vmax.f32 %v2715_v40, 0.0  ;;  %v4703_v35 = vpack.c.bf16 %v3121_v3, %v3119_v34  ;;  %v3118_v40 = vld [vmem:[#allocation14 + $0x320] sm:$0xff]  ;;  %v3127_v33 = vld [vmem:[#allocation14 + $0x368] sm:$0xff]  ;;  %v3128_v14 = vld [vmem:[#allocation14 + $0x370] sm:$0xff] }
 0x85c   : > { %v3011_v43 = vmax.f32 %v2717_v17, 0.0  ;;  %4678 = vmatpush1.bf16.msra.mxu0 %v4677_v45  ;;  %v4701_v45 = vpack.c.bf16 %v3116_v28, %v3114_v39  ;;  %v4705_v24 = vpack.c.bf16 %v3120_v58, %v3118_v40  ;;  %v3122_v17 = vld [vmem:[#allocation14 + $0x340] sm:$0xff]  ;;  %v3131_v16 = vld [vmem:[#allocation14 + $0x388] sm:$0xff]  ;;  %v3144_v28 = vld [vmem:[#allocation14 + $0x3f0] sm:$0xff] }
 0x85d   : > { %4680 = vmatprep.subr.bf16.mxu0 %v4679_v9  ;;  %v3123_v9 = vld [vmem:[#allocation14 + $0x348] sm:$0xff]  ;;  %v3142_v39 = vld [vmem:[#allocation14 + $0x3e0] sm:$0xff]  ;;  %v3149_v3 = vld [vmem:[#allocation14 + $0x418] sm:$0xff] }
 0x85e   : > { %3368 = vmatprep.mubr.f32.mxu0 %v3011_v43  ;;  %v4707_v52 = vpack.c.bf16 %v3125_v21, %v3123_v9  ;;  %v3129_v43 = vld [vmem:[#allocation14 + $0x378] sm:$0xff]  ;;  %v3143_v27 = vld [vmem:[#allocation14 + $0x3e8] sm:$0xff]  ;;  %v4729_v40 = vpack.c.bf16 %v3144_v28, %v3142_v39 }
 0x85f   : > { %3369 = vmatmul.mubr.f32.gmra.mrb[30].mxu0 %v3010_v13  ;;  %v4711_v13 = vpack.c.bf16 %v3129_v43, %v3127_v33  ;;  %v3147_v34 = vld [vmem:[#allocation14 + $0x408] sm:$0xff]  ;;  %v3153_v43 = vld [vmem:[#allocation14 + $0x438] sm:$0xff] }
 0x860   : > { %4682 = vmatpush1.bf16.msra.mxu0 %v4681_v18  ;;  %3439 = vmatprep.mubr.f32.mxu0 %v2989_v5  ;;  %v4709_v18 = vpack.c.bf16 %v3124_v51, %v3122_v17  ;;  %v3133_v5 = vld [vmem:[#allocation14 + $0x398] sm:$0xff]  ;;  %v3148_v17 = vld [vmem:[#allocation14 + $0x410] sm:$0xff]  ;;  %v2794_v51 = vadd.f32 %v6715_v15, %v6723_v0  ;;  %v3151_v33 = vld [vmem:[#allocation14 + $0x428] sm:$0xff] }
 0x861   : > { %4684 = vmatprep.subr.bf16.mxu0 %v4683_v8  ;;  %v3126_v8 = vld [vmem:[#allocation14 + $0x360] sm:$0xff]  ;;  %v4715_v23 = vpack.c.bf16 %v3133_v5, %v3131_v16  ;;  %v3152_v15 = vld [vmem:[#allocation14 + $0x430] sm:$0xff] }
 0x862   : > { %v4713_v62 = vpack.c.bf16 %v3128_v14, %v3126_v8 }
 0x864   : > { %4686 = vmatpush1.bf16.msra.mxu0 %v4685_v10  ;;  %v3130_v10 = vld [vmem:[#allocation14 + $0x380] sm:$0xff] }
 0x865   : > { %4688 = vmatprep.subr.bf16.mxu0 %v4687_v29  ;;  %v3132_v29 = vld [vmem:[#allocation14 + $0x390] sm:$0xff] }
 0x866   : > { %v4717_v7 = vpack.c.bf16 %v3132_v29, %v3130_v10  ;;  %v2997_v10 = vmax.f32 %v2794_v51, 0.0  ;;  %v2800_v29 = vadd.f32 %v6720_v37, %v6723_v0  ;;  %v3165_v51 = vld [vmem:[#allocation14 + $0x498] sm:$0xff] }
 0x868   : > { %4690 = vmatpush1.bf16.msra.mxu0 %v4689_v38  ;;  %v3134_v38 = vld [vmem:[#allocation14 + $0x3a0] sm:$0xff] }
 0x869   : > { %4692 = vmatprep.subr.bf16.mxu0 %v4691_v49  ;;  %v3136_v49 = vld [vmem:[#allocation14 + $0x3b0] sm:$0xff] }
 0x86a   : > { %v4721_v41 = vpack.c.bf16 %v3136_v49, %v3134_v38 }
 0x86c   : > { %4694 = vmatpush1.bf16.msra.mxu0 %v4693_v26  ;;  %v4723_v26 = vpack.c.bf16 %v3141_v1, %v3139_v25 }
 0x86d   : > { %4696 = vmatprep.subr.bf16.mxu0 %v4695_v47  ;;  %v3138_v47 = vld [vmem:[#allocation14 + $0x3c0] sm:$0xff] }
 0x86e   : > { %v4725_v60 = vpack.c.bf16 %v3140_v42, %v3138_v47  ;;  %v3005_v47 = vmax.f32 %v2800_v29, 0.0  ;;  %v2806_v42 = vadd.f32 %v6727_v57, %v6723_v0  ;;  %v3171_v29 = vld [vmem:[#allocation14 + $0x4c8] sm:$0xff] }
 0x870   : > { %4698 = vmatpush1.bf16.msra.mxu0 %v4697_v6  ;;  %v6732_v6 = vrot.slane %v6705_v48, %v2600_v56  ;;  %v3154_v56 = vld [vmem:[#allocation14 + $0x440] sm:$0xff] }
 0x871   : > { %4700 = vmatprep.subr.bf16.mxu0 %v4699_v63  ;;  %v4727_v63 = vpack.c.bf16 %v3145_v61, %v3143_v27  ;;  %v6770_v27 = vrot.slane %v6705_v48, %v2612_v30  ;;  %v3159_v61 = vld [vmem:[#allocation14 + $0x468] sm:$0xff]  ;;  %v3173_v30 = vld [vmem:[#allocation14 + $0x4d8] sm:$0xff] }
 0x872   : > { %v2786_v58 = vadd.f32 %v6711_v53, %v6732_v6  ;;  %v2792_v53 = vadd.f32 %v6713_v4, %v6732_v6  ;;  %v2798_v25 = vadd.f32 %v6718_v50, %v6732_v6 }
 0x874   : > { %4702 = vmatpush1.bf16.msra.mxu0 %v4701_v45  ;;  %v2988_v14 = vmax.f32 %v2786_v58, 0.0  ;;  %v2996_v49 = vmax.f32 %v2792_v53, 0.0  ;;  %v3004_v28 = vmax.f32 %v2798_v25, 0.0  ;;  %v3160_v58 = vld [vmem:[#allocation14 + $0x470] sm:$0xff]  ;;  %v3167_v53 = vld [vmem:[#allocation14 + $0x4a8] sm:$0xff] }
 0x875   : > { %4704 = vmatprep.subr.bf16.mxu0 %v4703_v35  ;;  %v3175_v25 = vld [vmem:[#allocation14 + $0x4e8] sm:$0xff] }
 0x878   : > { %4706 = vmatpush1.bf16.msra.mxu0 %v4705_v24  ;;  %v4731_v24 = vpack.c.bf16 %v3149_v3, %v3147_v34  ;;  %v2804_v34 = vadd.f32 %v6725_v46, %v6732_v6  ;;  %v3162_v6 = vld [vmem:[#allocation14 + $0x480] sm:$0xff] }
 0x879   : > { %4708 = vmatprep.subr.bf16.mxu0 %v4707_v52  ;;  %v3146_v52 = vld [vmem:[#allocation14 + $0x400] sm:$0xff] }
 0x87a   : > { %v4733_v8 = vpack.c.bf16 %v3148_v17, %v3146_v52  ;;  %v3163_v17 = vld [vmem:[#allocation14 + $0x488] sm:$0xff] }
 0x87b   : > { %v4747_v46 = vpack.c.bf16 %v3165_v51, %v3163_v17  ;;  %v3182_v17 = vld [vmem:[#allocation14 + $0x520] sm:$0xff]  ;;  %v3184_v51 = vld [vmem:[#allocation14 + $0x530] sm:$0xff] }
 0x87c   : > { %4710 = vmatpush1.bf16.msra.mxu0 %v4709_v18 }
 0x87d   : > { %4712 = vmatprep.subr.bf16.mxu0 %v4711_v13 }
 0x880   : > { %4714 = vmatpush1.bf16.msra.mxu0 %v4713_v62  ;;  %v4735_v62 = vpack.c.bf16 %v3153_v43, %v3151_v33  ;;  %v3012_v43 = vmax.f32 %v2804_v34, 0.0  ;;  %v3178_v34 = vld [vmem:[#allocation14 + $0x500] sm:$0xff] }
 0x881   : > { %4716 = vmatprep.subr.bf16.mxu0 %v4715_v23  ;;  %v3150_v23 = vld [vmem:[#allocation14 + $0x420] sm:$0xff] }
 0x882   : > { %v4737_v38 = vpack.c.bf16 %v3152_v15, %v3150_v23  ;;  %v3166_v15 = vld [vmem:[#allocation14 + $0x4a0] sm:$0xff] }
 0x884   : > { %4718 = vmatpush1.bf16.msra.mxu0 %v4717_v7  ;;  %v3157_v7 = vld [vmem:[#allocation14 + $0x458] sm:$0xff] }
 0x885   : > { %4720 = vmatprep.subr.bf16.mxu0 %v4719_v44  ;;  %v4739_v37 = vpack.c.bf16 %v3157_v7, %v3155_v19  ;;  %v4755_v7 = vpack.c.bf16 %v3173_v30, %v3171_v29  ;;  %v3195_v29 = vld [vmem:[#allocation14 + $0x588] sm:$0xff]  ;;  %v3197_v30 = vld [vmem:[#allocation14 + $0x598] sm:$0xff] }
 0x888   : > { %4722 = vmatpush1.bf16.msra.mxu0 %v4721_v41 }
 0x889   : > { %4724 = vmatprep.subr.bf16.mxu0 %v4723_v26  ;;  %v3156_v26 = vld [vmem:[#allocation14 + $0x450] sm:$0xff] }
 0x88a   : > { %v4741_v39 = vpack.c.bf16 %v3156_v26, %v3154_v56 }
 0x88c   : > { %v6734_v45 = vpop.f32.mrb[16].mxu0  ;;  %v6736_v35 = vpop.f32.mrb[64].mxu1  ;;  %4726 = vmatpush1.bf16.msra.mxu0 %v4725_v60  ;;  %v3161_v60 = vld [vmem:[#allocation14 + $0x478] sm:$0xff] }
 0x88d   : > { %v2876_v9 = vpop.f32.mrb[17].mxu0  ;;  %v6740_v21 = vpop.f32.mrb[65].mxu1  ;;  %4728 = vmatprep.subr.bf16.mxu0 %v4727_v63  ;;  %v4743_v57 = vpack.c.bf16 %v3161_v60, %v3159_v61  ;;  %v3179_v61 = vld [vmem:[#allocation14 + $0x508] sm:$0xff]  ;;  %v3181_v60 = vld [vmem:[#allocation14 + $0x518] sm:$0xff] }
 0x88e   : > { %v2877_v52 = vadd.f32 %v2876_v9, %v6770_v27 }
 0x890   : > { %v6744_v18 = vpop.f32.mrb[18].mxu0  ;;  %v6746_v13 = vpop.f32.mrb[66].mxu1  ;;  %4730 = vmatpush1.bf16.msra.mxu0 %v4729_v40  ;;  %v3158_v40 = vld [vmem:[#allocation14 + $0x460] sm:$0xff] }
 0x891   : > { %v6750_v16 = vpop.f32.mrb[19].mxu0  ;;  %v6752_v5 = vpop.f32.mrb[67].mxu1  ;;  %4732 = vmatprep.subr.bf16.mxu0 %v4731_v24  ;;  %v3013_v24 = vmax.f32 %v2806_v42, 0.0  ;;  %v4745_v33 = vpack.c.bf16 %v3160_v58, %v3158_v40  ;;  %v3176_v42 = vld [vmem:[#allocation14 + $0x4f0] sm:$0xff]  ;;  %v3183_v40 = vld [vmem:[#allocation14 + $0x528] sm:$0xff]  ;;  %v3185_v58 = vld [vmem:[#allocation14 + $0x538] sm:$0xff] }
 0x893   : > { %3440 = vmatmul.mubr.f32.vlgmr.msra.gmra.mrb[24].mxu0 %v2988_v14  ;;  %v2991_v14 = vmax.f32 %v2877_v52, 0.0  ;;  %v4767_v52 = vpack.c.bf16 %v3185_v58, %v3183_v40  ;;  %v3204_v40 = vld [vmem:[#allocation14 + $0x5d0] sm:$0xff]  ;;  %v3207_v58 = vld [vmem:[#allocation14 + $0x5e8] sm:$0xff] }
 0x894   : > { %v6757_v44 = vpop.f32.mrb[20].mxu0  ;;  %v6759_v4 = vpop.f32.mrb[68].mxu1  ;;  %3445 = vmatprep.mubr.f32.mxu0 %v2997_v10  ;;  %4734 = vmatpush1.bf16.msra.mxu0 %v4733_v8  ;;  %v3164_v8 = vld [vmem:[#allocation14 + $0x490] sm:$0xff] }
 0x895   : > { %v6763_v1 = vpop.f32.mrb[21].mxu0  ;;  %v6765_v41 = vpop.f32.mrb[69].mxu1  ;;  %4736 = vmatprep.subr.bf16.mxu0 %v4735_v62  ;;  %v3169_v62 = vld [vmem:[#allocation14 + $0x4b8] sm:$0xff]  ;;  %v4749_v23 = vpack.c.bf16 %v3164_v8, %v3162_v6  ;;  %v3168_v10 = vld [vmem:[#allocation14 + $0x4b0] sm:$0xff]  ;;  %v3186_v8 = vld [vmem:[#allocation14 + $0x540] sm:$0xff] }
 0x896   : > { %v4751_v9 = vpack.c.bf16 %v3169_v62, %v3167_v53  ;;  %v4753_v19 = vpack.c.bf16 %v3168_v10, %v3166_v15  ;;  %v3191_v53 = vld [vmem:[#allocation14 + $0x568] sm:$0xff]  ;;  %v3193_v62 = vld [vmem:[#allocation14 + $0x578] sm:$0xff]  ;;  %v3190_v15 = vld [vmem:[#allocation14 + $0x560] sm:$0xff] }
 0x897   : > { %3446 = vmatmul.mubr.f32.gmra.mrb[26].mxu0 %v2996_v49  ;;  %v3172_v49 = vld [vmem:[#allocation14 + $0x4d0] sm:$0xff] }
 0x898   : > { %v6772_v63 = vpop.f32.mrb[22].mxu0  ;;  %v6774_v50 = vpop.f32.mrb[70].mxu1  ;;  %3451 = vmatprep.mubr.f32.mxu0 %v3005_v47  ;;  %4738 = vmatpush1.bf16.msra.mxu0 %v4737_v38  ;;  %v3170_v38 = vld [vmem:[#allocation14 + $0x4c0] sm:$0xff]  ;;  %v3192_v10 = vld [vmem:[#allocation14 + $0x570] sm:$0xff] }
 0x899   : > { %v6778_v3 = vpop.f32.mrb[23].mxu0  ;;  %v6780_v0 = vpop.f32.mrb[71].mxu1  ;;  %4740 = vmatprep.subr.bf16.mxu0 %v4739_v37  ;;  %v3177_v37 = vld [vmem:[#allocation14 + $0x4f8] sm:$0xff]  ;;  %v4757_v56 = vpack.c.bf16 %v3172_v49, %v3170_v38  ;;  %v3174_v47 = vld [vmem:[#allocation14 + $0x4e0] sm:$0xff]  ;;  %v3196_v49 = vld [vmem:[#allocation14 + $0x590] sm:$0xff] }
 0x89a   : > { %v4759_v26 = vpack.c.bf16 %v3177_v37, %v3175_v25  ;;  %v3194_v38 = vld [vmem:[#allocation14 + $0x580] sm:$0xff]  ;;  %v3199_v25 = vld [vmem:[#allocation14 + $0x5a8] sm:$0xff]  ;;  %v3201_v37 = vld [vmem:[#allocation14 + $0x5b8] sm:$0xff] }
 0x89b   : > { %3452 = vmatmul.mubr.f32.gmra.mrb[28].mxu0 %v3004_v28  ;;  %v4763_v28 = vpack.c.bf16 %v3181_v60, %v3179_v61  ;;  %v3203_v61 = vld [vmem:[#allocation14 + $0x5c8] sm:$0xff]  ;;  %v3205_v60 = vld [vmem:[#allocation14 + $0x5d8] sm:$0xff] }
 0x89c   : > { %3457 = vmatprep.mubr.f32.mxu0 %v3013_v24  ;;  %4742 = vmatpush1.bf16.msra.mxu0 %v4741_v39  ;;  %v4761_v39 = vpack.c.bf16 %v3176_v42, %v3174_v47  ;;  %v3198_v47 = vld [vmem:[#allocation14 + $0x5a0] sm:$0xff]  ;;  %v3200_v42 = vld [vmem:[#allocation14 + $0x5b0] sm:$0xff] }
 0x89d   : > { %4744 = vmatprep.subr.bf16.mxu0 %v4743_v57  ;;  %v3180_v57 = vld [vmem:[#allocation14 + $0x510] sm:$0xff] }
 0x89e   : > { %v4765_v24 = vpack.c.bf16 %v3180_v57, %v3178_v34  ;;  %v4787_v34 = vpack.c.bf16 %v3205_v60, %v3203_v61  ;;  %v3202_v57 = vld [vmem:[#allocation14 + $0x5c0] sm:$0xff]  ;;  %v3220_v60 = vld [vmem:[#allocation14 + $0x650] sm:$0xff] }
 0x89f   : > { %3458 = vmatmul.mubr.f32.gmra.mrb[30].mxu0 %v3012_v43  ;;  %v3189_v43 = vld [vmem:[#allocation14 + $0x558] sm:$0xff]  ;;  %v3218_v61 = vld [vmem:[#allocation14 + $0x640] sm:$0xff] }
 0x8a0   : > { %4746 = vmatpush1.bf16.msra.mxu0 %v4745_v33  ;;  %3528 = vmatprep.mubr.f32.mxu0 %v2991_v14  ;;  %v3187_v33 = vld [vmem:[#allocation14 + $0x548] sm:$0xff]  ;;  %v3188_v14 = vld [vmem:[#allocation14 + $0x550] sm:$0xff] }
 0x8a1   : > { %4748 = vmatprep.subr.bf16.mxu0 %v4747_v46  ;;  %v4769_v46 = vpack.c.bf16 %v3184_v51, %v3182_v17  ;;  %v4771_v6 = vpack.c.bf16 %v3189_v43, %v3187_v33  ;;  %v3206_v33 = vld [vmem:[#allocation14 + $0x5e0] sm:$0xff]  ;;  %v3208_v43 = vld [vmem:[#allocation14 + $0x5f0] sm:$0xff] }
 0x8a4   : > { %4750 = vmatpush1.bf16.msra.mxu0 %v4749_v23  ;;  %v4773_v23 = vpack.c.bf16 %v3188_v14, %v3186_v8  ;;  %v4793_v8 = vpack.c.bf16 %v3208_v43, %v3206_v33 }
 0x8a5   : > { %4752 = vmatprep.subr.bf16.mxu0 %v4751_v9  ;;  %v4775_v9 = vpack.c.bf16 %v3193_v62, %v3191_v53  ;;  %v3210_v62 = vld [vmem:[#allocation14 + $0x600] sm:$0xff] }
 0x8a8   : > { %4754 = vmatpush1.bf16.msra.mxu0 %v4753_v19  ;;  %v4777_v19 = vpack.c.bf16 %v3192_v10, %v3190_v15  ;;  %v3215_v15 = vld [vmem:[#allocation14 + $0x628] sm:$0xff]  ;;  %v3217_v10 = vld [vmem:[#allocation14 + $0x638] sm:$0xff] }
 0x8a9   : > { %4756 = vmatprep.subr.bf16.mxu0 %v4755_v7  ;;  %v4779_v7 = vpack.c.bf16 %v3197_v30, %v3195_v29 }
 0x8ac   : > { %4758 = vmatpush1.bf16.msra.mxu0 %v4757_v56  ;;  %v4781_v56 = vpack.c.bf16 %v3196_v49, %v3194_v38  ;;  %v3214_v38 = vld [vmem:[#allocation14 + $0x620] sm:$0xff]  ;;  %v3216_v49 = vld [vmem:[#allocation14 + $0x630] sm:$0xff] }
 0x8ad   : > { %4760 = vmatprep.subr.bf16.mxu0 %v4759_v26  ;;  %v4783_v26 = vpack.c.bf16 %v3201_v37, %v3199_v25  ;;  %v2889_v37 = vadd.f32 %v6763_v1, %v6770_v27  ;;  %v2895_v1 = vadd.f32 %v6778_v3, %v6770_v27 }
 0x8af   : > { %v3015_v43 = vmax.f32 %v2895_v1, 0.0  ;;  %v3249_v1 = vld [vmem:[#allocation14 + $0x738] sm:$0xff] }
 0x8b0   : > { %4762 = vmatpush1.bf16.msra.mxu0 %v4761_v39  ;;  %v4785_v39 = vpack.c.bf16 %v3200_v42, %v3198_v47 }
 0x8b1   : > { %4764 = vmatprep.subr.bf16.mxu0 %v4763_v28  ;;  %v2608_v28 = vsub.s32 4, %v6187_v20 }
 0x8b3   : > { %v2609_v17 = vrot.slane %v6705_v48, %v2608_v28  ;;  %v3007_v28 = vmax.f32 %v2889_v37, 0.0 }
 0x8b4   : > { %4766 = vmatpush1.bf16.msra.mxu0 %v4765_v24  ;;  %v3209_v24 = vld [vmem:[#allocation14 + $0x5f8] sm:$0xff] }
 0x8b5   : > { %4768 = vmatprep.subr.bf16.mxu0 %v4767_v52  ;;  %v4789_v52 = vpack.c.bf16 %v3204_v40, %v3202_v57  ;;  %v4791_v51 = vpack.c.bf16 %v3209_v24, %v3207_v58  ;;  %v2875_v14 = vadd.f32 %v6734_v45, %v2609_v17  ;;  %v2620_v45 = vsub.s32 7, %v6187_v20  ;;  %v3225_v57 = vld [vmem:[#allocation14 + $0x678] sm:$0xff] }
 0x8b6   : > { %v2887_v42 = vadd.f32 %v6757_v44, %v2609_v17  ;;  %v4805_v40 = vpack.c.bf16 %v3220_v60, %v3218_v61  ;;  %v2893_v44 = vadd.f32 %v6772_v63, %v2609_v17  ;;  %v3242_v61 = vld [vmem:[#allocation14 + $0x700] sm:$0xff]  ;;  %v3244_v60 = vld [vmem:[#allocation14 + $0x710] sm:$0xff] }
 0x8b7   : > { %v2990_v30 = vmax.f32 %v2875_v14, 0.0  ;;  %v3226_v14 = vld [vmem:[#allocation14 + $0x680] sm:$0xff] }
 0x8b8   : > { %4770 = vmatpush1.bf16.msra.mxu0 %v4769_v46  ;;  %v3211_v46 = vld [vmem:[#allocation14 + $0x608] sm:$0xff]  ;;  %v3006_v58 = vmax.f32 %v2887_v42, 0.0  ;;  %v3014_v3 = vmax.f32 %v2893_v44, 0.0 }
 0x8b9   : > { %4772 = vmatprep.subr.bf16.mxu0 %v4771_v6  ;;  %v3213_v6 = vld [vmem:[#allocation14 + $0x618] sm:$0xff]  ;;  %v3251_v44 = vld [vmem:[#allocation14 + $0x748] sm:$0xff] }
 0x8ba   : > { %v4795_v53 = vpack.c.bf16 %v3213_v6, %v3211_v46  ;;  %v3227_v46 = vld [vmem:[#allocation14 + $0x688] sm:$0xff]  ;;  %v3229_v6 = vld [vmem:[#allocation14 + $0x698] sm:$0xff] }
 0x8bc   : > { %4774 = vmatpush1.bf16.msra.mxu0 %v4773_v23  ;;  %v3212_v23 = vld [vmem:[#allocation14 + $0x610] sm:$0xff] }
 0x8bd   : > { %4776 = vmatprep.subr.bf16.mxu0 %v4775_v9  ;;  %v2883_v9 = vadd.f32 %v6750_v16, %v6770_v27  ;;  %v4797_v29 = vpack.c.bf16 %v3212_v23, %v3210_v62  ;;  %v4801_v16 = vpack.c.bf16 %v3216_v49, %v3214_v38  ;;  %v3233_v62 = vld [vmem:[#allocation14 + $0x6b8] sm:$0xff]  ;;  %v3236_v38 = vld [vmem:[#allocation14 + $0x6d0] sm:$0xff]  ;;  %v3239_v49 = vld [vmem:[#allocation14 + $0x6e8] sm:$0xff] }
 0x8bf   : > { %v2999_v25 = vmax.f32 %v2883_v9, 0.0  ;;  %v3230_v9 = vld [vmem:[#allocation14 + $0x6a0] sm:$0xff] }
 0x8c0   : > { %4778 = vmatpush1.bf16.msra.mxu0 %v4777_v19  ;;  %v2881_v19 = vadd.f32 %v6744_v18, %v2609_v17  ;;  %v3231_v17 = vld [vmem:[#allocation14 + $0x6a8] sm:$0xff] }
 0x8c1   : > { %4780 = vmatprep.subr.bf16.mxu0 %v4779_v7  ;;  %v4799_v7 = vpack.c.bf16 %v3217_v10, %v3215_v15  ;;  %v3232_v15 = vld [vmem:[#allocation14 + $0x6b0] sm:$0xff]  ;;  %v3235_v10 = vld [vmem:[#allocation14 + $0x6c8] sm:$0xff] }
 0x8c2   : > { %v2998_v47 = vmax.f32 %v2881_v19, 0.0 }
 0x8c4   : > { %4782 = vmatpush1.bf16.msra.mxu0 %v4781_v56  ;;  %v3219_v56 = vld [vmem:[#allocation14 + $0x648] sm:$0xff] }
 0x8c5   : > { %4784 = vmatprep.subr.bf16.mxu0 %v4783_v26  ;;  %v3221_v26 = vld [vmem:[#allocation14 + $0x658] sm:$0xff] }
 0x8c6   : > { %v4803_v18 = vpack.c.bf16 %v3221_v26, %v3219_v56  ;;  %v3238_v56 = vld [vmem:[#allocation14 + $0x6e0] sm:$0xff]  ;;  %v3240_v26 = vld [vmem:[#allocation14 + $0x6f0] sm:$0xff] }
 0x8c7   : > { %v4825_v42 = vpack.c.bf16 %v3240_v26, %v3238_v56  ;;  %v3268_v56 = vld [vmem:[#allocation14 + $0x7d0] sm:$0xff]  ;;  %v3271_v26 = vld [vmem:[#allocation14 + $0x7e8] sm:$0xff] }
 0x8c8   : > { %4786 = vmatpush1.bf16.msra.mxu0 %v4785_v39  ;;  %v6794_v39 = vrot.slane %v6705_v48, %v2620_v45  ;;  %v3241_v45 = vld [vmem:[#allocation14 + $0x6f8] sm:$0xff] }
 0x8c9   : > { %4788 = vmatprep.subr.bf16.mxu0 %v4787_v34  ;;  %v3223_v34 = vld [vmem:[#allocation14 + $0x668] sm:$0xff]  ;;  %v4823_v37 = vpack.c.bf16 %v3241_v45, %v3239_v49  ;;  %v2616_v45 = vsub.s32 6, %v6187_v20 }
 0x8ca   : > { %v4807_v24 = vpack.c.bf16 %v3225_v57, %v3223_v34  ;;  %v2966_v33 = vadd.f32 %v6740_v21, %v6794_v39  ;;  %v4815_v21 = vpack.c.bf16 %v3233_v62, %v3231_v17  ;;  %v4829_v34 = vpack.c.bf16 %v3244_v60, %v3242_v61  ;;  %v3270_v61 = vld [vmem:[#allocation14 + $0x7e0] sm:$0xff]  ;;  %v3272_v60 = vld [vmem:[#allocation14 + $0x7f0] sm:$0xff] }
 0x8cb   : > { %v2972_v20 = vadd.f32 %v6752_v5, %v6794_v39 }
 0x8cc   : > { %4790 = vmatpush1.bf16.msra.mxu0 %v4789_v52  ;;  %v3222_v52 = vld [vmem:[#allocation14 + $0x660] sm:$0xff]  ;;  %v2993_v63 = vmax.f32 %v2966_v33, 0.0 }
 0x8cd   : > { %4792 = vmatprep.subr.bf16.mxu0 %v4791_v51  ;;  %v3224_v51 = vld [vmem:[#allocation14 + $0x670] sm:$0xff]  ;;  %v3250_v33 = vld [vmem:[#allocation14 + $0x740] sm:$0xff] }
 0x8ce   : > { %v4809_v27 = vpack.c.bf16 %v3224_v51, %v3222_v52 }
 0x8d0   : > { %4794 = vmatpush1.bf16.msra.mxu0 %v4793_v8  ;;  %v4811_v8 = vpack.c.bf16 %v3229_v6, %v3227_v46  ;;  %v3255_v46 = vld [vmem:[#allocation14 + $0x768] sm:$0xff]  ;;  %v3257_v6 = vld [vmem:[#allocation14 + $0x778] sm:$0xff] }
 0x8d1   : > { %4796 = vmatprep.subr.bf16.mxu0 %v4795_v53  ;;  %v3228_v53 = vld [vmem:[#allocation14 + $0x690] sm:$0xff] }
 0x8d2   : > { %v4813_v23 = vpack.c.bf16 %v3228_v53, %v3226_v14  ;;  %v3256_v14 = vld [vmem:[#allocation14 + $0x770] sm:$0xff]  ;;  %v3259_v53 = vld [vmem:[#allocation14 + $0x788] sm:$0xff] }
 0x8d3   : > { %3529 = vmatmul.mubr.f32.vlgmr.msra.gmra.mrb[24].mxu0 %v2990_v30  ;;  %v4817_v30 = vpack.c.bf16 %v3232_v15, %v3230_v9  ;;  %v3263_v9 = vld [vmem:[#allocation14 + $0x7a8] sm:$0xff]  ;;  %v3265_v15 = vld [vmem:[#allocation14 + $0x7b8] sm:$0xff] }
 0x8d4   : > { %3534 = vmatprep.mubr.f32.mxu0 %v2999_v25  ;;  %4798 = vmatpush1.bf16.msra.mxu0 %v4797_v29  ;;  %v3237_v29 = vld [vmem:[#allocation14 + $0x6d8] sm:$0xff] }
 0x8d5   : > { %4800 = vmatprep.subr.bf16.mxu0 %v4799_v7  ;;  %v4819_v19 = vpack.c.bf16 %v3237_v29, %v3235_v10  ;;  %v3234_v7 = vld [vmem:[#allocation14 + $0x6c0] sm:$0xff]  ;;  %v4847_v29 = vpack.c.bf16 %v3265_v15, %v3263_v9 }
 0x8d6   : > { %v4821_v25 = vpack.c.bf16 %v3236_v38, %v3234_v7  ;;  %v3267_v7 = vld [vmem:[#allocation14 + $0x7c8] sm:$0xff]  ;;  %v3269_v38 = vld [vmem:[#allocation14 + $0x7d8] sm:$0xff] }
 0x8d7   : > { %3535 = vmatmul.mubr.f32.gmra.mrb[26].mxu0 %v2998_v47  ;;  %v3245_v47 = vld [vmem:[#allocation14 + $0x718] sm:$0xff] }
 0x8d8   : > { %3540 = vmatprep.mubr.f32.mxu0 %v3007_v28  ;;  %4802 = vmatpush1.bf16.msra.mxu0 %v4801_v16  ;;  %v3243_v16 = vld [vmem:[#allocation14 + $0x708] sm:$0xff] }
 0x8d9   : > { %4804 = vmatprep.subr.bf16.mxu0 %v4803_v18  ;;  %v4827_v18 = vpack.c.bf16 %v3245_v47, %v3243_v16  ;;  %v3247_v28 = vld [vmem:[#allocation14 + $0x728] sm:$0xff]  ;;  %v3273_v16 = vld [vmem:[#allocation14 + $0x7f8] sm:$0xff] }
 0x8da   : > { %v4831_v57 = vpack.c.bf16 %v3249_v1, %v3247_v28  ;;  %v4857_v28 = vpack.c.bf16 %v3272_v60, %v3270_v61 }
 0x8db   : > { %3541 = vmatmul.mubr.f32.gmra.mrb[28].mxu0 %v3006_v58  ;;  %v3248_v58 = vld [vmem:[#allocation14 + $0x730] sm:$0xff] }
 0x8dc   : > { %3546 = vmatprep.mubr.f32.mxu0 %v3015_v43  ;;  %4806 = vmatpush1.bf16.msra.mxu0 %v4805_v40  ;;  %v3246_v40 = vld [vmem:[#allocation14 + $0x720] sm:$0xff]  ;;  %v3252_v43 = vld [vmem:[#allocation14 + $0x750] sm:$0xff] }
 0x8dd   : > { %4808 = vmatprep.subr.bf16.mxu0 %v4807_v24  ;;  %v3253_v24 = vld [vmem:[#allocation14 + $0x758] sm:$0xff]  ;;  %v4833_v52 = vpack.c.bf16 %v3248_v58, %v3246_v40  ;;  %v3001_v40 = vmax.f32 %v2972_v20, 0.0 }
 0x8de   : > { %v4835_v51 = vpack.c.bf16 %v3253_v24, %v3251_v44 }
 0x8df   : > { %3547 = vmatmul.mubr.f32.gmra.mrb[30].mxu0 %v3014_v3  ;;  %v4839_v3 = vpack.c.bf16 %v3257_v6, %v3255_v46 }
 0x8e0   : > { %4810 = vmatpush1.bf16.msra.mxu0 %v4809_v27  ;;  %3617 = vmatprep.mubr.f32.mxu0 %v2993_v63  ;;  %v4837_v27 = vpack.c.bf16 %v3252_v43, %v3250_v33  ;;  %v3261_v63 = vld [vmem:[#allocation14 + $0x798] sm:$0xff] }
 0x8e1   : > { %4812 = vmatprep.subr.bf16.mxu0 %v4811_v8  ;;  %v3254_v8 = vld [vmem:[#allocation14 + $0x760] sm:$0xff]  ;;  %v4843_v62 = vpack.c.bf16 %v3261_v63, %v3259_v53 }
 0x8e2   : > { %v4841_v17 = vpack.c.bf16 %v3256_v14, %v3254_v8 }
 0x8e4   : > { %4814 = vmatpush1.bf16.msra.mxu0 %v4813_v23  ;;  %v3258_v23 = vld [vmem:[#allocation14 + $0x780] sm:$0xff] }
 0x8e5   : > { %4816 = vmatprep.subr.bf16.mxu0 %v4815_v21  ;;  %v3260_v21 = vld [vmem:[#allocation14 + $0x790] sm:$0xff] }
 0x8e6   : > { %v4845_v10 = vpack.c.bf16 %v3260_v21, %v3258_v23 }
 0x8e8   : > { %4818 = vmatpush1.bf16.msra.mxu0 %v4817_v30  ;;  %v3262_v30 = vld [vmem:[#allocation14 + $0x7a0] sm:$0xff] }
 0x8e9   : > { %4820 = vmatprep.subr.bf16.mxu0 %v4819_v19  ;;  %v3264_v19 = vld [vmem:[#allocation14 + $0x7b0] sm:$0xff] }
 0x8ea   : > { %v4849_v49 = vpack.c.bf16 %v3264_v19, %v3262_v30 }
 0x8ec   : > { %4822 = vmatpush1.bf16.msra.mxu0 %v4821_v25  ;;  %v4851_v25 = vpack.c.bf16 %v3269_v38, %v3267_v7 }
 0x8ed   : > { %4824 = vmatprep.subr.bf16.mxu0 %v4823_v37  ;;  %v3266_v37 = vld [vmem:[#allocation14 + $0x7c0] sm:$0xff] }
 0x8ee   : > { %v4853_v47 = vpack.c.bf16 %v3268_v56, %v3266_v37 }
 0x8f0   : > { %4826 = vmatpush1.bf16.msra.mxu0 %v4825_v42  ;;  %v2617_v42 = vrot.slane %v6705_v48, %v2616_v45  ;;  %v2978_v48 = vadd.f32 %v6765_v41, %v6794_v39  ;;  %v3274_v41 = vld [vmem:[%s7010_s18] sm:$0x3]  ;;  %s5378_s18 = sshll.u32 %s5531_s13, 4  ;;  %s5379_s18 = int_to_ptr.vmem [resolvable:$false] %s5378_s18 }
 0x8f1   : > { %4828 = vmatprep.subr.bf16.mxu0 %v4827_v18  ;;  %v4855_v18 = vpack.c.bf16 %v3273_v16, %v3271_v26  ;;  %s5380_s0 = scalar_lea.vmem %s5379_s18, 2048  ;;  %p5381_p0 = scmp.lt.s32.totalorder %s6836_s1, %s5379_s18 }
 0x8f2   : > { %v2964_v1 = vadd.f32 %v6736_v35, %v2617_v42  ;;  %v2976_v44 = vadd.f32 %v6759_v4, %v2617_v42  ;;  %v3009_v24 = vmax.f32 %v2978_v48, 0.0  ;;  %v2984_v35 = vadd.f32 %v6780_v0, %v6794_v39  ;;  %p5382_p9 = scmp.lt.s32.totalorder %s5380_s0, %s5374_s14 }
 0x8f3   : > { %v3279_v4 = vrot.slane %v3274_v41, %v6194_v31  ;;  %v3283_v0 = vrot.slane %v3274_v41, %v6197_v32 }
 0x8f4   : > { %4830 = vmatpush1.bf16.msra.mxu0 %v4829_v34  ;;  %v2992_v34 = vmax.f32 %v2964_v1, 0.0  ;;  %v3008_v5 = vmax.f32 %v2976_v44, 0.0  ;;  %p5383_p11 = por %p5382_p9, %p5381_p0 }
 0x8f5   : > { %4832 = vmatprep.subr.bf16.mxu0 %v4831_v57  ;;  %v2970_v57 = vadd.f32 %v6746_v13, %v2617_v42  ;;  %v3017_v13 = vmax.f32 %v2984_v35, 0.0 }
 0x8f6   : > { %p5384_p7 = pnand %p5383_p11, %p5377_p8 }
 0x8f7   : > { %v3000_v58 = vmax.f32 %v2970_v57, 0.0 }
 0x8f8   : > { %4834 = vmatpush1.bf16.msra.mxu0 %v4833_v52  ;;  %v2982_v52 = vadd.f32 %v6774_v50, %v2617_v42 }
 0x8f9   : > { %4836 = vmatprep.subr.bf16.mxu0 %v4835_v51 }
 0x8fa   : > { %v3016_v51 = vmax.f32 %v2982_v52, 0.0 }
 0x8fc   : > { %4838 = vmatpush1.bf16.msra.mxu0 %v4837_v27 }
 0x8fd   : > { %4840 = vmatprep.subr.bf16.mxu0 %v4839_v3 }
 0x900   : > { %4842 = vmatpush1.bf16.msra.mxu0 %v4841_v17 }
 0x901   : > { %4844 = vmatprep.subr.bf16.mxu0 %v4843_v62 }
 0x904   : > { %4846 = vmatpush1.bf16.msra.mxu0 %v4845_v10 }
 0x905   : > { %4848 = vmatprep.subr.bf16.mxu0 %v4847_v29 }
 0x908   : > { %4850 = vmatpush1.bf16.msra.mxu0 %v4849_v49 }
 0x909   : > { %4852 = vmatprep.subr.bf16.mxu0 %v4851_v25 }
 0x90c   : > { %4854 = vmatpush1.bf16.msra.mxu0 %v4853_v47 }
 0x90d   : > { %4856 = vmatprep.subr.bf16.mxu0 %v4855_v18 }
 0x910   : > { %4858 = vmatpush1.bf16.msra.mxu0 %v4857_v28 }
 0x913   : > { %3618 = vmatmul.mubr.f32.vlgmr.msra.gmra.mrb[24].mxu0 %v2992_v34 }
 0x914   : > { %3623 = vmatprep.mubr.f32.mxu0 %v3001_v40 }
 0x917   : > { %3624 = vmatmul.mubr.f32.gmra.mrb[26].mxu0 %v3000_v58 }
 0x918   : > { %3629 = vmatprep.mubr.f32.mxu0 %v3009_v24 }
 0x91b   : > { %3630 = vmatmul.mubr.f32.gmra.mrb[28].mxu0 %v3008_v5 }
 0x91c   : > { %3635 = vmatprep.mubr.f32.mxu0 %v3017_v13 }
 0x91f   : > { %3636 = vmatmul.mubr.f32.gmra.mrb[30].mxu0 %v3016_v51 }
 0x9e6   : > { %v3619_v39 = vpop.f32.mrb[24].mxu0 }
 0x9e7   : > { %v4859_v33 = vadd.f32 %v3619_v39, %v3279_v4  ;;  %v3621_v43 = vpop.f32.mrb[25].mxu0 }
 0x9e8   : > { %v4860_v50 = vadd.f32 %v3621_v43, %v3283_v0 }
 0x9e9   : > { %v3642_v46 = vadd.f32 %v4859_v33, %v6553_v11 }
 0x9ea   : > { %v3643_v6 = vadd.f32 %v4860_v50, %v6556_v2  ;;  %v3625_v27 = vpop.f32.mrb[26].mxu0 }
 0x9eb   : > { %3650 = vst [vmem:[%s6822_s19] sm:$0xff] %v3642_v46  ;;  %v4861_v31 = vadd.f32 %v3625_v27, %v3279_v4  ;;  %v3627_v32 = vpop.f32.mrb[27].mxu0 }
 0x9ec   : > { %3651 = vst [vmem:[%s6822_s19 + $0x8] sm:$0xff] %v3643_v6  ;;  %v4862_v3 = vadd.f32 %v3627_v32, %v3283_v0 }
 0x9ed   : > { %v3644_v11 = vadd.f32 %v4861_v31, %v6565_v22 }
 0x9ee   : > { %v3645_v2 = vadd.f32 %v4862_v3, %v6568_v12  ;;  %v3631_v8 = vpop.f32.mrb[28].mxu0 }
 0x9ef   : > { %3652 = vst [vmem:[%s6822_s19 + $0x10] sm:$0xff] %v3644_v11  ;;  %v4863_v14 = vadd.f32 %v3631_v8, %v3279_v4  ;;  %v3633_v53 = vpop.f32.mrb[29].mxu0 }
 0x9f0   : > { %3653 = vst [vmem:[%s6822_s19 + $0x18] sm:$0xff] %v3645_v2  ;;  %v4864_v63 = vadd.f32 %v3633_v53, %v3283_v0 }
 0x9f1   : > { %v3646_v17 = vadd.f32 %v4863_v14, %v6577_v54 }
 0x9f2   : > { %v3647_v62 = vadd.f32 %v4864_v63, %v6580_v36  ;;  %v3637_v23 = vpop.f32.mrb[30].mxu0 }
 0x9f3   : > { %3654 = vst [vmem:[%s6822_s19 + $0x20] sm:$0xff] %v3646_v17  ;;  %v4865_v22 = vadd.f32 %v3637_v23, %v3279_v4  ;;  %v3639_v12 = vpop.f32.mrb[31].mxu0 }
 0x9f4   : > { %3655 = vst [vmem:[%s6822_s19 + $0x28] sm:$0xff] %v3647_v62  ;;  %v4866_v21 = vadd.f32 %v3639_v12, %v3283_v0 }
 0x9f5   : > { %v3648_v9 = vadd.f32 %v4865_v22, %v6589_v59 }
 0x9f6   : > { %v3649_v54 = vadd.f32 %v4866_v21, %v6592_v55 }
 0x9f7   : > { %3656 = vst [vmem:[%s6822_s19 + $0x30] sm:$0xff] %v3648_v9 }
 0x9f8   : > { %3657 = vst [vmem:[%s6822_s19 + $0x38] sm:$0xff] %v3649_v54 }
 0x9f9   : > { %5387 = shalt.err (!%p5384_p7)
}
 0x9fa   : > { %s5388_s9 = scalar_lea.hbm %s6843_s16, 1024  ;;  %s5392_s5 = scalar_lea.hbm %s7013_s29, 4096 }
 0x9fb   : > { %p5389_p2 = scmp.ne.s32.totalorder %s6843_s16, %s5388_s9  ;;  %p5393_p13 = scmp.lt.u32.totalorder %s6843_s16, %s7013_s29 }
 0x9fc   : > { %p5394_p1 = scmp.lt.u32.totalorder %s5392_s5, %s5388_s9  ;;  %p5396_p6 = scmp.lt.u32.totalorder %s5388_s9, %s6843_s16 }
 0x9fd   : > { %p5390_p10 = pnand %p5389_p2, %p7014_p3 }
 0x9fe   : > { %p5395_p5 = por %p5394_p1, %p5393_p13 }
 0x9ff   : > { %p5391_p12 = pneg %p5390_p10 }
 0xa00   : > { %p5397_p4 = por %p5396_p6, %p5395_p5 }
 0xa02   : > { %p5398_p8 = pnand %p5397_p4, %p5391_p12 }
 0xa04   : > { %5401 = shalt.err (!%p5398_p8)
}
 0xa05   : > { %s5532_s30 = smov 256   ;;  %s5533_s12 = smov 16  }
 0xa06   : > { %4927 = dma.vmem_to_hbm [thread:$0]  (%p7014_p3), %s6836_s1, 1024, %s6843_s16, %s3659_s7, %s5532_s30, %s5532_s30, %s5533_s12  }
 0xa07 PF: > { %p4972_p0 = scmp.ge.s32.totalorder %s5516_s28, 2  ;;  %s3690_s14 = sand.u32 1, %s5488_s21  }
 0xa08   : > { %p7015_p9 = scmp.ne.s32.totalorder %s6974_s17, 0  ;;  %s3691_s13 = scalar_lea.sflag [#allocation4], %s3690_s14 }
 0xa0a   : > { %p4956_p11 = pnand %p4972_p0, %p7015_p9 }
 0xa0c   : > { %5471 = dma.done.wait (!%p4956_p11), %s3691_s13, 1024  }
 0xa0d   : > { %5473 = vsyncadd (!%p4956_p11), %s3691_s13, 4294966272  ;;  %s37_s28 = sadd.s32 1, %s5516_s28   ;;  %s7016_s18 = sld [smem:[#allocation25_spill]] }
 0xa0e   : > { %p34_p7 = scmp.ge.s32.totalorder %s37_s28, 6   ;;  %s7017_s19 = smov %s5484_s20 }
 0xa0f   : > { %s7018_s20 = smov %s5935_s8  ;;  %s7019_s21 = smov %s5492_s22 }
 0xa10   : > { %s7020_s22 = smov %s5496_s23  ;;  %s7021_s23 = smov %s5879_s10 }
 0xa11   : > { %s7022_s24 = smov %s5508_s26  ;;  %s7023_s25 = smov %s5512_s27 }
 0xa12   : > { %s7024_s26 = smov %s7027_s15  ;;  %s7025_s27 = smov %s7031_s2 }
 0xa13   :  { %36 = sbr.rel (!%p34_p7) target bundleno = 31 (0x1f), region = 162 }
 0xa1a   :  { %3696 = vsyncpa [#allocation3], 1 }
 0xa1b   :  { %3698 = vsyncpa [#allocation3 + $0x1], 1 }
 0xa1c   :  { %3699 = vsyncpa [#allocation6], 1 }
 0xa1d   :  { %3701 = vsyncpa [#allocation6 + $0x1], 1 }
 0xa1e   :  { %3702 = vsyncpa [#allocation9], 1 }
 0xa1f   :  { %3703 = vsyncpa [#allocation12], 1 }
 0xa20   :  { %3704 = vsyncpa [#allocation15], 1 }
 0xa21   :  { %3705 = vsyncpa [#allocation4], 1 }
 0xa22   :  { %3707 = vsyncpa [#allocation4 + $0x1], 1 }

// kernel: tpu_custom_call.1
= control target key start
LH: loop header
LB: loop body
LE: loop exit
PB: predicated region body
PF: predicated region fallthrough
CT: control target
= control target key end

     0   :  { %s6909_s0 = inlined_call_operand.hbm [shape: f32[2,64,256], index: 0, kind: input, shape index: {}]   ;;  %s6910_s1 = inlined_call_operand.hbm [shape: f32[2,64,256], index: 1, kind: input, shape index: {}]   ;;  %s6911_s2 = inlined_call_operand.hbm [shape: f32[256,256], index: 2, kind: input, shape index: {}]   ;;  %s6912_s3 = inlined_call_operand.hbm [shape: f32[256,256], index: 3, kind: input, shape index: {}]   ;;  %s6913_s4 = inlined_call_operand.hbm [shape: f32[256,256], index: 4, kind: input, shape index: {}]   ;;  %s6914_s5 = inlined_call_operand.hbm [shape: f32[2,128,256], index: 5, kind: input, shape index: {}]   ;;  %s6915_s6 = inlined_call_operand.vmem [shape: f32[1,256], index: 6, kind: input, shape index: {}]   ;;  %s6916_s7 = inlined_call_operand.vmem [shape: f32[1,256], index: 7, kind: input, shape index: {}]   ;;  %s6917_s8 = inlined_call_operand.vmem [shape: f32[1,256], index: 8, kind: input, shape index: {}]   ;;  %s6918_s9 = inlined_call_operand.vmem [shape: f32[1,256], index: 9, kind: input, shape index: {}]   ;;  %s6919_s10 = inlined_call_operand.vmem [shape: f32[1,256], index: 10, kind: input, shape index: {}]   ;;  %s6920_s11 = inlined_call_operand.hbm [shape: f32[256,1024], index: 11, kind: input, shape index: {}]   ;;  %s6921_s12 = inlined_call_operand.vmem [shape: f32[1,1024], index: 12, kind: input, shape index: {}]   ;;  %s6922_s13 = inlined_call_operand.hbm [shape: f32[1024,256], index: 13, kind: input, shape index: {}]   ;;  %s6923_s14 = inlined_call_operand.vmem [shape: f32[1,256], index: 14, kind: input, shape index: {}]   ;;  %s6924_s15 = inlined_call_operand.hbm [shape: f32[2,64,256], index: 15, kind: output, shape index: {}]  }
   0x1   :  { %6939 = sst [smem:[#allocation29_spill]] %s6909_s0 }
   0x2   :  { %6940 = sst [smem:[#allocation30_spill]] %s6910_s1 }
   0x3   :  { %6941 = sst [smem:[#allocation31_spill]] %s6911_s2 }
   0x4   :  { %6942 = sst [smem:[#allocation32_spill]] %s6912_s3 }
   0x5   :  { %6943 = sst [smem:[#allocation33_spill]] %s6913_s4 }
   0x6   :  { %6944 = sst [smem:[#allocation34_spill]] %s6914_s5 }
   0x7   :  { %6945 = sst [smem:[#allocation35_spill]] %s6915_s6 }
   0x8   :  { %6946 = sst [smem:[#allocation36_spill]] %s6916_s7 }
   0x9   :  { %6947 = sst [smem:[#allocation37_spill]] %s6917_s8 }
   0xa   :  { %6948 = sst [smem:[#allocation38_spill]] %s6918_s9 }
   0xb   :  { %6949 = sst [smem:[#allocation39_spill]] %s6919_s10 }
   0xc   :  { %6950 = sst [smem:[#allocation40_spill]] %s6920_s11 }
   0xd   :  { %6951 = sst [smem:[#allocation41_spill]] %s6921_s12 }
   0xe   :  { %6952 = sst [smem:[#allocation42_spill]] %s6922_s13 }
   0xf   :  { %6953 = sst [smem:[#allocation43_spill]] %s6923_s14 }
  0x10   :  { %6954 = sst [smem:[#allocation44_spill]] %s6924_s15 }
  0x11   :  { %20 = vsyncpa [#allocation3], 0 }
  0x12   :  { %22 = vsyncpa [#allocation3 + $0x1], 0 }
  0x13   :  { %23 = vsyncpa [#allocation6], 0 }
  0x14   :  { %25 = vsyncpa [#allocation6 + $0x1], 0 }
  0x15   :  { %26 = vsyncpa [#allocation9], 0 }
  0x16   :  { %27 = vsyncpa [#allocation12], 0 }
  0x17   :  { %28 = vsyncpa [#allocation15], 0 }
  0x18   :  { %29 = vsyncpa [#allocation4], 0 }
  0x19   :  { %31 = vsyncpa [#allocation4 + $0x1], 0  ;;  %s5614_s18 = smov 0   ;;  %s5616_s19 = smov 0  }
  0x1a   :  { %s5618_s20 = smov 0   ;;  %s5620_s21 = smov 0  }
  0x1b   :  { %s5622_s22 = smov 0   ;;  %s5624_s23 = smov 0  }
  0x1c   :  { %s5626_s24 = smov 0   ;;  %s5628_s25 = smov 0  }
  0x1d   :  { %s5630_s26 = smov 0   ;;  %s5632_s27 = smov 0  }
  0x1e   :  { %s5634_s28 = smov 0  }
  0x1f LB: > { %6955 = sst [smem:[#allocation24_spill]] %s5476_s18  ;;  %s5670_s29 = sadd.s32 4294967295, %s5516_s28   ;;  %s5516_s28 = sphi %s5634_s28, %s37_s28   ;;  %s5512_s27 = sphi %s5632_s27, %s7025_s27   ;;  %s5508_s26 = sphi %s5630_s26, %s7024_s26   ;;  %s5504_s25 = sphi %s5628_s25, %s7023_s25   ;;  %s5500_s24 = sphi %s5626_s24, %s7022_s24   ;;  %s5496_s23 = sphi %s5624_s23, %s7021_s23   ;;  %s5492_s22 = sphi %s5622_s22, %s7020_s22   ;;  %s5488_s21 = sphi %s5620_s21, %s7019_s21   ;;  %s5484_s20 = sphi %s5618_s20, %s7018_s20   ;;  %s5480_s19 = sphi %s5616_s19, %s7017_s19   ;;  %s5476_s18 = sphi %s5614_s18, %s7016_s18  }
  0x20   : > { %6956 = sst [smem:[#allocation25_spill]] %s5480_s19  ;;  %p3847_p0 = scmp.ge.s32.totalorder %s5516_s28, 1 }
  0x21   : > { %6957 = sst [smem:[#allocation26_spill]] %s5500_s24  ;;  %p6929_p1 = scmp.eq.s32.totalorder %s5670_s29, 0 }
  0x22   : > { %6958 = sst [smem:[#allocation27_spill]] %s5504_s25  ;;  %p409_p2 = scmp.lt.s32.totalorder %s5516_s28, 5 }
  0x23   : > { %s5518_s16 = smov [#allocation7]   ;;  %s5519_s25 = smov [#allocation8]  }
  0x24   : > { %p5675_p3 = pnand %p3847_p0, %p409_p2  ;;  %s421_s17 = sshll.u32 %s5518_s16, 4  ;;  %s5679_s17 = int_to_ptr.vmem [resolvable:$true] %s421_s17 }
  0x25   : > { %s434_s24 = sshll.u32 %s5519_s25, 4  ;;  %s5520_s14 = smov [#allocation11]   ;;  %s5689_s24 = int_to_ptr.vmem [resolvable:$true] %s434_s24 }
  0x26   : > { %s6959_s30 = scalar_select %p5675_p3, 1, 0 }
  0x27   : > { %p4929_p4 = pneg %p5675_p3  ;;  %s5691_s12 = sshll.u32 %s5520_s14, 4  ;;  %s461_s12 = int_to_ptr.vmem [resolvable:$true] %s5691_s12 }
  0x28   : > { %6960 = sst [smem:[#allocation28_spill]] %s6959_s30  ;;  %s6962_s2 = sld [smem:[#allocation31_spill]] }
  0x29   : > { %p5685_p5 = pnand %p4929_p4, %p6929_p1 }
  0x2b   : > { %p5701_p7 = pneg %p5685_p5 }
  0x2e   : > { %s5146_s16 = scalar_lea.hbm %s6962_s2, 8192 }
  0x2f   : > { %p5147_p6 = scmp.ne.s32.totalorder %s6962_s2, %s5146_s16  ;;  %p5153_p10 = scmp.lt.u32.totalorder %s5146_s16, %s6962_s2 }
  0x31   : > { %p5149_p8 = pnand %p5701_p7, %p5147_p6 }
  0x33   : > { %p5150_p9 = pneg %p5149_p8 }
  0x35   : > { %p5155_p11 = pnand %p5153_p10, %p5150_p9 }
  0x37   : > { %5158 = shalt.err (!%p5155_p11)
}
  0x38   : > { %s5159_s6 = scalar_lea.vmem %s5679_s17, 8192  ;;  %p5167_p2 = scmp.lt.s32.totalorder %s5679_s17, %s5679_s17 }
  0x39   : > { %p5160_p12 = scmp.ne.s32.totalorder %s5679_s17, %s5159_s6  ;;  %p5168_p4 = scmp.lt.s32.totalorder %s5159_s6, %s5159_s6 }
  0x3b   : > { %p5162_p13 = pnand %p5160_p12, %p5701_p7  ;;  %p5169_p6 = por %p5168_p4, %p5167_p2 }
  0x3d   : > { %p5163_p0 = pneg %p5162_p13 }
  0x3f   : > { %p5170_p8 = pnand %p5169_p6, %p5163_p0 }
  0x41   : > { %5173 = shalt.err (!%p5170_p8)
}
  0x42   : > { %s6931_s8 = smov 256   ;;  %s6933_s9 = smov 16  }
  0x43   : > { %4932 = dma.hbm_to_vmem [thread:$0]  (!%p5685_p5), %s6962_s2, 8192, %s5679_s17, [#allocation6], %s6931_s8, %s6931_s8, %s6933_s9  }
  0x44   : > { %s6964_s3 = sld [smem:[#allocation32_spill]] }
  0x4a   : > { %s5174_s6 = scalar_lea.hbm %s6964_s3, 8192 }
  0x4b   : > { %p5175_p9 = scmp.ne.s32.totalorder %s6964_s3, %s5174_s6  ;;  %p5181_p12 = scmp.lt.u32.totalorder %s5174_s6, %s6964_s3 }
  0x4d   : > { %p5177_p10 = pnand %p5175_p9, %p5701_p7 }
  0x4f   : > { %p5178_p11 = pneg %p5177_p10 }
  0x51   : > { %p5183_p13 = pnand %p5181_p12, %p5178_p11 }
  0x53   : > { %5186 = shalt.err (!%p5183_p13)
}
  0x54   : > { %s5187_s17 = scalar_lea.vmem %s5689_s24, 8192  ;;  %p5195_p6 = scmp.lt.s32.totalorder %s5689_s24, %s5689_s24 }
  0x55   : > { %p5188_p0 = scmp.ne.s32.totalorder %s5689_s24, %s5187_s17  ;;  %p5196_p8 = scmp.lt.s32.totalorder %s5187_s17, %s5187_s17 }
  0x57   : > { %p5190_p2 = pnand %p5188_p0, %p5701_p7  ;;  %p5197_p9 = por %p5196_p8, %p5195_p6 }
  0x59   : > { %p5191_p4 = pneg %p5190_p2 }
  0x5b   : > { %p5198_p10 = pnand %p5197_p9, %p5191_p4 }
  0x5d   : > { %5201 = shalt.err (!%p5198_p10)
}
  0x5e   : > { %4935 = dma.hbm_to_vmem [thread:$0]  (!%p5685_p5), %s6964_s3, 8192, %s5689_s24, [#allocation9], %s6931_s8, %s6931_s8, %s6933_s9  }
  0x5f   : > { %s6965_s5 = sld [smem:[#allocation34_spill]] }
  0x65   : > { %s5202_s10 = scalar_lea.hbm %s6965_s5, 8192 }
  0x66   : > { %p5203_p11 = scmp.ne.s32.totalorder %s6965_s5, %s5202_s10  ;;  %p5209_p0 = scmp.lt.u32.totalorder %s5202_s10, %s6965_s5 }
  0x68   : > { %p5205_p12 = pnand %p5203_p11, %p5701_p7 }
  0x6a   : > { %p5206_p13 = pneg %p5205_p12 }
  0x6c   : > { %p5211_p2 = pnand %p5209_p0, %p5206_p13 }
  0x6e   : > { %5214 = shalt.err (!%p5211_p2)
}
  0x6f   : > { %s5215_s17 = scalar_lea.vmem %s461_s12, 8192  ;;  %p5223_p9 = scmp.lt.s32.totalorder %s461_s12, %s461_s12 }
  0x70   : > { %p5216_p4 = scmp.ne.s32.totalorder %s461_s12, %s5215_s17  ;;  %p5224_p10 = scmp.lt.s32.totalorder %s5215_s17, %s5215_s17 }
  0x72   : > { %p5218_p6 = pnand %p5216_p4, %p5701_p7  ;;  %p5225_p1 = por %p5224_p10, %p5223_p9 }
  0x74   : > { %p5219_p8 = pneg %p5218_p6 }
  0x76   : > { %p5226_p3 = pnand %p5225_p1, %p5219_p8 }
  0x78   : > { %5229 = shalt.err (!%p5226_p3)
}
  0x79   : > { %4941 = dma.hbm_to_vmem [thread:$0]  (!%p5685_p5), %s6965_s5, 8192, %s461_s12, [#allocation12], %s6931_s8, %s6931_s8, %s6933_s9  }
  0x7a   : > { %s5523_s18 = smov [#allocation10]   ;;  %s5524_s30 = smov [#allocation13]  }
  0x7b   : > { %s447_s19 = sshll.u32 %s5523_s18, 4  ;;  %s488_s10 = sshll.u32 %s5524_s30, 4  ;;  %s448_s19 = int_to_ptr.vmem [resolvable:$true] %s447_s19  ;;  %s489_s10 = int_to_ptr.vmem [resolvable:$true] %s488_s10 }
  0x7c   : > { %s6966_s4 = sld [smem:[#allocation33_spill]] }
  0x82   : > { %s5230_s14 = scalar_lea.hbm %s6966_s4, 8192 }
  0x83   : > { %p5231_p1 = scmp.ne.s32.totalorder %s6966_s4, %s5230_s14  ;;  %p5237_p12 = scmp.lt.u32.totalorder %s5230_s14, %s6966_s4 }
  0x85   : > { %p5233_p3 = pnand %p5231_p1, %p5701_p7 }
  0x87   : > { %p5234_p11 = pneg %p5233_p3 }
  0x89   : > { %p5239_p13 = pnand %p5237_p12, %p5234_p11 }
  0x8b   : > { %5242 = shalt.err (!%p5239_p13)
}
  0x8c   : > { %s5243_s12 = scalar_lea.vmem %s448_s19, 8192  ;;  %p5251_p6 = scmp.lt.s32.totalorder %s448_s19, %s448_s19 }
  0x8d   : > { %p5244_p0 = scmp.ne.s32.totalorder %s448_s19, %s5243_s12  ;;  %p5252_p8 = scmp.lt.s32.totalorder %s5243_s12, %s5243_s12 }
  0x8f   : > { %p5246_p2 = pnand %p5244_p0, %p5701_p7  ;;  %p5253_p9 = por %p5252_p8, %p5251_p6 }
  0x91   : > { %p5247_p4 = pneg %p5246_p2 }
  0x93   : > { %p5254_p10 = pnand %p5253_p9, %p5247_p4 }
  0x95   : > { %5257 = shalt.err (!%p5254_p10)
}
  0x96   : > { %4938 = dma.hbm_to_vmem [thread:$0]  (!%p5685_p5), %s6966_s4, 8192, %s448_s19, [#allocation9], %s6931_s8, %s6931_s8, %s6933_s9  }
  0x97   : > { %s6967_s11 = sld [smem:[#allocation40_spill]] }
  0x9d   : > { %s5258_s16 = scalar_lea.hbm %s6967_s11, 32768 }
  0x9e   : > { %p5259_p1 = scmp.ne.s32.totalorder %s6967_s11, %s5258_s16  ;;  %p5265_p12 = scmp.lt.u32.totalorder %s5258_s16, %s6967_s11 }
  0xa0   : > { %p5261_p3 = pnand %p5259_p1, %p5701_p7 }
  0xa2   : > { %p5262_p11 = pneg %p5261_p3 }
  0xa4   : > { %p5267_p13 = pnand %p5265_p12, %p5262_p11 }
  0xa6   : > { %5270 = shalt.err (!%p5267_p13)
}
  0xa7   : > { %s5271_s24 = scalar_lea.vmem %s489_s10, 32768  ;;  %p5279_p6 = scmp.lt.s32.totalorder %s489_s10, %s489_s10 }
  0xa8   : > { %p5272_p0 = scmp.ne.s32.totalorder %s489_s10, %s5271_s24  ;;  %p5280_p8 = scmp.lt.s32.totalorder %s5271_s24, %s5271_s24 }
  0xaa   : > { %p5274_p2 = pnand %p5272_p0, %p5701_p7  ;;  %p5281_p9 = por %p5280_p8, %p5279_p6 }
  0xac   : > { %p5275_p4 = pneg %p5274_p2 }
  0xae   : > { %p5282_p10 = pnand %p5281_p9, %p5275_p4 }
  0xb0   : > { %5285 = shalt.err (!%p5282_p10)
}
  0xb1   : > { %s5525_s19 = smov 1024   ;;  %s5526_s12 = smov 64  }
  0xb2   : > { %4944 = dma.hbm_to_vmem [thread:$0]  (!%p5685_p5), %s6967_s11, 32768, %s489_s10, [#allocation12], %s5525_s19, %s5525_s19, %s5526_s12  }
  0xb3   : > { %s5527_s18 = smov [#allocation14]   ;;  %s6968_s13 = sld [smem:[#allocation42_spill]] }
  0xb4   : > { %s504_s30 = sshll.u32 %s5527_s18, 4  ;;  %s505_s30 = int_to_ptr.vmem [resolvable:$true] %s504_s30 }
  0xb9   : > { %s5286_s14 = scalar_lea.hbm %s6968_s13, 32768 }
  0xba   : > { %p5287_p1 = scmp.ne.s32.totalorder %s6968_s13, %s5286_s14  ;;  %p5293_p12 = scmp.lt.u32.totalorder %s5286_s14, %s6968_s13 }
  0xbc   : > { %p5289_p3 = pnand %p5287_p1, %p5701_p7 }
  0xbe   : > { %p5290_p11 = pneg %p5289_p3 }
  0xc0   : > { %p5295_p13 = pnand %p5293_p12, %p5290_p11 }
  0xc2   : > { %5298 = shalt.err (!%p5295_p13)
}
  0xc3   : > { %s5299_s10 = scalar_lea.vmem %s505_s30, 32768  ;;  %p5307_p6 = scmp.lt.s32.totalorder %s505_s30, %s505_s30 }
  0xc4   : > { %p5300_p0 = scmp.ne.s32.totalorder %s505_s30, %s5299_s10  ;;  %p5308_p8 = scmp.lt.s32.totalorder %s5299_s10, %s5299_s10 }
  0xc6   : > { %p5302_p2 = pnand %p5300_p0, %p5701_p7  ;;  %p5309_p9 = por %p5308_p8, %p5307_p6 }
  0xc8   : > { %p5303_p4 = pneg %p5302_p2 }
  0xca   : > { %p5310_p10 = pnand %p5309_p9, %p5303_p4 }
  0xcc   : > { %5313 = shalt.err (!%p5310_p10)
}
  0xcd   : > { %s6969_s19 = smov 256   ;;  %s3846_s7 = sadd.s32 4294967294, %s5516_s28  }
  0xce   : > { %4947 = dma.hbm_to_vmem [thread:$0]  (!%p5685_p5), %s6968_s13, 32768, %s505_s30, [#allocation15], %s6969_s19, %s6969_s19, %s6933_s9  }
  0xcf   : > { %s46_s15 = sadd.s32 1, %s5508_s26  ;;  %s49_s2 = sadd.s32 1, %s5512_s27 }
  0xd0   : > { %p47_p7 = scmp.ge.s32.totalorder %s46_s15, 2  ;;  %s58_s1 = sadd.s32 1, %s5496_s23 }
  0xd1   : > { %p65_p1 = scmp.ne.s32.totalorder %s5496_s23, %s5492_s22  ;;  %p6936_p3 = scmp.eq.s32.totalorder %s5516_s28, 0 }
  0xd2   : > { %s7027_s15 = smov (%p47_p7, %s46_s15), 0  ;;  %s7029_s2 = smov (!%p47_p7, %s49_s2), %s5512_s27 }
  0xd3   : > { %s54_s18 = ssub.s32 %s5508_s26, %s7027_s15  ;;  %p51_p11 = scmp.ge.s32.totalorder %s7029_s2, 2 }
  0xd4   : > { %p71_p12 = scmp.ne.s32.totalorder %s5492_s22, %s5488_s21  ;;  %p5849_p5 = por %p6936_p3, %p65_p1 }
  0xd5   : > { %p396_p13 = scmp.eq.s32.totalorder %s5670_s29, 3  ;;  %s7031_s2 = smov (%p51_p11, %s7029_s2), 0 }
  0xd6   : > { %p6971_p0 = scmp.eq.s32.totalorder %s5670_s29, 0  ;;  %s5868_s14 = ssub.s32 %s5512_s27, %s7031_s2 }
  0xd7   : > { %p5862_p4 = por %p396_p13, %p65_p1  ;;  %p402_p6 = scmp.eq.s32.totalorder %s3846_s7, 3 }
  0xd8   : > { %p5858_p2 = por %p6971_p0, %p71_p12  ;;  %s55_s6 = sor.u32 %s54_s18, %s5868_s14 }
  0xd9   : > { %s6973_s25 = scalar_select %p5862_p4, 1, 0 }
  0xda   : > { %p56_p9 = scmp.eq.s32.totalorder %s55_s6, 0  ;;  %p5872_p10 = por %p402_p6, %p71_p12 }
  0xdb   : > { %p6935_p7 = scmp.lt.s32.totalorder %s5516_s28, 4  ;;  %s521_s24 = sand.u32 1, %s5496_s23  }
  0xdc   : > { %s6974_s17 = scalar_select %p5872_p10, 1, 0 }
  0xdd   : > { %s5879_s10 = scalar_select %p56_p9, %s5496_s23, %s58_s1  }
  0xde   : > { %s3855_s8 = sshll.u32 %s521_s24, 6  ;;  %s3888_s12 = sshll.u32 %s5508_s26, 3 }
  0xdf   : > { %s3858_s9 = sshll.u32 %s5512_s27, 4  ;;  %s525_s3 = scalar_lea.vmem [#allocation2], %s3855_s8 }
  0xe0   : > { %s535_s4 = sshll.u32 %s525_s3, 4  ;;  %s532_s5 = sadd.s32 %s3888_s12, %s3858_s9  ;;  %s5883_s4 = int_to_ptr.vmem [resolvable:$true] %s535_s4 }
  0xe1   : > { %s3859_s7 = sshll.u32 %s532_s5, 7  ;;  %p5889_p1 = pnand %p6935_p7, %p5849_p5 }
  0xe2   : > { %s6976_s0 = sld [smem:[#allocation29_spill]]  ;;  %s5898_s3 = scalar_lea.sflag [#allocation3], %s521_s24 }
  0xe3   : > { %p5316_p12 = pneg %p5889_p1 }
  0xe8   : > { %s5896_s1 = scalar_lea.hbm %s6976_s0, %s3859_s7  ;;  %s5319_s30 = scalar_lea.hbm %s6976_s0, 4096 }
  0xe9   : > { %s5314_s5 = scalar_lea.hbm %s5896_s1, 1024  ;;  %p5320_p0 = scmp.lt.u32.totalorder %s5896_s1, %s6976_s0 }
  0xea   : > { %p5315_p11 = scmp.ne.s32.totalorder %s5896_s1, %s5314_s5  ;;  %p5321_p6 = scmp.lt.u32.totalorder %s5319_s30, %s5314_s5 }
  0xeb   : > { %p5323_p7 = scmp.lt.u32.totalorder %s5314_s5, %s5896_s1 }
  0xec   : > { %p5317_p5 = pnand %p5316_p12, %p5315_p11  ;;  %p5322_p9 = por %p5321_p6, %p5320_p0 }
  0xee   : > { %p5318_p13 = pneg %p5317_p5  ;;  %p5324_p3 = por %p5323_p7, %p5322_p9 }
  0xf0   : > { %p5325_p8 = pnand %p5324_p3, %p5318_p13 }
  0xf2   : > { %5328 = shalt.err (!%p5325_p8)
}
  0xf3   : > { %s5329_s24 = scalar_lea.vmem %s5883_s4, 1024  ;;  %s5528_s7 = smov [#allocation2]  }
  0xf4   : > { %p5330_p11 = scmp.ne.s32.totalorder %s5883_s4, %s5329_s24  ;;  %s5334_s6 = sshll.u32 %s5528_s7, 4  ;;  %s5335_s6 = int_to_ptr.vmem [resolvable:$false] %s5334_s6 }
  0xf5   : > { %s5336_s9 = scalar_lea.vmem %s5335_s6, 2048  ;;  %p5337_p4 = scmp.lt.s32.totalorder %s5883_s4, %s5335_s6 }
  0xf6   : > { %p5332_p5 = pnand %p5330_p11, %p5316_p12  ;;  %p5338_p0 = scmp.lt.s32.totalorder %s5336_s9, %s5329_s24 }
  0xf8   : > { %p5333_p10 = pneg %p5332_p5  ;;  %p5339_p6 = por %p5338_p0, %p5337_p4 }
  0xfa   : > { %p5340_p7 = pnand %p5339_p6, %p5333_p10 }
  0xfc   : > { %5343 = shalt.err (!%p5340_p7)
}
  0xfd   : > { %s6977_s5 = smov 16   ;;  %s6978_s11 = sld [smem:[#allocation25_spill]] }
  0xfe   : > { %s6979_s30 = sld [smem:[#allocation24_spill]]  ;;  %s84_s18 = sadd.s32 1, %s5484_s20 }
  0xff   : > { %4951 = dma.hbm_to_vmem [thread:$0]  (!%p5889_p1), %s5896_s1, 1024, %s5883_s4, %s5898_s3, %s6969_s19, %s6969_s19, %s6977_s5  }
 0x100   : > { %p6980_p4 = scmp.eq.s32.totalorder %s5868_s14, 0  ;;  %p6981_p8 = scmp.eq.s32.totalorder %s5516_s28, 0 }
 0x101   : > { %s545_s12 = sand.u32 1, %s5516_s28   ;;  %s547_s24 = sand.u32 1, %s5484_s20  }
 0x102   : > { %s5935_s8 = scalar_select %p6980_p4, %s5484_s20, %s84_s18  }
 0x103   : > { %p91_p3 = scmp.ne.s32.totalorder %s5484_s20, %s6978_s11  ;;  %p6982_p13 = scmp.eq.s32.totalorder %s5670_s29, 0 }
 0x104   : > { %p97_p12 = scmp.ne.s32.totalorder %s6978_s11, %s6979_s30  ;;  %s3860_s6 = sshll.u32 %s547_s24, 7 }
 0x105   : > { %p93_p10 = por %p91_p3, %p6981_p8  ;;  %s3889_s9 = sshll.u32 %s5512_s27, 11 }
 0x106   : > { %p5945_p9 = por %p97_p12, %p6982_p13  ;;  %s6984_s4 = sld [smem:[#allocation30_spill]] }
 0x107   : > { %s549_s14 = scalar_lea.vmem [#allocation5], %s3860_s6  ;;  %p6985_p1 = scmp.lt.s32.totalorder %s5516_s28, 4 }
 0x108   : > { %s6983_s7 = scalar_select %p5945_p9, 1, 0 }
 0x109   : > { %s556_s3 = sshll.u32 %s549_s14, 4  ;;  %p5957_p11 = pnand %p6985_p1, %p93_p10  ;;  %s5961_s3 = int_to_ptr.vmem [resolvable:$true] %s556_s3 }
 0x10a   : > { %s5963_s30 = scalar_lea.sflag [#allocation6], %s545_s12 }
 0x10b   : > { %p5346_p0 = pneg %p5957_p11 }
 0x10c   : > { %s5953_s1 = scalar_lea.hbm %s6984_s4, %s3889_s9  ;;  %s5349_s24 = scalar_lea.hbm %s6984_s4, 4096 }
 0x10d   : > { %s5344_s0 = scalar_lea.hbm %s5953_s1, 2048  ;;  %p5350_p3 = scmp.lt.u32.totalorder %s5953_s1, %s6984_s4 }
 0x10e   : > { %p5345_p5 = scmp.ne.s32.totalorder %s5953_s1, %s5344_s0  ;;  %p5351_p4 = scmp.lt.u32.totalorder %s5349_s24, %s5344_s0 }
 0x10f   : > { %p5353_p10 = scmp.lt.u32.totalorder %s5344_s0, %s5953_s1 }
 0x110   : > { %p5347_p6 = pnand %p5346_p0, %p5345_p5  ;;  %p5352_p8 = por %p5351_p4, %p5350_p3 }
 0x112   : > { %p5348_p7 = pneg %p5347_p6  ;;  %p5354_p12 = por %p5353_p10, %p5352_p8 }
 0x114   : > { %p5355_p13 = pnand %p5354_p12, %p5348_p7 }
 0x116   : > { %5358 = shalt.err (!%p5355_p13)
}
 0x117   : > { %s5359_s12 = scalar_lea.vmem %s5961_s3, 2048  ;;  %s5529_s14 = smov [#allocation5]  }
 0x118   : > { %p5360_p1 = scmp.ne.s32.totalorder %s5961_s3, %s5359_s12  ;;  %s5364_s13 = sshll.u32 %s5529_s14, 4  ;;  %s5365_s13 = int_to_ptr.vmem [resolvable:$false] %s5364_s13 }
 0x119   : > { %s5366_s18 = scalar_lea.vmem %s5365_s13, 4096  ;;  %p5367_p9 = scmp.lt.s32.totalorder %s5961_s3, %s5365_s13 }
 0x11a   : > { %p5362_p5 = pnand %p5360_p1, %p5346_p0  ;;  %p5368_p3 = scmp.lt.s32.totalorder %s5366_s18, %s5359_s12 }
 0x11c   : > { %p5363_p6 = pneg %p5362_p5  ;;  %p5369_p4 = por %p5368_p3, %p5367_p9 }
 0x11e   : > { %p5370_p8 = pnand %p5369_p4, %p5363_p6 }
 0x120   : > { %5373 = shalt.err (!%p5370_p8)
}
 0x121   : > { %4954 = dma.hbm_to_vmem [thread:$0]  (!%p5957_p11), %s5953_s1, 2048, %s5961_s3, %s5963_s30, %s6969_s19, %s6969_s19, %s6977_s5  }
 0x122   : > { %s6987_s0 = sld [smem:[#allocation28_spill]] }
 0x128   : > { %p6988_p0 = scmp.ne.s32.totalorder %s6987_s0, 0 }
 0x129   : > { %s5997_s24 = sand.u32 (!%p6988_p0), 1, %s5492_s22  }
 0x12a   : > { %568 = sbr.rel (%p6988_p0) target bundleno = 2567 (0xa07), region = 80  ;;  %s3864_s6 = sshll.u32 (!%p6988_p0), %s5997_s24, 6 }
 0x12b   : > { %s571_s9 = scalar_lea.sflag (!%p6988_p0), [#allocation3], %s5997_s24  ;;  %s6003_s11 = scalar_lea.vmem (!%p6988_p0), [#allocation2], %s3864_s6 }
 0x131   : > { %5447 = dma.done.wait (%p5858_p2), %s571_s9, 1024  }
 0x132   : > { %5449 = vsyncadd (%p5858_p2), %s571_s9, 4294966272  ;;  %s6989_s19 = sld [smem:[#allocation25_spill]]  ;;  %s579_s5 = sand.u32 1, %s5670_s29  }
 0x133   : > { %s580_s30 = scalar_lea.sflag [#allocation6], %s579_s5  ;;  %p6990_p9 = scmp.ne.s32.totalorder %s6983_s7, 0 }
 0x138   : > { %s581_s1 = sand.u32 1, %s6989_s19  }
 0x139   : > { %s3865_s3 = sshll.u32 %s581_s1, 7 }
 0x13a   : > { %s6011_s12 = scalar_lea.vmem [#allocation5], %s3865_s3 }
 0x13b   : > { %5451 = dma.done.wait (%p6990_p9), %s580_s30, 2048  }
 0x13c   : > { %5453 = vsyncadd (%p6990_p9), %s580_s30, 4294965248  ;;  %p6991_p11 = scmp.eq.s32.totalorder %s5670_s29, 0 }
 0x13e   : > { %5455 = dma.done.wait (%p6991_p11), [#allocation6], 8192   ;;  %p6992_p7 = pmov %p6991_p11 }
 0x140   : > { %5457 = vsyncadd (%p6992_p7), [#allocation6], 4294959104  ;;  %p6993_p2 = pmov %p6992_p7 }
 0x142   : > { %5459 = dma.done.wait (%p6993_p2), [#allocation9], 16384   ;;  %p6994_p10 = pmov %p6993_p2 }
 0x143   : > { %p6995_p12 = pmov %p6993_p2 }
 0x144   : > { %5461 = vsyncadd (%p6994_p10), [#allocation9], 4294950912 }
 0x145   : > { %5463 = dma.done.wait (%p6995_p12), [#allocation12], 40960   ;;  %p6996_p13 = pmov %p6993_p2 }
 0x146   : > { %p6997_p1 = pmov %p6993_p2 }
 0x147   : > { %5465 = vsyncadd (%p6996_p13), [#allocation12], 4294926336 }
 0x148   : > { %5467 = dma.done.wait (%p6997_p1), [#allocation15], 32768   ;;  %p6998_p5 = pmov %p6997_p1 }
 0x149   : > { %v6034_v0 = vld [vmem:[%s6011_s12 + $0x10] sm:$0xff]  ;;  %v6037_v1 = vld [vmem:[%s6011_s12 + $0x18] sm:$0xff]  ;;  %v6040_v2 = vld [vmem:[%s6011_s12] sm:$0xff]  ;;  %s6999_s7 = sld [smem:[#allocation36_spill]]  ;;  %s7000_s18 = sld [smem:[#allocation37_spill]]  ;;  %vm1659_vm0 = vcmask 523264  }
 0x14a   : > { %5469 = vsyncadd (%p6998_p5), [#allocation15], 4294934528  ;;  %v801_v3 = vadd.f32 %v6037_v1, %v6034_v0  ;;  %v6045_v4 = vld [vmem:[%s6011_s12 + $0x8] sm:$0xff]  ;;  %v832_v5 = vmul.f32 %v6034_v0, %v6034_v0  ;;  %v833_v6 = vmul.f32 %v6037_v1, %v6037_v1  ;;  %v830_v7 = vmul.f32 %v6040_v2, %v6040_v2  ;;  %v6054_v8 = vld [vmem:[%s6011_s12 + $0x20] sm:$0xff]  ;;  %s7006_s19 = sld [smem:[#allocation35_spill]]  ;;  %s7007_s1 = sld [smem:[#allocation38_spill]] }
 0x14b   : > { %v6057_v9 = vld [vmem:[%s6011_s12 + $0x28] sm:$0xff]  ;;  %v798_v10 = vadd.f32 %v6045_v4, %v6040_v2  ;;  %v831_v11 = vmul.f32 %v6045_v4, %v6045_v4  ;;  %v834_v13 = vmul.f32 %v6054_v8, %v6054_v8  ;;  %v6068_v16 = vld [vmem:[%s6011_s12 + $0x30] sm:$0xff]  ;;  %v6071_v17 = vld [vmem:[%s6011_s12 + $0x38] sm:$0xff]  ;;  %s7011_s0 = sld [smem:[#allocation26_spill]]  ;;  %s7012_s9 = sld [smem:[#allocation27_spill]] }
 0x14c   : > { %802 = vadd.xlane.f32.xlu1 %v801_v3  ;;  %v849_v12 = vadd.f32 %v833_v6, %v832_v5  ;;  %v835_v14 = vmul.f32 %v6057_v9, %v6057_v9  ;;  %v836_v19 = vmul.f32 %v6068_v16, %v6068_v16  ;;  %v837_v20 = vmul.f32 %v6071_v17, %v6071_v17  ;;  %v6080_v22 = vld [vmem:[%s6011_s12 + $0x40] sm:$0xff]  ;;  %v6083_v23 = vld [vmem:[%s6011_s12 + $0x48] sm:$0xff]  ;;  %v1130_v25 = vld [vmem:[#allocation8 + $0x18] sm:$0xff]  ;;  %s7013_s29 = sld [smem:[#allocation44_spill]]  ;;  %p7014_p3 = scmp.ne.s32.totalorder %s6973_s25, 0 }
 0x14d   : > { %799 = vadd.xlane.f32.xlu0 %v798_v10  ;;  %v846_v15 = vadd.f32 %v831_v11, %v830_v7  ;;  %v804_v21 = vadd.f32 %v6057_v9, %v6054_v8  ;;  %v1128_v24 = vld [vmem:[#allocation8 + $0x8] sm:$0xff]  ;;  %v1127_v26 = vld [vmem:[#allocation8] sm:$0xff]  ;;  %v1129_v27 = vld [vmem:[#allocation8 + $0x10] sm:$0xff]  ;;  %v838_v31 = vmul.f32 %v6080_v22, %v6080_v22  ;;  %v839_v32 = vmul.f32 %v6083_v23, %v6083_v23  ;;  %s5531_s13 = smov [#allocation16]  }
 0x14e   : > { %v852_v18 = vadd.f32 %v835_v14, %v834_v13  ;;  %v1132_v28 = vld [vmem:[#allocation8 + $0x28] sm:$0xff]  ;;  %v1134_v29 = vld [vmem:[#allocation8 + $0x38] sm:$0xff]  ;;  %v855_v30 = vadd.f32 %v837_v20, %v836_v19  ;;  %v6090_v33 = vld [vmem:[%s6011_s12 + $0x50] sm:$0xff]  ;;  %v807_v34 = vadd.f32 %v6071_v17, %v6068_v16  ;;  %v4091_v36 = vpack.c.bf16 %v1130_v25, %v1128_v24 }
 0x14f   : > { %v6095_v35 = vld [vmem:[%s6011_s12 + $0x58] sm:$0xff]  ;;  %v4093_v37 = vpack.c.bf16 %v1129_v27, %v1127_v26  ;;  %v1131_v38 = vld [vmem:[#allocation8 + $0x20] sm:$0xff]  ;;  %v1133_v39 = vld [vmem:[#allocation8 + $0x30] sm:$0xff]  ;;  %v4095_v40 = vpack.c.bf16 %v1134_v29, %v1132_v28  ;;  %v840_v43 = vmul.f32 %v6090_v33, %v6090_v33  ;;  %v858_v44 = vadd.f32 %v839_v32, %v838_v31 }
 0x150   : > { %850 = vadd.xlane.f32.xlu1 %v849_v12  ;;  %v1136_v41 = vld [vmem:[#allocation8 + $0x48] sm:$0xff]  ;;  %v1138_v42 = vld [vmem:[#allocation8 + $0x58] sm:$0xff]  ;;  %4092 = vmatprep.subr.bf16.mxu1 %v4091_v36  ;;  %v841_v45 = vmul.f32 %v6095_v35, %v6095_v35  ;;  %v6102_v46 = vld [vmem:[%s6011_s12 + $0x60] sm:$0xff]  ;;  %v4097_v47 = vpack.c.bf16 %v1133_v39, %v1131_v38  ;;  %v810_v48 = vadd.f32 %v6083_v23, %v6080_v22 }
 0x151   : > { %847 = vadd.xlane.f32.xlu0 %v846_v15  ;;  %4094 = vmatpush1.bf16.msra.mxu1 %v4093_v37  ;;  %v6107_v49 = vld [vmem:[%s6011_s12 + $0x68] sm:$0xff]  ;;  %v4099_v50 = vpack.c.bf16 %v1138_v42, %v1136_v41  ;;  %v1135_v51 = vld [vmem:[#allocation8 + $0x40] sm:$0xff]  ;;  %v1137_v52 = vld [vmem:[#allocation8 + $0x50] sm:$0xff]  ;;  %v842_v55 = vmul.f32 %v6102_v46, %v6102_v46  ;;  %v813_v5 = vadd.f32 %v6095_v35, %v6090_v33  ;;  %s3884_s5 = sshll.u32 %s7012_s9, 4 }
 0x152   : > { %4096 = vmatprep.subr.bf16.mxu1 %v4095_v40  ;;  %v1140_v53 = vld [vmem:[#allocation8 + $0x68] sm:$0xff]  ;;  %v1142_v54 = vld [vmem:[#allocation8 + $0x78] sm:$0xff]  ;;  %v6112_v56 = vld [vmem:[%s6011_s12 + $0x70] sm:$0xff]  ;;  %v861_v59 = vadd.f32 %v841_v45, %v840_v43  ;;  %v843_v60 = vmul.f32 %v6107_v49, %v6107_v49  ;;  %v4101_v61 = vpack.c.bf16 %v1137_v52, %v1135_v51  ;;  %v816_v31 = vadd.f32 %v6107_v49, %v6102_v46 }
 0x153   : > { %v6115_v57 = vld [vmem:[%s6011_s12 + $0x78] sm:$0xff]  ;;  %v975_v58 = vld [vmem:[#allocation7 + $0x8] sm:$0xff]  ;;  %v974_v63 = vld [vmem:[#allocation7] sm:$0xff]  ;;  %v4103_v6 = vpack.c.bf16 %v1142_v54, %v1140_v53  ;;  %v844_v19 = vmul.f32 %v6112_v56, %v6112_v56  ;;  %s7008_s12 = sld [smem:[#allocation39_spill]] }
 0x154   : > { %853 = vadd.xlane.f32.xlu1 %v852_v18  ;;  %v977_v62 = vld [vmem:[#allocation7 + $0x18] sm:$0xff]  ;;  %v976_v3 = vld [vmem:[#allocation7 + $0x10] sm:$0xff]  ;;  %v1139_v7 = vld [vmem:[#allocation8 + $0x60] sm:$0xff]  ;;  %v864_v25 = vadd.f32 %v843_v60, %v842_v55  ;;  %v845_v26 = vmul.f32 %v6115_v57, %v6115_v57  ;;  %v819_v53 = vadd.f32 %v6115_v57, %v6112_v56 }
 0x155   : > { %805 = vadd.xlane.f32.xlu0 %v804_v21  ;;  %4098 = vmatpush1.bf16.msra.mxu1 %v4097_v47  ;;  %v1141_v10 = vld [vmem:[#allocation8 + $0x70] sm:$0xff]  ;;  %v1144_v11 = vld [vmem:[#allocation8 + $0x88] sm:$0xff]  ;;  %v4027_v12 = vpack.c.bf16 %v977_v62, %v975_v58  ;;  %v1146_v13 = vld [vmem:[#allocation8 + $0x98] sm:$0xff]  ;;  %v4029_v14 = vpack.c.bf16 %v976_v3, %v974_v63 }
 0x156   : > { %4100 = vmatprep.subr.bf16.mxu1 %v4099_v50  ;;  %v979_v15 = vld [vmem:[#allocation7 + $0x28] sm:$0xff]  ;;  %v981_v18 = vld [vmem:[#allocation7 + $0x38] sm:$0xff]  ;;  %v978_v21 = vld [vmem:[#allocation7 + $0x20] sm:$0xff]  ;;  %v4105_v29 = vpack.c.bf16 %v1141_v10, %v1139_v7  ;;  %v4107_v32 = vpack.c.bf16 %v1146_v13, %v1144_v11  ;;  %v867_v45 = vadd.f32 %v845_v26, %v844_v19 }
 0x157   : > { %4028 = vmatprep.subr.bf16.mxu0 %v4027_v12  ;;  %v4031_v20 = vpack.c.bf16 %v981_v18, %v979_v15  ;;  %v980_v24 = vld [vmem:[#allocation7 + $0x30] sm:$0xff]  ;;  %v6126_v27 = vld [vmem:[%s6003_s11] sm:$0xff]  ;;  %v6129_v28 = vld [vmem:[%s6003_s11 + $0x8] sm:$0xff] }
 0x158   : > { %856 = vadd.xlane.f32.xlu1 %v855_v30  ;;  %v1143_v30 = vld [vmem:[#allocation8 + $0x80] sm:$0xff]  ;;  %v983_v36 = vld [vmem:[#allocation7 + $0x48] sm:$0xff]  ;;  %v985_v37 = vld [vmem:[#allocation7 + $0x58] sm:$0xff]  ;;  %4030 = vmatpush1.bf16.msra.mxu0 %v4029_v14  ;;  %v4033_v40 = vpack.c.bf16 %v980_v24, %v978_v21  ;;  %v704_v41 = vmul.f32 %v6126_v27, %v6126_v27  ;;  %v705_v47 = vmul.f32 %v6129_v28, %v6129_v28 }
 0x159   : > { %808 = vadd.xlane.f32.xlu0 %v807_v34  ;;  %4102 = vmatpush1.bf16.msra.mxu1 %v4101_v61  ;;  %v1145_v34 = vld [vmem:[#allocation8 + $0x90] sm:$0xff]  ;;  %v1148_v38 = vld [vmem:[#allocation8 + $0xa8] sm:$0xff]  ;;  %v1150_v39 = vld [vmem:[#allocation8 + $0xb8] sm:$0xff]  ;;  %v4035_v42 = vpack.c.bf16 %v985_v37, %v983_v36  ;;  %v687_v15 = vadd.f32 %v6129_v28, %v6126_v27 }
 0x15a   : > { %4104 = vmatprep.subr.bf16.mxu1 %v4103_v6  ;;  %4032 = vmatprep.subr.bf16.mxu0 %v4031_v20  ;;  %v982_v43 = vld [vmem:[#allocation7 + $0x40] sm:$0xff]  ;;  %v4109_v50 = vpack.c.bf16 %v1145_v34, %v1143_v30  ;;  %v987_v51 = vld [vmem:[#allocation7 + $0x68] sm:$0xff]  ;;  %v989_v52 = vld [vmem:[#allocation7 + $0x78] sm:$0xff]  ;;  %v4111_v55 = vpack.c.bf16 %v1150_v39, %v1148_v38  ;;  %v712_v7 = vadd.f32 %v705_v47, %v704_v41 }
 0x15b   : > { %v6143_v54 = vld [vmem:[%s6003_s11 + $0x18] sm:$0xff]  ;;  %v1147_v58 = vld [vmem:[#allocation8 + $0xa0] sm:$0xff]  ;;  %v1152_v60 = vld [vmem:[#allocation8 + $0xc8] sm:$0xff]  ;;  %v4039_v3 = vpack.c.bf16 %v989_v52, %v987_v51 }
 0x15c   : > { %859 = vadd.xlane.f32.xlu1 %v858_v44  ;;  %v984_v44 = vld [vmem:[#allocation7 + $0x50] sm:$0xff]  ;;  %v1154_v61 = vld [vmem:[#allocation8 + $0xd8] sm:$0xff]  ;;  %4034 = vmatpush1.bf16.msra.mxu0 %v4033_v40  ;;  %v707_v10 = vmul.f32 %v6143_v54, %v6143_v54  ;;  %v6150_v11 = vld [vmem:[%s6003_s11 + $0x20] sm:$0xff] }
 0x15d   : > { %811 = vadd.xlane.f32.xlu0 %v810_v48  ;;  %v6138_v48 = vld [vmem:[%s6003_s11 + $0x10] sm:$0xff]  ;;  %4106 = vmatpush1.bf16.msra.mxu1 %v4105_v29  ;;  %v4037_v62 = vpack.c.bf16 %v984_v44, %v982_v43  ;;  %v991_v13 = vld [vmem:[#allocation7 + $0x88] sm:$0xff]  ;;  %v993_v14 = vld [vmem:[#allocation7 + $0x98] sm:$0xff]  ;;  %v4115_v19 = vpack.c.bf16 %v1154_v61, %v1152_v60  ;;  %v708_v29 = vmul.f32 %v6150_v11, %v6150_v11 }
 0x15e   : > { %4108 = vmatprep.subr.bf16.mxu1 %v4107_v32  ;;  %v706_v63 = vmul.f32 %v6138_v48, %v6138_v48  ;;  %4036 = vmatprep.subr.bf16.mxu0 %v4035_v42  ;;  %v988_v6 = vld [vmem:[#allocation7 + $0x70] sm:$0xff]  ;;  %v6155_v18 = vld [vmem:[%s6003_s11 + $0x28] sm:$0xff]  ;;  %v1151_v20 = vld [vmem:[#allocation8 + $0xc0] sm:$0xff]  ;;  %v4043_v30 = vpack.c.bf16 %v993_v14, %v991_v13  ;;  %v690_v41 = vadd.f32 %v6143_v54, %v6138_v48 }
 0x15f   : > { %v1153_v21 = vld [vmem:[#allocation8 + $0xd0] sm:$0xff]  ;;  %v1156_v24 = vld [vmem:[#allocation8 + $0xe8] sm:$0xff]  ;;  %v709_v36 = vmul.f32 %v6155_v18, %v6155_v18  ;;  %v997_v40 = vld [vmem:[#allocation7 + $0xb8] sm:$0xff] }
 0x160   : > { %862 = vadd.xlane.f32.xlu1 %v861_v59  ;;  %v1149_v59 = vld [vmem:[#allocation8 + $0xb0] sm:$0xff]  ;;  %4038 = vmatpush1.bf16.msra.mxu0 %v4037_v62  ;;  %v715_v34 = vadd.f32 %v707_v10, %v706_v63  ;;  %v4117_v38 = vpack.c.bf16 %v1153_v21, %v1151_v20  ;;  %v995_v39 = vld [vmem:[#allocation7 + $0xa8] sm:$0xff]  ;;  %v6167_v42 = vld [vmem:[%s6003_s11 + $0x38] sm:$0xff] }
 0x161   : > { %814 = vadd.xlane.f32.xlu0 %v813_v5  ;;  %v986_v5 = vld [vmem:[#allocation7 + $0x60] sm:$0xff]  ;;  %4110 = vmatpush1.bf16.msra.mxu1 %v4109_v50  ;;  %v4113_v12 = vpack.c.bf16 %v1149_v59, %v1147_v58  ;;  %v992_v32 = vld [vmem:[#allocation7 + $0x90] sm:$0xff]  ;;  %v1160_v47 = vld [vmem:[#allocation8 + $0x108] sm:$0xff]  ;;  %v718_v59 = vadd.f32 %v709_v36, %v708_v29  ;;  %v711_v60 = vmul.f32 %v6167_v42, %v6167_v42 }
 0x162   : > { %4112 = vmatprep.subr.bf16.mxu1 %v4111_v55  ;;  %v4041_v26 = vpack.c.bf16 %v988_v6, %v986_v5  ;;  %4040 = vmatprep.subr.bf16.mxu0 %v4039_v3  ;;  %v6162_v37 = vld [vmem:[%s6003_s11 + $0x30] sm:$0xff]  ;;  %v1155_v44 = vld [vmem:[#allocation8 + $0xe0] sm:$0xff]  ;;  %v1162_v50 = vld [vmem:[#allocation8 + $0x118] sm:$0xff]  ;;  %v693_v3 = vadd.f32 %v6155_v18, %v6150_v11 }
 0x163   : > { %v710_v52 = vmul.f32 %v6162_v37, %v6162_v37  ;;  %v994_v55 = vld [vmem:[#allocation7 + $0xa0] sm:$0xff]  ;;  %v996_v58 = vld [vmem:[#allocation7 + $0xb0] sm:$0xff]  ;;  %v999_v62 = vld [vmem:[#allocation7 + $0xc8] sm:$0xff]  ;;  %v4123_v5 = vpack.c.bf16 %v1162_v50, %v1160_v47 }
 0x164   : > { %865 = vadd.xlane.f32.xlu1 %v864_v25  ;;  %v1158_v25 = vld [vmem:[#allocation8 + $0xf8] sm:$0xff]  ;;  %4042 = vmatpush1.bf16.msra.mxu0 %v4041_v26  ;;  %v1159_v6 = vld [vmem:[#allocation8 + $0x100] sm:$0xff]  ;;  %v1164_v10 = vld [vmem:[#allocation8 + $0x128] sm:$0xff]  ;;  %v4049_v13 = vpack.c.bf16 %v996_v58, %v994_v55  ;;  %v696_v26 = vadd.f32 %v6167_v42, %v6162_v37 }
 0x165   : > { %817 = vadd.xlane.f32.xlu0 %v816_v31  ;;  %v990_v31 = vld [vmem:[#allocation7 + $0x80] sm:$0xff]  ;;  %4114 = vmatpush1.bf16.msra.mxu1 %v4113_v12  ;;  %v4119_v43 = vpack.c.bf16 %v1158_v25, %v1156_v24  ;;  %v1001_v63 = vld [vmem:[#allocation7 + $0xd8] sm:$0xff]  ;;  %v721_v20 = vadd.f32 %v711_v60, %v710_v52  ;;  %v1003_v24 = vld [vmem:[#allocation7 + $0xe8] sm:$0xff] }
 0x166   : > { %4116 = vmatprep.subr.bf16.mxu1 %v4115_v19  ;;  %v4045_v51 = vpack.c.bf16 %v992_v32, %v990_v31  ;;  %4044 = vmatprep.subr.bf16.mxu0 %v4043_v30  ;;  %v1166_v12 = vld [vmem:[#allocation8 + $0x138] sm:$0xff]  ;;  %v4051_v14 = vpack.c.bf16 %v1001_v63, %v999_v62  ;;  %v1000_v19 = vld [vmem:[#allocation7 + $0xd0] sm:$0xff]  ;;  %v1163_v30 = vld [vmem:[#allocation8 + $0x120] sm:$0xff] }
 0x167   : > { %v1005_v25 = vld [vmem:[#allocation7 + $0xf8] sm:$0xff]  ;;  %v4127_v29 = vpack.c.bf16 %v1166_v12, %v1164_v10  ;;  %v1165_v31 = vld [vmem:[#allocation8 + $0x130] sm:$0xff]  ;;  %v1168_v32 = vld [vmem:[#allocation8 + $0x148] sm:$0xff] }
 0x168   : > { %868 = vadd.xlane.f32.xlu1 %v867_v45  ;;  %v1157_v45 = vld [vmem:[#allocation8 + $0xf0] sm:$0xff]  ;;  %4046 = vmatpush1.bf16.msra.mxu0 %v4045_v51  ;;  %v1167_v47 = vld [vmem:[#allocation8 + $0x140] sm:$0xff]  ;;  %v1172_v51 = vld [vmem:[#allocation8 + $0x168] sm:$0xff] }
 0x169   : > { %820 = vadd.xlane.f32.xlu0 %v819_v53  ;;  %v4047_v53 = vpack.c.bf16 %v997_v40, %v995_v39  ;;  %4118 = vmatpush1.bf16.msra.mxu1 %v4117_v38  ;;  %v4121_v61 = vpack.c.bf16 %v1157_v45, %v1155_v44  ;;  %v4055_v38 = vpack.c.bf16 %v1005_v25, %v1003_v24  ;;  %v1002_v39 = vld [vmem:[#allocation7 + $0xe0] sm:$0xff]  ;;  %v1004_v40 = vld [vmem:[#allocation7 + $0xf0] sm:$0xff]  ;;  %v1009_v44 = vld [vmem:[#allocation7 + $0x118] sm:$0xff] }
 0x16a   : > { %4120 = vmatprep.subr.bf16.mxu1 %v4119_v43  ;;  %v1007_v43 = vld [vmem:[#allocation7 + $0x108] sm:$0xff]  ;;  %v1169_v50 = vld [vmem:[#allocation8 + $0x150] sm:$0xff]  ;;  %v1174_v52 = vld [vmem:[#allocation8 + $0x178] sm:$0xff] }
 0x16b   : > { %4048 = vmatprep.subr.bf16.mxu0 %v4047_v53  ;;  %v4057_v53 = vpack.c.bf16 %v1004_v40, %v1002_v39  ;;  %v4059_v55 = vpack.c.bf16 %v1009_v44, %v1007_v43  ;;  %v1006_v58 = vld [vmem:[#allocation7 + $0x100] sm:$0xff]  ;;  %v4133_v60 = vpack.c.bf16 %v1169_v50, %v1167_v47  ;;  %v1013_v62 = vld [vmem:[#allocation7 + $0x138] sm:$0xff]  ;;  %v4135_v63 = vpack.c.bf16 %v1174_v52, %v1172_v51  ;;  %v1177_v25 = vld [vmem:[#allocation8 + $0x190] sm:$0xff] }
 0x16c   : > { %713 = vadd.xlane.f32.xlu1 %v712_v7  ;;  %v1161_v7 = vld [vmem:[#allocation8 + $0x110] sm:$0xff]  ;;  %4050 = vmatpush1.bf16.msra.mxu0 %v4049_v13  ;;  %v1010_v13 = vld [vmem:[#allocation7 + $0x120] sm:$0xff]  ;;  %v1021_v39 = vld [vmem:[#allocation7 + $0x178] sm:$0xff] }
 0x16d   : > { %688 = vadd.xlane.f32.xlu0 %v687_v15  ;;  %v998_v15 = vld [vmem:[#allocation7 + $0xc0] sm:$0xff]  ;;  %4122 = vmatpush1.bf16.msra.mxu1 %v4121_v61  ;;  %v4125_v21 = vpack.c.bf16 %v1161_v7, %v1159_v6  ;;  %v1011_v61 = vld [vmem:[#allocation7 + $0x128] sm:$0xff]  ;;  %v1178_v7 = vld [vmem:[#allocation8 + $0x198] sm:$0xff] }
 0x16e   : > { %4124 = vmatprep.subr.bf16.mxu1 %v4123_v5  ;;  %v4053_v36 = vpack.c.bf16 %v1000_v19, %v998_v15  ;;  %4052 = vmatprep.subr.bf16.mxu0 %v4051_v14  ;;  %v1173_v5 = vld [vmem:[#allocation8 + $0x170] sm:$0xff]  ;;  %v1176_v6 = vld [vmem:[#allocation8 + $0x188] sm:$0xff]  ;;  %v4063_v12 = vpack.c.bf16 %v1013_v62, %v1011_v61  ;;  %v1175_v24 = vld [vmem:[#allocation8 + $0x180] sm:$0xff] }
 0x16f   : > { %v1012_v14 = vld [vmem:[#allocation7 + $0x130] sm:$0xff]  ;;  %v1015_v19 = vld [vmem:[#allocation7 + $0x148] sm:$0xff]  ;;  %v1018_v51 = vld [vmem:[#allocation7 + $0x160] sm:$0xff] }
 0x170   : > { %716 = vadd.xlane.f32.xlu1 %v715_v34  ;;  %v1170_v34 = vld [vmem:[#allocation8 + $0x158] sm:$0xff]  ;;  %4054 = vmatpush1.bf16.msra.mxu0 %v4053_v36  ;;  %v4141_v36 = vpack.c.bf16 %v1177_v25, %v1175_v24  ;;  %v1181_v43 = vld [vmem:[#allocation8 + $0x1b0] sm:$0xff]  ;;  %v1184_v44 = vld [vmem:[#allocation8 + $0x1c8] sm:$0xff] }
 0x171   : > { %691 = vadd.xlane.f32.xlu0 %v690_v41  ;;  %4126 = vmatpush1.bf16.msra.mxu1 %v4125_v21  ;;  %v4129_v41 = vpack.c.bf16 %v1165_v31, %v1163_v30  ;;  %v4131_v45 = vpack.c.bf16 %v1170_v34, %v1168_v32  ;;  %v4139_v21 = vpack.c.bf16 %v1178_v7, %v1176_v6  ;;  %v1014_v32 = vld [vmem:[#allocation7 + $0x140] sm:$0xff]  ;;  %v1016_v34 = vld [vmem:[#allocation7 + $0x150] sm:$0xff]  ;;  %v1188_v62 = vld [vmem:[#allocation8 + $0x1e8] sm:$0xff] }
 0x172   : > { %4128 = vmatprep.subr.bf16.mxu1 %v4127_v29  ;;  %4056 = vmatprep.subr.bf16.mxu0 %v4055_v38  ;;  %v1182_v29 = vld [vmem:[#allocation8 + $0x1b8] sm:$0xff]  ;;  %v4065_v30 = vpack.c.bf16 %v1012_v14, %v1010_v13  ;;  %v1019_v38 = vld [vmem:[#allocation7 + $0x168] sm:$0xff]  ;;  %v4069_v47 = vpack.c.bf16 %v1016_v34, %v1014_v32  ;;  %v1020_v52 = vld [vmem:[#allocation7 + $0x170] sm:$0xff] }
 0x173   : > { %v4071_v50 = vpack.c.bf16 %v1021_v39, %v1019_v38  ;;  %v1185_v61 = vld [vmem:[#allocation8 + $0x1d0] sm:$0xff]  ;;  %v1022_v6 = vld [vmem:[#allocation7 + $0x180] sm:$0xff]  ;;  %v1029_v13 = vld [vmem:[#allocation7 + $0x1b8] sm:$0xff] }
 0x174   : > { %719 = vadd.xlane.f32.xlu1 %v718_v59  ;;  %v1008_v59 = vld [vmem:[#allocation7 + $0x110] sm:$0xff]  ;;  %4058 = vmatpush1.bf16.msra.mxu0 %v4057_v53  ;;  %v1033_v32 = vld [vmem:[#allocation7 + $0x1d8] sm:$0xff]  ;;  %v1030_v39 = vld [vmem:[#allocation7 + $0x1c0] sm:$0xff] }
 0x175   : > { %694 = vadd.xlane.f32.xlu0 %v693_v3  ;;  %4130 = vmatpush1.bf16.msra.mxu1 %v4129_v41  ;;  %v1171_v3 = vld [vmem:[#allocation8 + $0x160] sm:$0xff]  ;;  %v4061_v10 = vpack.c.bf16 %v1008_v59, %v1006_v58  ;;  %v1025_v58 = vld [vmem:[#allocation7 + $0x198] sm:$0xff]  ;;  %v1024_v7 = vld [vmem:[#allocation7 + $0x190] sm:$0xff] }
 0x176   : > { %4132 = vmatprep.subr.bf16.mxu1 %v4131_v45  ;;  %4060 = vmatprep.subr.bf16.mxu0 %v4059_v55  ;;  %v4137_v15 = vpack.c.bf16 %v1173_v5, %v1171_v3  ;;  %v1179_v41 = vld [vmem:[#allocation8 + $0x1a0] sm:$0xff]  ;;  %v1186_v45 = vld [vmem:[#allocation8 + $0x1d8] sm:$0xff]  ;;  %v1023_v55 = vld [vmem:[#allocation7 + $0x188] sm:$0xff]  ;;  %v4073_v3 = vpack.c.bf16 %v1020_v52, %v1018_v51  ;;  %v4077_v24 = vpack.c.bf16 %v1024_v7, %v1022_v6  ;;  %v761_v6 = vlaneseq }
 0x177   : > { %v4145_v53 = vpack.c.bf16 %v1181_v43, %v1179_v41  ;;  %v4147_v59 = vpack.c.bf16 %v1186_v45, %v1184_v44  ;;  %v4075_v5 = vpack.c.bf16 %v1025_v58, %v1023_v55  ;;  %v1035_v41 = vld [vmem:[#allocation7 + $0x1e8] sm:$0xff]  ;;  %v1037_v43 = vld [vmem:[#allocation7 + $0x1f8] sm:$0xff] }
 0x178   : > { %722 = vadd.xlane.f32.xlu1 %v721_v20  ;;  %v1017_v20 = vld [vmem:[#allocation7 + $0x158] sm:$0xff]  ;;  %4062 = vmatpush1.bf16.msra.mxu0 %v4061_v10  ;;  %v4087_v45 = vpack.c.bf16 %v1037_v43, %v1035_v41  ;;  %v6207_v43 = vld [vmem:[#allocation10] sm:$0xff] }
 0x179   : > { %697 = vadd.xlane.f32.xlu0 %v696_v26  ;;  %4134 = vmatpush1.bf16.msra.mxu1 %v4133_v60  ;;  %v1180_v26 = vld [vmem:[#allocation8 + $0x1a8] sm:$0xff]  ;;  %v4067_v31 = vpack.c.bf16 %v1017_v20, %v1015_v19  ;;  %v1183_v60 = vld [vmem:[#allocation8 + $0x1c0] sm:$0xff]  ;;  %v1189_v19 = vld [vmem:[#allocation8 + $0x1f0] sm:$0xff] }
 0x17a   : > { %4136 = vmatprep.subr.bf16.mxu1 %v4135_v63  ;;  %4064 = vmatprep.subr.bf16.mxu0 %v4063_v12  ;;  %v4143_v40 = vpack.c.bf16 %v1182_v29, %v1180_v26  ;;  %v1190_v63 = vld [vmem:[#allocation8 + $0x1f8] sm:$0xff]  ;;  %v4149_v10 = vpack.c.bf16 %v1185_v61, %v1183_v60  ;;  %v1027_v12 = vld [vmem:[#allocation7 + $0x1a8] sm:$0xff]  ;;  %v1026_v26 = vld [vmem:[#allocation7 + $0x1a0] sm:$0xff] }
 0x17b   : > { %v4151_v14 = vpack.c.bf16 %v1190_v63, %v1188_v62  ;;  %v1305_v20 = vld [vmem:[#allocation10 + $0x8] sm:$0xff]  ;;  %v4079_v25 = vpack.c.bf16 %v1029_v13, %v1027_v12  ;;  %v1028_v29 = vld [vmem:[#allocation7 + $0x1b0] sm:$0xff] }
 0x17c   : > { %4066 = vmatpush1.bf16.msra.mxu0 %v4065_v30 }
 0x17d   : > { %4138 = vmatpush1.bf16.msra.mxu1 %v4137_v15  ;;  %4068 = vmatprep.subr.bf16.mxu0 %v4067_v31  ;;  %v1187_v15 = vld [vmem:[#allocation8 + $0x1e0] sm:$0xff]  ;;  %v1031_v31 = vld [vmem:[#allocation7 + $0x1c8] sm:$0xff] }
 0x17e   : > { %4140 = vmatprep.subr.bf16.mxu1 %v4139_v21  ;;  %v1307_v21 = vld [vmem:[#allocation10 + $0x18] sm:$0xff]  ;;  %v4153_v30 = vpack.c.bf16 %v1189_v19, %v1187_v15  ;;  %v4083_v38 = vpack.c.bf16 %v1033_v32, %v1031_v31 }
 0x17f   : > { %v4155_v34 = vpack.c.bf16 %v1307_v21, %v1305_v20  ;;  %v6187_v20 = vshrl.u32 %v761_v6, 7  ;;  %v6233_v6 = vld [vmem:[#allocation10 + $0x38] sm:$0xff] }
 0x180   : > { %4070 = vmatpush1.bf16.msra.mxu0 %v4069_v47  ;;  %v1034_v47 = vld [vmem:[#allocation7 + $0x1e0] sm:$0xff] }
 0x181   : > { %4142 = vmatpush1.bf16.msra.mxu1 %v4141_v36  ;;  %4072 = vmatprep.subr.bf16.mxu0 %v4071_v50  ;;  %v4081_v36 = vpack.c.bf16 %v1028_v29, %v1026_v26  ;;  %v1036_v50 = vld [vmem:[#allocation7 + $0x1f0] sm:$0xff]  ;;  %v6194_v31 = vsub.s32 0, %v6187_v20  ;;  %v6197_v32 = vsub.s32 1, %v6187_v20 }
 0x182   : > { %4144 = vmatprep.subr.bf16.mxu1 %v4143_v40  ;;  %v1032_v40 = vld [vmem:[#allocation7 + $0x1d0] sm:$0xff]  ;;  %v4089_v51 = vpack.c.bf16 %v1036_v50, %v1034_v47 }
 0x183   : > { %v4085_v44 = vpack.c.bf16 %v1032_v40, %v1030_v39  ;;  %v685_v39 = vld [vmem:[%s6999_s7] sm:$0x3]  ;;  %s7009_s7 = sld [smem:[#allocation41_spill]] }
 0x184   : > { %4074 = vmatpush1.bf16.msra.mxu0 %v4073_v3  ;;  %v686_v40 = vld [vmem:[%s7000_s18] sm:$0x3]  ;;  %s7010_s18 = sld [smem:[#allocation43_spill]] }
 0x185   : > { %4146 = vmatpush1.bf16.msra.mxu1 %v4145_v53  ;;  %4076 = vmatprep.subr.bf16.mxu0 %v4075_v5 }
 0x186   : > { %4148 = vmatprep.subr.bf16.mxu1 %v4147_v59 }
 0x188   : > { %4078 = vmatpush1.bf16.msra.mxu0 %v4077_v24 }
 0x189   : > { %4150 = vmatpush1.bf16.msra.mxu1 %v4149_v10  ;;  %4080 = vmatprep.subr.bf16.mxu0 %v4079_v25 }
 0x18a   : > { %4152 = vmatprep.subr.bf16.mxu1 %v4151_v14 }
 0x18c   : > { %4082 = vmatpush1.bf16.msra.mxu0 %v4081_v36 }
 0x18d   : > { %4154 = vmatpush1.bf16.msra.mxu1 %v4153_v30  ;;  %4084 = vmatprep.subr.bf16.mxu0 %v4083_v38 }
 0x18e   : > { %4156 = vmatprep.subr.bf16.mxu1 %v4155_v34 }
 0x190   : > { %4086 = vmatpush1.bf16.msra.mxu0 %v4085_v44  ;;  %v6209_v44 = vld [vmem:[#allocation10 + $0x10] sm:$0xff] }
 0x191   : > { %4088 = vmatprep.subr.bf16.mxu0 %v4087_v45 }
 0x194   : > { %4090 = vmatpush1.bf16.msra.mxu0 %v4089_v51  ;;  %v6214_v51 = vrot.slane %v685_v39, %v6194_v31 }
 0x1d9   : > { %v803_v52 = vpop.xlane.xlu1 %802 }
 0x1da   : > { %v6177_v53 = vmul.f32 0.00390625, %v803_v52  ;;  %v800_v55 = vpop.xlane.xlu0 %799  ;;  %v6217_v52 = vrot.slane %v685_v39, %v6197_v32 }
 0x1db   : > { %v6179_v58 = vmul.f32 0.00390625, %v800_v55  ;;  %v6220_v55 = vrot.slane %v686_v40, %v6194_v31 }
 0x1dc   : > { %v879_v59 = vmul.f32 %v6177_v53, %v6177_v53 }
 0x1dd   : > { %v851_v60 = vpop.xlane.xlu1 %850  ;;  %v878_v63 = vmul.f32 %v6179_v58, %v6179_v58 }
 0x1de   : > { %v871_v61 = vmul.f32 0.00390625, %v851_v60  ;;  %v848_v62 = vpop.xlane.xlu0 %847  ;;  %v6225_v60 = vld [vmem:[#allocation10 + $0x28] sm:$0xff] }
 0x1df   : > { %v870_v3 = vmul.f32 0.00390625, %v848_v62 }
 0x1e0   : > { %v887_v5 = vsub.f32 %v871_v61, %v879_v59  ;;  %v6223_v59 = vrot.slane %v686_v40, %v6197_v32  ;;  %v913_v61 = vsub.f32 %v6037_v1, %v6177_v53  ;;  %v910_v1 = vsub.f32 %v6040_v2, %v6179_v58 }
 0x1e1   : > { %v886_v7 = vsub.f32 %v870_v3, %v878_v63  ;;  %v854_v10 = vpop.xlane.xlu1 %853 }
 0x1e2   : > { %v895_v12 = vadd.f32 1e-05, %v887_v5  ;;  %v806_v13 = vpop.xlane.xlu0 %805  ;;  %v872_v19 = vmul.f32 0.00390625, %v854_v10  ;;  %v4157_v5 = vpack.c.bf16 %v6209_v44, %v6207_v43  ;;  %v6237_v10 = vld [vmem:[#allocation10 + $0x30] sm:$0xff] }
 0x1e3   : > { %v894_v14 = vadd.f32 1e-05, %v886_v7  ;;  %v6185_v15 = vmul.f32 0.00390625, %v806_v13  ;;  %v6235_v7 = vld [vmem:[#allocation10 + $0x20] sm:$0xff]  ;;  %v912_v13 = vsub.f32 %v6034_v0, %v6177_v53  ;;  %v6253_v0 = vld [vmem:[#allocation10 + $0x50] sm:$0xff] }
 0x1e4   : > { %5074 = vrsqrt.f32 %v895_v12  ;;  %v6323_v43 = vld [vmem:[#allocation10 + $0x90] sm:$0xff] }
 0x1e5   : > { %5076 = vrsqrt.f32 %v894_v14  ;;  %v880_v21 = vmul.f32 %v6185_v15, %v6185_v15  ;;  %v857_v24 = vpop.xlane.xlu1 %856  ;;  %v911_v14 = vsub.f32 %v6045_v4, %v6179_v58  ;;  %v4159_v4 = vpack.c.bf16 %v6233_v6, %v6225_v60  ;;  %v6268_v6 = vld [vmem:[#allocation10 + $0x68] sm:$0xff] }
 0x1e6   : > { %v809_v25 = vpop.xlane.xlu0 %808  ;;  %v873_v30 = vmul.f32 0.00390625, %v857_v24  ;;  %v6245_v24 = vld [vmem:[#allocation10 + $0x48] sm:$0xff] }
 0x1e7   : > { %v888_v26 = vsub.f32 %v872_v19, %v880_v21  ;;  %v6191_v29 = vmul.f32 0.00390625, %v809_v25  ;;  %v6247_v25 = vld [vmem:[#allocation10 + $0x58] sm:$0xff]  ;;  %v6302_v58 = vld [vmem:[#allocation10 + $0x88] sm:$0xff] }
 0x1e9   : > { %v896_v34 = vadd.f32 1e-05, %v888_v26  ;;  %v881_v36 = vmul.f32 %v6191_v29, %v6191_v29  ;;  %v860_v38 = vpop.xlane.xlu1 %859 }
 0x1ea   : > { %v812_v41 = vpop.xlane.xlu0 %811  ;;  %v874_v50 = vmul.f32 0.00390625, %v860_v38  ;;  %v6251_v38 = vld [vmem:[#allocation10 + $0x40] sm:$0xff] }
 0x1eb   : > { %5078 = vrsqrt.f32 %v896_v34  ;;  %v889_v45 = vsub.f32 %v873_v30, %v881_v36  ;;  %v6211_v47 = vmul.f32 0.00390625, %v812_v41 }
 0x1ed   : > { %v897_v62 = vadd.f32 1e-05, %v889_v45  ;;  %v882_v63 = vmul.f32 %v6211_v47, %v6211_v47  ;;  %v863_v3 = vpop.xlane.xlu1 %862 }
 0x1ee   : > { %v5075_v12 = vpop.eup %5074  ;;  %v815_v19 = vpop.xlane.xlu0 %814  ;;  %v875_v21 = vmul.f32 0.00390625, %v863_v3 }
 0x1ef   : > { %v5077_v26 = vpop.eup %5076  ;;  %5080 = vrsqrt.f32 %v897_v62  ;;  %v890_v30 = vsub.f32 %v874_v50, %v882_v63  ;;  %v6249_v34 = vmul.f32 0.00390625, %v815_v19  ;;  %v929_v36 = vmul.f32 %v5075_v12, %v913_v61  ;;  %v6274_v19 = vld [vmem:[#allocation10 + $0x60] sm:$0xff] }
 0x1f0   : > { %v927_v2 = vmul.f32 %v5077_v26, %v911_v14  ;;  %v926_v53 = vmul.f32 %v5077_v26, %v910_v1  ;;  %v928_v45 = vmul.f32 %v5075_v12, %v912_v13  ;;  %v6270_v1 = vld [vmem:[#allocation10 + $0x78] sm:$0xff]  ;;  %v6276_v26 = vld [vmem:[#allocation10 + $0x70] sm:$0xff] }
 0x1f1   : > { %v898_v39 = vadd.f32 1e-05, %v890_v30  ;;  %v883_v40 = vmul.f32 %v6249_v34, %v6249_v34  ;;  %v866_v41 = vpop.xlane.xlu1 %865  ;;  %v945_v3 = vmul.f32 %v929_v36, %v6217_v52  ;;  %v914_v30 = vsub.f32 %v6054_v8, %v6185_v15  ;;  %v6304_v8 = vld [vmem:[#allocation10 + $0x98] sm:$0xff] }
 0x1f2   : > { %v818_v61 = vpop.xlane.xlu0 %817  ;;  %v943_v62 = vmul.f32 %v927_v2, %v6217_v52  ;;  %v942_v63 = vmul.f32 %v926_v53, %v6214_v51  ;;  %v876_v13 = vmul.f32 0.00390625, %v866_v41  ;;  %v915_v36 = vsub.f32 %v6057_v9, %v6185_v15 }
 0x1f3   : > { %5082 = vrsqrt.f32 %v898_v39  ;;  %v891_v14 = vsub.f32 %v875_v21, %v883_v40  ;;  %v6272_v12 = vmul.f32 0.00390625, %v818_v61  ;;  %v944_v61 = vmul.f32 %v928_v45, %v6214_v51 }
 0x1f4   : > { %v6283_v2 = vadd.f32 %v943_v62, %v6223_v59  ;;  %v6286_v53 = vadd.f32 %v942_v63, %v6220_v55  ;;  %v6295_v15 = vadd.f32 %v945_v3, %v6223_v59  ;;  %v916_v3 = vsub.f32 %v6068_v16, %v6191_v29 }
 0x1f5   : > { %v5079_v21 = vpop.eup %5078  ;;  %v899_v39 = vadd.f32 1e-05, %v891_v14  ;;  %v884_v40 = vmul.f32 %v6272_v12, %v6272_v12  ;;  %v869_v41 = vpop.xlane.xlu1 %868  ;;  %v7001_v14 = vpack.c.bf16 %v6237_v10, %v6235_v7 }
 0x1f6   : > { %1255 = vmatprep.mubr.f32.mxu1 %v6283_v2  ;;  %v821_v9 = vpop.xlane.xlu0 %820  ;;  %v931_v62 = vmul.f32 %v5079_v21, %v915_v36  ;;  %v930_v63 = vmul.f32 %v5079_v21, %v914_v30  ;;  %v877_v45 = vmul.f32 0.00390625, %v869_v41  ;;  %v917_v30 = vsub.f32 %v6071_v17, %v6191_v29  ;;  %v6321_v29 = vld [vmem:[#allocation10 + $0x80] sm:$0xff] }
 0x1f7   : > { %5084 = vrsqrt.f32 %v899_v39  ;;  %v892_v60 = vsub.f32 %v876_v13, %v884_v40  ;;  %v6299_v50 = vmul.f32 0.00390625, %v821_v9  ;;  %1256 = vmatmul.mubr.f32.vlgmr.msra.gmra.mrb[0].mxu1 %v6286_v53  ;;  %v6318_v40 = vadd.f32 %v944_v61, %v6220_v55 }
 0x1f8   : > { %4158 = vmatpush1.bf16.msra.mxu1 %v4157_v5  ;;  %1261 = vmatprep.mubr.f32.mxu1 %v6295_v15  ;;  %v947_v13 = vmul.f32 %v931_v62, %v6217_v52  ;;  %v946_v17 = vmul.f32 %v930_v63, %v6214_v51  ;;  %v4171_v9 = vpack.c.bf16 %v6304_v8, %v6302_v58 }
 0x1f9   : > { %v5081_v36 = vpop.eup %5080  ;;  %v900_v21 = vadd.f32 1e-05, %v892_v60  ;;  %v885_v39 = vmul.f32 %v6299_v50, %v6299_v50  ;;  %4160 = vmatprep.subr.bf16.mxu1 %v4159_v4  ;;  %v714_v16 = vpop.xlane.xlu1 %713  ;;  %v919_v63 = vsub.f32 %v6083_v23, %v6211_v47  ;;  %v7002_v23 = vpack.c.bf16 %v6247_v25, %v6245_v24 }
 0x1fa   : > { %v689_v44 = vpop.xlane.xlu0 %688  ;;  %v6326_v5 = vadd.f32 %v947_v13, %v6223_v59  ;;  %v724_v41 = vmul.f32 0.00390625, %v714_v16  ;;  %v933_v60 = vmul.f32 %v5081_v36, %v917_v30  ;;  %v932_v62 = vmul.f32 %v5081_v36, %v916_v3  ;;  %v6354_v36 = vld [vmem:[#allocation10 + $0xb8] sm:$0xff] }
 0x1fb   : > { %5086 = vrsqrt.f32 %v900_v21  ;;  %v893_v4 = vsub.f32 %v877_v45, %v885_v39  ;;  %v6330_v61 = vmul.f32 0.00390625, %v689_v44  ;;  %1262 = vmatmul.mubr.f32.gmra.mrb[2].mxu1 %v6318_v40  ;;  %v4173_v13 = vpack.c.bf16 %v6323_v43, %v6321_v29 }
 0x1fc   : > { %4162 = vmatpush1.bf16.msra.mxu1 %v7001_v14  ;;  %1267 = vmatprep.mubr.f32.mxu1 %v6326_v5  ;;  %v949_v30 = vmul.f32 %v933_v60, %v6217_v52  ;;  %v918_v21 = vsub.f32 %v6080_v22, %v6211_v47  ;;  %v6350_v7 = vadd.f32 %v946_v17, %v6220_v55  ;;  %v6352_v14 = vld [vmem:[#allocation10 + $0xa8] sm:$0xff] }
 0x1fd   : > { %v5083_v45 = vpop.eup %5082  ;;  %v901_v39 = vadd.f32 1e-05, %v893_v4  ;;  %v728_v3 = vmul.f32 %v6330_v61, %v6330_v61  ;;  %4164 = vmatprep.subr.bf16.mxu1 %v7002_v23  ;;  %v717_v10 = vpop.xlane.xlu1 %716  ;;  %v948_v47 = vmul.f32 %v932_v62, %v6214_v51  ;;  %v921_v17 = vsub.f32 %v6095_v35, %v6249_v34 }
 0x1fe   : > { %v692_v16 = vpop.xlane.xlu0 %691  ;;  %v6357_v44 = vadd.f32 %v949_v30, %v6223_v59  ;;  %v725_v22 = vmul.f32 0.00390625, %v717_v10  ;;  %v935_v60 = vmul.f32 %v5083_v45, %v919_v63  ;;  %v934_v25 = vmul.f32 %v5083_v45, %v918_v21  ;;  %v1324_v21 = vld [vmem:[#allocation10 + $0xa0] sm:$0xff] }
 0x1ff   : > { %5088 = vrsqrt.f32 %v901_v39  ;;  %v732_v4 = vsub.f32 %v724_v41, %v728_v3  ;;  %v6360_v24 = vmul.f32 0.00390625, %v692_v16  ;;  %1268 = vmatmul.mubr.f32.gmra.mrb[4].mxu1 %v6350_v7  ;;  %v7003_v23 = vpack.c.bf16 %v6253_v0, %v6251_v38  ;;  %v1326_v3 = vld [vmem:[#allocation10 + $0xb0] sm:$0xff] }
 0x200   : > { %1273 = vmatprep.mubr.f32.mxu1 %v6357_v44  ;;  %v951_v30 = vmul.f32 %v935_v60, %v6217_v52  ;;  %v4175_v62 = vpack.c.bf16 %v6354_v36, %v6352_v14  ;;  %v920_v63 = vsub.f32 %v6090_v33, %v6249_v34  ;;  %v7004_v35 = vpack.c.bf16 %v6270_v1, %v6268_v6 }
 0x201   : > { %4166 = vmatpush1.bf16.msra.mxu1 %v7003_v23  ;;  %v5085_v41 = vpop.eup %5084  ;;  %v736_v39 = vadd.f32 1e-05, %v732_v4  ;;  %v729_v45 = vmul.f32 %v6360_v24, %v6360_v24  ;;  %v6380_v38 = vadd.f32 %v948_v47, %v6220_v55  ;;  %v720_v0 = vpop.xlane.xlu1 %719  ;;  %v950_v33 = vmul.f32 %v934_v25, %v6214_v51 }
 0x202   : > { %4168 = vmatprep.subr.bf16.mxu1 %v7004_v35  ;;  %v695_v10 = vpop.xlane.xlu0 %694  ;;  %v6383_v14 = vadd.f32 %v951_v30, %v6223_v59  ;;  %v726_v36 = vmul.f32 0.00390625, %v720_v0  ;;  %v937_v34 = vmul.f32 %v5085_v41, %v921_v17  ;;  %v936_v6 = vmul.f32 %v5085_v41, %v920_v63 }
 0x203   : > { %5090 = vrsqrt.f32 %v736_v39  ;;  %v733_v16 = vsub.f32 %v725_v22, %v729_v45  ;;  %v6386_v60 = vmul.f32 0.00390625, %v695_v10  ;;  %1274 = vmatmul.mubr.f32.gmra.mrb[6].mxu1 %v6380_v38  ;;  %v923_v1 = vsub.f32 %v6107_v49, %v6272_v12  ;;  %v1331_v45 = vld [vmem:[#allocation10 + $0xd8] sm:$0xff]  ;;  %v1330_v10 = vld [vmem:[#allocation10 + $0xd0] sm:$0xff] }
 0x204   : > { %v7005_v47 = vpack.c.bf16 %v6276_v26, %v6274_v19  ;;  %1279 = vmatprep.mubr.f32.mxu1 %v6383_v14  ;;  %v953_v4 = vmul.f32 %v937_v34, %v6217_v52  ;;  %v4177_v25 = vpack.c.bf16 %v1326_v3, %v1324_v21  ;;  %v922_v22 = vsub.f32 %v6102_v46, %v6272_v12  ;;  %v1329_v12 = vld [vmem:[#allocation10 + $0xc8] sm:$0xff]  ;;  %v1328_v3 = vld [vmem:[#allocation10 + $0xc0] sm:$0xff] }
 0x205   : > { %v5087_v17 = vpop.eup %5086  ;;  %v737_v23 = vadd.f32 1e-05, %v733_v16  ;;  %v730_v30 = vmul.f32 %v6386_v60, %v6386_v60  ;;  %v6404_v49 = vadd.f32 %v950_v33, %v6220_v55  ;;  %v723_v19 = vpop.xlane.xlu1 %722  ;;  %v952_v39 = vmul.f32 %v936_v6, %v6214_v51  ;;  %v1335_v16 = vld [vmem:[#allocation10 + $0xf8] sm:$0xff] }
 0x206   : > { %4170 = vmatpush1.bf16.msra.mxu1 %v7005_v47  ;;  %v698_v26 = vpop.xlane.xlu0 %697  ;;  %v6407_v41 = vadd.f32 %v953_v4, %v6223_v59  ;;  %v727_v63 = vmul.f32 0.00390625, %v723_v19  ;;  %v939_v46 = vmul.f32 %v5087_v17, %v923_v1  ;;  %v938_v58 = vmul.f32 %v5087_v17, %v922_v22  ;;  %v1332_v22 = vld [vmem:[#allocation10 + $0xe0] sm:$0xff] }
 0x207   : > { %4172 = vmatprep.subr.bf16.mxu1 %v4171_v9  ;;  %5092 = vrsqrt.f32 %v737_v23  ;;  %v734_v35 = vsub.f32 %v726_v36, %v730_v30  ;;  %v6410_v0 = vmul.f32 0.00390625, %v698_v26  ;;  %1280 = vmatmul.mubr.f32.gmra.mrb[8].mxu1 %v6404_v49  ;;  %v924_v8 = vsub.f32 %v6112_v56, %v6299_v50  ;;  %v1334_v23 = vld [vmem:[#allocation10 + $0xf0] sm:$0xff] }
 0x208   : > { %v925_v9 = vsub.f32 %v6115_v57, %v6299_v50  ;;  %1285 = vmatprep.mubr.f32.mxu1 %v6407_v41  ;;  %v955_v21 = vmul.f32 %v939_v46, %v6217_v52  ;;  %v6425_v56 = vadd.f32 %v952_v39, %v6220_v55  ;;  %v4179_v57 = vpack.c.bf16 %v1331_v45, %v1329_v12  ;;  %v1339_v46 = vld [vmem:[#allocation10 + $0x118] sm:$0xff] }
 0x209   : > { %v5089_v36 = vpop.eup %5088  ;;  %v738_v33 = vadd.f32 1e-05, %v734_v35  ;;  %v731_v34 = vmul.f32 %v6410_v0, %v6410_v0  ;;  %v954_v29 = vmul.f32 %v938_v58, %v6214_v51  ;;  %v4181_v47 = vpack.c.bf16 %v1330_v10, %v1328_v3 }
 0x20a   : > { %4174 = vmatpush1.bf16.msra.mxu1 %v4173_v13  ;;  %v6428_v50 = vadd.f32 %v955_v21, %v6223_v59  ;;  %v941_v43 = vmul.f32 %v5089_v36, %v925_v9  ;;  %v1333_v13 = vld [vmem:[#allocation10 + $0xe8] sm:$0xff]  ;;  %v940_v6 = vmul.f32 %v5089_v36, %v924_v8  ;;  %v745_v4 = vsub.f32 %v6129_v28, %v6330_v61 }
 0x20b   : > { %4176 = vmatprep.subr.bf16.mxu1 %v4175_v62  ;;  %5094 = vrsqrt.f32 %v738_v33  ;;  %v735_v1 = vsub.f32 %v727_v63, %v731_v34  ;;  %1286 = vmatmul.mubr.f32.gmra.mrb[10].mxu1 %v6425_v56  ;;  %v744_v62 = vsub.f32 %v6126_v27, %v6330_v61  ;;  %v6439_v26 = vadd.f32 %v954_v29, %v6220_v55  ;;  %v1341_v29 = vld [vmem:[#allocation10 + $0x128] sm:$0xff] }
 0x20c   : > { %1291 = vmatprep.mubr.f32.mxu1 %v6428_v50  ;;  %v957_v17 = vmul.f32 %v941_v43, %v6217_v52  ;;  %v4183_v63 = vpack.c.bf16 %v1335_v16, %v1333_v13  ;;  %v956_v39 = vmul.f32 %v940_v6, %v6214_v51  ;;  %v746_v12 = vsub.f32 %v6138_v48, %v6360_v24  ;;  %v1343_v43 = vld [vmem:[#allocation10 + $0x138] sm:$0xff] }
 0x20d   : > { %v5091_v30 = vpop.eup %5090  ;;  %v739_v19 = vadd.f32 1e-05, %v735_v1  ;;  %v4185_v45 = vpack.c.bf16 %v1334_v23, %v1332_v22  ;;  %v747_v35 = vsub.f32 %v6143_v54, %v6360_v24  ;;  %v748_v21 = vsub.f32 %v6150_v11, %v6386_v60  ;;  %v1336_v54 = vld [vmem:[#allocation10 + $0x100] sm:$0xff]  ;;  %v1338_v24 = vld [vmem:[#allocation10 + $0x110] sm:$0xff] }
 0x20e   : > { %4178 = vmatpush1.bf16.msra.mxu1 %v4177_v25  ;;  %v6443_v27 = vadd.f32 %v957_v17, %v6223_v59  ;;  %v753_v28 = vmul.f32 %v5091_v30, %v745_v4  ;;  %v752_v61 = vmul.f32 %v5091_v30, %v744_v62  ;;  %v1337_v25 = vld [vmem:[#allocation10 + $0x108] sm:$0xff]  ;;  %v749_v48 = vsub.f32 %v6155_v18, %v6386_v60  ;;  %v1342_v62 = vld [vmem:[#allocation10 + $0x130] sm:$0xff] }
 0x20f   : > { %4180 = vmatprep.subr.bf16.mxu1 %v4179_v57  ;;  %5096 = vrsqrt.f32 %v739_v19  ;;  %1292 = vmatmul.mubr.f32.gmra.mrb[12].mxu1 %v6439_v26  ;;  %v6458_v3 = vadd.f32 %v956_v39, %v6220_v55  ;;  %v4187_v10 = vpack.c.bf16 %v1339_v46, %v1337_v25  ;;  %v4189_v11 = vpack.c.bf16 %v1338_v24, %v1336_v54  ;;  %v1345_v30 = vld [vmem:[#allocation10 + $0x148] sm:$0xff]  ;;  %v1347_v19 = vld [vmem:[#allocation10 + $0x158] sm:$0xff]  ;;  %v1344_v39 = vld [vmem:[#allocation10 + $0x140] sm:$0xff] }
 0x210   : > { %1297 = vmatprep.mubr.f32.mxu1 %v6443_v27  ;;  %v772_v58 = vmul.f32 %v6217_v52, %v753_v28  ;;  %v771_v8 = vmul.f32 %v6214_v51, %v752_v61  ;;  %v750_v16 = vsub.f32 %v6162_v37, %v6410_v0  ;;  %v751_v6 = vsub.f32 %v6167_v42, %v6410_v0  ;;  %v1346_v28 = vld [vmem:[#allocation10 + $0x150] sm:$0xff] }
 0x211   : > { %v5093_v9 = vpop.eup %5092  ;;  %v4191_v1 = vpack.c.bf16 %v1343_v43, %v1341_v29  ;;  %v1354_v29 = vld [vmem:[#allocation10 + $0x190] sm:$0xff]  ;;  %v1359_v43 = vld [vmem:[#allocation10 + $0x1b8] sm:$0xff] }
 0x212   : > { %4182 = vmatpush1.bf16.msra.mxu1 %v4181_v47  ;;  %v791_v36 = vadd.f32 %v6223_v59, %v772_v58  ;;  %v790_v33 = vadd.f32 %v6220_v55, %v771_v8  ;;  %v755_v34 = vmul.f32 %v5093_v9, %v747_v35  ;;  %v754_v57 = vmul.f32 %v5093_v9, %v746_v12  ;;  %v1340_v47 = vld [vmem:[#allocation10 + $0x120] sm:$0xff]  ;;  %v1351_v35 = vld [vmem:[#allocation10 + $0x178] sm:$0xff] }
 0x213   : > { %4184 = vmatprep.subr.bf16.mxu1 %v4183_v63  ;;  %1298 = vmatmul.mubr.f32.gmra.mrb[14].mxu1 %v6458_v3  ;;  %v4193_v37 = vpack.c.bf16 %v1342_v62, %v1340_v47  ;;  %v4195_v63 = vpack.c.bf16 %v1347_v19, %v1345_v30  ;;  %v4197_v58 = vpack.c.bf16 %v1346_v28, %v1344_v39  ;;  %v1362_v47 = vld [vmem:[#allocation10 + $0x1d0] sm:$0xff]  ;;  %v1365_v62 = vld [vmem:[#allocation10 + $0x1e8] sm:$0xff] }
 0x214   : > { %1102 = vmatprep.mubr.f32.mxu0 %v791_v36  ;;  %v774_v18 = vmul.f32 %v6217_v52, %v755_v34  ;;  %v773_v60 = vmul.f32 %v6214_v51, %v754_v57  ;;  %1432 = vmatprep.mubr.f32.mxu1 %v6283_v2  ;;  %v1353_v36 = vld [vmem:[#allocation10 + $0x188] sm:$0xff]  ;;  %v1366_v30 = vld [vmem:[#allocation10 + $0x1f0] sm:$0xff] }
 0x215   : > { %v5095_v13 = vpop.eup %5094  ;;  %1103 = vmatmul.mubr.f32.vlgmr.msra.gmra.mrb[0].mxu0 %v790_v33  ;;  %v1355_v33 = vld [vmem:[#allocation10 + $0x198] sm:$0xff] }
 0x216   : > { %4186 = vmatpush1.bf16.msra.mxu1 %v4185_v45  ;;  %v793_v4 = vadd.f32 %v6223_v59, %v774_v18  ;;  %v792_v17 = vadd.f32 %v6220_v55, %v773_v60  ;;  %v757_v22 = vmul.f32 %v5095_v13, %v749_v48  ;;  %v756_v23 = vmul.f32 %v5095_v13, %v748_v21  ;;  %v1349_v45 = vld [vmem:[#allocation10 + $0x168] sm:$0xff]  ;;  %v1348_v48 = vld [vmem:[#allocation10 + $0x160] sm:$0xff] }
 0x217   : > { %4188 = vmatprep.subr.bf16.mxu1 %v4187_v10  ;;  %v4199_v21 = vpack.c.bf16 %v1351_v35, %v1349_v45  ;;  %v1350_v10 = vld [vmem:[#allocation10 + $0x170] sm:$0xff]  ;;  %v4203_v57 = vpack.c.bf16 %v1355_v33, %v1353_v36  ;;  %v1356_v60 = vld [vmem:[#allocation10 + $0x1a0] sm:$0xff]  ;;  %v1361_v13 = vld [vmem:[#allocation10 + $0x1c8] sm:$0xff] }
 0x218   : > { %1108 = vmatprep.mubr.f32.mxu0 %v793_v4  ;;  %v776_v42 = vmul.f32 %v6217_v52, %v757_v22  ;;  %v775_v2 = vmul.f32 %v6214_v51, %v756_v23  ;;  %v4201_v34 = vpack.c.bf16 %v1350_v10, %v1348_v48  ;;  %v1367_v4 = vld [vmem:[#allocation10 + $0x1f8] sm:$0xff]  ;;  %v1364_v23 = vld [vmem:[#allocation10 + $0x1e0] sm:$0xff] }
 0x219   : > { %v5097_v0 = vpop.eup %5096  ;;  %1109 = vmatmul.mubr.f32.gmra.mrb[2].mxu0 %v792_v17  ;;  %v4215_v22 = vpack.c.bf16 %v1367_v4, %v1365_v62  ;;  %v4217_v19 = vpack.c.bf16 %v1366_v30, %v1364_v23 }
 0x21a   : > { %4190 = vmatpush1.bf16.msra.mxu1 %v4189_v11  ;;  %v795_v61 = vadd.f32 %v6223_v59, %v776_v42  ;;  %v794_v25 = vadd.f32 %v6220_v55, %v775_v2  ;;  %v759_v46 = vmul.f32 %v5097_v0, %v751_v6  ;;  %v758_v12 = vmul.f32 %v5097_v0, %v750_v16 }
 0x21b   : > { %4192 = vmatprep.subr.bf16.mxu1 %v4191_v1  ;;  %v1360_v1 = vld [vmem:[#allocation10 + $0x1c0] sm:$0xff] }
 0x21c   : > { %1114 = vmatprep.mubr.f32.mxu0 %v795_v61  ;;  %v778_v8 = vmul.f32 %v6217_v52, %v759_v46  ;;  %v777_v9 = vmul.f32 %v6214_v51, %v758_v12  ;;  %v1352_v52 = vld [vmem:[#allocation10 + $0x180] sm:$0xff]  ;;  %v1357_v51 = vld [vmem:[#allocation10 + $0x1a8] sm:$0xff]  ;;  %v4213_v17 = vpack.c.bf16 %v1362_v47, %v1360_v1 }
 0x21d   : > { %1115 = vmatmul.mubr.f32.gmra.mrb[4].mxu0 %v794_v25  ;;  %v4205_v11 = vpack.c.bf16 %v1354_v29, %v1352_v52  ;;  %v4207_v18 = vpack.c.bf16 %v1359_v43, %v1357_v51 }
 0x21e   : > { %4194 = vmatpush1.bf16.msra.mxu1 %v4193_v37  ;;  %v797_v54 = vadd.f32 %v6223_v59, %v778_v8  ;;  %v796_v24 = vadd.f32 %v6220_v55, %v777_v9  ;;  %v1358_v59 = vld [vmem:[#allocation10 + $0x1b0] sm:$0xff]  ;;  %v1363_v55 = vld [vmem:[#allocation10 + $0x1d8] sm:$0xff] }
 0x21f   : > { %4196 = vmatprep.subr.bf16.mxu1 %v4195_v63  ;;  %v4209_v16 = vpack.c.bf16 %v1358_v59, %v1356_v60  ;;  %v4211_v6 = vpack.c.bf16 %v1363_v55, %v1361_v13 }
 0x220   : > { %1120 = vmatprep.mubr.f32.mxu0 %v797_v54 }
 0x221   : > { %1121 = vmatmul.mubr.f32.gmra.mrb[6].mxu0 %v796_v24 }
 0x222   : > { %4198 = vmatpush1.bf16.msra.mxu1 %v4197_v58 }
 0x223   : > { %4200 = vmatprep.subr.bf16.mxu1 %v4199_v21 }
 0x226   : > { %4202 = vmatpush1.bf16.msra.mxu1 %v4201_v34 }
 0x227   : > { %4204 = vmatprep.subr.bf16.mxu1 %v4203_v57 }
 0x22a   : > { %4206 = vmatpush1.bf16.msra.mxu1 %v4205_v11 }
 0x22b   : > { %4208 = vmatprep.subr.bf16.mxu1 %v4207_v18 }
 0x22e   : > { %4210 = vmatpush1.bf16.msra.mxu1 %v4209_v16 }
 0x22f   : > { %4212 = vmatprep.subr.bf16.mxu1 %v4211_v6 }
 0x232   : > { %4214 = vmatpush1.bf16.msra.mxu1 %v4213_v17 }
 0x233   : > { %4216 = vmatprep.subr.bf16.mxu1 %v4215_v22 }
 0x236   : > { %4218 = vmatpush1.bf16.msra.mxu1 %v4217_v19 }
 0x239   : > { %1433 = vmatmul.mubr.f32.vlgmr.msra.gmra.mrb[16].mxu1 %v6286_v53 }
 0x23a   : > { %1438 = vmatprep.mubr.f32.mxu1 %v6295_v15 }
 0x23d   : > { %1439 = vmatmul.mubr.f32.gmra.mrb[18].mxu1 %v6318_v40 }
 0x23e   : > { %1444 = vmatprep.mubr.f32.mxu1 %v6326_v5 }
 0x241   : > { %1445 = vmatmul.mubr.f32.gmra.mrb[20].mxu1 %v6350_v7 }
 0x242   : > { %1450 = vmatprep.mubr.f32.mxu1 %v6357_v44 }
 0x245   : > { %1451 = vmatmul.mubr.f32.gmra.mrb[22].mxu1 %v6380_v38 }
 0x246   : > { %1456 = vmatprep.mubr.f32.mxu1 %v6383_v14 }
 0x249   : > { %1457 = vmatmul.mubr.f32.gmra.mrb[24].mxu1 %v6404_v49 }
 0x24a   : > { %1462 = vmatprep.mubr.f32.mxu1 %v6407_v41 }
 0x24d   : > { %1463 = vmatmul.mubr.f32.gmra.mrb[26].mxu1 %v6425_v56 }
 0x24e   : > { %1468 = vmatprep.mubr.f32.mxu1 %v6428_v50 }
 0x251   : > { %1469 = vmatmul.mubr.f32.gmra.mrb[28].mxu1 %v6439_v26 }
 0x252   : > { %1474 = vmatprep.mubr.f32.mxu1 %v6443_v27 }
 0x255   : > { %1475 = vmatmul.mubr.f32.gmra.mrb[30].mxu1 %v6458_v3 }
 0x2ca   : > { %v1257_v53 = vpop.f32.mrb[0].mxu1 }
 0x2cb   : > { %v1259_v15 = vpop.f32.mrb[1].mxu1 }
 0x2ce   : > { %v1263_v40 = vpop.f32.mrb[2].mxu1 }
 0x2cf   : > { %v4219_v5 = vpack.c.bf16 %v1263_v40, %v1257_v53  ;;  %v1265_v7 = vpop.f32.mrb[3].mxu1 }
 0x2d0   : > { %v4235_v44 = vpack.c.bf16 %v1265_v7, %v1259_v15 }
 0x2d1   : > { %4220 = vmatprep.subr.bf16.mxu1 %v4219_v5 }
 0x2d2   : > { %v1269_v38 = vpop.f32.mrb[4].mxu1  ;;  %4222 = vmatpush3.bf16.xpose.msra.mxu1 %v4219_v5 }
 0x2d3   : > { %v1271_v14 = vpop.f32.mrb[5].mxu1 }
 0x2d6   : > { %v1275_v49 = vpop.f32.mrb[6].mxu1 }
 0x2d7   : > { %v4223_v41 = vpack.c.bf16 %v1275_v49, %v1269_v38  ;;  %v1277_v56 = vpop.f32.mrb[7].mxu1 }
 0x2d8   : > { %v4239_v50 = vpack.c.bf16 %v1277_v56, %v1271_v14 }
 0x2d9   : > { %4224 = vmatprep.subr.bf16.mxu1 %v4223_v41 }
 0x2da   : > { %v1281_v26 = vpop.f32.mrb[8].mxu1  ;;  %4226 = vmatpush3.bf16.xpose.msra.mxu1 %v4223_v41 }
 0x2db   : > { %v1283_v27 = vpop.f32.mrb[9].mxu1 }
 0x2de   : > { %v1287_v37 = vpop.f32.mrb[10].mxu1 }
 0x2df   : > { %v4227_v3 = vpack.c.bf16 %v1287_v37, %v1281_v26  ;;  %v1289_v42 = vpop.f32.mrb[11].mxu1 }
 0x2e0   : > { %v4243_v2 = vpack.c.bf16 %v1289_v42, %v1283_v27 }
 0x2e1   : > { %4228 = vmatprep.subr.bf16.mxu1 %v4227_v3 }
 0x2e2   : > { %v1293_v0 = vpop.f32.mrb[12].mxu1  ;;  %4230 = vmatpush3.bf16.xpose.msra.mxu1 %v4227_v3 }
 0x2e3   : > { %v1295_v63 = vpop.f32.mrb[13].mxu1 }
 0x2e6   : > { %v1299_v39 = vpop.f32.mrb[14].mxu1 }
 0x2e7   : > { %v4231_v28 = vpack.c.bf16 %v1299_v39, %v1293_v0  ;;  %v1301_v61 = vpop.f32.mrb[15].mxu1 }
 0x2e8   : > { %v4247_v25 = vpack.c.bf16 %v1301_v61, %v1295_v63  ;;  %v1104_v46 = vpop.f32.mrb[0].mxu0 }
 0x2e9   : > { %v1481_v12 = vmul.f32 0.088388346, %v1104_v46  ;;  %v1106_v45 = vpop.f32.mrb[1].mxu0  ;;  %4232 = vmatprep.subr.bf16.mxu1 %v4231_v28 }
 0x2ea   : > { %4234 = vmatpush3.bf16.xpose.msra.mxu1 %v4231_v28  ;;  %v1482_v36 = vmul.f32 0.088388346, %v1106_v45 }
 0x2eb   : > { %3955 = vmatprep.mubr.f32.mxu1 %v1481_v12  ;;  %4236 = vmatprep.subr.bf16.mxu1 %v4235_v44 }
 0x2ec   : > { %v1110_v35 = vpop.f32.mrb[2].mxu0 }
 0x2ed   : > { %v1112_v58 = vpop.f32.mrb[3].mxu0  ;;  %v1483_v8 = vmul.f32 0.088388346, %v1110_v35 }
 0x2ee   : > { %v1484_v52 = vmul.f32 0.088388346, %v1112_v58 }
 0x2f0   : > { %v1116_v9 = vpop.f32.mrb[4].mxu0 }
 0x2f1   : > { %v1485_v21 = vmul.f32 0.088388346, %v1116_v9  ;;  %3956 = vmatmul.mubr.f32.vlgmr.msra.gmra.mrb[32].mxu1 %v1483_v8  ;;  %v1118_v48 = vpop.f32.mrb[5].mxu0 }
 0x2f2   : > { %4238 = vmatpush3.bf16.xpose.msra.mxu1 %v4235_v44  ;;  %v1486_v43 = vmul.f32 0.088388346, %v1118_v48 }
 0x2f3   : > { %4240 = vmatprep.subr.bf16.mxu1 %v4239_v50  ;;  %3958 = vmatprep.mubr.f32.mxu1 %v1485_v21 }
 0x2f4   : > { %v1122_v10 = vpop.f32.mrb[6].mxu0 }
 0x2f5   : > { %v1487_v54 = vmul.f32 0.088388346, %v1122_v10  ;;  %v1124_v24 = vpop.f32.mrb[7].mxu0 }
 0x2f6   : > { %v1488_v60 = vmul.f32 0.088388346, %v1124_v24 }
 0x2f7   : > { %3959 = vmatmul.mubr.f32.gmra.mrb[34].mxu1 %v1487_v54 }
 0x2f8   : > { %3977 = vmatprep.mubr.f32.mxu1 %v1482_v36 }
 0x2fa   : > { %4242 = vmatpush3.bf16.xpose.msra.mxu1 %v4239_v50 }
 0x2fb   : > { %4244 = vmatprep.subr.bf16.mxu1 %v4243_v2 }
 0x302   : > { %4246 = vmatpush3.bf16.xpose.msra.mxu1 %v4243_v2 }
 0x303   : > { %4248 = vmatprep.subr.bf16.mxu1 %v4247_v25 }
 0x30a   : > { %4250 = vmatpush3.bf16.xpose.msra.mxu1 %v4247_v25 }
 0x30c   : > { %v1434_v33 = vpop.f32.mrb[16].mxu1 }
 0x30d   : > { %v1436_v34 = vpop.f32.mrb[17].mxu1 }
 0x310   : > { %v1440_v57 = vpop.f32.mrb[18].mxu1 }
 0x311   : > { %v4251_v29 = vpack.c.bf16 %v1440_v57, %v1434_v33  ;;  %v1442_v51 = vpop.f32.mrb[19].mxu1  ;;  %3978 = vmatmul.mubr.f32.vlgmr.msra.gmra.mrb[36].mxu1 %v1484_v52 }
 0x312   : > { %v6495_v11 = vpack.c.bf16 %v1442_v51, %v1436_v34  ;;  %3980 = vmatprep.mubr.f32.mxu1 %v1486_v43 }
 0x313   : > { %4252 = vmatprep.subr.bf16.mxu1 %v4251_v29 }
 0x314   : > { %v1446_v18 = vpop.f32.mrb[20].mxu1  ;;  %4254 = vmatpush3.bf16.msra.mxu1 %v4251_v29 }
 0x315   : > { %v1448_v59 = vpop.f32.mrb[21].mxu1  ;;  %3981 = vmatmul.mubr.f32.gmra.mrb[38].mxu1 %v1488_v60 }
 0x318   : > { %v1452_v13 = vpop.f32.mrb[22].mxu1 }
 0x319   : > { %v4255_v55 = vpack.c.bf16 %v1452_v13, %v1446_v18  ;;  %v1454_v16 = vpop.f32.mrb[23].mxu1 }
 0x31a   : > { %v6497_v6 = vpack.c.bf16 %v1454_v16, %v1448_v59 }
 0x31b   : > { %4256 = vmatprep.subr.bf16.mxu1 %v4255_v55 }
 0x31c   : > { %v1458_v1 = vpop.f32.mrb[24].mxu1  ;;  %4258 = vmatpush3.bf16.msra.mxu1 %v4255_v55 }
 0x31d   : > { %v1460_v47 = vpop.f32.mrb[25].mxu1 }
 0x320   : > { %v1464_v62 = vpop.f32.mrb[26].mxu1 }
 0x321   : > { %v4259_v4 = vpack.c.bf16 %v1464_v62, %v1458_v1  ;;  %v1466_v17 = vpop.f32.mrb[27].mxu1 }
 0x322   : > { %v6499_v22 = vpack.c.bf16 %v1466_v17, %v1460_v47 }
 0x323   : > { %4260 = vmatprep.subr.bf16.mxu1 %v4259_v4 }
 0x324   : > { %v1470_v23 = vpop.f32.mrb[28].mxu1  ;;  %4262 = vmatpush3.bf16.msra.mxu1 %v4259_v4 }
 0x325   : > { %v1472_v30 = vpop.f32.mrb[29].mxu1 }
 0x328   : > { %v1476_v19 = vpop.f32.mrb[30].mxu1 }
 0x329   : > { %v4263_v53 = vpack.c.bf16 %v1476_v19, %v1470_v23  ;;  %v1478_v15 = vpop.f32.mrb[31].mxu1 }
 0x32a   : > { %v6501_v40 = vpack.c.bf16 %v1478_v15, %v1472_v30 }
 0x32b   : > { %4264 = vmatprep.subr.bf16.mxu1 %v4263_v53 }
 0x32c   : > { %4266 = vmatpush3.bf16.msra.mxu1 %v4263_v53 }
 0x32d   : > { %4268 = vmatprep.subr.bf16.mxu1 %v6495_v11 }
 0x3c4   : > { %v3957_v5 = vpop.f32.mrb[32].mxu1 }
 0x3c5   : > { %v1555_v7 = vpop.f32.mrb[33].mxu1  ;;  %v1663_v44 = vsel %vm1659_vm0, %v3957_v5, -inf }
 0x3c6   : > { %1664 = vmax.xlane.f32.xlu1 %v1663_v44  ;;  %v1660_v38 = vsel %vm1659_vm0, %v1555_v7, -inf }
 0x3c7   : > { %1661 = vmax.xlane.f32.xlu0 %v1660_v38 }
 0x3ca   : > { %v3960_v14 = vpop.f32.mrb[34].mxu1 }
 0x3cb   : > { %v1565_v49 = vpop.f32.mrb[35].mxu1  ;;  %v1669_v41 = vsel %vm1659_vm0, %v3960_v14, -inf }
 0x3cc   : > { %1670 = vmax.xlane.f32.xlu1 %v1669_v41  ;;  %v1666_v56 = vsel %vm1659_vm0, %v1565_v49, -inf }
 0x3cd   : > { %1667 = vmax.xlane.f32.xlu0 %v1666_v56 }
 0x3e4   : > { %v3979_v50 = vpop.f32.mrb[36].mxu1 }
 0x3e5   : > { %v1640_v26 = vpop.f32.mrb[37].mxu1  ;;  %v1675_v27 = vsel %vm1659_vm0, %v3979_v50, -inf }
 0x3e6   : > { %1676 = vmax.xlane.f32.xlu1 %v1675_v27  ;;  %v1672_v37 = vsel %vm1659_vm0, %v1640_v26, -inf }
 0x3e7   : > { %1673 = vmax.xlane.f32.xlu0 %v1672_v37  ;;  %v1943_v37 = vld [vmem:[#allocation11 + $0x8] sm:$0xff] }
 0x3e8   : > { %v3982_v3 = vpop.f32.mrb[38].mxu1 }
 0x3e9   : > { %v1650_v42 = vpop.f32.mrb[39].mxu1  ;;  %v1681_v2 = vsel %vm1659_vm0, %v3982_v3, -inf }
 0x3ea   : > { %1682 = vmax.xlane.f32.xlu1 %v1681_v2  ;;  %v1678_v0 = vsel %vm1659_vm0, %v1650_v42, -inf }
 0x3eb   : > { %1679 = vmax.xlane.f32.xlu0 %v1678_v0 }
 0x453   : > { %v1665_v63 = vpop.xlane.xlu1 %1664 }
 0x454   : > { %v1685_v39 = vsub.f32 %v3957_v5, %v1665_v63  ;;  %v1662_v28 = vpop.xlane.xlu0 %1661  ;;  %v1942_v63 = vld [vmem:[#allocation11] sm:$0xff] }
 0x455   : > { %v1684_v61 = vsub.f32 %v1555_v7, %v1662_v28 }
 0x456   : > { %v1694_v25 = vmul.f32 1.442695, %v1685_v39  ;;  %v1944_v39 = vld [vmem:[#allocation11 + $0x10] sm:$0xff] }
 0x457   : > { %v1692_v46 = vmul.f32 1.442695, %v1684_v61  ;;  %v1947_v61 = vld [vmem:[#allocation11 + $0x28] sm:$0xff] }
 0x458   : > { %5098 = vpow2.f32 %v1694_v25  ;;  %v1949_v25 = vld [vmem:[#allocation11 + $0x38] sm:$0xff] }
 0x459   : > { %5100 = vpow2.f32 %v1692_v46  ;;  %v1671_v12 = vpop.xlane.xlu1 %1670 }
 0x45a   : > { %v1687_v45 = vsub.f32 %v3960_v14, %v1671_v12  ;;  %v1668_v35 = vpop.xlane.xlu0 %1667  ;;  %v4285_v12 = vpack.c.bf16 %v1944_v39, %v1942_v63 }
 0x45b   : > { %v1686_v58 = vsub.f32 %v1565_v49, %v1668_v35  ;;  %v4287_v35 = vpack.c.bf16 %v1949_v25, %v1947_v61  ;;  %v1978_v61 = vld [vmem:[#allocation11 + $0x120] sm:$0xff]  ;;  %v1980_v25 = vld [vmem:[#allocation11 + $0x130] sm:$0xff] }
 0x45c   : > { %v1698_v8 = vmul.f32 1.442695, %v1687_v45 }
 0x45d   : > { %v1696_v9 = vmul.f32 1.442695, %v1686_v58  ;;  %v1948_v58 = vld [vmem:[#allocation11 + $0x30] sm:$0xff] }
 0x45e   : > { %5102 = vpow2.f32 %v1698_v8 }
 0x45f   : > { %5104 = vpow2.f32 %v1696_v9  ;;  %v1951_v9 = vld [vmem:[#allocation11 + $0x48] sm:$0xff] }
 0x462   : > { %v5099_v21 = vpop.eup %5098 }
 0x463   : > { %v5101_v48 = vpop.eup %5100  ;;  %v1711_v10 = vsel %vm1659_vm0, %v5099_v21, 0.0 }
 0x464   : > { %1712 = vadd.xlane.f32.xlu1 %v1711_v10  ;;  %v1708_v54 = vsel %vm1659_vm0, %v5101_v48, 0.0 }
 0x465   : > { %1709 = vadd.xlane.f32.xlu0 %v1708_v54 }
 0x468   : > { %v5103_v24 = vpop.eup %5102 }
 0x469   : > { %v5105_v36 = vpop.eup %5104  ;;  %v1717_v33 = vsel %vm1659_vm0, %v5103_v24, 0.0 }
 0x46a   : > { %1718 = vadd.xlane.f32.xlu1 %v1717_v33  ;;  %v1714_v34 = vsel %vm1659_vm0, %v5105_v36, 0.0  ;;  %v1950_v33 = vld [vmem:[#allocation11 + $0x40] sm:$0xff] }
 0x46b   : > { %1715 = vadd.xlane.f32.xlu0 %v1714_v34  ;;  %v1952_v34 = vld [vmem:[#allocation11 + $0x50] sm:$0xff] }
 0x473   : > { %v1677_v57 = vpop.xlane.xlu1 %1676 }
 0x474   : > { %v1689_v52 = vsub.f32 %v3979_v50, %v1677_v57  ;;  %v1674_v29 = vpop.xlane.xlu0 %1673  ;;  %v1955_v57 = vld [vmem:[#allocation11 + $0x68] sm:$0xff] }
 0x475   : > { %v1688_v51 = vsub.f32 %v1640_v26, %v1674_v29  ;;  %v4293_v29 = vpack.c.bf16 %v1952_v34, %v1950_v33  ;;  %v1991_v33 = vld [vmem:[#allocation11 + $0x188] sm:$0xff]  ;;  %v1993_v34 = vld [vmem:[#allocation11 + $0x198] sm:$0xff] }
 0x476   : > { %v1702_v43 = vmul.f32 1.442695, %v1689_v52  ;;  %v1957_v52 = vld [vmem:[#allocation11 + $0x78] sm:$0xff] }
 0x477   : > { %v1700_v18 = vmul.f32 1.442695, %v1688_v51  ;;  %v1683_v60 = vpop.xlane.xlu1 %1682  ;;  %v4295_v51 = vpack.c.bf16 %v1957_v52, %v1955_v57  ;;  %v4331_v52 = vpack.c.bf16 %v1993_v34, %v1991_v33  ;;  %v2366_v33 = vld [vmem:[#allocation13 + $0x110] sm:$0xff] }
 0x478   : > { %5106 = vpow2.f32 %v1702_v43  ;;  %v1691_v59 = vsub.f32 %v3982_v3, %v1683_v60  ;;  %v1680_v13 = vpop.xlane.xlu0 %1679  ;;  %v1945_v3 = vld [vmem:[#allocation11 + $0x18] sm:$0xff]  ;;  %v1954_v43 = vld [vmem:[#allocation11 + $0x60] sm:$0xff]  ;;  %v1959_v60 = vld [vmem:[#allocation11 + $0x88] sm:$0xff] }
 0x479   : > { %5108 = vpow2.f32 %v1700_v18  ;;  %v1690_v55 = vsub.f32 %v1650_v42, %v1680_v13  ;;  %v1956_v18 = vld [vmem:[#allocation11 + $0x70] sm:$0xff] }
 0x47a   : > { %v1706_v16 = vmul.f32 1.442695, %v1691_v59  ;;  %v1961_v59 = vld [vmem:[#allocation11 + $0x98] sm:$0xff]  ;;  %v4297_v13 = vpack.c.bf16 %v1956_v18, %v1954_v43  ;;  %v1995_v43 = vld [vmem:[#allocation11 + $0x1a8] sm:$0xff]  ;;  %v2374_v34 = vld [vmem:[#allocation13 + $0x150] sm:$0xff] }
 0x47b   : > { %v1704_v1 = vmul.f32 1.442695, %v1690_v55  ;;  %v4299_v55 = vpack.c.bf16 %v1961_v59, %v1959_v60  ;;  %v1997_v18 = vld [vmem:[#allocation11 + $0x1b8] sm:$0xff] }
 0x47c   : > { %5110 = vpow2.f32 %v1706_v16  ;;  %v1958_v16 = vld [vmem:[#allocation11 + $0x80] sm:$0xff]  ;;  %v4335_v59 = vpack.c.bf16 %v1997_v18, %v1995_v43  ;;  %v4421_v43 = vpack.c.bf16 %v2374_v34, %v2366_v33  ;;  %v2454_v33 = vld [vmem:[#allocation13 + $0x3d0] sm:$0xff]  ;;  %v2461_v34 = vld [vmem:[#allocation13 + $0x408] sm:$0xff] }
 0x47d   : > { %5112 = vpow2.f32 %v1704_v1  ;;  %v1960_v1 = vld [vmem:[#allocation11 + $0x90] sm:$0xff] }
 0x482   : > { %v5107_v47 = vpop.eup %5106 }
 0x483   : > { %v5109_v62 = vpop.eup %5108  ;;  %v1723_v4 = vsel %vm1659_vm0, %v5107_v47, 0.0 }
 0x484   : > { %1724 = vadd.xlane.f32.xlu1 %v1723_v4  ;;  %v1720_v17 = vsel %vm1659_vm0, %v5109_v62, 0.0  ;;  %v4301_v4 = vpack.c.bf16 %v1960_v1, %v1958_v16  ;;  %v1999_v16 = vld [vmem:[#allocation11 + $0x1c8] sm:$0xff]  ;;  %v2001_v1 = vld [vmem:[#allocation11 + $0x1d8] sm:$0xff] }
 0x485   : > { %1721 = vadd.xlane.f32.xlu0 %v1720_v17 }
 0x486   : > { %v6518_v23 = vpop.eup %5110 }
 0x487   : > { %v5113_v30 = vpop.eup %5112  ;;  %v1729_v19 = vsel %vm1659_vm0, %v6518_v23, 0.0 }
 0x488   : > { %1730 = vadd.xlane.f32.xlu1 %v1729_v19  ;;  %v1726_v53 = vsel %vm1659_vm0, %v5113_v30, 0.0  ;;  %v1967_v19 = vld [vmem:[#allocation11 + $0xc8] sm:$0xff] }
 0x489   : > { %1727 = vadd.xlane.f32.xlu0 %v1726_v53  ;;  %v1969_v53 = vld [vmem:[#allocation11 + $0xd8] sm:$0xff] }
 0x4f1   : > { %v1713_v15 = vpop.xlane.xlu1 %1712 }
 0x4f2   : > { %5114 = vrcp.f32 %v1713_v15  ;;  %v1710_v5 = vpop.xlane.xlu0 %1709 }
 0x4f3   : > { %5116 = vrcp.f32 %v1710_v5  ;;  %v4307_v5 = vpack.c.bf16 %v1969_v53, %v1967_v19 }
 0x4f7   : > { %v1719_v7 = vpop.xlane.xlu1 %1718 }
 0x4f8   : > { %5118 = vrcp.f32 %v1719_v7  ;;  %v1716_v44 = vpop.xlane.xlu0 %1715  ;;  %v1966_v7 = vld [vmem:[#allocation11 + $0xc0] sm:$0xff] }
 0x4f9   : > { %5120 = vrcp.f32 %v1716_v44  ;;  %v1968_v44 = vld [vmem:[#allocation11 + $0xd0] sm:$0xff] }
 0x4fc   : > { %v5115_v38 = vpop.eup %5114 }
 0x4fd   : > { %v5117_v14 = vpop.eup %5116  ;;  %v1741_v41 = vmul.f32 %v5115_v38, %v5099_v21  ;;  %v1953_v21 = vld [vmem:[#allocation11 + $0x58] sm:$0xff]  ;;  %v1971_v38 = vld [vmem:[#allocation11 + $0xe8] sm:$0xff] }
 0x4fe   : > { %v1740_v49 = vmul.f32 %v5117_v14, %v5101_v48  ;;  %v1973_v14 = vld [vmem:[#allocation11 + $0xf8] sm:$0xff] }
 0x500   : > { %3999 = vmatprep.mubr.msk.f32.mxu1 %vm1659_vm0, %v1740_v49  ;;  %v4309_v49 = vpack.c.bf16 %v1968_v44, %v1966_v7 }
 0x501   : > { %4000 = vmatmul.mubr.msk.f32.vlgmr.msra.gmra.mrb[40].mxu1 %vm1659_vm0, %v1741_v41  ;;  %v4311_v41 = vpack.c.bf16 %v1973_v14, %v1971_v38 }
 0x502   : > { %v5119_v56 = vpop.eup %5118  ;;  %4270 = vmatpush3.bf16.msra.mxu1 %v6495_v11  ;;  %v4283_v11 = vpack.c.bf16 %v1945_v3, %v1943_v37  ;;  %v1977_v37 = vld [vmem:[#allocation11 + $0x118] sm:$0xff]  ;;  %v5530_v3 = vmov 0.0  }
 0x503   : > { %v5121_v50 = vpop.eup %5120  ;;  %4272 = vmatprep.subr.bf16.mxu1 %v6497_v6  ;;  %v1743_v27 = vmul.f32 %v5119_v56, %v5103_v24  ;;  %v1970_v56 = vld [vmem:[#allocation11 + $0xe0] sm:$0xff] }
 0x504   : > { %v1742_v26 = vmul.f32 %v5121_v50, %v5105_v36  ;;  %v4291_v36 = vpack.c.bf16 %v1953_v21, %v1951_v9  ;;  %v1972_v50 = vld [vmem:[#allocation11 + $0xf0] sm:$0xff]  ;;  %v1989_v9 = vld [vmem:[#allocation11 + $0x178] sm:$0xff] }
 0x506   : > { %4274 = vmatpush3.bf16.msra.mxu1 %v6497_v6  ;;  %4002 = vmatprep.mubr.msk.f32.mxu1 %vm1659_vm0, %v1742_v26  ;;  %v4313_v26 = vpack.c.bf16 %v1972_v50, %v1970_v56  ;;  %v2341_v56 = vld [vmem:[#allocation13 + $0x48] sm:$0xff]  ;;  %v2335_v50 = vld [vmem:[#allocation13 + $0x18] sm:$0xff] }
 0x507   : > { %4276 = vmatprep.subr.bf16.mxu1 %v6499_v22  ;;  %4003 = vmatmul.mubr.msk.f32.gmra.mrb[42].mxu1 %vm1659_vm0, %v1743_v27  ;;  %v1975_v27 = vld [vmem:[#allocation11 + $0x108] sm:$0xff] }
 0x50a   : > { %4278 = vmatpush3.bf16.msra.mxu1 %v6499_v22 }
 0x50b   : > { %4280 = vmatprep.subr.bf16.mxu1 %v6501_v40 }
 0x50e   : > { %4282 = vmatpush3.bf16.msra.mxu1 %v6501_v40  ;;  %v1946_v40 = vld [vmem:[#allocation11 + $0x20] sm:$0xff] }
 0x50f   : > { %4284 = vmatprep.subr.bf16.mxu1 %v4283_v11  ;;  %v4289_v54 = vpack.c.bf16 %v1948_v58, %v1946_v40  ;;  %v4315_v11 = vpack.c.bf16 %v1977_v37, %v1975_v27  ;;  %v1982_v40 = vld [vmem:[#allocation11 + $0x140] sm:$0xff]  ;;  %v1984_v58 = vld [vmem:[#allocation11 + $0x150] sm:$0xff]  ;;  %v2343_v27 = vld [vmem:[#allocation13 + $0x58] sm:$0xff] }
 0x510   : > { %v2332_v37 = vld [vmem:[#allocation13] sm:$0xff] }
 0x511   : > { %v1725_v42 = vpop.xlane.xlu1 %1724 }
 0x512   : > { %5122 = vrcp.f32 %v1725_v42  ;;  %v1722_v2 = vpop.xlane.xlu0 %1721  ;;  %v1974_v42 = vld [vmem:[#allocation11 + $0x100] sm:$0xff] }
 0x513   : > { %5124 = vrcp.f32 %v1722_v2  ;;  %v1976_v2 = vld [vmem:[#allocation11 + $0x110] sm:$0xff] }
 0x514   : > { %v4317_v63 = vpack.c.bf16 %v1976_v2, %v1974_v42  ;;  %v4411_v42 = vpack.c.bf16 %v2343_v27, %v2335_v50  ;;  %v2412_v27 = vld [vmem:[#allocation13 + $0x280] sm:$0xff] }
 0x515   : > { %v1731_v6 = vpop.xlane.xlu1 %1730 }
 0x516   : > { %5126 = vrcp.f32 %v1731_v6  ;;  %v1728_v0 = vpop.xlane.xlu0 %1727  ;;  %v1979_v6 = vld [vmem:[#allocation11 + $0x128] sm:$0xff] }
 0x517   : > { %5128 = vrcp.f32 %v1728_v0  ;;  %v1981_v0 = vld [vmem:[#allocation11 + $0x138] sm:$0xff] }
 0x51c   : > { %v5123_v28 = vpop.eup %5122 }
 0x51d   : > { %v5125_v22 = vpop.eup %5124  ;;  %v1745_v45 = vmul.f32 %v5123_v28, %v5107_v47  ;;  %v1963_v47 = vld [vmem:[#allocation11 + $0xa8] sm:$0xff]  ;;  %v4319_v28 = vpack.c.bf16 %v1981_v0, %v1979_v6  ;;  %v2334_v6 = vld [vmem:[#allocation13 + $0x10] sm:$0xff] }
 0x51e   : > { %v1744_v46 = vmul.f32 %v5125_v22, %v5109_v62  ;;  %v1965_v62 = vld [vmem:[#allocation11 + $0xb8] sm:$0xff]  ;;  %v2342_v0 = vld [vmem:[#allocation13 + $0x50] sm:$0xff] }
 0x51f   : > { %v4303_v17 = vpack.c.bf16 %v1965_v62, %v1963_v47  ;;  %v4339_v62 = vpack.c.bf16 %v2001_v1, %v1999_v16  ;;  %v2382_v16 = vld [vmem:[#allocation13 + $0x190] sm:$0xff] }
 0x520   : > { %v5127_v8 = vpop.eup %5126  ;;  %4021 = vmatprep.mubr.msk.f32.mxu1 %vm1659_vm0, %v1744_v46  ;;  %v1983_v46 = vld [vmem:[#allocation11 + $0x148] sm:$0xff]  ;;  %v2390_v1 = vld [vmem:[#allocation13 + $0x1d0] sm:$0xff] }
 0x521   : > { %v5129_v48 = vpop.eup %5128  ;;  %4022 = vmatmul.mubr.msk.f32.vlgmr.msra.gmra.mrb[44].mxu1 %vm1659_vm0, %v1745_v45  ;;  %v1747_v24 = vmul.f32 %v5127_v8, %v6518_v23  ;;  %v1962_v23 = vld [vmem:[#allocation11 + $0xa0] sm:$0xff]  ;;  %v4321_v45 = vpack.c.bf16 %v1980_v25, %v1978_v61  ;;  %v1987_v8 = vld [vmem:[#allocation11 + $0x168] sm:$0xff]  ;;  %v2351_v61 = vld [vmem:[#allocation13 + $0x98] sm:$0xff] }
 0x522   : > { %v1746_v10 = vmul.f32 %v5129_v48, %v5113_v30  ;;  %4286 = vmatpush1.bf16.msra.mxu1 %v4285_v12  ;;  %v1964_v30 = vld [vmem:[#allocation11 + $0xb0] sm:$0xff]  ;;  %v1985_v12 = vld [vmem:[#allocation11 + $0x158] sm:$0xff] }
 0x523   : > { %4288 = vmatprep.subr.bf16.mxu1 %v4287_v35  ;;  %v4305_v15 = vpack.c.bf16 %v1964_v30, %v1962_v23  ;;  %v4323_v35 = vpack.c.bf16 %v1985_v12, %v1983_v46  ;;  %v2003_v23 = vld [vmem:[#allocation11 + $0x1e8] sm:$0xff]  ;;  %v2005_v30 = vld [vmem:[#allocation11 + $0x1f8] sm:$0xff]  ;;  %v2348_v46 = vld [vmem:[#allocation13 + $0x80] sm:$0xff] }
 0x524   : > { %4024 = vmatprep.mubr.msk.f32.mxu1 %vm1659_vm0, %v1746_v10  ;;  %v4325_v10 = vpack.c.bf16 %v1984_v58, %v1982_v40  ;;  %v4343_v53 = vpack.c.bf16 %v2005_v30, %v2003_v23  ;;  %v2359_v25 = vld [vmem:[#allocation13 + $0xd8] sm:$0xff]  ;;  %v2356_v12 = vld [vmem:[#allocation13 + $0xc0] sm:$0xff]  ;;  %v2358_v40 = vld [vmem:[#allocation13 + $0xd0] sm:$0xff]  ;;  %v4425_v30 = vpack.c.bf16 %v2390_v1, %v2382_v16 }
 0x525   : > { %4025 = vmatmul.mubr.msk.f32.gmra.mrb[46].mxu1 %vm1659_vm0, %v1747_v24  ;;  %v1986_v24 = vld [vmem:[#allocation11 + $0x160] sm:$0xff]  ;;  %v2365_v58 = vld [vmem:[#allocation13 + $0x108] sm:$0xff]  ;;  %v2470_v16 = vld [vmem:[#allocation13 + $0x450] sm:$0xff] }
 0x526   : > { %4290 = vmatpush1.bf16.msra.mxu1 %v4289_v54  ;;  %2070 = vmatprep.mubr.f32.mxu1 %v5530_v3  ;;  %v4327_v54 = vpack.c.bf16 %v1989_v9, %v1987_v8  ;;  %v2373_v8 = vld [vmem:[#allocation13 + $0x148] sm:$0xff] }
 0x527   : > { %4292 = vmatprep.subr.bf16.mxu1 %v4291_v36  ;;  %v1988_v36 = vld [vmem:[#allocation11 + $0x170] sm:$0xff]  ;;  %v2477_v1 = vld [vmem:[#allocation13 + $0x488] sm:$0xff] }
 0x528   : > { %v4329_v57 = vpack.c.bf16 %v1988_v36, %v1986_v24  ;;  %v2372_v36 = vld [vmem:[#allocation13 + $0x140] sm:$0xff] }
 0x52a   : > { %4294 = vmatpush1.bf16.msra.mxu1 %v4293_v29  ;;  %v1990_v29 = vld [vmem:[#allocation11 + $0x180] sm:$0xff] }
 0x52b   : > { %4296 = vmatprep.subr.bf16.mxu1 %v4295_v51  ;;  %v1992_v51 = vld [vmem:[#allocation11 + $0x190] sm:$0xff] }
 0x52c   : > { %v4333_v60 = vpack.c.bf16 %v1992_v51, %v1990_v29  ;;  %v2389_v29 = vld [vmem:[#allocation13 + $0x1c8] sm:$0xff]  ;;  %v2383_v51 = vld [vmem:[#allocation13 + $0x198] sm:$0xff] }
 0x52e   : > { %4298 = vmatpush1.bf16.msra.mxu1 %v4297_v13  ;;  %v1994_v13 = vld [vmem:[#allocation11 + $0x1a0] sm:$0xff] }
 0x52f   : > { %4300 = vmatprep.subr.bf16.mxu1 %v4299_v55  ;;  %v1996_v55 = vld [vmem:[#allocation11 + $0x1b0] sm:$0xff] }
 0x530   : > { %v4337_v47 = vpack.c.bf16 %v1996_v55, %v1994_v13  ;;  %v2388_v13 = vld [vmem:[#allocation13 + $0x1c0] sm:$0xff] }
 0x532   : > { %4302 = vmatpush1.bf16.msra.mxu1 %v4301_v4  ;;  %v1998_v4 = vld [vmem:[#allocation11 + $0x1c0] sm:$0xff] }
 0x533   : > { %4304 = vmatprep.subr.bf16.mxu1 %v4303_v17  ;;  %v2000_v17 = vld [vmem:[#allocation11 + $0x1d0] sm:$0xff] }
 0x534   : > { %v4341_v19 = vpack.c.bf16 %v2000_v17, %v1998_v4  ;;  %v2399_v4 = vld [vmem:[#allocation13 + $0x218] sm:$0xff] }
 0x535   : > { %v2407_v17 = vld [vmem:[#allocation13 + $0x258] sm:$0xff] }
 0x536   : > { %4306 = vmatpush1.bf16.msra.mxu1 %v4305_v15  ;;  %v2002_v15 = vld [vmem:[#allocation11 + $0x1e0] sm:$0xff] }
 0x537   : > { %4308 = vmatprep.subr.bf16.mxu1 %v4307_v5  ;;  %v2004_v5 = vld [vmem:[#allocation11 + $0x1f0] sm:$0xff] }
 0x538   : > { %v4345_v7 = vpack.c.bf16 %v2004_v5, %v2002_v15  ;;  %v2404_v15 = vld [vmem:[#allocation13 + $0x240] sm:$0xff]  ;;  %v2398_v5 = vld [vmem:[#allocation13 + $0x210] sm:$0xff] }
 0x53a   : > { %4310 = vmatpush1.bf16.msra.mxu1 %v4309_v49 }
 0x53b   : > { %4312 = vmatprep.subr.bf16.mxu1 %v4311_v41  ;;  %v2333_v41 = vld [vmem:[#allocation13 + $0x8] sm:$0xff] }
 0x53e   : > { %4314 = vmatpush1.bf16.msra.mxu1 %v4313_v26  ;;  %v4347_v26 = vpack.c.bf16 %v2341_v56, %v2333_v41  ;;  %v2423_v41 = vld [vmem:[#allocation13 + $0x2d8] sm:$0xff] }
 0x53f   : > { %4316 = vmatprep.subr.bf16.mxu1 %v4315_v11  ;;  %v2340_v11 = vld [vmem:[#allocation13 + $0x40] sm:$0xff] }
 0x540   : > { %v4349_v2 = vpack.c.bf16 %v2340_v11, %v2332_v37  ;;  %4348 = vmatprep.subr.bf16.mxu0 %v4347_v26  ;;  %v2420_v37 = vld [vmem:[#allocation13 + $0x2c0] sm:$0xff]  ;;  %v2414_v11 = vld [vmem:[#allocation13 + $0x290] sm:$0xff] }
 0x542   : > { %4350 = vmatpush1.bf16.msra.mxu0 %v4349_v2  ;;  %v2422_v2 = vld [vmem:[#allocation13 + $0x2d0] sm:$0xff] }
 0x5d4   : > { %v4001_v39 = vpop.f32.mrb[40].mxu1 }
 0x5d5   : > { %v1826_v22 = vpop.f32.mrb[41].mxu1 }
 0x5d6   : > { %2071 = vmatmul.mubr.f32.vlgmr.msra.gmra.mrb[48].mxu1 %v1826_v22  ;;  %v4415_v22 = vpack.c.bf16 %v2359_v25, %v2351_v61  ;;  %v4433_v61 = vpack.c.bf16 %v2422_v2, %v2414_v11 }
 0x5d7   : > { %4318 = vmatpush1.bf16.msra.mxu1 %v4317_v63  ;;  %2076 = vmatprep.mubr.f32.mxu1 %v5530_v3  ;;  %v2349_v63 = vld [vmem:[#allocation13 + $0x88] sm:$0xff] }
 0x5d8   : > { %4320 = vmatprep.subr.bf16.mxu1 %v4319_v28  ;;  %v2357_v28 = vld [vmem:[#allocation13 + $0xc8] sm:$0xff] }
 0x5da   : > { %v4004_v21 = vpop.f32.mrb[42].mxu1  ;;  %2077 = vmatmul.mubr.f32.gmra.mrb[50].mxu1 %v4001_v39  ;;  %v4413_v39 = vpack.c.bf16 %v2342_v0, %v2334_v6  ;;  %v2429_v6 = vld [vmem:[#allocation13 + $0x308] sm:$0xff] }
 0x5db   : > { %v1836_v48 = vpop.f32.mrb[43].mxu1  ;;  %4322 = vmatpush1.bf16.msra.mxu1 %v4321_v45  ;;  %2082 = vmatprep.mubr.f32.mxu1 %v5530_v3  ;;  %v2350_v45 = vld [vmem:[#allocation13 + $0x90] sm:$0xff]  ;;  %v2437_v0 = vld [vmem:[#allocation13 + $0x348] sm:$0xff] }
 0x5dc   : > { %4324 = vmatprep.subr.bf16.mxu1 %v4323_v35  ;;  %v4353_v35 = vpack.c.bf16 %v2356_v12, %v2348_v46  ;;  %v4417_v9 = vpack.c.bf16 %v2358_v40, %v2350_v45  ;;  %v4371_v25 = vpack.c.bf16 %v2437_v0, %v2429_v6  ;;  %v2430_v46 = vld [vmem:[#allocation13 + $0x310] sm:$0xff]  ;;  %v2453_v40 = vld [vmem:[#allocation13 + $0x3c8] sm:$0xff] }
 0x5dd   : > { %v2438_v45 = vld [vmem:[#allocation13 + $0x350] sm:$0xff] }
 0x5de   : > { %2083 = vmatmul.mubr.f32.gmra.mrb[52].mxu1 %v1836_v48  ;;  %v2367_v48 = vld [vmem:[#allocation13 + $0x118] sm:$0xff] }
 0x5df   : > { %4326 = vmatpush1.bf16.msra.mxu1 %v4325_v10  ;;  %2088 = vmatprep.mubr.f32.mxu1 %v5530_v3  ;;  %v2375_v10 = vld [vmem:[#allocation13 + $0x158] sm:$0xff] }
 0x5e0   : > { %4328 = vmatprep.subr.bf16.mxu1 %v4327_v54  ;;  %v2364_v54 = vld [vmem:[#allocation13 + $0x100] sm:$0xff]  ;;  %v4419_v24 = vpack.c.bf16 %v2375_v10, %v2367_v48 }
 0x5e1   : > { %v2444_v10 = vld [vmem:[#allocation13 + $0x380] sm:$0xff] }
 0x5e2   : > { %2089 = vmatmul.mubr.f32.gmra.mrb[54].mxu1 %v4004_v21  ;;  %v4355_v21 = vpack.c.bf16 %v2373_v8, %v2365_v58  ;;  %v2447_v58 = vld [vmem:[#allocation13 + $0x398] sm:$0xff] }
 0x5e3   : > { %4330 = vmatpush1.bf16.msra.mxu1 %v4329_v57  ;;  %2159 = vmatprep.mubr.f32.mxu1 %v5530_v3  ;;  %v4357_v57 = vpack.c.bf16 %v2372_v36, %v2364_v54  ;;  %v2455_v8 = vld [vmem:[#allocation13 + $0x3d8] sm:$0xff]  ;;  %v2452_v54 = vld [vmem:[#allocation13 + $0x3c0] sm:$0xff] }
 0x5e4   : > { %4332 = vmatprep.subr.bf16.mxu1 %v4331_v52  ;;  %v2381_v52 = vld [vmem:[#allocation13 + $0x188] sm:$0xff]  ;;  %v4439_v36 = vpack.c.bf16 %v2455_v8, %v2447_v58 }
 0x5e5   : > { %v4359_v18 = vpack.c.bf16 %v2389_v29, %v2381_v52  ;;  %v2463_v52 = vld [vmem:[#allocation13 + $0x418] sm:$0xff] }
 0x5e6   : > { %v2471_v29 = vld [vmem:[#allocation13 + $0x458] sm:$0xff] }
 0x5e7   : > { %4334 = vmatpush1.bf16.msra.mxu1 %v4333_v60  ;;  %v2391_v60 = vld [vmem:[#allocation13 + $0x1d8] sm:$0xff] }
 0x5e8   : > { %4336 = vmatprep.subr.bf16.mxu1 %v4335_v59  ;;  %v2380_v59 = vld [vmem:[#allocation13 + $0x180] sm:$0xff]  ;;  %v4423_v55 = vpack.c.bf16 %v2391_v60, %v2383_v51  ;;  %v4377_v51 = vpack.c.bf16 %v2452_v54, %v2444_v10 }
 0x5e9   : > { %v4361_v23 = vpack.c.bf16 %v2388_v13, %v2380_v59  ;;  %v2460_v60 = vld [vmem:[#allocation13 + $0x400] sm:$0xff]  ;;  %v2462_v13 = vld [vmem:[#allocation13 + $0x410] sm:$0xff] }
 0x5ea   : > { %v2468_v59 = vld [vmem:[#allocation13 + $0x440] sm:$0xff] }
 0x5eb   : > { %4338 = vmatpush1.bf16.msra.mxu1 %v4337_v47  ;;  %v2397_v47 = vld [vmem:[#allocation13 + $0x208] sm:$0xff]  ;;  %v5142_v10 = vld [vmem:[%s6003_s11 + $0x20] sm:$0xff] }
 0x5ec   : > { %4340 = vmatprep.subr.bf16.mxu1 %v4339_v62  ;;  %v2405_v62 = vld [vmem:[#allocation13 + $0x248] sm:$0xff] }
 0x5ef   : > { %4342 = vmatpush1.bf16.msra.mxu1 %v4341_v19  ;;  %v4363_v19 = vpack.c.bf16 %v2405_v62, %v2397_v47  ;;  %v2485_v47 = vld [vmem:[#allocation13 + $0x4c8] sm:$0xff]  ;;  %v2479_v62 = vld [vmem:[#allocation13 + $0x498] sm:$0xff] }
 0x5f0   : > { %4344 = vmatprep.subr.bf16.mxu1 %v4343_v53  ;;  %v2396_v53 = vld [vmem:[#allocation13 + $0x200] sm:$0xff] }
 0x5f1   : > { %v4365_v56 = vpack.c.bf16 %v2404_v15, %v2396_v53  ;;  %v2484_v53 = vld [vmem:[#allocation13 + $0x4c0] sm:$0xff] }
 0x5f3   : > { %4346 = vmatpush1.bf16.msra.mxu1 %v4345_v7  ;;  %v4427_v7 = vpack.c.bf16 %v2407_v17, %v2399_v4  ;;  %v2487_v4 = vld [vmem:[#allocation13 + $0x4d8] sm:$0xff]  ;;  %v4381_v17 = vpack.c.bf16 %v2468_v59, %v2460_v60  ;;  %v5144_v60 = vld [vmem:[%s6003_s11 + $0x30] sm:$0xff] }
 0x5f4   : > { %v4023_v44 = vpop.f32.mrb[44].mxu1  ;;  %4412 = vmatprep.subr.bf16.mxu1 %v4411_v42  ;;  %v4447_v15 = vpack.c.bf16 %v2487_v4, %v2479_v62 }
 0x5f5   : > { %v1923_v38 = vpop.f32.mrb[45].mxu1 }
 0x5f6   : > { %2160 = vmatmul.mubr.f32.vlgmr.msra.gmra.mrb[48].mxu1 %v1923_v38  ;;  %v2413_v38 = vld [vmem:[#allocation13 + $0x288] sm:$0xff] }
 0x5f7   : > { %2165 = vmatprep.mubr.f32.mxu1 %v5530_v3  ;;  %4414 = vmatpush1.bf16.msra.mxu1 %v4413_v39  ;;  %v2439_v39 = vld [vmem:[#allocation13 + $0x358] sm:$0xff] }
 0x5f8   : > { %v4026_v14 = vpop.f32.mrb[46].mxu1  ;;  %4416 = vmatprep.subr.bf16.mxu1 %v4415_v22  ;;  %v2436_v22 = vld [vmem:[#allocation13 + $0x340] sm:$0xff] }
 0x5f9   : > { %v1933_v49 = vpop.f32.mrb[47].mxu1 }
 0x5fa   : > { %2166 = vmatmul.mubr.f32.gmra.mrb[50].mxu1 %v4023_v44  ;;  %v2406_v44 = vld [vmem:[#allocation13 + $0x250] sm:$0xff] }
 0x5fb   : > { %2171 = vmatprep.mubr.f32.mxu1 %v5530_v3  ;;  %4418 = vmatpush1.bf16.msra.mxu1 %v4417_v9  ;;  %v4429_v50 = vpack.c.bf16 %v2406_v44, %v2398_v5  ;;  %v2478_v5 = vld [vmem:[#allocation13 + $0x490] sm:$0xff] }
 0x5fc   : > { %4420 = vmatprep.subr.bf16.mxu1 %v4419_v24  ;;  %v2446_v24 = vld [vmem:[#allocation13 + $0x390] sm:$0xff] }
 0x5fe   : > { %2172 = vmatmul.mubr.f32.gmra.mrb[52].mxu1 %v1933_v49  ;;  %v2415_v49 = vld [vmem:[#allocation13 + $0x298] sm:$0xff] }
 0x5ff   : > { %2177 = vmatprep.mubr.f32.mxu1 %v5530_v3  ;;  %v4351_v3 = vpack.c.bf16 %v2357_v28, %v2349_v63  ;;  %4422 = vmatpush1.bf16.msra.mxu1 %v4421_v43  ;;  %v4431_v42 = vpack.c.bf16 %v2423_v41, %v2415_v49  ;;  %v2431_v63 = vld [vmem:[#allocation13 + $0x318] sm:$0xff]  ;;  %v4369_v28 = vpack.c.bf16 %v2420_v37, %v2412_v27  ;;  %v5138_v37 = vld [vmem:[%s6003_s11] sm:$0xff] }
 0x600   : > { %4424 = vmatprep.subr.bf16.mxu1 %v4423_v55  ;;  %v4435_v12 = vpack.c.bf16 %v2439_v39, %v2431_v63  ;;  %v4441_v43 = vpack.c.bf16 %v2454_v33, %v2446_v24  ;;  %v4443_v55 = vpack.c.bf16 %v2471_v29, %v2463_v52  ;;  %v5143_v24 = vld [vmem:[%s6003_s11 + $0x28] sm:$0xff] }
 0x601   : > { %4352 = vmatprep.subr.bf16.mxu0 %v4351_v3  ;;  %v2428_v3 = vld [vmem:[#allocation13 + $0x300] sm:$0xff] }
 0x602   : > { %2178 = vmatmul.mubr.f32.gmra.mrb[54].mxu1 %v4026_v14  ;;  %4354 = vmatpush1.bf16.msra.mxu0 %v4353_v35  ;;  %v2421_v14 = vld [vmem:[#allocation13 + $0x2c8] sm:$0xff]  ;;  %v4373_v9 = vpack.c.bf16 %v2436_v22, %v2428_v3  ;;  %v5140_v3 = vld [vmem:[%s6003_s11 + $0x10] sm:$0xff] }
 0x603   : > { %4356 = vmatprep.subr.bf16.mxu0 %v4355_v21  ;;  %4426 = vmatpush1.bf16.msra.mxu1 %v4425_v30  ;;  %v4367_v26 = vpack.c.bf16 %v2421_v14, %v2413_v38  ;;  %v2445_v35 = vld [vmem:[#allocation13 + $0x388] sm:$0xff]  ;;  %v4437_v21 = vpack.c.bf16 %v2438_v45, %v2430_v46  ;;  %v4383_v30 = vpack.c.bf16 %v2485_v47, %v2477_v1  ;;  %v2192_v14 = vld [vmem:[%s7006_s19] sm:$0x3]  ;;  %v5141_v46 = vld [vmem:[%s6003_s11 + $0x18] sm:$0xff]  ;;  %s6822_s19 = scalar_lea.vmem [#allocation16], %s3864_s6 }
 0x604   : > { %4428 = vmatprep.subr.bf16.mxu1 %v4427_v7  ;;  %v4375_v48 = vpack.c.bf16 %v2453_v40, %v2445_v35  ;;  %v2486_v7 = vld [vmem:[#allocation13 + $0x4d0] sm:$0xff]  ;;  %v2197_v49 = vrot.slane %v2192_v14, %v6194_v31  ;;  %v2201_v41 = vrot.slane %v2192_v14, %v6197_v32 }
 0x605   : > { %v4449_v38 = vpack.c.bf16 %v2486_v7, %v2478_v5  ;;  %v2500_v5 = vld [vmem:[#allocation13 + $0x540] sm:$0xff]  ;;  %v2502_v14 = vld [vmem:[#allocation13 + $0x550] sm:$0xff] }
 0x606   : > { %4358 = vmatpush1.bf16.msra.mxu0 %v4357_v57  ;;  %v2469_v57 = vld [vmem:[#allocation13 + $0x448] sm:$0xff] }
 0x607   : > { %4360 = vmatprep.subr.bf16.mxu0 %v4359_v18  ;;  %4430 = vmatpush1.bf16.msra.mxu1 %v4429_v50  ;;  %v4379_v18 = vpack.c.bf16 %v2469_v57, %v2461_v34 }
 0x608   : > { %4432 = vmatprep.subr.bf16.mxu1 %v4431_v42  ;;  %v5139_v42 = vld [vmem:[%s6003_s11 + $0x8] sm:$0xff] }
 0x60a   : > { %4362 = vmatpush1.bf16.msra.mxu0 %v4361_v23  ;;  %v4445_v23 = vpack.c.bf16 %v2470_v16, %v2462_v13  ;;  %v5145_v13 = vld [vmem:[%s6003_s11 + $0x38] sm:$0xff]  ;;  %s3890_s11 = sshll.u32 %s7011_s0, 3 }
 0x60b   : > { %4364 = vmatprep.subr.bf16.mxu0 %v4363_v19  ;;  %4434 = vmatpush1.bf16.msra.mxu1 %v4433_v61  ;;  %v2476_v19 = vld [vmem:[#allocation13 + $0x480] sm:$0xff]  ;;  %s3672_s6 = sadd.s32 %s3890_s11, %s3884_s5 }
 0x60c   : > { %4436 = vmatprep.subr.bf16.mxu1 %v4435_v12  ;;  %v4385_v44 = vpack.c.bf16 %v2484_v53, %v2476_v19  ;;  %v2503_v53 = vld [vmem:[#allocation13 + $0x558] sm:$0xff]  ;;  %s3885_s3 = sshll.u32 %s3672_s6, 7 }
 0x60d   : > { %s6843_s16 = scalar_lea.hbm %s7013_s29, %s3885_s3 }
 0x60e   : > { %4366 = vmatpush1.bf16.msra.mxu0 %v4365_v56 }
 0x60f   : > { %4368 = vmatprep.subr.bf16.mxu0 %v4367_v26  ;;  %4438 = vmatpush1.bf16.msra.mxu1 %v4437_v21 }
 0x610   : > { %4440 = vmatprep.subr.bf16.mxu1 %v4439_v36 }
 0x612   : > { %4370 = vmatpush1.bf16.msra.mxu0 %v4369_v28 }
 0x613   : > { %4372 = vmatprep.subr.bf16.mxu0 %v4371_v25  ;;  %4442 = vmatpush1.bf16.msra.mxu1 %v4441_v43 }
 0x614   : > { %4444 = vmatprep.subr.bf16.mxu1 %v4443_v55 }
 0x616   : > { %4374 = vmatpush1.bf16.msra.mxu0 %v4373_v9 }
 0x617   : > { %4376 = vmatprep.subr.bf16.mxu0 %v4375_v48  ;;  %4446 = vmatpush1.bf16.msra.mxu1 %v4445_v23  ;;  %v2501_v23 = vld [vmem:[#allocation13 + $0x548] sm:$0xff] }
 0x618   : > { %4448 = vmatprep.subr.bf16.mxu1 %v4447_v15  ;;  %v2492_v15 = vld [vmem:[#allocation13 + $0x500] sm:$0xff] }
 0x61a   : > { %4378 = vmatpush1.bf16.msra.mxu0 %v4377_v51 }
 0x61b   : > { %4380 = vmatprep.subr.bf16.mxu0 %v4379_v18  ;;  %4450 = vmatpush1.bf16.msra.mxu1 %v4449_v38  ;;  %v2494_v38 = vld [vmem:[#allocation13 + $0x510] sm:$0xff] }
 0x61e   : > { %4382 = vmatpush1.bf16.msra.mxu0 %v4381_v17  ;;  %v2493_v17 = vld [vmem:[#allocation13 + $0x508] sm:$0xff] }
 0x61f   : > { %4384 = vmatprep.subr.bf16.mxu0 %v4383_v30  ;;  %v2495_v30 = vld [vmem:[#allocation13 + $0x518] sm:$0xff]  ;;  %v4387_v19 = vpack.c.bf16 %v2501_v23, %v2493_v17  ;;  %v2556_v17 = vld [vmem:[#allocation13 + $0x700] sm:$0xff] }
 0x620   : > { %v4451_v7 = vpack.c.bf16 %v2503_v53, %v2495_v30  ;;  %v2564_v23 = vld [vmem:[#allocation13 + $0x740] sm:$0xff]  ;;  %v2558_v53 = vld [vmem:[#allocation13 + $0x710] sm:$0xff] }
 0x622   : > { %4386 = vmatpush1.bf16.msra.mxu0 %v4385_v44  ;;  %v4389_v44 = vpack.c.bf16 %v2500_v5, %v2492_v15  ;;  %4452 = vmatprep.subr.bf16.mxu1 %v4451_v7  ;;  %v2566_v15 = vld [vmem:[#allocation13 + $0x750] sm:$0xff]  ;;  %v2573_v7 = vld [vmem:[#allocation13 + $0x788] sm:$0xff] }
 0x623   : > { %4388 = vmatprep.subr.bf16.mxu0 %v4387_v19  ;;  %v4405_v19 = vpack.c.bf16 %v2564_v23, %v2556_v17  ;;  %v4469_v5 = vpack.c.bf16 %v2566_v15, %v2558_v53 }
 0x626   : > { %4390 = vmatpush1.bf16.msra.mxu0 %v4389_v44  ;;  %v2581_v44 = vld [vmem:[#allocation13 + $0x7c8] sm:$0xff] }
 0x6c9   : > { %v2161_v56 = vpop.f32.mrb[48].mxu1 }
 0x6ca   : > { %v2204_v50 = vadd.f32 %v2197_v49, %v2161_v56  ;;  %v2163_v26 = vpop.f32.mrb[49].mxu1  ;;  %v2517_v56 = vld [vmem:[#allocation13 + $0x5c8] sm:$0xff] }
 0x6cb   : > { %v2205_v27 = vadd.f32 %v2201_v41, %v2163_v26 }
 0x6cc   : > { %v6553_v11 = vadd.f32 %v5138_v37, %v2204_v50  ;;  %v2511_v50 = vld [vmem:[#allocation13 + $0x598] sm:$0xff]  ;;  %v2508_v37 = vld [vmem:[#allocation13 + $0x580] sm:$0xff] }
 0x6cd   : > { %v6556_v2 = vadd.f32 %v5139_v42, %v2205_v27  ;;  %v2167_v6 = vpop.f32.mrb[50].mxu1  ;;  %v2519_v27 = vld [vmem:[#allocation13 + $0x5d8] sm:$0xff]  ;;  %v2516_v42 = vld [vmem:[#allocation13 + $0x5c0] sm:$0xff] }
 0x6ce   : > { %v2206_v0 = vadd.f32 %v2197_v49, %v2167_v6  ;;  %v2169_v63 = vpop.f32.mrb[51].mxu1  ;;  %v2238_v39 = vmul.f32 %v6553_v11, %v6553_v11  ;;  %v4455_v6 = vpack.c.bf16 %v2519_v27, %v2511_v50  ;;  %v2574_v27 = vld [vmem:[#allocation13 + $0x790] sm:$0xff] }
 0x6cf   : > { %v2207_v28 = vadd.f32 %v2201_v41, %v2169_v63  ;;  %v2222_v61 = vadd.f32 %v6556_v2, %v6553_v11  ;;  %v2239_v25 = vmul.f32 %v6556_v2, %v6556_v2  ;;  %v2510_v63 = vld [vmem:[#allocation13 + $0x590] sm:$0xff] }
 0x6d0   : > { %v6565_v22 = vadd.f32 %v5140_v3, %v2206_v0  ;;  %v4393_v0 = vpack.c.bf16 %v2516_v42, %v2508_v37  ;;  %v2527_v3 = vld [vmem:[#allocation13 + $0x618] sm:$0xff]  ;;  %v2582_v37 = vld [vmem:[#allocation13 + $0x7d0] sm:$0xff] }
 0x6d1   : > { %v6568_v12 = vadd.f32 %v5141_v46, %v2207_v28  ;;  %2223 = vadd.xlane.f32.xlu0 %v2222_v61  ;;  %v2173_v45 = vpop.f32.mrb[52].mxu1  ;;  %v2246_v35 = vadd.f32 %v2239_v25, %v2238_v39  ;;  %v2518_v39 = vld [vmem:[#allocation13 + $0x5d0] sm:$0xff]  ;;  %v2525_v61 = vld [vmem:[#allocation13 + $0x608] sm:$0xff]  ;;  %v4473_v42 = vpack.c.bf16 %v2582_v37, %v2574_v27 }
 0x6d2   : > { %v2208_v40 = vadd.f32 %v2197_v49, %v2173_v45  ;;  %v2175_v58 = vpop.f32.mrb[53].mxu1  ;;  %v2240_v8 = vmul.f32 %v6565_v22, %v6565_v22  ;;  %v4457_v28 = vpack.c.bf16 %v2518_v39, %v2510_v63  ;;  %v2533_v25 = vld [vmem:[#allocation13 + $0x648] sm:$0xff]  ;;  %v2535_v45 = vld [vmem:[#allocation13 + $0x658] sm:$0xff] }
 0x6d3   : > { %v2209_v9 = vadd.f32 %v2201_v41, %v2175_v58  ;;  %2247 = vadd.xlane.f32.xlu1 %v2246_v35  ;;  %v2225_v21 = vadd.f32 %v6568_v12, %v6565_v22  ;;  %v2241_v48 = vmul.f32 %v6568_v12, %v6568_v12  ;;  %v4395_v46 = vpack.c.bf16 %v2533_v25, %v2525_v61  ;;  %v2524_v35 = vld [vmem:[#allocation13 + $0x600] sm:$0xff]  ;;  %v2339_v63 = vld [vmem:[#allocation13 + $0x38] sm:$0xff] }
 0x6d4   : > { %v6577_v54 = vadd.f32 %v5142_v10, %v2208_v40  ;;  %v2532_v40 = vld [vmem:[#allocation13 + $0x640] sm:$0xff]  ;;  %v4459_v58 = vpack.c.bf16 %v2535_v45, %v2527_v3  ;;  %v2541_v10 = vld [vmem:[#allocation13 + $0x688] sm:$0xff] }
 0x6d5   : > { %v6580_v36 = vadd.f32 %v5143_v24, %v2209_v9  ;;  %2226 = vadd.xlane.f32.xlu0 %v2225_v21  ;;  %v2179_v33 = vpop.f32.mrb[54].mxu1  ;;  %v2249_v34 = vadd.f32 %v2241_v48, %v2240_v8  ;;  %v4397_v8 = vpack.c.bf16 %v2532_v40, %v2524_v35  ;;  %v2526_v9 = vld [vmem:[#allocation13 + $0x610] sm:$0xff]  ;;  %v2549_v24 = vld [vmem:[#allocation13 + $0x6c8] sm:$0xff] }
 0x6d6   : > { %v2210_v57 = vadd.f32 %v2197_v49, %v2179_v33  ;;  %v2181_v52 = vpop.f32.mrb[55].mxu1  ;;  %v2242_v29 = vmul.f32 %v6577_v54, %v6577_v54  ;;  %v4453_v49 = vpack.c.bf16 %v2502_v14, %v2494_v38  ;;  %v2534_v21 = vld [vmem:[#allocation13 + $0x650] sm:$0xff]  ;;  %v2543_v33 = vld [vmem:[#allocation13 + $0x698] sm:$0xff]  ;;  %v4407_v14 = vpack.c.bf16 %v2581_v44, %v2573_v7 }
 0x6d7   : > { %v2211_v51 = vadd.f32 %v2201_v41, %v2181_v52  ;;  %2250 = vadd.xlane.f32.xlu1 %v2249_v34  ;;  %v2228_v43 = vadd.f32 %v6580_v36, %v6577_v54  ;;  %v2243_v18 = vmul.f32 %v6580_v36, %v6580_v36  ;;  %v2509_v41 = vld [vmem:[#allocation13 + $0x588] sm:$0xff]  ;;  %v4461_v48 = vpack.c.bf16 %v2534_v21, %v2526_v9  ;;  %v2540_v52 = vld [vmem:[#allocation13 + $0x680] sm:$0xff]  ;;  %v2575_v38 = vld [vmem:[#allocation13 + $0x798] sm:$0xff] }
 0x6d8   : > { %v6589_v59 = vadd.f32 %v5144_v60, %v2210_v57  ;;  %4454 = vmatpush1.bf16.msra.mxu1 %v4453_v49  ;;  %v4391_v26 = vpack.c.bf16 %v2517_v56, %v2509_v41  ;;  %v4399_v34 = vpack.c.bf16 %v2549_v24, %v2541_v10  ;;  %v2551_v57 = vld [vmem:[#allocation13 + $0x6d8] sm:$0xff]  ;;  %v2550_v60 = vld [vmem:[#allocation13 + $0x6d0] sm:$0xff]  ;;  %v2572_v41 = vld [vmem:[#allocation13 + $0x780] sm:$0xff] }
 0x6d9   : > { %v6592_v55 = vadd.f32 %v5145_v13, %v2211_v51  ;;  %2229 = vadd.xlane.f32.xlu0 %v2228_v43  ;;  %v2252_v16 = vadd.f32 %v2243_v18, %v2242_v29  ;;  %4456 = vmatprep.subr.bf16.mxu1 %v4455_v6  ;;  %v2548_v29 = vld [vmem:[#allocation13 + $0x6c0] sm:$0xff]  ;;  %v4463_v51 = vpack.c.bf16 %v2551_v57, %v2543_v33  ;;  %v2542_v18 = vld [vmem:[#allocation13 + $0x690] sm:$0xff]  ;;  %v2583_v49 = vld [vmem:[#allocation13 + $0x7d8] sm:$0xff] }
 0x6da   : > { %v2244_v1 = vmul.f32 %v6589_v59, %v6589_v59  ;;  %4392 = vmatprep.subr.bf16.mxu0 %v4391_v26  ;;  %v4401_v43 = vpack.c.bf16 %v2548_v29, %v2540_v52  ;;  %v4465_v13 = vpack.c.bf16 %v2550_v60, %v2542_v18  ;;  %v2580_v56 = vld [vmem:[#allocation13 + $0x7c0] sm:$0xff]  ;;  %v4471_v50 = vpack.c.bf16 %v2583_v49, %v2575_v38  ;;  %v2337_v6 = vld [vmem:[#allocation13 + $0x28] sm:$0xff] }
 0x6db   : > { %2253 = vadd.xlane.f32.xlu1 %v2252_v16  ;;  %v2231_v47 = vadd.f32 %v6592_v55, %v6589_v59  ;;  %v2245_v62 = vmul.f32 %v6592_v55, %v6592_v55  ;;  %4394 = vmatpush1.bf16.msra.mxu0 %v4393_v0  ;;  %v2557_v16 = vld [vmem:[#allocation13 + $0x708] sm:$0xff]  ;;  %v4409_v26 = vpack.c.bf16 %v2580_v56, %v2572_v41  ;;  %v2336_v49 = vld [vmem:[#allocation13 + $0x20] sm:$0xff]  ;;  %v2338_v56 = vld [vmem:[#allocation13 + $0x30] sm:$0xff] }
 0x6dc   : > { %4458 = vmatpush1.bf16.msra.mxu1 %v4457_v28  ;;  %4396 = vmatprep.subr.bf16.mxu0 %v4395_v46  ;;  %v2345_v0 = vld [vmem:[#allocation13 + $0x68] sm:$0xff]  ;;  %v2347_v28 = vld [vmem:[#allocation13 + $0x78] sm:$0xff]  ;;  %v2344_v41 = vld [vmem:[#allocation13 + $0x60] sm:$0xff] }
 0x6dd   : > { %2232 = vadd.xlane.f32.xlu0 %v2231_v47  ;;  %v2255_v4 = vadd.f32 %v2245_v62, %v2244_v1  ;;  %4460 = vmatprep.subr.bf16.mxu1 %v4459_v58  ;;  %v2565_v1 = vld [vmem:[#allocation13 + $0x748] sm:$0xff]  ;;  %v2559_v47 = vld [vmem:[#allocation13 + $0x718] sm:$0xff]  ;;  %v4475_v39 = vpack.c.bf16 %v2345_v0, %v2337_v6  ;;  %v4539_v61 = vpack.c.bf16 %v2347_v28, %v2339_v63 }
 0x6de   : > { %v4403_v62 = vpack.c.bf16 %v2565_v1, %v2557_v16  ;;  %v2220_v16 = vld [vmem:[%s7007_s1] sm:$0x3]  ;;  %v2355_v6 = vld [vmem:[#allocation13 + $0xb8] sm:$0xff]  ;;  %s3675_s1 = sshll.u32 %s6822_s19, 4  ;;  %s6836_s1 = int_to_ptr.vmem [resolvable:$true] %s3675_s1 }
 0x6df   : > { %2256 = vadd.xlane.f32.xlu1 %v2255_v4  ;;  %4398 = vmatpush1.bf16.msra.mxu0 %v4397_v8  ;;  %v2567_v4 = vld [vmem:[#allocation13 + $0x758] sm:$0xff]  ;;  %v6615_v17 = vrot.slane %v2220_v16, %v6194_v31  ;;  %v6620_v53 = vrot.slane %v2220_v16, %v6197_v32  ;;  %s5374_s14 = scalar_lea.vmem %s6836_s1, 1024 }
 0x6e0   : > { %4462 = vmatpush1.bf16.msra.mxu1 %v4461_v48  ;;  %4400 = vmatprep.subr.bf16.mxu0 %v4399_v34  ;;  %v4467_v30 = vpack.c.bf16 %v2567_v4, %v2559_v47  ;;  %v2221_v4 = vld [vmem:[%s7008_s12] sm:$0x3]  ;;  %v2363_v0 = vld [vmem:[#allocation13 + $0xf8] sm:$0xff]  ;;  %p5375_p6 = scmp.ne.s32.totalorder %s6836_s1, %s5374_s14 }
 0x6e1   : > { %4464 = vmatprep.subr.bf16.mxu1 %v4463_v51 }
 0x6e2   : > { %p5376_p4 = pnand %p5375_p6, %p7014_p3 }
 0x6e3   : > { %4402 = vmatpush1.bf16.msra.mxu0 %v4401_v43 }
 0x6e4   : > { %4466 = vmatpush1.bf16.msra.mxu1 %v4465_v13  ;;  %4404 = vmatprep.subr.bf16.mxu0 %v4403_v62  ;;  %p5377_p8 = pneg %p5376_p4 }
 0x6e5   : > { %4468 = vmatprep.subr.bf16.mxu1 %v4467_v30 }
 0x6e7   : > { %4406 = vmatpush1.bf16.msra.mxu0 %v4405_v19 }
 0x6e8   : > { %4470 = vmatpush1.bf16.msra.mxu1 %v4469_v5  ;;  %4408 = vmatprep.subr.bf16.mxu0 %v4407_v14  ;;  %v6623_v5 = vrot.slane %v2221_v4, %v6194_v31  ;;  %v6626_v14 = vrot.slane %v2221_v4, %v6197_v32  ;;  %v2368_v4 = vld [vmem:[#allocation13 + $0x120] sm:$0xff] }
 0x6e9   : > { %4472 = vmatprep.subr.bf16.mxu1 %v4471_v50  ;;  %v2346_v50 = vld [vmem:[#allocation13 + $0x70] sm:$0xff] }
 0x6eb   : > { %4410 = vmatpush1.bf16.msra.mxu0 %v4409_v26  ;;  %v2353_v26 = vld [vmem:[#allocation13 + $0xa8] sm:$0xff] }
 0x6ec   : > { %4474 = vmatpush1.bf16.msra.mxu1 %v4473_v42  ;;  %4476 = vmatprep.subr.bf16.mxu0 %v4475_v39  ;;  %v2361_v42 = vld [vmem:[#allocation13 + $0xe8] sm:$0xff] }
 0x6ed   : > { %4540 = vmatprep.subr.bf16.mxu1 %v4539_v61 }
 0x75e   : > { %v2224_v25 = vpop.xlane.xlu0 %2223 }
 0x75f   : > { %v2234_v3 = vmul.f32 0.00390625, %v2224_v25 }
 0x760   : > { %v2248_v46 = vpop.xlane.xlu1 %2247 }
 0x761   : > { %v2258_v45 = vmul.f32 0.00390625, %v2248_v46  ;;  %v2262_v35 = vmul.f32 %v2234_v3, %v2234_v3  ;;  %v2278_v23 = vsub.f32 %v6553_v11, %v2234_v3  ;;  %v2279_v30 = vsub.f32 %v6556_v2, %v2234_v3 }
 0x762   : > { %v2227_v40 = vpop.xlane.xlu0 %2226  ;;  %v4477_v3 = vpack.c.bf16 %v2344_v41, %v2336_v49  ;;  %v4541_v46 = vpack.c.bf16 %v2346_v50, %v2338_v56  ;;  %v2393_v50 = vld [vmem:[#allocation13 + $0x1e8] sm:$0xff] }
 0x763   : > { %v2266_v58 = vsub.f32 %v2258_v45, %v2262_v35  ;;  %v2235_v8 = vmul.f32 0.00390625, %v2227_v40  ;;  %v4479_v35 = vpack.c.bf16 %v2361_v42, %v2353_v26  ;;  %v4543_v40 = vpack.c.bf16 %v2363_v0, %v2355_v6  ;;  %v2387_v26 = vld [vmem:[#allocation13 + $0x1b8] sm:$0xff] }
 0x764   : > { %v2251_v9 = vpop.xlane.xlu1 %2250 }
 0x765   : > { %v2270_v21 = vadd.f32 1e-05, %v2266_v58  ;;  %v2259_v48 = vmul.f32 0.00390625, %v2251_v9  ;;  %v2263_v10 = vmul.f32 %v2235_v8, %v2235_v8  ;;  %v2280_v63 = vsub.f32 %v6565_v22, %v2235_v8  ;;  %v2352_v9 = vld [vmem:[#allocation13 + $0xa0] sm:$0xff] }
 0x766   : > { %v2230_v24 = vpop.xlane.xlu0 %2229  ;;  %v2281_v39 = vsub.f32 %v6568_v12, %v2235_v8 }
 0x767   : > { %5130 = vrsqrt.f32 %v2270_v21  ;;  %v6600_v33 = vmul.f32 0.00390625, %v2230_v24  ;;  %v2267_v34 = vsub.f32 %v2259_v48, %v2263_v10  ;;  %v2360_v21 = vld [vmem:[#allocation13 + $0xe0] sm:$0xff]  ;;  %v2354_v10 = vld [vmem:[#allocation13 + $0xb0] sm:$0xff] }
 0x768   : > { %v2254_v57 = vpop.xlane.xlu1 %2253  ;;  %v2362_v24 = vld [vmem:[#allocation13 + $0xf0] sm:$0xff] }
 0x769   : > { %v2260_v52 = vmul.f32 0.00390625, %v2254_v57  ;;  %v2264_v29 = vmul.f32 %v6600_v33, %v6600_v33  ;;  %v2271_v51 = vadd.f32 1e-05, %v2267_v34  ;;  %v2282_v48 = vsub.f32 %v6577_v54, %v6600_v33 }
 0x76a   : > { %v2233_v43 = vpop.xlane.xlu0 %2232  ;;  %v2283_v8 = vsub.f32 %v6580_v36, %v6600_v33  ;;  %v4481_v33 = vpack.c.bf16 %v2360_v21, %v2352_v9  ;;  %v2401_v21 = vld [vmem:[#allocation13 + $0x228] sm:$0xff] }
 0x76b   : > { %v2268_v18 = vsub.f32 %v2260_v52, %v2264_v29  ;;  %v6604_v60 = vmul.f32 0.00390625, %v2233_v43  ;;  %5132 = vrsqrt.f32 %v2271_v51  ;;  %v2369_v29 = vld [vmem:[#allocation13 + $0x128] sm:$0xff] }
 0x76c   : > { %v2257_v13 = vpop.xlane.xlu1 %2256  ;;  %v2377_v51 = vld [vmem:[#allocation13 + $0x168] sm:$0xff] }
 0x76d   : > { %v2272_v1 = vadd.f32 1e-05, %v2268_v18  ;;  %v2261_v47 = vmul.f32 0.00390625, %v2257_v13  ;;  %v2265_v62 = vmul.f32 %v6604_v60, %v6604_v60  ;;  %v2371_v18 = vld [vmem:[#allocation13 + $0x138] sm:$0xff]  ;;  %v2284_v49 = vsub.f32 %v6589_v59, %v6604_v60 }
 0x76e   : > { %v2379_v13 = vld [vmem:[#allocation13 + $0x178] sm:$0xff]  ;;  %v2285_v41 = vsub.f32 %v6592_v55, %v6604_v60 }
 0x76f   : > { %5134 = vrsqrt.f32 %v2272_v1  ;;  %v2269_v19 = vsub.f32 %v2261_v47, %v2265_v62  ;;  %v4545_v62 = vpack.c.bf16 %v2362_v24, %v2354_v10  ;;  %v4547_v56 = vpack.c.bf16 %v2379_v13, %v2371_v18  ;;  %v2403_v10 = vld [vmem:[#allocation13 + $0x238] sm:$0xff]  ;;  %v2425_v13 = vld [vmem:[#allocation13 + $0x2e8] sm:$0xff] }
 0x770   : > { %v2411_v24 = vld [vmem:[#allocation13 + $0x278] sm:$0xff] }
 0x771   : > { %v5131_v15 = vpop.eup %5130  ;;  %v2273_v44 = vadd.f32 1e-05, %v2269_v19  ;;  %v4483_v19 = vpack.c.bf16 %v2377_v51, %v2369_v29  ;;  %v2402_v29 = vld [vmem:[#allocation13 + $0x230] sm:$0xff]  ;;  %v4555_v18 = vpack.c.bf16 %v2411_v24, %v2403_v10  ;;  %v2473_v10 = vld [vmem:[#allocation13 + $0x468] sm:$0xff]  ;;  %v2467_v24 = vld [vmem:[#allocation13 + $0x438] sm:$0xff] }
 0x772   : > { %v2286_v7 = vmul.f32 %v5131_v15, %v2278_v23  ;;  %v2287_v38 = vmul.f32 %v5131_v15, %v2279_v30  ;;  %v2376_v23 = vld [vmem:[#allocation13 + $0x160] sm:$0xff]  ;;  %v2410_v51 = vld [vmem:[#allocation13 + $0x270] sm:$0xff] }
 0x773   : > { %5136 = vrsqrt.f32 %v2273_v44  ;;  %v2378_v44 = vld [vmem:[#allocation13 + $0x170] sm:$0xff]  ;;  %v4485_v60 = vpack.c.bf16 %v2376_v23, %v2368_v4  ;;  %v2416_v4 = vld [vmem:[#allocation13 + $0x2a0] sm:$0xff] }
 0x774   : > { %v2306_v27 = vmul.f32 %v6620_v53, %v2287_v38  ;;  %v2305_v37 = vmul.f32 %v6615_v17, %v2286_v7  ;;  %v2370_v7 = vld [vmem:[#allocation13 + $0x130] sm:$0xff]  ;;  %v2385_v38 = vld [vmem:[#allocation13 + $0x1a8] sm:$0xff]  ;;  %v2424_v23 = vld [vmem:[#allocation13 + $0x2e0] sm:$0xff] }
 0x775   : > { %v5133_v28 = vpop.eup %5132  ;;  %v4549_v0 = vpack.c.bf16 %v2378_v44, %v2370_v7  ;;  %v2426_v7 = vld [vmem:[#allocation13 + $0x2f0] sm:$0xff]  ;;  %v2433_v44 = vld [vmem:[#allocation13 + $0x328] sm:$0xff] }
 0x776   : > { %v6633_v61 = vadd.f32 %v6626_v14, %v2306_v27  ;;  %v6636_v25 = vadd.f32 %v6623_v5, %v2305_v37  ;;  %v2289_v45 = vmul.f32 %v5133_v28, %v2281_v39  ;;  %v2288_v58 = vmul.f32 %v5133_v28, %v2280_v63  ;;  %v2395_v27 = vld [vmem:[#allocation13 + $0x1f8] sm:$0xff]  ;;  %v2384_v28 = vld [vmem:[#allocation13 + $0x1a0] sm:$0xff] }
 0x778   : > { %2694 = vmatprep.mubr.f32.mxu0 %v6633_v61  ;;  %2783 = vmatprep.mubr.f32.mxu1 %v6633_v61  ;;  %v2308_v57 = vmul.f32 %v6620_v53, %v2289_v45  ;;  %v2307_v52 = vmul.f32 %v6615_v17, %v2288_v58  ;;  %v4551_v45 = vpack.c.bf16 %v2395_v27, %v2387_v26  ;;  %v2432_v26 = vld [vmem:[#allocation13 + $0x320] sm:$0xff] }
 0x779   : > { %v5135_v34 = vpop.eup %5134  ;;  %2695 = vmatmul.mubr.f32.vlgmr.msra.gmra.mrb[8].mxu0 %v6636_v25  ;;  %2784 = vmatmul.mubr.f32.vlgmr.msra.gmra.mrb[56].mxu1 %v6636_v25  ;;  %v2440_v27 = vld [vmem:[#allocation13 + $0x360] sm:$0xff] }
 0x77a   : > { %4478 = vmatpush1.bf16.msra.mxu0 %v4477_v3  ;;  %4542 = vmatpush1.bf16.msra.mxu1 %v4541_v46  ;;  %v2291_v43 = vmul.f32 %v5135_v34, %v2283_v8  ;;  %v2290_v16 = vmul.f32 %v5135_v34, %v2282_v48  ;;  %v6649_v1 = vadd.f32 %v6626_v14, %v2308_v57  ;;  %v2392_v3 = vld [vmem:[#allocation13 + $0x1e0] sm:$0xff]  ;;  %v2409_v8 = vld [vmem:[#allocation13 + $0x268] sm:$0xff] }
 0x77b   : > { %4480 = vmatprep.subr.bf16.mxu0 %v4479_v35  ;;  %4544 = vmatprep.subr.bf16.mxu1 %v4543_v40  ;;  %v6652_v47 = vadd.f32 %v6623_v5, %v2307_v52  ;;  %v4487_v46 = vpack.c.bf16 %v2393_v50, %v2385_v38  ;;  %v2386_v35 = vld [vmem:[#allocation13 + $0x1b0] sm:$0xff]  ;;  %v4489_v48 = vpack.c.bf16 %v2392_v3, %v2384_v28  ;;  %v2400_v52 = vld [vmem:[#allocation13 + $0x220] sm:$0xff]  ;;  %v2441_v38 = vld [vmem:[#allocation13 + $0x368] sm:$0xff] }
 0x77c   : > { %v2310_v30 = vmul.f32 %v6620_v53, %v2291_v43  ;;  %v2309_v15 = vmul.f32 %v6615_v17, %v2290_v16  ;;  %2700 = vmatprep.mubr.f32.mxu0 %v6649_v1  ;;  %2789 = vmatprep.mubr.f32.mxu1 %v6649_v1  ;;  %v2394_v40 = vld [vmem:[#allocation13 + $0x1f0] sm:$0xff]  ;;  %v4491_v43 = vpack.c.bf16 %v2409_v8, %v2401_v21  ;;  %v2427_v16 = vld [vmem:[#allocation13 + $0x2f8] sm:$0xff]  ;;  %v2465_v8 = vld [vmem:[#allocation13 + $0x428] sm:$0xff] }
 0x77d   : > { %v5137_v37 = vpop.eup %5136  ;;  %2701 = vmatmul.mubr.f32.gmra.mrb[10].mxu0 %v6652_v47  ;;  %2790 = vmatmul.mubr.f32.gmra.mrb[58].mxu1 %v6652_v47  ;;  %v2451_v28 = vld [vmem:[#allocation13 + $0x3b8] sm:$0xff]  ;;  %v2450_v21 = vld [vmem:[#allocation13 + $0x3b0] sm:$0xff] }
 0x77e   : > { %v6665_v42 = vadd.f32 %v6626_v14, %v2310_v30  ;;  %v6668_v6 = vadd.f32 %v6623_v5, %v2309_v15  ;;  %4482 = vmatpush1.bf16.msra.mxu0 %v4481_v33  ;;  %4546 = vmatpush1.bf16.msra.mxu1 %v4545_v62  ;;  %v2293_v63 = vmul.f32 %v5137_v37, %v2285_v41  ;;  %v2417_v33 = vld [vmem:[#allocation13 + $0x2a8] sm:$0xff]  ;;  %v2418_v15 = vld [vmem:[#allocation13 + $0x2b0] sm:$0xff]  ;;  %v2443_v41 = vld [vmem:[#allocation13 + $0x378] sm:$0xff] }
 0x77f   : > { %v2292_v39 = vmul.f32 %v5137_v37, %v2284_v49  ;;  %4484 = vmatprep.subr.bf16.mxu0 %v4483_v19  ;;  %4548 = vmatprep.subr.bf16.mxu1 %v4547_v56  ;;  %v4557_v62 = vpack.c.bf16 %v2410_v51, %v2402_v29  ;;  %v4495_v30 = vpack.c.bf16 %v2425_v13, %v2417_v33  ;;  %v2435_v49 = vld [vmem:[#allocation13 + $0x338] sm:$0xff]  ;;  %v2464_v29 = vld [vmem:[#allocation13 + $0x420] sm:$0xff]  ;;  %v2474_v13 = vld [vmem:[#allocation13 + $0x470] sm:$0xff] }
 0x780   : > { %2706 = vmatprep.mubr.f32.mxu0 %v6665_v42  ;;  %2795 = vmatprep.mubr.f32.mxu1 %v6665_v42  ;;  %v2312_v58 = vmul.f32 %v6620_v53, %v2293_v63  ;;  %v4553_v53 = vpack.c.bf16 %v2394_v40, %v2386_v35  ;;  %v4497_v56 = vpack.c.bf16 %v2424_v23, %v2416_v4  ;;  %v2449_v63 = vld [vmem:[#allocation13 + $0x3a8] sm:$0xff]  ;;  %v2459_v3 = vld [vmem:[#allocation13 + $0x3f8] sm:$0xff]  ;;  %v2448_v35 = vld [vmem:[#allocation13 + $0x3a0] sm:$0xff] }
 0x781   : > { %v2311_v9 = vmul.f32 %v6615_v17, %v2292_v39  ;;  %2707 = vmatmul.mubr.f32.gmra.mrb[12].mxu0 %v6668_v6  ;;  %2796 = vmatmul.mubr.f32.gmra.mrb[60].mxu1 %v6668_v6  ;;  %v2408_v17 = vld [vmem:[#allocation13 + $0x260] sm:$0xff]  ;;  %v4561_v50 = vpack.c.bf16 %v2426_v7, %v2418_v15  ;;  %v4499_v37 = vpack.c.bf16 %v2441_v38, %v2433_v44  ;;  %v2457_v39 = vld [vmem:[#allocation13 + $0x3e8] sm:$0xff]  ;;  %v2482_v44 = vld [vmem:[#allocation13 + $0x4b0] sm:$0xff] }
 0x782   : > { %4486 = vmatpush1.bf16.msra.mxu0 %v4485_v60  ;;  %4550 = vmatpush1.bf16.msra.mxu1 %v4549_v0  ;;  %v6677_v34 = vadd.f32 %v6626_v14, %v2312_v58  ;;  %v2419_v14 = vld [vmem:[#allocation13 + $0x2b8] sm:$0xff]  ;;  %v2434_v60 = vld [vmem:[#allocation13 + $0x330] sm:$0xff]  ;;  %v2456_v40 = vld [vmem:[#allocation13 + $0x3e0] sm:$0xff]  ;;  %v4503_v58 = vpack.c.bf16 %v2457_v39, %v2449_v63  ;;  %v4507_v33 = vpack.c.bf16 %v2473_v10, %v2465_v8 }
 0x783   : > { %v6680_v57 = vadd.f32 %v6623_v5, %v2311_v9  ;;  %4488 = vmatprep.subr.bf16.mxu0 %v4487_v46  ;;  %4552 = vmatprep.subr.bf16.mxu1 %v4551_v45  ;;  %v4493_v5 = vpack.c.bf16 %v2408_v17, %v2400_v52  ;;  %v4559_v19 = vpack.c.bf16 %v2427_v16, %v2419_v14  ;;  %v2442_v0 = vld [vmem:[#allocation13 + $0x370] sm:$0xff]  ;;  %v2472_v51 = vld [vmem:[#allocation13 + $0x460] sm:$0xff]  ;;  %v2481_v14 = vld [vmem:[#allocation13 + $0x4a8] sm:$0xff] }
 0x784   : > { %2712 = vmatprep.mubr.f32.mxu0 %v6677_v34  ;;  %2801 = vmatprep.mubr.f32.mxu1 %v6677_v34  ;;  %v4501_v46 = vpack.c.bf16 %v2440_v27, %v2432_v26  ;;  %v4565_v45 = vpack.c.bf16 %v2442_v0, %v2434_v60  ;;  %v4567_v9 = vpack.c.bf16 %v2459_v3, %v2451_v28  ;;  %v2489_v16 = vld [vmem:[#allocation13 + $0x4e8] sm:$0xff]  ;;  %v2490_v38 = vld [vmem:[#allocation13 + $0x4f0] sm:$0xff] }
 0x785   : > { %2713 = vmatmul.mubr.f32.gmra.mrb[14].mxu0 %v6680_v57  ;;  %2802 = vmatmul.mubr.f32.gmra.mrb[62].mxu1 %v6680_v57  ;;  %v4505_v52 = vpack.c.bf16 %v2456_v40, %v2448_v35  ;;  %v4509_v4 = vpack.c.bf16 %v2472_v51, %v2464_v29  ;;  %v4511_v15 = vpack.c.bf16 %v2489_v16, %v2481_v14  ;;  %v2498_v63 = vld [vmem:[#allocation13 + $0x530] sm:$0xff]  ;;  %v2513_v28 = vld [vmem:[#allocation13 + $0x5a8] sm:$0xff] }
 0x786   : > { %4490 = vmatpush1.bf16.msra.mxu0 %v4489_v48  ;;  %4554 = vmatpush1.bf16.msra.mxu1 %v4553_v53  ;;  %v2458_v48 = vld [vmem:[#allocation13 + $0x3f0] sm:$0xff]  ;;  %v2475_v53 = vld [vmem:[#allocation13 + $0x478] sm:$0xff]  ;;  %v4577_v27 = vpack.c.bf16 %v2490_v38, %v2482_v44  ;;  %v2521_v3 = vld [vmem:[#allocation13 + $0x5e8] sm:$0xff] }
 0x787   : > { %2872 = vmatprep.mubr.f32.mxu0 %v6633_v61  ;;  %2961 = vmatprep.mubr.f32.mxu1 %v6633_v61  ;;  %v4563_v61 = vpack.c.bf16 %v2443_v41, %v2435_v49  ;;  %v4569_v17 = vpack.c.bf16 %v2458_v48, %v2450_v21  ;;  %v2497_v49 = vld [vmem:[#allocation13 + $0x528] sm:$0xff]  ;;  %v2506_v39 = vld [vmem:[#allocation13 + $0x570] sm:$0xff]  ;;  %v4519_v21 = vpack.c.bf16 %v2521_v3, %v2513_v28 }
 0x788   : > { %4492 = vmatprep.subr.bf16.mxu0 %v4491_v43  ;;  %4556 = vmatprep.subr.bf16.mxu1 %v4555_v18  ;;  %v4571_v43 = vpack.c.bf16 %v2475_v53, %v2467_v24  ;;  %v2466_v18 = vld [vmem:[#allocation13 + $0x430] sm:$0xff]  ;;  %v2505_v41 = vld [vmem:[#allocation13 + $0x568] sm:$0xff]  ;;  %v4581_v40 = vpack.c.bf16 %v2506_v39, %v2498_v63 }
 0x789   : > { %v4573_v23 = vpack.c.bf16 %v2474_v13, %v2466_v18  ;;  %v4515_v60 = vpack.c.bf16 %v2505_v41, %v2497_v49  ;;  %v2514_v8 = vld [vmem:[#allocation13 + $0x5b0] sm:$0xff]  ;;  %v2529_v24 = vld [vmem:[#allocation13 + $0x628] sm:$0xff] }
 0x78a   : > { %4494 = vmatpush1.bf16.msra.mxu0 %v4493_v5  ;;  %4558 = vmatpush1.bf16.msra.mxu1 %v4557_v62  ;;  %v2483_v5 = vld [vmem:[#allocation13 + $0x4b8] sm:$0xff]  ;;  %v2522_v10 = vld [vmem:[#allocation13 + $0x5f0] sm:$0xff]  ;;  %v2537_v53 = vld [vmem:[#allocation13 + $0x668] sm:$0xff] }
 0x78b   : > { %4496 = vmatprep.subr.bf16.mxu0 %v4495_v30  ;;  %4560 = vmatprep.subr.bf16.mxu1 %v4559_v19  ;;  %v2491_v62 = vld [vmem:[#allocation13 + $0x4f8] sm:$0xff]  ;;  %v2480_v30 = vld [vmem:[#allocation13 + $0x4a0] sm:$0xff]  ;;  %v4585_v51 = vpack.c.bf16 %v2522_v10, %v2514_v8  ;;  %v4523_v18 = vpack.c.bf16 %v2537_v53, %v2529_v24  ;;  %v2530_v14 = vld [vmem:[#allocation13 + $0x630] sm:$0xff] }
 0x78c   : > { %v2488_v19 = vld [vmem:[#allocation13 + $0x4e0] sm:$0xff]  ;;  %v4575_v7 = vpack.c.bf16 %v2491_v62, %v2483_v5  ;;  %v2538_v16 = vld [vmem:[#allocation13 + $0x670] sm:$0xff]  ;;  %v2545_v5 = vld [vmem:[#allocation13 + $0x6a8] sm:$0xff] }
 0x78d   : > { %v4513_v26 = vpack.c.bf16 %v2488_v19, %v2480_v30  ;;  %v2553_v62 = vld [vmem:[#allocation13 + $0x6e8] sm:$0xff]  ;;  %v4589_v19 = vpack.c.bf16 %v2538_v16, %v2530_v14  ;;  %v2546_v49 = vld [vmem:[#allocation13 + $0x6b0] sm:$0xff]  ;;  %v2584_v10 = vld [vmem:[#allocation13 + $0x7e0] sm:$0xff] }
 0x78e   : > { %4498 = vmatpush1.bf16.msra.mxu0 %v4497_v56  ;;  %4562 = vmatpush1.bf16.msra.mxu1 %v4561_v50  ;;  %v2499_v56 = vld [vmem:[#allocation13 + $0x538] sm:$0xff]  ;;  %v4527_v44 = vpack.c.bf16 %v2553_v62, %v2545_v5  ;;  %v2554_v41 = vld [vmem:[#allocation13 + $0x6f0] sm:$0xff]  ;;  %v3022_v62 = vld [vmem:[#allocation14 + $0x20] sm:$0xff] }
 0x78f   : > { %4500 = vmatprep.subr.bf16.mxu0 %v4499_v37  ;;  %4564 = vmatprep.subr.bf16.mxu1 %v4563_v61  ;;  %v2507_v50 = vld [vmem:[#allocation13 + $0x578] sm:$0xff]  ;;  %v2496_v37 = vld [vmem:[#allocation13 + $0x520] sm:$0xff]  ;;  %v2562_v28 = vld [vmem:[#allocation13 + $0x730] sm:$0xff] }
 0x790   : > { %v2504_v61 = vld [vmem:[#allocation13 + $0x560] sm:$0xff]  ;;  %v4579_v0 = vpack.c.bf16 %v2507_v50, %v2499_v56  ;;  %v2561_v56 = vld [vmem:[#allocation13 + $0x728] sm:$0xff]  ;;  %v2570_v3 = vld [vmem:[#allocation13 + $0x770] sm:$0xff] }
 0x791   : > { %v4517_v35 = vpack.c.bf16 %v2504_v61, %v2496_v37  ;;  %v2569_v50 = vld [vmem:[#allocation13 + $0x768] sm:$0xff]  ;;  %v4593_v61 = vpack.c.bf16 %v2554_v41, %v2546_v49  ;;  %v2578_v24 = vld [vmem:[#allocation13 + $0x7b0] sm:$0xff]  ;;  %v3025_v14 = vld [vmem:[#allocation14 + $0x38] sm:$0xff] }
 0x792   : > { %4502 = vmatpush1.bf16.msra.mxu0 %v4501_v46  ;;  %4566 = vmatpush1.bf16.msra.mxu1 %v4565_v45  ;;  %v2515_v46 = vld [vmem:[#allocation13 + $0x5b8] sm:$0xff]  ;;  %v4531_v63 = vpack.c.bf16 %v2569_v50, %v2561_v56  ;;  %v2586_v53 = vld [vmem:[#allocation13 + $0x7f0] sm:$0xff]  ;;  %v3030_v41 = vld [vmem:[#allocation14 + $0x60] sm:$0xff] }
 0x793   : > { %4504 = vmatprep.subr.bf16.mxu0 %v4503_v58  ;;  %4568 = vmatprep.subr.bf16.mxu1 %v4567_v9  ;;  %v2523_v45 = vld [vmem:[#allocation13 + $0x5f8] sm:$0xff]  ;;  %v2512_v58 = vld [vmem:[#allocation13 + $0x5a0] sm:$0xff]  ;;  %v3032_v56 = vld [vmem:[#allocation14 + $0x70] sm:$0xff] }
 0x794   : > { %v2520_v9 = vld [vmem:[#allocation13 + $0x5e0] sm:$0xff]  ;;  %v4583_v48 = vpack.c.bf16 %v2523_v45, %v2515_v46  ;;  %v2577_v46 = vld [vmem:[#allocation13 + $0x7a8] sm:$0xff]  ;;  %v3033_v49 = vld [vmem:[#allocation14 + $0x78] sm:$0xff] }
 0x795   : > { %v4521_v29 = vpack.c.bf16 %v2520_v9, %v2512_v58  ;;  %v2585_v45 = vld [vmem:[#allocation13 + $0x7e8] sm:$0xff]  ;;  %v4597_v9 = vpack.c.bf16 %v2570_v3, %v2562_v28 }
 0x796   : > { %4506 = vmatpush1.bf16.msra.mxu0 %v4505_v52  ;;  %4570 = vmatpush1.bf16.msra.mxu1 %v4569_v17  ;;  %v2531_v52 = vld [vmem:[#allocation13 + $0x638] sm:$0xff]  ;;  %v3035_v50 = vld [vmem:[#allocation14 + $0x88] sm:$0xff] }
 0x797   : > { %4508 = vmatprep.subr.bf16.mxu0 %v4507_v33  ;;  %4572 = vmatprep.subr.bf16.mxu1 %v4571_v43  ;;  %v2539_v17 = vld [vmem:[#allocation13 + $0x678] sm:$0xff]  ;;  %v2528_v33 = vld [vmem:[#allocation13 + $0x620] sm:$0xff]  ;;  %v3043_v28 = vld [vmem:[#allocation14 + $0xc8] sm:$0xff] }
 0x798   : > { %v2536_v43 = vld [vmem:[#allocation13 + $0x660] sm:$0xff]  ;;  %v4587_v13 = vpack.c.bf16 %v2539_v17, %v2531_v52  ;;  %v3019_v52 = vld [vmem:[#allocation14 + $0x8] sm:$0xff]  ;;  %v3021_v17 = vld [vmem:[#allocation14 + $0x18] sm:$0xff] }
 0x799   : > { %v4525_v30 = vpack.c.bf16 %v2536_v43, %v2528_v33  ;;  %v4603_v33 = vpack.c.bf16 %v3021_v17, %v3019_v52  ;;  %v3018_v43 = vld [vmem:[#allocation14] sm:$0xff]  ;;  %v3052_v17 = vld [vmem:[#allocation14 + $0x110] sm:$0xff] }
 0x79a   : > { %4510 = vmatpush1.bf16.msra.mxu0 %v4509_v4  ;;  %4574 = vmatpush1.bf16.msra.mxu1 %v4573_v23  ;;  %v2547_v4 = vld [vmem:[#allocation13 + $0x6b8] sm:$0xff]  ;;  %v3050_v52 = vld [vmem:[#allocation14 + $0x100] sm:$0xff] }
 0x79b   : > { %4512 = vmatprep.subr.bf16.mxu0 %v4511_v15  ;;  %4576 = vmatprep.subr.bf16.mxu1 %v4575_v7  ;;  %v2555_v23 = vld [vmem:[#allocation13 + $0x6f8] sm:$0xff]  ;;  %v2544_v15 = vld [vmem:[#allocation13 + $0x6a0] sm:$0xff] }
 0x79c   : > { %v2552_v7 = vld [vmem:[#allocation13 + $0x6e0] sm:$0xff]  ;;  %v4591_v38 = vpack.c.bf16 %v2555_v23, %v2547_v4  ;;  %v3024_v4 = vld [vmem:[#allocation14 + $0x30] sm:$0xff]  ;;  %v3027_v23 = vld [vmem:[#allocation14 + $0x48] sm:$0xff] }
 0x79d   : > { %v4529_v37 = vpack.c.bf16 %v2552_v7, %v2544_v15  ;;  %v3026_v7 = vld [vmem:[#allocation14 + $0x40] sm:$0xff] }
 0x79e   : > { %4514 = vmatpush1.bf16.msra.mxu0 %v4513_v26  ;;  %4578 = vmatpush1.bf16.msra.mxu1 %v4577_v27  ;;  %v2563_v26 = vld [vmem:[#allocation13 + $0x738] sm:$0xff] }
 0x79f   : > { %4516 = vmatprep.subr.bf16.mxu0 %v4515_v60  ;;  %4580 = vmatprep.subr.bf16.mxu1 %v4579_v0  ;;  %v2571_v27 = vld [vmem:[#allocation13 + $0x778] sm:$0xff]  ;;  %v2560_v60 = vld [vmem:[#allocation13 + $0x720] sm:$0xff] }
 0x7a0   : > { %v2568_v0 = vld [vmem:[#allocation13 + $0x760] sm:$0xff]  ;;  %v4595_v39 = vpack.c.bf16 %v2571_v27, %v2563_v26  ;;  %v3037_v26 = vld [vmem:[#allocation14 + $0x98] sm:$0xff] }
 0x7a1   : > { %v4533_v58 = vpack.c.bf16 %v2568_v0, %v2560_v60  ;;  %v3034_v27 = vld [vmem:[#allocation14 + $0x80] sm:$0xff]  ;;  %v3041_v60 = vld [vmem:[#allocation14 + $0xb8] sm:$0xff] }
 0x7a2   : > { %4518 = vmatpush1.bf16.msra.mxu0 %v4517_v35  ;;  %4582 = vmatpush1.bf16.msra.mxu1 %v4581_v40  ;;  %v2579_v35 = vld [vmem:[#allocation13 + $0x7b8] sm:$0xff] }
 0x7a3   : > { %4520 = vmatprep.subr.bf16.mxu0 %v4519_v21  ;;  %4584 = vmatprep.subr.bf16.mxu1 %v4583_v48  ;;  %v2587_v40 = vld [vmem:[#allocation13 + $0x7f8] sm:$0xff]  ;;  %v2576_v21 = vld [vmem:[#allocation13 + $0x7a0] sm:$0xff]  ;;  %v4535_v48 = vpack.c.bf16 %v2585_v45, %v2577_v46 }
 0x7a4   : > { %v4599_v8 = vpack.c.bf16 %v2587_v40, %v2579_v35  ;;  %v3042_v45 = vld [vmem:[#allocation14 + $0xc0] sm:$0xff]  ;;  %v3044_v35 = vld [vmem:[#allocation14 + $0xd0] sm:$0xff]  ;;  %v3047_v40 = vld [vmem:[#allocation14 + $0xe8] sm:$0xff] }
 0x7a6   : > { %4522 = vmatpush1.bf16.msra.mxu0 %v4521_v29  ;;  %4586 = vmatpush1.bf16.msra.mxu1 %v4585_v51  ;;  %v4537_v29 = vpack.c.bf16 %v2584_v10, %v2576_v21  ;;  %v4601_v51 = vpack.c.bf16 %v2586_v53, %v2578_v24  ;;  %v3046_v21 = vld [vmem:[#allocation14 + $0xe0] sm:$0xff]  ;;  %v3053_v10 = vld [vmem:[#allocation14 + $0x118] sm:$0xff] }
 0x7a7   : > { %4524 = vmatprep.subr.bf16.mxu0 %v4523_v18  ;;  %4588 = vmatprep.subr.bf16.mxu1 %v4587_v13  ;;  %v3020_v18 = vld [vmem:[#allocation14 + $0x10] sm:$0xff]  ;;  %v3023_v13 = vld [vmem:[#allocation14 + $0x28] sm:$0xff] }
 0x7a8   : > { %v4605_v16 = vpack.c.bf16 %v3020_v18, %v3018_v43  ;;  %v4607_v5 = vpack.c.bf16 %v3025_v14, %v3023_v13  ;;  %v3054_v18 = vld [vmem:[#allocation14 + $0x120] sm:$0xff]  ;;  %v3056_v13 = vld [vmem:[#allocation14 + $0x130] sm:$0xff]  ;;  %v3059_v14 = vld [vmem:[#allocation14 + $0x148] sm:$0xff] }
 0x7aa   : > { %4526 = vmatpush1.bf16.msra.mxu0 %v4525_v30  ;;  %4590 = vmatpush1.bf16.msra.mxu1 %v4589_v19  ;;  %v3029_v30 = vld [vmem:[#allocation14 + $0x58] sm:$0xff]  ;;  %v4609_v19 = vpack.c.bf16 %v3024_v4, %v3022_v62  ;;  %v3058_v4 = vld [vmem:[#allocation14 + $0x140] sm:$0xff] }
 0x7ab   : > { %4528 = vmatprep.subr.bf16.mxu0 %v4527_v44  ;;  %4592 = vmatprep.subr.bf16.mxu1 %v4591_v38  ;;  %v4611_v15 = vpack.c.bf16 %v3029_v30, %v3027_v23  ;;  %v3028_v44 = vld [vmem:[#allocation14 + $0x50] sm:$0xff]  ;;  %v3031_v38 = vld [vmem:[#allocation14 + $0x68] sm:$0xff] }
 0x7ac   : > { %v3060_v23 = vld [vmem:[#allocation14 + $0x150] sm:$0xff]  ;;  %v3063_v30 = vld [vmem:[#allocation14 + $0x168] sm:$0xff] }
 0x7ae   : > { %4530 = vmatpush1.bf16.msra.mxu0 %v4529_v37  ;;  %4594 = vmatpush1.bf16.msra.mxu1 %v4593_v61  ;;  %v3036_v37 = vld [vmem:[#allocation14 + $0x90] sm:$0xff]  ;;  %v3039_v61 = vld [vmem:[#allocation14 + $0xa8] sm:$0xff] }
 0x7af   : > { %4532 = vmatprep.subr.bf16.mxu0 %v4531_v63  ;;  %4596 = vmatprep.subr.bf16.mxu1 %v4595_v39  ;;  %v4623_v0 = vpack.c.bf16 %v3041_v60, %v3039_v61  ;;  %v3038_v63 = vld [vmem:[#allocation14 + $0xa0] sm:$0xff]  ;;  %v3040_v39 = vld [vmem:[#allocation14 + $0xb0] sm:$0xff]  ;;  %v3075_v60 = vld [vmem:[#allocation14 + $0x1c8] sm:$0xff] }
 0x7b0   : > { %v4625_v3 = vpack.c.bf16 %v3040_v39, %v3038_v63  ;;  %v3072_v61 = vld [vmem:[#allocation14 + $0x1b0] sm:$0xff]  ;;  %v3074_v39 = vld [vmem:[#allocation14 + $0x1c0] sm:$0xff] }
 0x7b2   : > { %4534 = vmatpush1.bf16.msra.mxu0 %v4533_v58  ;;  %4598 = vmatpush1.bf16.msra.mxu1 %v4597_v9  ;;  %v3049_v58 = vld [vmem:[#allocation14 + $0xf8] sm:$0xff] }
 0x7b3   : > { %4536 = vmatprep.subr.bf16.mxu0 %v4535_v48  ;;  %4600 = vmatprep.subr.bf16.mxu1 %v4599_v8  ;;  %v4631_v9 = vpack.c.bf16 %v3049_v58, %v3047_v40  ;;  %v3048_v48 = vld [vmem:[#allocation14 + $0xf0] sm:$0xff]  ;;  %v3051_v8 = vld [vmem:[#allocation14 + $0x108] sm:$0xff] }
 0x7b4   : > { %v4633_v24 = vpack.c.bf16 %v3048_v48, %v3046_v21  ;;  %v4635_v53 = vpack.c.bf16 %v3053_v10, %v3051_v8  ;;  %v3080_v40 = vld [vmem:[#allocation14 + $0x1f0] sm:$0xff]  ;;  %v3083_v58 = vld [vmem:[#allocation14 + $0x208] sm:$0xff]  ;;  %v6705_v48 = vld [vmem:[%s7009_s7] sm:$0xff]  ;;  %s3659_s7 = scalar_lea.sflag [#allocation4], %s5997_s24 }
 0x7b5   : > { %v2593_v8 = vrot.slane %v6705_v48, %v6194_v31  ;;  %v2597_v10 = vrot.slane %v6705_v48, %v6197_v32 }
 0x7b6   : > { %4538 = vmatpush1.bf16.msra.mxu0 %v4537_v29  ;;  %4602 = vmatpush1.bf16.msra.mxu1 %v4601_v51  ;;  %v3055_v29 = vld [vmem:[#allocation14 + $0x128] sm:$0xff]  ;;  %v3057_v51 = vld [vmem:[#allocation14 + $0x138] sm:$0xff] }
 0x7b7   : > { %4604 = vmatprep.subr.bf16.mxu0 %v4603_v33  ;;  %v4637_v33 = vpack.c.bf16 %v3052_v17, %v3050_v52  ;;  %v4639_v43 = vpack.c.bf16 %v3057_v51, %v3055_v29  ;;  %v3082_v51 = vld [vmem:[#allocation14 + $0x200] sm:$0xff] }
 0x7b9   : > { %2873 = vmatmul.mubr.f32.vlgmr.msra.gmra.mrb[16].mxu0 %v6636_v25  ;;  %2962 = vmatmul.mubr.f32.vlgmr.msra.gmra.mrb[64].mxu1 %v6636_v25  ;;  %v4613_v25 = vpack.c.bf16 %v3028_v44, %v3026_v7  ;;  %v3062_v44 = vld [vmem:[#allocation14 + $0x160] sm:$0xff] }
 0x7ba   : > { %2878 = vmatprep.mubr.f32.mxu0 %v6649_v1  ;;  %2967 = vmatprep.mubr.f32.mxu1 %v6649_v1  ;;  %v4615_v1 = vpack.c.bf16 %v3033_v49, %v3031_v38  ;;  %v3064_v38 = vld [vmem:[#allocation14 + $0x170] sm:$0xff]  ;;  %v3067_v49 = vld [vmem:[#allocation14 + $0x188] sm:$0xff] }
 0x7bb   : > { %4606 = vmatpush1.bf16.msra.mxu0 %v4605_v16  ;;  %v3061_v16 = vld [vmem:[#allocation14 + $0x158] sm:$0xff] }
 0x7bc   : > { %4608 = vmatprep.subr.bf16.mxu0 %v4607_v5  ;;  %v4641_v5 = vpack.c.bf16 %v3056_v13, %v3054_v18  ;;  %v4643_v62 = vpack.c.bf16 %v3061_v16, %v3059_v14  ;;  %v3087_v18 = vld [vmem:[#allocation14 + $0x228] sm:$0xff]  ;;  %v3089_v13 = vld [vmem:[#allocation14 + $0x238] sm:$0xff] }
 0x7bd   : > { %2879 = vmatmul.mubr.f32.gmra.mrb[18].mxu0 %v6652_v47  ;;  %2968 = vmatmul.mubr.f32.gmra.mrb[66].mxu1 %v6652_v47  ;;  %v4617_v47 = vpack.c.bf16 %v3032_v56, %v3030_v41  ;;  %v3066_v56 = vld [vmem:[#allocation14 + $0x180] sm:$0xff] }
 0x7be   : > { %2884 = vmatprep.mubr.f32.mxu0 %v6665_v42  ;;  %2973 = vmatprep.mubr.f32.mxu1 %v6665_v42  ;;  %v4619_v42 = vpack.c.bf16 %v3037_v26, %v3035_v50  ;;  %v3068_v50 = vld [vmem:[#allocation14 + $0x190] sm:$0xff]  ;;  %v3071_v26 = vld [vmem:[#allocation14 + $0x1a8] sm:$0xff] }
 0x7bf   : > { %4610 = vmatpush1.bf16.msra.mxu0 %v4609_v19  ;;  %v3065_v19 = vld [vmem:[#allocation14 + $0x178] sm:$0xff] }
 0x7c0   : > { %4612 = vmatprep.subr.bf16.mxu0 %v4611_v15  ;;  %v4645_v15 = vpack.c.bf16 %v3060_v23, %v3058_v4  ;;  %v4647_v7 = vpack.c.bf16 %v3065_v19, %v3063_v30  ;;  %v4671_v23 = vpack.c.bf16 %v3089_v13, %v3087_v18 }
 0x7c1   : > { %2885 = vmatmul.mubr.f32.gmra.mrb[20].mxu0 %v6668_v6  ;;  %2974 = vmatmul.mubr.f32.gmra.mrb[68].mxu1 %v6668_v6  ;;  %v4621_v6 = vpack.c.bf16 %v3036_v37, %v3034_v27  ;;  %v3070_v37 = vld [vmem:[#allocation14 + $0x1a0] sm:$0xff] }
 0x7c2   : > { %2890 = vmatprep.mubr.f32.mxu0 %v6677_v34  ;;  %2979 = vmatprep.mubr.f32.mxu1 %v6677_v34  ;;  %v3045_v34 = vld [vmem:[#allocation14 + $0xd8] sm:$0xff] }
 0x7c3   : > { %4614 = vmatpush1.bf16.msra.mxu0 %v4613_v25  ;;  %v4627_v46 = vpack.c.bf16 %v3045_v34, %v3043_v28  ;;  %v3069_v25 = vld [vmem:[#allocation14 + $0x198] sm:$0xff]  ;;  %v3076_v28 = vld [vmem:[#allocation14 + $0x1d0] sm:$0xff]  ;;  %v3079_v34 = vld [vmem:[#allocation14 + $0x1e8] sm:$0xff] }
 0x7c4   : > { %4616 = vmatprep.subr.bf16.mxu0 %v4615_v1  ;;  %v4649_v1 = vpack.c.bf16 %v3064_v38, %v3062_v44  ;;  %v4651_v41 = vpack.c.bf16 %v3069_v25, %v3067_v49  ;;  %v3088_v44 = vld [vmem:[#allocation14 + $0x230] sm:$0xff]  ;;  %v2604_v38 = vsub.s32 3, %v6187_v20  ;;  %v3091_v25 = vld [vmem:[#allocation14 + $0x248] sm:$0xff] }
 0x7c5   : > { %2891 = vmatmul.mubr.f32.gmra.mrb[22].mxu0 %v6680_v57  ;;  %2980 = vmatmul.mubr.f32.gmra.mrb[70].mxu1 %v6680_v57  ;;  %v4629_v57 = vpack.c.bf16 %v3044_v35, %v3042_v45  ;;  %v3078_v35 = vld [vmem:[#allocation14 + $0x1e0] sm:$0xff] }
 0x7c7   : > { %4618 = vmatpush1.bf16.msra.mxu0 %v4617_v47  ;;  %v3073_v47 = vld [vmem:[#allocation14 + $0x1b8] sm:$0xff] }
 0x7c8   : > { %4620 = vmatprep.subr.bf16.mxu0 %v4619_v42  ;;  %v4653_v42 = vpack.c.bf16 %v3068_v50, %v3066_v56  ;;  %v4655_v27 = vpack.c.bf16 %v3073_v47, %v3071_v26 }
 0x7cb   : > { %4622 = vmatpush1.bf16.msra.mxu0 %v4621_v6  ;;  %v3077_v6 = vld [vmem:[#allocation14 + $0x1d8] sm:$0xff] }
 0x7cc   : > { %4624 = vmatprep.subr.bf16.mxu0 %v4623_v0  ;;  %v4657_v0 = vpack.c.bf16 %v3072_v61, %v3070_v37  ;;  %v4659_v63 = vpack.c.bf16 %v3077_v6, %v3075_v60  ;;  %v3090_v60 = vld [vmem:[#allocation14 + $0x240] sm:$0xff]  ;;  %v3092_v6 = vld [vmem:[#allocation14 + $0x250] sm:$0xff] }
 0x7cf   : > { %4626 = vmatpush1.bf16.msra.mxu0 %v4625_v3  ;;  %v3081_v3 = vld [vmem:[#allocation14 + $0x1f8] sm:$0xff] }
 0x7d0   : > { %4628 = vmatprep.subr.bf16.mxu0 %v4627_v46  ;;  %v4661_v46 = vpack.c.bf16 %v3076_v28, %v3074_v39  ;;  %v4663_v45 = vpack.c.bf16 %v3081_v3, %v3079_v34  ;;  %v3095_v39 = vld [vmem:[#allocation14 + $0x268] sm:$0xff]  ;;  %v3097_v28 = vld [vmem:[#allocation14 + $0x278] sm:$0xff] }
 0x7d3   : > { %4630 = vmatpush1.bf16.msra.mxu0 %v4629_v57  ;;  %v3085_v57 = vld [vmem:[#allocation14 + $0x218] sm:$0xff] }
 0x7d4   : > { %4632 = vmatprep.subr.bf16.mxu0 %v4631_v9  ;;  %v4665_v9 = vpack.c.bf16 %v3080_v40, %v3078_v35  ;;  %v4667_v21 = vpack.c.bf16 %v3085_v57, %v3083_v58 }
 0x7d7   : > { %4634 = vmatpush1.bf16.msra.mxu0 %v4633_v24 }
 0x7d8   : > { %4636 = vmatprep.subr.bf16.mxu0 %v4635_v53 }
 0x7db   : > { %4638 = vmatpush1.bf16.msra.mxu0 %v4637_v33  ;;  %v3084_v33 = vld [vmem:[#allocation14 + $0x210] sm:$0xff] }
 0x7dc   : > { %4640 = vmatprep.subr.bf16.mxu0 %v4639_v43  ;;  %v4669_v16 = vpack.c.bf16 %v3084_v33, %v3082_v51  ;;  %v3099_v51 = vld [vmem:[#allocation14 + $0x288] sm:$0xff]  ;;  %v3101_v33 = vld [vmem:[#allocation14 + $0x298] sm:$0xff] }
 0x7df   : > { %4642 = vmatpush1.bf16.msra.mxu0 %v4641_v5 }
 0x7e0   : > { %4644 = vmatprep.subr.bf16.mxu0 %v4643_v62 }
 0x7e3   : > { %4646 = vmatpush1.bf16.msra.mxu0 %v4645_v15 }
 0x7e4   : > { %4648 = vmatprep.subr.bf16.mxu0 %v4647_v7  ;;  %v3086_v7 = vld [vmem:[#allocation14 + $0x220] sm:$0xff] }
 0x7e5   : > { %v4673_v26 = vpack.c.bf16 %v3088_v44, %v3086_v7  ;;  %v3107_v7 = vld [vmem:[#allocation14 + $0x2c8] sm:$0xff]  ;;  %v3109_v44 = vld [vmem:[#allocation14 + $0x2d8] sm:$0xff] }
 0x7e7   : > { %4650 = vmatpush1.bf16.msra.mxu0 %v4649_v1  ;;  %v3093_v1 = vld [vmem:[#allocation14 + $0x258] sm:$0xff] }
 0x7e8   : > { %4652 = vmatprep.subr.bf16.mxu0 %v4651_v41  ;;  %v4675_v61 = vpack.c.bf16 %v3093_v1, %v3091_v25  ;;  %v3106_v25 = vld [vmem:[#allocation14 + $0x2c0] sm:$0xff]  ;;  %v3108_v1 = vld [vmem:[#allocation14 + $0x2d0] sm:$0xff] }
 0x7eb   : > { %4654 = vmatpush1.bf16.msra.mxu0 %v4653_v42 }
 0x7ec   : > { %4656 = vmatprep.subr.bf16.mxu0 %v4655_v27 }
 0x7ef   : > { %4658 = vmatpush1.bf16.msra.mxu0 %v4657_v0  ;;  %v6723_v0 = vrot.slane %v6705_v48, %v2604_v38 }
 0x7f0   : > { %4660 = vmatprep.subr.bf16.mxu0 %v4659_v63 }
 0x7f3   : > { %4662 = vmatpush1.bf16.msra.mxu0 %v4661_v46 }
 0x7f4   : > { %4664 = vmatprep.subr.bf16.mxu0 %v4663_v45  ;;  %v4677_v45 = vpack.c.bf16 %v3092_v6, %v3090_v60  ;;  %v3117_v60 = vld [vmem:[#allocation14 + $0x318] sm:$0xff] }
 0x7f7   : > { %4666 = vmatpush1.bf16.msra.mxu0 %v4665_v9  ;;  %v4679_v9 = vpack.c.bf16 %v3097_v28, %v3095_v39  ;;  %v3114_v39 = vld [vmem:[#allocation14 + $0x300] sm:$0xff]  ;;  %v3116_v28 = vld [vmem:[#allocation14 + $0x310] sm:$0xff] }
 0x7f8   : > { %4668 = vmatprep.subr.bf16.mxu0 %v4667_v21  ;;  %v3094_v21 = vld [vmem:[#allocation14 + $0x260] sm:$0xff] }
 0x84c   : > { %v2696_v24 = vpop.f32.mrb[8].mxu0  ;;  %v6711_v53 = vpop.f32.mrb[56].mxu1 }
 0x84d   : > { %v2697_v52 = vadd.f32 %v2696_v24, %v2593_v8  ;;  %v2698_v17 = vpop.f32.mrb[9].mxu0  ;;  %v2787_v29 = vpop.f32.mrb[57].mxu1  ;;  %v3096_v24 = vld [vmem:[#allocation14 + $0x270] sm:$0xff] }
 0x84e   : > { %v2699_v43 = vadd.f32 %v2698_v17, %v2597_v10  ;;  %v4681_v18 = vpack.c.bf16 %v3096_v24, %v3094_v21  ;;  %v3125_v21 = vld [vmem:[#allocation14 + $0x358] sm:$0xff] }
 0x84f   : > { %v2986_v5 = vmax.f32 %v2697_v52, 0.0  ;;  %v2788_v52 = vadd.f32 %v2787_v29, %v6723_v0 }
 0x850   : > { %v2987_v14 = vmax.f32 %v2699_v43, 0.0  ;;  %v2702_v62 = vpop.f32.mrb[10].mxu0  ;;  %v6713_v4 = vpop.f32.mrb[58].mxu1 }
 0x851   : > { %v2703_v30 = vadd.f32 %v2702_v62, %v2593_v8  ;;  %v2704_v19 = vpop.f32.mrb[11].mxu0  ;;  %v6715_v15 = vpop.f32.mrb[59].mxu1  ;;  %v3103_v62 = vld [vmem:[#allocation14 + $0x2a8] sm:$0xff] }
 0x852   : > { %3350 = vmatprep.mubr.f32.mxu0 %v2987_v14  ;;  %v2705_v49 = vadd.f32 %v2704_v19, %v2597_v10  ;;  %v3098_v14 = vld [vmem:[#allocation14 + $0x280] sm:$0xff]  ;;  %v3104_v19 = vld [vmem:[#allocation14 + $0x2b0] sm:$0xff] }
 0x853   : > { %3351 = vmatmul.mubr.f32.vlgmr.msra.gmra.mrb[24].mxu0 %v2986_v5  ;;  %v2994_v47 = vmax.f32 %v2703_v30, 0.0  ;;  %v2989_v5 = vmax.f32 %v2788_v52, 0.0  ;;  %v3102_v30 = vld [vmem:[#allocation14 + $0x2a0] sm:$0xff] }
 0x854   : > { %4670 = vmatpush1.bf16.msra.mxu0 %v4669_v16  ;;  %v2995_v41 = vmax.f32 %v2705_v49, 0.0  ;;  %v2708_v56 = vpop.f32.mrb[12].mxu0  ;;  %v6718_v50 = vpop.f32.mrb[60].mxu1  ;;  %v3100_v16 = vld [vmem:[#allocation14 + $0x290] sm:$0xff]  ;;  %v4689_v38 = vpack.c.bf16 %v3104_v19, %v3102_v30  ;;  %v4691_v49 = vpack.c.bf16 %v3109_v44, %v3107_v7  ;;  %v3135_v30 = vld [vmem:[#allocation14 + $0x3a8] sm:$0xff]  ;;  %v3137_v19 = vld [vmem:[#allocation14 + $0x3b8] sm:$0xff] }
 0x855   : > { %4672 = vmatprep.subr.bf16.mxu0 %v4671_v23  ;;  %v2709_v42 = vadd.f32 %v2708_v56, %v2593_v8  ;;  %v2710_v27 = vpop.f32.mrb[13].mxu0  ;;  %v6720_v37 = vpop.f32.mrb[61].mxu1  ;;  %v3105_v23 = vld [vmem:[#allocation14 + $0x2b8] sm:$0xff]  ;;  %v4719_v44 = vpack.c.bf16 %v3137_v19, %v3135_v30  ;;  %v2612_v30 = vsub.s32 5, %v6187_v20  ;;  %v3155_v19 = vld [vmem:[#allocation14 + $0x448] sm:$0xff] }
 0x856   : > { %v2711_v63 = vadd.f32 %v2710_v27, %v2597_v10  ;;  %3356 = vmatprep.mubr.f32.mxu0 %v2995_v41  ;;  %v4687_v29 = vpack.c.bf16 %v3105_v23, %v3103_v62  ;;  %v3111_v41 = vld [vmem:[#allocation14 + $0x2e8] sm:$0xff]  ;;  %v3113_v56 = vld [vmem:[#allocation14 + $0x2f8] sm:$0xff]  ;;  %v3112_v27 = vld [vmem:[#allocation14 + $0x2f0] sm:$0xff] }
 0x857   : > { %3357 = vmatmul.mubr.f32.gmra.mrb[26].mxu0 %v2994_v47  ;;  %v3002_v35 = vmax.f32 %v2709_v42, 0.0  ;;  %v4695_v47 = vpack.c.bf16 %v3113_v56, %v3111_v41  ;;  %v3110_v42 = vld [vmem:[#allocation14 + $0x2e0] sm:$0xff]  ;;  %v2600_v56 = vsub.s32 2, %v6187_v20 }
 0x858   : > { %v3003_v34 = vmax.f32 %v2711_v63, 0.0  ;;  %4674 = vmatpush1.bf16.msra.mxu0 %v4673_v26  ;;  %v2714_v3 = vpop.f32.mrb[14].mxu0  ;;  %v6725_v46 = vpop.f32.mrb[62].mxu1  ;;  %v4693_v26 = vpack.c.bf16 %v3108_v1, %v3106_v25  ;;  %v4697_v6 = vpack.c.bf16 %v3112_v27, %v3110_v42  ;;  %v3139_v25 = vld [vmem:[#allocation14 + $0x3c8] sm:$0xff]  ;;  %v3141_v1 = vld [vmem:[#allocation14 + $0x3d8] sm:$0xff]  ;;  %v3140_v42 = vld [vmem:[#allocation14 + $0x3d0] sm:$0xff] }
 0x859   : > { %v2715_v40 = vadd.f32 %v2714_v3, %v2593_v8  ;;  %v2716_v58 = vpop.f32.mrb[15].mxu0  ;;  %v6727_v57 = vpop.f32.mrb[63].mxu1  ;;  %4676 = vmatprep.subr.bf16.mxu0 %v4675_v61  ;;  %v4683_v8 = vpack.c.bf16 %v3101_v33, %v3099_v51  ;;  %v3115_v61 = vld [vmem:[#allocation14 + $0x308] sm:$0xff]  ;;  %v3121_v3 = vld [vmem:[#allocation14 + $0x338] sm:$0xff]  ;;  %v3124_v51 = vld [vmem:[#allocation14 + $0x350] sm:$0xff] }
 0x85a   : > { %v2717_v17 = vadd.f32 %v2716_v58, %v2597_v10  ;;  %3362 = vmatprep.mubr.f32.mxu0 %v3003_v34  ;;  %v4685_v10 = vpack.c.bf16 %v3100_v16, %v3098_v14  ;;  %v4699_v63 = vpack.c.bf16 %v3117_v60, %v3115_v61  ;;  %v3119_v34 = vld [vmem:[#allocation14 + $0x328] sm:$0xff]  ;;  %v3120_v58 = vld [vmem:[#allocation14 + $0x330] sm:$0xff]  ;;  %v3145_v61 = vld [vmem:[#allocation14 + $0x3f8] sm:$0xff] }
 0x85b   : > { %3363 = vmatmul.mubr.f32.gmra.mrb[28].mxu0 %v3002_v35  ;;  %v3010_v13 = vmax.f32 %v2715_v40, 0.0  ;;  %v4703_v35 = vpack.c.bf16 %v3121_v3, %v3119_v34  ;;  %v3118_v40 = vld [vmem:[#allocation14 + $0x320] sm:$0xff]  ;;  %v3127_v33 = vld [vmem:[#allocation14 + $0x368] sm:$0xff]  ;;  %v3128_v14 = vld [vmem:[#allocation14 + $0x370] sm:$0xff] }
 0x85c   : > { %v3011_v43 = vmax.f32 %v2717_v17, 0.0  ;;  %4678 = vmatpush1.bf16.msra.mxu0 %v4677_v45  ;;  %v4701_v45 = vpack.c.bf16 %v3116_v28, %v3114_v39  ;;  %v4705_v24 = vpack.c.bf16 %v3120_v58, %v3118_v40  ;;  %v3122_v17 = vld [vmem:[#allocation14 + $0x340] sm:$0xff]  ;;  %v3131_v16 = vld [vmem:[#allocation14 + $0x388] sm:$0xff]  ;;  %v3144_v28 = vld [vmem:[#allocation14 + $0x3f0] sm:$0xff] }
 0x85d   : > { %4680 = vmatprep.subr.bf16.mxu0 %v4679_v9  ;;  %v3123_v9 = vld [vmem:[#allocation14 + $0x348] sm:$0xff]  ;;  %v3142_v39 = vld [vmem:[#allocation14 + $0x3e0] sm:$0xff]  ;;  %v3149_v3 = vld [vmem:[#allocation14 + $0x418] sm:$0xff] }
 0x85e   : > { %3368 = vmatprep.mubr.f32.mxu0 %v3011_v43  ;;  %v4707_v52 = vpack.c.bf16 %v3125_v21, %v3123_v9  ;;  %v3129_v43 = vld [vmem:[#allocation14 + $0x378] sm:$0xff]  ;;  %v3143_v27 = vld [vmem:[#allocation14 + $0x3e8] sm:$0xff]  ;;  %v4729_v40 = vpack.c.bf16 %v3144_v28, %v3142_v39 }
 0x85f   : > { %3369 = vmatmul.mubr.f32.gmra.mrb[30].mxu0 %v3010_v13  ;;  %v4711_v13 = vpack.c.bf16 %v3129_v43, %v3127_v33  ;;  %v3147_v34 = vld [vmem:[#allocation14 + $0x408] sm:$0xff]  ;;  %v3153_v43 = vld [vmem:[#allocation14 + $0x438] sm:$0xff] }
 0x860   : > { %4682 = vmatpush1.bf16.msra.mxu0 %v4681_v18  ;;  %3439 = vmatprep.mubr.f32.mxu0 %v2989_v5  ;;  %v4709_v18 = vpack.c.bf16 %v3124_v51, %v3122_v17  ;;  %v3133_v5 = vld [vmem:[#allocation14 + $0x398] sm:$0xff]  ;;  %v3148_v17 = vld [vmem:[#allocation14 + $0x410] sm:$0xff]  ;;  %v2794_v51 = vadd.f32 %v6715_v15, %v6723_v0  ;;  %v3151_v33 = vld [vmem:[#allocation14 + $0x428] sm:$0xff] }
 0x861   : > { %4684 = vmatprep.subr.bf16.mxu0 %v4683_v8  ;;  %v3126_v8 = vld [vmem:[#allocation14 + $0x360] sm:$0xff]  ;;  %v4715_v23 = vpack.c.bf16 %v3133_v5, %v3131_v16  ;;  %v3152_v15 = vld [vmem:[#allocation14 + $0x430] sm:$0xff] }
 0x862   : > { %v4713_v62 = vpack.c.bf16 %v3128_v14, %v3126_v8 }
 0x864   : > { %4686 = vmatpush1.bf16.msra.mxu0 %v4685_v10  ;;  %v3130_v10 = vld [vmem:[#allocation14 + $0x380] sm:$0xff] }
 0x865   : > { %4688 = vmatprep.subr.bf16.mxu0 %v4687_v29  ;;  %v3132_v29 = vld [vmem:[#allocation14 + $0x390] sm:$0xff] }
 0x866   : > { %v4717_v7 = vpack.c.bf16 %v3132_v29, %v3130_v10  ;;  %v2997_v10 = vmax.f32 %v2794_v51, 0.0  ;;  %v2800_v29 = vadd.f32 %v6720_v37, %v6723_v0  ;;  %v3165_v51 = vld [vmem:[#allocation14 + $0x498] sm:$0xff] }
 0x868   : > { %4690 = vmatpush1.bf16.msra.mxu0 %v4689_v38  ;;  %v3134_v38 = vld [vmem:[#allocation14 + $0x3a0] sm:$0xff] }
 0x869   : > { %4692 = vmatprep.subr.bf16.mxu0 %v4691_v49  ;;  %v3136_v49 = vld [vmem:[#allocation14 + $0x3b0] sm:$0xff] }
 0x86a   : > { %v4721_v41 = vpack.c.bf16 %v3136_v49, %v3134_v38 }
 0x86c   : > { %4694 = vmatpush1.bf16.msra.mxu0 %v4693_v26  ;;  %v4723_v26 = vpack.c.bf16 %v3141_v1, %v3139_v25 }
 0x86d   : > { %4696 = vmatprep.subr.bf16.mxu0 %v4695_v47  ;;  %v3138_v47 = vld [vmem:[#allocation14 + $0x3c0] sm:$0xff] }
 0x86e   : > { %v4725_v60 = vpack.c.bf16 %v3140_v42, %v3138_v47  ;;  %v3005_v47 = vmax.f32 %v2800_v29, 0.0  ;;  %v2806_v42 = vadd.f32 %v6727_v57, %v6723_v0  ;;  %v3171_v29 = vld [vmem:[#allocation14 + $0x4c8] sm:$0xff] }
 0x870   : > { %4698 = vmatpush1.bf16.msra.mxu0 %v4697_v6  ;;  %v6732_v6 = vrot.slane %v6705_v48, %v2600_v56  ;;  %v3154_v56 = vld [vmem:[#allocation14 + $0x440] sm:$0xff] }
 0x871   : > { %4700 = vmatprep.subr.bf16.mxu0 %v4699_v63  ;;  %v4727_v63 = vpack.c.bf16 %v3145_v61, %v3143_v27  ;;  %v6770_v27 = vrot.slane %v6705_v48, %v2612_v30  ;;  %v3159_v61 = vld [vmem:[#allocation14 + $0x468] sm:$0xff]  ;;  %v3173_v30 = vld [vmem:[#allocation14 + $0x4d8] sm:$0xff] }
 0x872   : > { %v2786_v58 = vadd.f32 %v6711_v53, %v6732_v6  ;;  %v2792_v53 = vadd.f32 %v6713_v4, %v6732_v6  ;;  %v2798_v25 = vadd.f32 %v6718_v50, %v6732_v6 }
 0x874   : > { %4702 = vmatpush1.bf16.msra.mxu0 %v4701_v45  ;;  %v2988_v14 = vmax.f32 %v2786_v58, 0.0  ;;  %v2996_v49 = vmax.f32 %v2792_v53, 0.0  ;;  %v3004_v28 = vmax.f32 %v2798_v25, 0.0  ;;  %v3160_v58 = vld [vmem:[#allocation14 + $0x470] sm:$0xff]  ;;  %v3167_v53 = vld [vmem:[#allocation14 + $0x4a8] sm:$0xff] }
 0x875   : > { %4704 = vmatprep.subr.bf16.mxu0 %v4703_v35  ;;  %v3175_v25 = vld [vmem:[#allocation14 + $0x4e8] sm:$0xff] }
 0x878   : > { %4706 = vmatpush1.bf16.msra.mxu0 %v4705_v24  ;;  %v4731_v24 = vpack.c.bf16 %v3149_v3, %v3147_v34  ;;  %v2804_v34 = vadd.f32 %v6725_v46, %v6732_v6  ;;  %v3162_v6 = vld [vmem:[#allocation14 + $0x480] sm:$0xff] }
 0x879   : > { %4708 = vmatprep.subr.bf16.mxu0 %v4707_v52  ;;  %v3146_v52 = vld [vmem:[#allocation14 + $0x400] sm:$0xff] }
 0x87a   : > { %v4733_v8 = vpack.c.bf16 %v3148_v17, %v3146_v52  ;;  %v3163_v17 = vld [vmem:[#allocation14 + $0x488] sm:$0xff] }
 0x87b   : > { %v4747_v46 = vpack.c.bf16 %v3165_v51, %v3163_v17  ;;  %v3182_v17 = vld [vmem:[#allocation14 + $0x520] sm:$0xff]  ;;  %v3184_v51 = vld [vmem:[#allocation14 + $0x530] sm:$0xff] }
 0x87c   : > { %4710 = vmatpush1.bf16.msra.mxu0 %v4709_v18 }
 0x87d   : > { %4712 = vmatprep.subr.bf16.mxu0 %v4711_v13 }
 0x880   : > { %4714 = vmatpush1.bf16.msra.mxu0 %v4713_v62  ;;  %v4735_v62 = vpack.c.bf16 %v3153_v43, %v3151_v33  ;;  %v3012_v43 = vmax.f32 %v2804_v34, 0.0  ;;  %v3178_v34 = vld [vmem:[#allocation14 + $0x500] sm:$0xff] }
 0x881   : > { %4716 = vmatprep.subr.bf16.mxu0 %v4715_v23  ;;  %v3150_v23 = vld [vmem:[#allocation14 + $0x420] sm:$0xff] }
 0x882   : > { %v4737_v38 = vpack.c.bf16 %v3152_v15, %v3150_v23  ;;  %v3166_v15 = vld [vmem:[#allocation14 + $0x4a0] sm:$0xff] }
 0x884   : > { %4718 = vmatpush1.bf16.msra.mxu0 %v4717_v7  ;;  %v3157_v7 = vld [vmem:[#allocation14 + $0x458] sm:$0xff] }
 0x885   : > { %4720 = vmatprep.subr.bf16.mxu0 %v4719_v44  ;;  %v4739_v37 = vpack.c.bf16 %v3157_v7, %v3155_v19  ;;  %v4755_v7 = vpack.c.bf16 %v3173_v30, %v3171_v29  ;;  %v3195_v29 = vld [vmem:[#allocation14 + $0x588] sm:$0xff]  ;;  %v3197_v30 = vld [vmem:[#allocation14 + $0x598] sm:$0xff] }
 0x888   : > { %4722 = vmatpush1.bf16.msra.mxu0 %v4721_v41 }
 0x889   : > { %4724 = vmatprep.subr.bf16.mxu0 %v4723_v26  ;;  %v3156_v26 = vld [vmem:[#allocation14 + $0x450] sm:$0xff] }
 0x88a   : > { %v4741_v39 = vpack.c.bf16 %v3156_v26, %v3154_v56 }
 0x88c   : > { %v6734_v45 = vpop.f32.mrb[16].mxu0  ;;  %v6736_v35 = vpop.f32.mrb[64].mxu1  ;;  %4726 = vmatpush1.bf16.msra.mxu0 %v4725_v60  ;;  %v3161_v60 = vld [vmem:[#allocation14 + $0x478] sm:$0xff] }
 0x88d   : > { %v2876_v9 = vpop.f32.mrb[17].mxu0  ;;  %v6740_v21 = vpop.f32.mrb[65].mxu1  ;;  %4728 = vmatprep.subr.bf16.mxu0 %v4727_v63  ;;  %v4743_v57 = vpack.c.bf16 %v3161_v60, %v3159_v61  ;;  %v3179_v61 = vld [vmem:[#allocation14 + $0x508] sm:$0xff]  ;;  %v3181_v60 = vld [vmem:[#allocation14 + $0x518] sm:$0xff] }
 0x88e   : > { %v2877_v52 = vadd.f32 %v2876_v9, %v6770_v27 }
 0x890   : > { %v6744_v18 = vpop.f32.mrb[18].mxu0  ;;  %v6746_v13 = vpop.f32.mrb[66].mxu1  ;;  %4730 = vmatpush1.bf16.msra.mxu0 %v4729_v40  ;;  %v3158_v40 = vld [vmem:[#allocation14 + $0x460] sm:$0xff] }
 0x891   : > { %v6750_v16 = vpop.f32.mrb[19].mxu0  ;;  %v6752_v5 = vpop.f32.mrb[67].mxu1  ;;  %4732 = vmatprep.subr.bf16.mxu0 %v4731_v24  ;;  %v3013_v24 = vmax.f32 %v2806_v42, 0.0  ;;  %v4745_v33 = vpack.c.bf16 %v3160_v58, %v3158_v40  ;;  %v3176_v42 = vld [vmem:[#allocation14 + $0x4f0] sm:$0xff]  ;;  %v3183_v40 = vld [vmem:[#allocation14 + $0x528] sm:$0xff]  ;;  %v3185_v58 = vld [vmem:[#allocation14 + $0x538] sm:$0xff] }
 0x893   : > { %3440 = vmatmul.mubr.f32.vlgmr.msra.gmra.mrb[24].mxu0 %v2988_v14  ;;  %v2991_v14 = vmax.f32 %v2877_v52, 0.0  ;;  %v4767_v52 = vpack.c.bf16 %v3185_v58, %v3183_v40  ;;  %v3204_v40 = vld [vmem:[#allocation14 + $0x5d0] sm:$0xff]  ;;  %v3207_v58 = vld [vmem:[#allocation14 + $0x5e8] sm:$0xff] }
 0x894   : > { %v6757_v44 = vpop.f32.mrb[20].mxu0  ;;  %v6759_v4 = vpop.f32.mrb[68].mxu1  ;;  %3445 = vmatprep.mubr.f32.mxu0 %v2997_v10  ;;  %4734 = vmatpush1.bf16.msra.mxu0 %v4733_v8  ;;  %v3164_v8 = vld [vmem:[#allocation14 + $0x490] sm:$0xff] }
 0x895   : > { %v6763_v1 = vpop.f32.mrb[21].mxu0  ;;  %v6765_v41 = vpop.f32.mrb[69].mxu1  ;;  %4736 = vmatprep.subr.bf16.mxu0 %v4735_v62  ;;  %v3169_v62 = vld [vmem:[#allocation14 + $0x4b8] sm:$0xff]  ;;  %v4749_v23 = vpack.c.bf16 %v3164_v8, %v3162_v6  ;;  %v3168_v10 = vld [vmem:[#allocation14 + $0x4b0] sm:$0xff]  ;;  %v3186_v8 = vld [vmem:[#allocation14 + $0x540] sm:$0xff] }
 0x896   : > { %v4751_v9 = vpack.c.bf16 %v3169_v62, %v3167_v53  ;;  %v4753_v19 = vpack.c.bf16 %v3168_v10, %v3166_v15  ;;  %v3191_v53 = vld [vmem:[#allocation14 + $0x568] sm:$0xff]  ;;  %v3193_v62 = vld [vmem:[#allocation14 + $0x578] sm:$0xff]  ;;  %v3190_v15 = vld [vmem:[#allocation14 + $0x560] sm:$0xff] }
 0x897   : > { %3446 = vmatmul.mubr.f32.gmra.mrb[26].mxu0 %v2996_v49  ;;  %v3172_v49 = vld [vmem:[#allocation14 + $0x4d0] sm:$0xff] }
 0x898   : > { %v6772_v63 = vpop.f32.mrb[22].mxu0  ;;  %v6774_v50 = vpop.f32.mrb[70].mxu1  ;;  %3451 = vmatprep.mubr.f32.mxu0 %v3005_v47  ;;  %4738 = vmatpush1.bf16.msra.mxu0 %v4737_v38  ;;  %v3170_v38 = vld [vmem:[#allocation14 + $0x4c0] sm:$0xff]  ;;  %v3192_v10 = vld [vmem:[#allocation14 + $0x570] sm:$0xff] }
 0x899   : > { %v6778_v3 = vpop.f32.mrb[23].mxu0  ;;  %v6780_v0 = vpop.f32.mrb[71].mxu1  ;;  %4740 = vmatprep.subr.bf16.mxu0 %v4739_v37  ;;  %v3177_v37 = vld [vmem:[#allocation14 + $0x4f8] sm:$0xff]  ;;  %v4757_v56 = vpack.c.bf16 %v3172_v49, %v3170_v38  ;;  %v3174_v47 = vld [vmem:[#allocation14 + $0x4e0] sm:$0xff]  ;;  %v3196_v49 = vld [vmem:[#allocation14 + $0x590] sm:$0xff] }
 0x89a   : > { %v4759_v26 = vpack.c.bf16 %v3177_v37, %v3175_v25  ;;  %v3194_v38 = vld [vmem:[#allocation14 + $0x580] sm:$0xff]  ;;  %v3199_v25 = vld [vmem:[#allocation14 + $0x5a8] sm:$0xff]  ;;  %v3201_v37 = vld [vmem:[#allocation14 + $0x5b8] sm:$0xff] }
 0x89b   : > { %3452 = vmatmul.mubr.f32.gmra.mrb[28].mxu0 %v3004_v28  ;;  %v4763_v28 = vpack.c.bf16 %v3181_v60, %v3179_v61  ;;  %v3203_v61 = vld [vmem:[#allocation14 + $0x5c8] sm:$0xff]  ;;  %v3205_v60 = vld [vmem:[#allocation14 + $0x5d8] sm:$0xff] }
 0x89c   : > { %3457 = vmatprep.mubr.f32.mxu0 %v3013_v24  ;;  %4742 = vmatpush1.bf16.msra.mxu0 %v4741_v39  ;;  %v4761_v39 = vpack.c.bf16 %v3176_v42, %v3174_v47  ;;  %v3198_v47 = vld [vmem:[#allocation14 + $0x5a0] sm:$0xff]  ;;  %v3200_v42 = vld [vmem:[#allocation14 + $0x5b0] sm:$0xff] }
 0x89d   : > { %4744 = vmatprep.subr.bf16.mxu0 %v4743_v57  ;;  %v3180_v57 = vld [vmem:[#allocation14 + $0x510] sm:$0xff] }
 0x89e   : > { %v4765_v24 = vpack.c.bf16 %v3180_v57, %v3178_v34  ;;  %v4787_v34 = vpack.c.bf16 %v3205_v60, %v3203_v61  ;;  %v3202_v57 = vld [vmem:[#allocation14 + $0x5c0] sm:$0xff]  ;;  %v3220_v60 = vld [vmem:[#allocation14 + $0x650] sm:$0xff] }
 0x89f   : > { %3458 = vmatmul.mubr.f32.gmra.mrb[30].mxu0 %v3012_v43  ;;  %v3189_v43 = vld [vmem:[#allocation14 + $0x558] sm:$0xff]  ;;  %v3218_v61 = vld [vmem:[#allocation14 + $0x640] sm:$0xff] }
 0x8a0   : > { %4746 = vmatpush1.bf16.msra.mxu0 %v4745_v33  ;;  %3528 = vmatprep.mubr.f32.mxu0 %v2991_v14  ;;  %v3187_v33 = vld [vmem:[#allocation14 + $0x548] sm:$0xff]  ;;  %v3188_v14 = vld [vmem:[#allocation14 + $0x550] sm:$0xff] }
 0x8a1   : > { %4748 = vmatprep.subr.bf16.mxu0 %v4747_v46  ;;  %v4769_v46 = vpack.c.bf16 %v3184_v51, %v3182_v17  ;;  %v4771_v6 = vpack.c.bf16 %v3189_v43, %v3187_v33  ;;  %v3206_v33 = vld [vmem:[#allocation14 + $0x5e0] sm:$0xff]  ;;  %v3208_v43 = vld [vmem:[#allocation14 + $0x5f0] sm:$0xff] }
 0x8a4   : > { %4750 = vmatpush1.bf16.msra.mxu0 %v4749_v23  ;;  %v4773_v23 = vpack.c.bf16 %v3188_v14, %v3186_v8  ;;  %v4793_v8 = vpack.c.bf16 %v3208_v43, %v3206_v33 }
 0x8a5   : > { %4752 = vmatprep.subr.bf16.mxu0 %v4751_v9  ;;  %v4775_v9 = vpack.c.bf16 %v3193_v62, %v3191_v53  ;;  %v3210_v62 = vld [vmem:[#allocation14 + $0x600] sm:$0xff] }
 0x8a8   : > { %4754 = vmatpush1.bf16.msra.mxu0 %v4753_v19  ;;  %v4777_v19 = vpack.c.bf16 %v3192_v10, %v3190_v15  ;;  %v3215_v15 = vld [vmem:[#allocation14 + $0x628] sm:$0xff]  ;;  %v3217_v10 = vld [vmem:[#allocation14 + $0x638] sm:$0xff] }
 0x8a9   : > { %4756 = vmatprep.subr.bf16.mxu0 %v4755_v7  ;;  %v4779_v7 = vpack.c.bf16 %v3197_v30, %v3195_v29 }
 0x8ac   : > { %4758 = vmatpush1.bf16.msra.mxu0 %v4757_v56  ;;  %v4781_v56 = vpack.c.bf16 %v3196_v49, %v3194_v38  ;;  %v3214_v38 = vld [vmem:[#allocation14 + $0x620] sm:$0xff]  ;;  %v3216_v49 = vld [vmem:[#allocation14 + $0x630] sm:$0xff] }
 0x8ad   : > { %4760 = vmatprep.subr.bf16.mxu0 %v4759_v26  ;;  %v4783_v26 = vpack.c.bf16 %v3201_v37, %v3199_v25  ;;  %v2889_v37 = vadd.f32 %v6763_v1, %v6770_v27  ;;  %v2895_v1 = vadd.f32 %v6778_v3, %v6770_v27 }
 0x8af   : > { %v3015_v43 = vmax.f32 %v2895_v1, 0.0  ;;  %v3249_v1 = vld [vmem:[#allocation14 + $0x738] sm:$0xff] }
 0x8b0   : > { %4762 = vmatpush1.bf16.msra.mxu0 %v4761_v39  ;;  %v4785_v39 = vpack.c.bf16 %v3200_v42, %v3198_v47 }
 0x8b1   : > { %4764 = vmatprep.subr.bf16.mxu0 %v4763_v28  ;;  %v2608_v28 = vsub.s32 4, %v6187_v20 }
 0x8b3   : > { %v2609_v17 = vrot.slane %v6705_v48, %v2608_v28  ;;  %v3007_v28 = vmax.f32 %v2889_v37, 0.0 }
 0x8b4   : > { %4766 = vmatpush1.bf16.msra.mxu0 %v4765_v24  ;;  %v3209_v24 = vld [vmem:[#allocation14 + $0x5f8] sm:$0xff] }
 0x8b5   : > { %4768 = vmatprep.subr.bf16.mxu0 %v4767_v52  ;;  %v4789_v52 = vpack.c.bf16 %v3204_v40, %v3202_v57  ;;  %v4791_v51 = vpack.c.bf16 %v3209_v24, %v3207_v58  ;;  %v2875_v14 = vadd.f32 %v6734_v45, %v2609_v17  ;;  %v2620_v45 = vsub.s32 7, %v6187_v20  ;;  %v3225_v57 = vld [vmem:[#allocation14 + $0x678] sm:$0xff] }
 0x8b6   : > { %v2887_v42 = vadd.f32 %v6757_v44, %v2609_v17  ;;  %v4805_v40 = vpack.c.bf16 %v3220_v60, %v3218_v61  ;;  %v2893_v44 = vadd.f32 %v6772_v63, %v2609_v17  ;;  %v3242_v61 = vld [vmem:[#allocation14 + $0x700] sm:$0xff]  ;;  %v3244_v60 = vld [vmem:[#allocation14 + $0x710] sm:$0xff] }
 0x8b7   : > { %v2990_v30 = vmax.f32 %v2875_v14, 0.0  ;;  %v3226_v14 = vld [vmem:[#allocation14 + $0x680] sm:$0xff] }
 0x8b8   : > { %4770 = vmatpush1.bf16.msra.mxu0 %v4769_v46  ;;  %v3211_v46 = vld [vmem:[#allocation14 + $0x608] sm:$0xff]  ;;  %v3006_v58 = vmax.f32 %v2887_v42, 0.0  ;;  %v3014_v3 = vmax.f32 %v2893_v44, 0.0 }
 0x8b9   : > { %4772 = vmatprep.subr.bf16.mxu0 %v4771_v6  ;;  %v3213_v6 = vld [vmem:[#allocation14 + $0x618] sm:$0xff]  ;;  %v3251_v44 = vld [vmem:[#allocation14 + $0x748] sm:$0xff] }
 0x8ba   : > { %v4795_v53 = vpack.c.bf16 %v3213_v6, %v3211_v46  ;;  %v3227_v46 = vld [vmem:[#allocation14 + $0x688] sm:$0xff]  ;;  %v3229_v6 = vld [vmem:[#allocation14 + $0x698] sm:$0xff] }
 0x8bc   : > { %4774 = vmatpush1.bf16.msra.mxu0 %v4773_v23  ;;  %v3212_v23 = vld [vmem:[#allocation14 + $0x610] sm:$0xff] }
 0x8bd   : > { %4776 = vmatprep.subr.bf16.mxu0 %v4775_v9  ;;  %v2883_v9 = vadd.f32 %v6750_v16, %v6770_v27  ;;  %v4797_v29 = vpack.c.bf16 %v3212_v23, %v3210_v62  ;;  %v4801_v16 = vpack.c.bf16 %v3216_v49, %v3214_v38  ;;  %v3233_v62 = vld [vmem:[#allocation14 + $0x6b8] sm:$0xff]  ;;  %v3236_v38 = vld [vmem:[#allocation14 + $0x6d0] sm:$0xff]  ;;  %v3239_v49 = vld [vmem:[#allocation14 + $0x6e8] sm:$0xff] }
 0x8bf   : > { %v2999_v25 = vmax.f32 %v2883_v9, 0.0  ;;  %v3230_v9 = vld [vmem:[#allocation14 + $0x6a0] sm:$0xff] }
 0x8c0   : > { %4778 = vmatpush1.bf16.msra.mxu0 %v4777_v19  ;;  %v2881_v19 = vadd.f32 %v6744_v18, %v2609_v17  ;;  %v3231_v17 = vld [vmem:[#allocation14 + $0x6a8] sm:$0xff] }
 0x8c1   : > { %4780 = vmatprep.subr.bf16.mxu0 %v4779_v7  ;;  %v4799_v7 = vpack.c.bf16 %v3217_v10, %v3215_v15  ;;  %v3232_v15 = vld [vmem:[#allocation14 + $0x6b0] sm:$0xff]  ;;  %v3235_v10 = vld [vmem:[#allocation14 + $0x6c8] sm:$0xff] }
 0x8c2   : > { %v2998_v47 = vmax.f32 %v2881_v19, 0.0 }
 0x8c4   : > { %4782 = vmatpush1.bf16.msra.mxu0 %v4781_v56  ;;  %v3219_v56 = vld [vmem:[#allocation14 + $0x648] sm:$0xff] }
 0x8c5   : > { %4784 = vmatprep.subr.bf16.mxu0 %v4783_v26  ;;  %v3221_v26 = vld [vmem:[#allocation14 + $0x658] sm:$0xff] }
 0x8c6   : > { %v4803_v18 = vpack.c.bf16 %v3221_v26, %v3219_v56  ;;  %v3238_v56 = vld [vmem:[#allocation14 + $0x6e0] sm:$0xff]  ;;  %v3240_v26 = vld [vmem:[#allocation14 + $0x6f0] sm:$0xff] }
 0x8c7   : > { %v4825_v42 = vpack.c.bf16 %v3240_v26, %v3238_v56  ;;  %v3268_v56 = vld [vmem:[#allocation14 + $0x7d0] sm:$0xff]  ;;  %v3271_v26 = vld [vmem:[#allocation14 + $0x7e8] sm:$0xff] }
 0x8c8   : > { %4786 = vmatpush1.bf16.msra.mxu0 %v4785_v39  ;;  %v6794_v39 = vrot.slane %v6705_v48, %v2620_v45  ;;  %v3241_v45 = vld [vmem:[#allocation14 + $0x6f8] sm:$0xff] }
 0x8c9   : > { %4788 = vmatprep.subr.bf16.mxu0 %v4787_v34  ;;  %v3223_v34 = vld [vmem:[#allocation14 + $0x668] sm:$0xff]  ;;  %v4823_v37 = vpack.c.bf16 %v3241_v45, %v3239_v49  ;;  %v2616_v45 = vsub.s32 6, %v6187_v20 }
 0x8ca   : > { %v4807_v24 = vpack.c.bf16 %v3225_v57, %v3223_v34  ;;  %v2966_v33 = vadd.f32 %v6740_v21, %v6794_v39  ;;  %v4815_v21 = vpack.c.bf16 %v3233_v62, %v3231_v17  ;;  %v4829_v34 = vpack.c.bf16 %v3244_v60, %v3242_v61  ;;  %v3270_v61 = vld [vmem:[#allocation14 + $0x7e0] sm:$0xff]  ;;  %v3272_v60 = vld [vmem:[#allocation14 + $0x7f0] sm:$0xff] }
 0x8cb   : > { %v2972_v20 = vadd.f32 %v6752_v5, %v6794_v39 }
 0x8cc   : > { %4790 = vmatpush1.bf16.msra.mxu0 %v4789_v52  ;;  %v3222_v52 = vld [vmem:[#allocation14 + $0x660] sm:$0xff]  ;;  %v2993_v63 = vmax.f32 %v2966_v33, 0.0 }
 0x8cd   : > { %4792 = vmatprep.subr.bf16.mxu0 %v4791_v51  ;;  %v3224_v51 = vld [vmem:[#allocation14 + $0x670] sm:$0xff]  ;;  %v3250_v33 = vld [vmem:[#allocation14 + $0x740] sm:$0xff] }
 0x8ce   : > { %v4809_v27 = vpack.c.bf16 %v3224_v51, %v3222_v52 }
 0x8d0   : > { %4794 = vmatpush1.bf16.msra.mxu0 %v4793_v8  ;;  %v4811_v8 = vpack.c.bf16 %v3229_v6, %v3227_v46  ;;  %v3255_v46 = vld [vmem:[#allocation14 + $0x768] sm:$0xff]  ;;  %v3257_v6 = vld [vmem:[#allocation14 + $0x778] sm:$0xff] }
 0x8d1   : > { %4796 = vmatprep.subr.bf16.mxu0 %v4795_v53  ;;  %v3228_v53 = vld [vmem:[#allocation14 + $0x690] sm:$0xff] }
 0x8d2   : > { %v4813_v23 = vpack.c.bf16 %v3228_v53, %v3226_v14  ;;  %v3256_v14 = vld [vmem:[#allocation14 + $0x770] sm:$0xff]  ;;  %v3259_v53 = vld [vmem:[#allocation14 + $0x788] sm:$0xff] }
 0x8d3   : > { %3529 = vmatmul.mubr.f32.vlgmr.msra.gmra.mrb[24].mxu0 %v2990_v30  ;;  %v4817_v30 = vpack.c.bf16 %v3232_v15, %v3230_v9  ;;  %v3263_v9 = vld [vmem:[#allocation14 + $0x7a8] sm:$0xff]  ;;  %v3265_v15 = vld [vmem:[#allocation14 + $0x7b8] sm:$0xff] }
 0x8d4   : > { %3534 = vmatprep.mubr.f32.mxu0 %v2999_v25  ;;  %4798 = vmatpush1.bf16.msra.mxu0 %v4797_v29  ;;  %v3237_v29 = vld [vmem:[#allocation14 + $0x6d8] sm:$0xff] }
 0x8d5   : > { %4800 = vmatprep.subr.bf16.mxu0 %v4799_v7  ;;  %v4819_v19 = vpack.c.bf16 %v3237_v29, %v3235_v10  ;;  %v3234_v7 = vld [vmem:[#allocation14 + $0x6c0] sm:$0xff]  ;;  %v4847_v29 = vpack.c.bf16 %v3265_v15, %v3263_v9 }
 0x8d6   : > { %v4821_v25 = vpack.c.bf16 %v3236_v38, %v3234_v7  ;;  %v3267_v7 = vld [vmem:[#allocation14 + $0x7c8] sm:$0xff]  ;;  %v3269_v38 = vld [vmem:[#allocation14 + $0x7d8] sm:$0xff] }
 0x8d7   : > { %3535 = vmatmul.mubr.f32.gmra.mrb[26].mxu0 %v2998_v47  ;;  %v3245_v47 = vld [vmem:[#allocation14 + $0x718] sm:$0xff] }
 0x8d8   : > { %3540 = vmatprep.mubr.f32.mxu0 %v3007_v28  ;;  %4802 = vmatpush1.bf16.msra.mxu0 %v4801_v16  ;;  %v3243_v16 = vld [vmem:[#allocation14 + $0x708] sm:$0xff] }
 0x8d9   : > { %4804 = vmatprep.subr.bf16.mxu0 %v4803_v18  ;;  %v4827_v18 = vpack.c.bf16 %v3245_v47, %v3243_v16  ;;  %v3247_v28 = vld [vmem:[#allocation14 + $0x728] sm:$0xff]  ;;  %v3273_v16 = vld [vmem:[#allocation14 + $0x7f8] sm:$0xff] }
 0x8da   : > { %v4831_v57 = vpack.c.bf16 %v3249_v1, %v3247_v28  ;;  %v4857_v28 = vpack.c.bf16 %v3272_v60, %v3270_v61 }
 0x8db   : > { %3541 = vmatmul.mubr.f32.gmra.mrb[28].mxu0 %v3006_v58  ;;  %v3248_v58 = vld [vmem:[#allocation14 + $0x730] sm:$0xff] }
 0x8dc   : > { %3546 = vmatprep.mubr.f32.mxu0 %v3015_v43  ;;  %4806 = vmatpush1.bf16.msra.mxu0 %v4805_v40  ;;  %v3246_v40 = vld [vmem:[#allocation14 + $0x720] sm:$0xff]  ;;  %v3252_v43 = vld [vmem:[#allocation14 + $0x750] sm:$0xff] }
 0x8dd   : > { %4808 = vmatprep.subr.bf16.mxu0 %v4807_v24  ;;  %v3253_v24 = vld [vmem:[#allocation14 + $0x758] sm:$0xff]  ;;  %v4833_v52 = vpack.c.bf16 %v3248_v58, %v3246_v40  ;;  %v3001_v40 = vmax.f32 %v2972_v20, 0.0 }
 0x8de   : > { %v4835_v51 = vpack.c.bf16 %v3253_v24, %v3251_v44 }
 0x8df   : > { %3547 = vmatmul.mubr.f32.gmra.mrb[30].mxu0 %v3014_v3  ;;  %v4839_v3 = vpack.c.bf16 %v3257_v6, %v3255_v46 }
 0x8e0   : > { %4810 = vmatpush1.bf16.msra.mxu0 %v4809_v27  ;;  %3617 = vmatprep.mubr.f32.mxu0 %v2993_v63  ;;  %v4837_v27 = vpack.c.bf16 %v3252_v43, %v3250_v33  ;;  %v3261_v63 = vld [vmem:[#allocation14 + $0x798] sm:$0xff] }
 0x8e1   : > { %4812 = vmatprep.subr.bf16.mxu0 %v4811_v8  ;;  %v3254_v8 = vld [vmem:[#allocation14 + $0x760] sm:$0xff]  ;;  %v4843_v62 = vpack.c.bf16 %v3261_v63, %v3259_v53 }
 0x8e2   : > { %v4841_v17 = vpack.c.bf16 %v3256_v14, %v3254_v8 }
 0x8e4   : > { %4814 = vmatpush1.bf16.msra.mxu0 %v4813_v23  ;;  %v3258_v23 = vld [vmem:[#allocation14 + $0x780] sm:$0xff] }
 0x8e5   : > { %4816 = vmatprep.subr.bf16.mxu0 %v4815_v21  ;;  %v3260_v21 = vld [vmem:[#allocation14 + $0x790] sm:$0xff] }
 0x8e6   : > { %v4845_v10 = vpack.c.bf16 %v3260_v21, %v3258_v23 }
 0x8e8   : > { %4818 = vmatpush1.bf16.msra.mxu0 %v4817_v30  ;;  %v3262_v30 = vld [vmem:[#allocation14 + $0x7a0] sm:$0xff] }
 0x8e9   : > { %4820 = vmatprep.subr.bf16.mxu0 %v4819_v19  ;;  %v3264_v19 = vld [vmem:[#allocation14 + $0x7b0] sm:$0xff] }
 0x8ea   : > { %v4849_v49 = vpack.c.bf16 %v3264_v19, %v3262_v30 }
 0x8ec   : > { %4822 = vmatpush1.bf16.msra.mxu0 %v4821_v25  ;;  %v4851_v25 = vpack.c.bf16 %v3269_v38, %v3267_v7 }
 0x8ed   : > { %4824 = vmatprep.subr.bf16.mxu0 %v4823_v37  ;;  %v3266_v37 = vld [vmem:[#allocation14 + $0x7c0] sm:$0xff] }
 0x8ee   : > { %v4853_v47 = vpack.c.bf16 %v3268_v56, %v3266_v37 }
 0x8f0   : > { %4826 = vmatpush1.bf16.msra.mxu0 %v4825_v42  ;;  %v2617_v42 = vrot.slane %v6705_v48, %v2616_v45  ;;  %v2978_v48 = vadd.f32 %v6765_v41, %v6794_v39  ;;  %v3274_v41 = vld [vmem:[%s7010_s18] sm:$0x3]  ;;  %s5378_s18 = sshll.u32 %s5531_s13, 4  ;;  %s5379_s18 = int_to_ptr.vmem [resolvable:$false] %s5378_s18 }
 0x8f1   : > { %4828 = vmatprep.subr.bf16.mxu0 %v4827_v18  ;;  %v4855_v18 = vpack.c.bf16 %v3273_v16, %v3271_v26  ;;  %s5380_s0 = scalar_lea.vmem %s5379_s18, 2048  ;;  %p5381_p0 = scmp.lt.s32.totalorder %s6836_s1, %s5379_s18 }
 0x8f2   : > { %v2964_v1 = vadd.f32 %v6736_v35, %v2617_v42  ;;  %v2976_v44 = vadd.f32 %v6759_v4, %v2617_v42  ;;  %v3009_v24 = vmax.f32 %v2978_v48, 0.0  ;;  %v2984_v35 = vadd.f32 %v6780_v0, %v6794_v39  ;;  %p5382_p9 = scmp.lt.s32.totalorder %s5380_s0, %s5374_s14 }
 0x8f3   : > { %v3279_v4 = vrot.slane %v3274_v41, %v6194_v31  ;;  %v3283_v0 = vrot.slane %v3274_v41, %v6197_v32 }
 0x8f4   : > { %4830 = vmatpush1.bf16.msra.mxu0 %v4829_v34  ;;  %v2992_v34 = vmax.f32 %v2964_v1, 0.0  ;;  %v3008_v5 = vmax.f32 %v2976_v44, 0.0  ;;  %p5383_p11 = por %p5382_p9, %p5381_p0 }
 0x8f5   : > { %4832 = vmatprep.subr.bf16.mxu0 %v4831_v57  ;;  %v2970_v57 = vadd.f32 %v6746_v13, %v2617_v42  ;;  %v3017_v13 = vmax.f32 %v2984_v35, 0.0 }
 0x8f6   : > { %p5384_p7 = pnand %p5383_p11, %p5377_p8 }
 0x8f7   : > { %v3000_v58 = vmax.f32 %v2970_v57, 0.0 }
 0x8f8   : > { %4834 = vmatpush1.bf16.msra.mxu0 %v4833_v52  ;;  %v2982_v52 = vadd.f32 %v6774_v50, %v2617_v42 }
 0x8f9   : > { %4836 = vmatprep.subr.bf16.mxu0 %v4835_v51 }
 0x8fa   : > { %v3016_v51 = vmax.f32 %v2982_v52, 0.0 }
 0x8fc   : > { %4838 = vmatpush1.bf16.msra.mxu0 %v4837_v27 }
 0x8fd   : > { %4840 = vmatprep.subr.bf16.mxu0 %v4839_v3 }
 0x900   : > { %4842 = vmatpush1.bf16.msra.mxu0 %v4841_v17 }
 0x901   : > { %4844 = vmatprep.subr.bf16.mxu0 %v4843_v62 }
 0x904   : > { %4846 = vmatpush1.bf16.msra.mxu0 %v4845_v10 }
 0x905   : > { %4848 = vmatprep.subr.bf16.mxu0 %v4847_v29 }
 0x908   : > { %4850 = vmatpush1.bf16.msra.mxu0 %v4849_v49 }
 0x909   : > { %4852 = vmatprep.subr.bf16.mxu0 %v4851_v25 }
 0x90c   : > { %4854 = vmatpush1.bf16.msra.mxu0 %v4853_v47 }
 0x90d   : > { %4856 = vmatprep.subr.bf16.mxu0 %v4855_v18 }
 0x910   : > { %4858 = vmatpush1.bf16.msra.mxu0 %v4857_v28 }
 0x913   : > { %3618 = vmatmul.mubr.f32.vlgmr.msra.gmra.mrb[24].mxu0 %v2992_v34 }
 0x914   : > { %3623 = vmatprep.mubr.f32.mxu0 %v3001_v40 }
 0x917   : > { %3624 = vmatmul.mubr.f32.gmra.mrb[26].mxu0 %v3000_v58 }
 0x918   : > { %3629 = vmatprep.mubr.f32.mxu0 %v3009_v24 }
 0x91b   : > { %3630 = vmatmul.mubr.f32.gmra.mrb[28].mxu0 %v3008_v5 }
 0x91c   : > { %3635 = vmatprep.mubr.f32.mxu0 %v3017_v13 }
 0x91f   : > { %3636 = vmatmul.mubr.f32.gmra.mrb[30].mxu0 %v3016_v51 }
 0x9e6   : > { %v3619_v39 = vpop.f32.mrb[24].mxu0 }
 0x9e7   : > { %v4859_v33 = vadd.f32 %v3619_v39, %v3279_v4  ;;  %v3621_v43 = vpop.f32.mrb[25].mxu0 }
 0x9e8   : > { %v4860_v50 = vadd.f32 %v3621_v43, %v3283_v0 }
 0x9e9   : > { %v3642_v46 = vadd.f32 %v4859_v33, %v6553_v11 }
 0x9ea   : > { %v3643_v6 = vadd.f32 %v4860_v50, %v6556_v2  ;;  %v3625_v27 = vpop.f32.mrb[26].mxu0 }
 0x9eb   : > { %3650 = vst [vmem:[%s6822_s19] sm:$0xff] %v3642_v46  ;;  %v4861_v31 = vadd.f32 %v3625_v27, %v3279_v4  ;;  %v3627_v32 = vpop.f32.mrb[27].mxu0 }
 0x9ec   : > { %3651 = vst [vmem:[%s6822_s19 + $0x8] sm:$0xff] %v3643_v6  ;;  %v4862_v3 = vadd.f32 %v3627_v32, %v3283_v0 }
 0x9ed   : > { %v3644_v11 = vadd.f32 %v4861_v31, %v6565_v22 }
 0x9ee   : > { %v3645_v2 = vadd.f32 %v4862_v3, %v6568_v12  ;;  %v3631_v8 = vpop.f32.mrb[28].mxu0 }
 0x9ef   : > { %3652 = vst [vmem:[%s6822_s19 + $0x10] sm:$0xff] %v3644_v11  ;;  %v4863_v14 = vadd.f32 %v3631_v8, %v3279_v4  ;;  %v3633_v53 = vpop.f32.mrb[29].mxu0 }
 0x9f0   : > { %3653 = vst [vmem:[%s6822_s19 + $0x18] sm:$0xff] %v3645_v2  ;;  %v4864_v63 = vadd.f32 %v3633_v53, %v3283_v0 }
 0x9f1   : > { %v3646_v17 = vadd.f32 %v4863_v14, %v6577_v54 }
 0x9f2   : > { %v3647_v62 = vadd.f32 %v4864_v63, %v6580_v36  ;;  %v3637_v23 = vpop.f32.mrb[30].mxu0 }
 0x9f3   : > { %3654 = vst [vmem:[%s6822_s19 + $0x20] sm:$0xff] %v3646_v17  ;;  %v4865_v22 = vadd.f32 %v3637_v23, %v3279_v4  ;;  %v3639_v12 = vpop.f32.mrb[31].mxu0 }
 0x9f4   : > { %3655 = vst [vmem:[%s6822_s19 + $0x28] sm:$0xff] %v3647_v62  ;;  %v4866_v21 = vadd.f32 %v3639_v12, %v3283_v0 }
 0x9f5   : > { %v3648_v9 = vadd.f32 %v4865_v22, %v6589_v59 }
 0x9f6   : > { %v3649_v54 = vadd.f32 %v4866_v21, %v6592_v55 }
 0x9f7   : > { %3656 = vst [vmem:[%s6822_s19 + $0x30] sm:$0xff] %v3648_v9 }
 0x9f8   : > { %3657 = vst [vmem:[%s6822_s19 + $0x38] sm:$0xff] %v3649_v54 }
 0x9f9   : > { %5387 = shalt.err (!%p5384_p7)
}
 0x9fa   : > { %s5388_s9 = scalar_lea.hbm %s6843_s16, 1024  ;;  %s5392_s5 = scalar_lea.hbm %s7013_s29, 4096 }
 0x9fb   : > { %p5389_p2 = scmp.ne.s32.totalorder %s6843_s16, %s5388_s9  ;;  %p5393_p13 = scmp.lt.u32.totalorder %s6843_s16, %s7013_s29 }
 0x9fc   : > { %p5394_p1 = scmp.lt.u32.totalorder %s5392_s5, %s5388_s9  ;;  %p5396_p6 = scmp.lt.u32.totalorder %s5388_s9, %s6843_s16 }
 0x9fd   : > { %p5390_p10 = pnand %p5389_p2, %p7014_p3 }
 0x9fe   : > { %p5395_p5 = por %p5394_p1, %p5393_p13 }
 0x9ff   : > { %p5391_p12 = pneg %p5390_p10 }
 0xa00   : > { %p5397_p4 = por %p5396_p6, %p5395_p5 }
 0xa02   : > { %p5398_p8 = pnand %p5397_p4, %p5391_p12 }
 0xa04   : > { %5401 = shalt.err (!%p5398_p8)
}
 0xa05   : > { %s5532_s30 = smov 256   ;;  %s5533_s12 = smov 16  }
 0xa06   : > { %4927 = dma.vmem_to_hbm [thread:$0]  (%p7014_p3), %s6836_s1, 1024, %s6843_s16, %s3659_s7, %s5532_s30, %s5532_s30, %s5533_s12  }
 0xa07 PF: > { %p4972_p0 = scmp.ge.s32.totalorder %s5516_s28, 2  ;;  %s3690_s14 = sand.u32 1, %s5488_s21  }
 0xa08   : > { %p7015_p9 = scmp.ne.s32.totalorder %s6974_s17, 0  ;;  %s3691_s13 = scalar_lea.sflag [#allocation4], %s3690_s14 }
 0xa0a   : > { %p4956_p11 = pnand %p4972_p0, %p7015_p9 }
 0xa0c   : > { %5471 = dma.done.wait (!%p4956_p11), %s3691_s13, 1024  }
 0xa0d   : > { %5473 = vsyncadd (!%p4956_p11), %s3691_s13, 4294966272  ;;  %s37_s28 = sadd.s32 1, %s5516_s28   ;;  %s7016_s18 = sld [smem:[#allocation25_spill]] }
 0xa0e   : > { %p34_p7 = scmp.ge.s32.totalorder %s37_s28, 6   ;;  %s7017_s19 = smov %s5484_s20 }
 0xa0f   : > { %s7018_s20 = smov %s5935_s8  ;;  %s7019_s21 = smov %s5492_s22 }
 0xa10   : > { %s7020_s22 = smov %s5496_s23  ;;  %s7021_s23 = smov %s5879_s10 }
 0xa11   : > { %s7022_s24 = smov %s5508_s26  ;;  %s7023_s25 = smov %s5512_s27 }
 0xa12   : > { %s7024_s26 = smov %s7027_s15  ;;  %s7025_s27 = smov %s7031_s2 }
 0xa13   :  { %36 = sbr.rel (!%p34_p7) target bundleno = 31 (0x1f), region = 162 }
 0xa1a   :  { %3696 = vsyncpa [#allocation3], 1 }
 0xa1b   :  { %3698 = vsyncpa [#allocation3 + $0x1], 1 }
 0xa1c   :  { %3699 = vsyncpa [#allocation6], 1 }
 0xa1d   :  { %3701 = vsyncpa [#allocation6 + $0x1], 1 }
 0xa1e   :  { %3702 = vsyncpa [#allocation9], 1 }
 0xa1f   :  { %3703 = vsyncpa [#allocation12], 1 }
 0xa20   :  { %3704 = vsyncpa [#allocation15], 1 }
 0xa21   :  { %3705 = vsyncpa [#allocation4], 1 }
 0xa22   :  { %3707 = vsyncpa [#allocation4 + $0x1], 1 }

</bundles_post_ra>
